<compile_context>
chip_gen: v7x
topology: tpu7x:2x2x1
jax: 0.10.0
libtpu: 0.0.40
codegen_flags: <defaults>
</compile_context>

<pallas_src>
import functools
import math

import jax
import jax.numpy as jnp
from jax.experimental import pallas as pl
from jax.experimental.pallas import tpu as pltpu

N_HEAD = 2
EPS = 1e-5                      # torch nn.GroupNorm default
_HIGHEST = jax.lax.Precision.HIGHEST


def self_attention_2d_kernel(x_ref, gamma_ref, beta_ref, wqkv_ref, bqkv_ref,
                             wout_ref, bout_ref, o_ref, *, n_head, kt):
    # Block layout: [B, C, S] -- channels on sublanes, spatial (S = H*W) on
    # lanes, so every vreg / output store is lane-dense (S >= 128 typically).
    nb, c, s = x_ref.shape
    d = c // n_head
    bh = nb * n_head
    num_kt = s // kt            # wrapper guarantees kt divides s

    gamma = gamma_ref[...]      # [C, 1]
    beta = beta_ref[...]        # [C, 1]
    wqkv = wqkv_ref[...]        # [3C, C]  (q/k rows pre-scaled by d**-0.25)
    bqkv = bqkv_ref[...]        # [3C, 1]
    wout = wout_ref[...]        # [C, C]
    bout = bout_ref[...]        # [C, 1]

    x = x_ref[...].astype(jnp.float32)                           # [B, C, S]

    # --- GroupNorm(num_groups=1): per-sample one-pass stats over C*S.
    inv_cnt = 1.0 / (c * s)
    mean = jnp.sum(x, axis=(1, 2), keepdims=True) * inv_cnt       # [B,1,1]
    var = jnp.sum(x * x, axis=(1, 2), keepdims=True) * inv_cnt - mean * mean
    inv_std = jax.lax.rsqrt(var + EPS)                            # [B,1,1]
    g = gamma[None, :, :] * inv_std                               # [B,C,1]
    xn = x * g + (beta[None, :, :] - mean * g)                    # [B,C,S]

    # --- qkv 1x1 conv: batched [3C,C] @ [B,C,S] on the MXU.
    qkv = jnp.einsum('oc,bcs->bos', wqkv, xn, precision=_HIGHEST,
                     preferred_element_type=jnp.float32) + bqkv[None, :, :]
    # Channel layout matches torch's view([n, 3*n_head, d, h*w]).
    qkv = qkv.reshape(nb, 3, n_head, d, s)
    q = qkv[:, 0].reshape(bh, d, s)                               # [BH,d,S]
    k = qkv[:, 1].reshape(bh, d, s)
    v = qkv[:, 2].reshape(bh, d, s)

    # Fused softmax denominator: append a row of ones to v so a single MXU op
    # produces both p @ v and sum_j p (last row of acc).  Hoisted out of loop.
    v_aug = jnp.concatenate([v, jnp.ones((bh, 1, s), jnp.float32)], axis=1)

    def scores(t):                                                # [BH,kt,S]
        k_t = k[:, :, t * kt:(t + 1) * kt]
        return jnp.einsum('gej,gei->gji', k_t, q, precision=_HIGHEST,
                          preferred_element_type=jnp.float32)

    def pv(t, p):                                                 # [BH,d+1,S]
        v_t = v_aug[:, :, t * kt:(t + 1) * kt]
        return jnp.einsum('gej,gji->gei', v_t, p, precision=_HIGHEST,
                          preferred_element_type=jnp.float32)

    # --- key-tiled online softmax; first tile specialised (no correction).
    att = scores(0)
    m = jnp.max(att, axis=1, keepdims=True)                       # [BH,1,S]
    p = jnp.exp(att - m)
    acc = pv(0, p)                                                # [BH,d+1,S]
    for t in range(1, num_kt):
        att = scores(t)
        m_new = jnp.maximum(m, jnp.max(att, axis=1, keepdims=True))
        alpha = jnp.exp(m - m_new)                                # [BH,1,S]
        p = jnp.exp(att - m_new)
        acc = acc * alpha + pv(t, p)      # fused denom row corrected too
        m = m_new

    # Normalize (exact reciprocal; denom >= 1 so this is safe), merge heads.
    y = (acc[:, :d, :] * (1.0 / acc[:, d:, :])).reshape(nb, c, s)

    # --- out 1x1 conv + residual.  Dropout2d is identity in eval mode.
    out = jnp.einsum('oc,bcs->bos', wout, y, precision=_HIGHEST,
                     preferred_element_type=jnp.float32) + bout[None, :, :]
    o_ref[...] = (x + out).astype(o_ref.dtype)


def _choose_samples_per_block(n, c, s, itemsize, target_bytes=2 << 20,
                              max_nb=16):
    """Largest divisor of n keeping (a) the block under ~2 MiB and (b) the
    grid at >= 2 steps when n >= 2 (v7x shards 'parallel' grid axes across
    its 2 TensorCores; a 1-step grid would idle one of them)."""
    cap = min(max_nb, max(1, n // 2)) if n >= 2 else 1
    per_sample = max(1, c * s * itemsize)
    best = 1
    for nb in range(1, n + 1):
        if n % nb:
            continue
        if nb > cap or nb * per_sample > target_bytes:
            break
        best = nb
    return best


def _choose_key_tile(s, cap=256):
    """Key-tile size: full S when small; else a 128-aligned divisor of S
    (floor of 8 sublanes), falling back to no tiling for awkward S."""
    if s <= cap:
        return s
    for kt in range(cap - cap % 128, 127, -128):
        if s % kt == 0:
            return kt
    for kt in range(min(cap, s), 7, -1):
        if s % kt == 0 and kt % 8 == 0:
            return kt
    return s


def self_attention_2d(x_nchw, params, *, n_head=N_HEAD, samples_per_block=None,
                      key_tile_cap=256):
    n, c, h, w = x_nchw.shape
    assert c % n_head == 0
    s = h * w
    d = c // n_head
    itemsize = jnp.dtype(x_nchw.dtype).itemsize

    # NCHW -> [N, C, S] is a pure reshape (no transpose): spatial on lanes.
    x = x_nchw.reshape(n, c, s)

    # Fold the d**-0.25 q/k scale into the qkv weight & bias (constant xform).
    scale = d ** (-0.25)
    row_scale = jnp.concatenate(
        [jnp.full((2 * c,), scale, jnp.float32), jnp.ones((c,), jnp.float32)])
    wqkv = params["wqkv"].astype(jnp.float32) * row_scale[:, None]      # [3C,C]
    bqkv = (params["bqkv"].astype(jnp.float32) * row_scale).reshape(3 * c, 1)
    wout = params["wout"].astype(jnp.float32)                           # [C,C]
    bout = params["bout"].astype(jnp.float32).reshape(c, 1)
    gamma = params["gamma"].astype(jnp.float32).reshape(c, 1)
    beta = params["beta"].astype(jnp.float32).reshape(c, 1)

    nb = samples_per_block
    if nb is None:
        nb = _choose_samples_per_block(n, c, s, itemsize)
    assert n % nb == 0, "samples_per_block must divide the batch size"
    kt = _choose_key_tile(s, key_tile_cap)
    assert s % kt == 0

    kernel = functools.partial(self_attention_2d_kernel, n_head=n_head, kt=kt)

    weight_bytes = 4 * (3 * c * c + c * c + 3 * c + 3 * c)
    flops = n * (2 * s * c * (3 * c)          # qkv proj
                 + 2 * s * s * c              # q.k scores
                 + 2 * s * s * (c + n_head)   # p @ [v; 1]  (fused denom)
                 + 2 * s * c * c)             # out proj
    transc = n * n_head * s * s               # exp
    bytes_acc = 2 * n * c * s * itemsize + weight_bytes

    # VMEM: double-buffered in/out blocks + weights + live f32 intermediates
    # (x/xn/qkv, v_aug/acc, att/p tile) with ~3x headroom for compiler spill
    # scratch (review item targeting v7x's 64 MiB VMEM / 32 MiB scoped default).
    interm_bytes = 4 * (5 * nb * c * s
                        + 2 * nb * (c + n_head) * s
                        + 2 * nb * n_head * kt * s)
    vmem_est = 4 * nb * c * s * itemsize + 2 * weight_bytes + 3 * interm_bytes
    vmem_limit = int(min(max(2 * vmem_est, 32 * 1024 * 1024), 64 * 1024 * 1024))

    out = pl.pallas_call(
        kernel,
        out_shape=jax.ShapeDtypeStruct((n, c, s), x_nchw.dtype),
        grid_spec=pltpu.PrefetchScalarGridSpec(
            num_scalar_prefetch=0,
            grid=(n // nb,),
            in_specs=[
                pl.BlockSpec((nb, c, s), lambda i: (i, 0, 0)),     # x
                pl.BlockSpec((c, 1), lambda i: (0, 0)),            # gamma
                pl.BlockSpec((c, 1), lambda i: (0, 0)),            # beta
                pl.BlockSpec((3 * c, c), lambda i: (0, 0)),        # wqkv
                pl.BlockSpec((3 * c, 1), lambda i: (0, 0)),        # bqkv
                pl.BlockSpec((c, c), lambda i: (0, 0)),            # wout
                pl.BlockSpec((c, 1), lambda i: (0, 0)),            # bout
            ],
            out_specs=pl.BlockSpec((nb, c, s), lambda i: (i, 0, 0)),
        ),
        compiler_params=pltpu.CompilerParams(
            dimension_semantics=("parallel",),
            vmem_limit_bytes=vmem_limit),
        cost_estimate=pl.CostEstimate(
            flops=int(flops), transcendentals=int(transc),
            bytes_accessed=int(bytes_acc)),
    )(x, gamma, beta, wqkv, bqkv, wout, bout)

    return out.reshape(n, c, h, w)


def reference(x, params, n_head):
    """Pure-JAX mirror of the PyTorch forward (eval mode), NCHW, full f32."""
    n, c, h, w = x.shape
    xf = x.astype(jnp.float32)
    mean = xf.mean(axis=(1, 2, 3), keepdims=True)
    var = ((xf - mean) ** 2).mean(axis=(1, 2, 3), keepdims=True)
    xn = (xf - mean) / jnp.sqrt(var + EPS)
    xn = xn * params["gamma"][None, :, None, None] + params["beta"][None, :, None, None]
    qkv = jnp.einsum("oc,nchw->nohw", params["wqkv"], xn, precision=_HIGHEST)
    qkv = qkv + params["bqkv"][None, :, None, None]
    d = c // n_head
    qkv = qkv.reshape(n, 3 * n_head, d, h * w).transpose(0, 1, 3, 2)
    q, k, v = jnp.split(qkv, 3, axis=1)
    scale = d ** (-0.25)
    logits = jnp.einsum("nhqd,nhkd->nhqk", q * scale, k * scale,
                        precision=_HIGHEST)
    att = jax.nn.softmax(logits, axis=-1)
    y = jnp.einsum("nhqk,nhkd->nhqd", att, v, precision=_HIGHEST)
    y = y.transpose(0, 1, 3, 2).reshape(n, c, h, w)
    out = jnp.einsum("oc,nchw->nohw", params["wout"], y, precision=_HIGHEST)
    out = out + params["bout"][None, :, None, None]
    return xf + out


if __name__ == "__main__":
    key = jax.random.PRNGKey(0)
    kx, kp, kx2, kx3 = jax.random.split(key, 4)

    def make_params(k, c):
        ks = jax.random.split(k, 6)
        return dict(
            gamma=1.0 + 0.1 * jax.random.normal(ks[0], (c,), jnp.float32),
            beta=0.1 * jax.random.normal(ks[1], (c,), jnp.float32),
            wqkv=jax.random.normal(ks[2], (3 * c, c), jnp.float32) / math.sqrt(c),
            bqkv=0.1 * jax.random.normal(ks[3], (3 * c,), jnp.float32),
            wout=jax.random.normal(ks[4], (c, c), jnp.float32) / math.sqrt(c),
            bout=0.1 * jax.random.normal(ks[5], (c,), jnp.float32),
        )

    def check(out, ref, label, tol=2e-2):
        # With full-f32 (HIGHEST) matmuls the kernel/reference gap is ~1e-5;
        # the loose bound only leaves headroom for backends that execute MXU
        # matmuls at bf16 input precision.
        if not jnp.allclose(out, ref, atol=tol, rtol=tol):
            raise AssertionError(
                f"mismatch ({label}): max abs err "
                f"{float(jnp.max(jnp.abs(out - ref)))}")

    n, c, h, w = 2, 8, 16, 16          # n_head=2 -> d=4, S=256 (lane-dense)
    params = make_params(kp, c)

    # Case 1: S=256, single key tile, one sample per step -> grid=(2,).
    x = jax.random.normal(kx, (n, c, h, w), jnp.float32)
    out = self_attention_2d(x, params, n_head=N_HEAD)
    jax.block_until_ready(out)
    assert out.shape == x.shape
    check(out, reference(x, params, N_HEAD), "single key-tile path")

    # Case 2: 32x32 -> S=1024, key tile 256 -> exercises the online-softmax
    # correction loop over 4 key tiles; grid=(2,).
    x2 = jax.random.normal(kx2, (2, c, 32, 32), jnp.float32)
    out2 = self_attention_2d(x2, params, n_head=N_HEAD, samples_per_block=1)
    jax.block_until_ready(out2)
    check(out2, reference(x2, params, N_HEAD), "key-tiled flash path")

    # Case 3: batched samples per block (nb=2, grid=(2,)) -> exercises the
    # batched (no per-sample unroll) formulation with B > 1.
    x3 = jax.random.normal(kx3, (4, c, h, w), jnp.float32)
    out3 = self_attention_2d(x3, params, n_head=N_HEAD, samples_per_block=2)
    jax.block_until_ready(out3)
    check(out3, reference(x3, params, N_HEAD), "batched-samples path")

    print("KERNEL_OK")
</pallas_src>

<mosaic_0001>
module attributes {stable_mosaic.version = 11 : i64} {
  func.func @self_attention_2d_kernel(%arg0: i32, %arg1: memref<1x8x256xf32, #tpu.memory_space<vmem>>, %arg2: memref<8x1xf32, #tpu.memory_space<vmem>>, %arg3: memref<8x1xf32, #tpu.memory_space<vmem>>, %arg4: memref<24x8xf32, #tpu.memory_space<vmem>>, %arg5: memref<24x1xf32, #tpu.memory_space<vmem>>, %arg6: memref<8x8xf32, #tpu.memory_space<vmem>>, %arg7: memref<8x1xf32, #tpu.memory_space<vmem>>, %arg8: memref<1x8x256xf32, #tpu.memory_space<vmem>>) attributes {dimension_semantics = [#tpu.dimension_semantics<parallel>], iteration_bounds = array<i64: 2>, scalar_prefetch = 0 : i64, scratch_operands = 0 : i64, tpu.core_type = #tpu.core_type<tc>, window_params = [{transform_indices = @transform_0, window_bounds = array<i64: 1, 8, 256>}, {pipeline_mode = #tpu.pipeline_mode<synchronous>, transform_indices = @transform_1, window_bounds = array<i64: 8, 1>}, {pipeline_mode = #tpu.pipeline_mode<synchronous>, transform_indices = @transform_2, window_bounds = array<i64: 8, 1>}, {pipeline_mode = #tpu.pipeline_mode<synchronous>, transform_indices = @transform_3, window_bounds = array<i64: 24, 8>}, {pipeline_mode = #tpu.pipeline_mode<synchronous>, transform_indices = @transform_4, window_bounds = array<i64: 24, 1>}, {pipeline_mode = #tpu.pipeline_mode<synchronous>, transform_indices = @transform_5, window_bounds = array<i64: 8, 8>}, {pipeline_mode = #tpu.pipeline_mode<synchronous>, transform_indices = @transform_6, window_bounds = array<i64: 8, 1>}, {transform_indices = @transform_7, window_bounds = array<i64: 1, 8, 256>}]} {
    %c0 = arith.constant 0 : index
    %c0_0 = arith.constant 0 : index
    %0 = vector.load %arg2[%c0, %c0_0] : memref<8x1xf32, #tpu.memory_space<vmem>>, vector<8x1xf32>
    %c0_1 = arith.constant 0 : index
    %c0_2 = arith.constant 0 : index
    %1 = vector.load %arg3[%c0_1, %c0_2] : memref<8x1xf32, #tpu.memory_space<vmem>>, vector<8x1xf32>
    %c0_3 = arith.constant 0 : index
    %c0_4 = arith.constant 0 : index
    %2 = vector.load %arg4[%c0_3, %c0_4] : memref<24x8xf32, #tpu.memory_space<vmem>>, vector<24x8xf32>
    %c0_5 = arith.constant 0 : index
    %c0_6 = arith.constant 0 : index
    %3 = vector.load %arg5[%c0_5, %c0_6] : memref<24x1xf32, #tpu.memory_space<vmem>>, vector<24x1xf32>
    %c0_7 = arith.constant 0 : index
    %c0_8 = arith.constant 0 : index
    %4 = vector.load %arg6[%c0_7, %c0_8] : memref<8x8xf32, #tpu.memory_space<vmem>>, vector<8x8xf32>
    %c0_9 = arith.constant 0 : index
    %c0_10 = arith.constant 0 : index
    %5 = vector.load %arg7[%c0_9, %c0_10] : memref<8x1xf32, #tpu.memory_space<vmem>>, vector<8x1xf32>
    %c0_11 = arith.constant 0 : index
    %c0_12 = arith.constant 0 : index
    %c0_13 = arith.constant 0 : index
    %6 = vector.load %arg1[%c0_11, %c0_12, %c0_13] : memref<1x8x256xf32, #tpu.memory_space<vmem>>, vector<1x8x256xf32>
    %cst = arith.constant dense<0.000000e+00> : vector<1xf32>
    %7 = vector.multi_reduction <add>, %6, %cst [1, 2] : vector<1x8x256xf32> to vector<1xf32>
    %8 = vector.shape_cast %7 : vector<1xf32> to vector<1x1x1xf32>
    %cst_14 = arith.constant 4.8828125E-4 : f32
    %9 = vector.broadcast %cst_14 : f32 to vector<1x1x1xf32>
    %10 = arith.mulf %8, %9 : vector<1x1x1xf32>
    %11 = arith.mulf %6, %6 : vector<1x8x256xf32>
    %cst_15 = arith.constant dense<0.000000e+00> : vector<1xf32>
    %12 = vector.multi_reduction <add>, %11, %cst_15 [1, 2] : vector<1x8x256xf32> to vector<1xf32>
    %13 = vector.shape_cast %12 : vector<1xf32> to vector<1x1x1xf32>
    %cst_16 = arith.constant 4.8828125E-4 : f32
    %14 = vector.broadcast %cst_16 : f32 to vector<1x1x1xf32>
    %15 = arith.mulf %13, %14 : vector<1x1x1xf32>
    %16 = arith.mulf %10, %10 : vector<1x1x1xf32>
    %17 = arith.subf %15, %16 : vector<1x1x1xf32>
    %cst_17 = arith.constant 9.99999974E-6 : f32
    %18 = vector.broadcast %cst_17 : f32 to vector<1x1x1xf32>
    %19 = arith.addf %17, %18 : vector<1x1x1xf32>
    %20 = math.rsqrt %19 : vector<1x1x1xf32>
    %21 = vector.shape_cast %0 : vector<8x1xf32> to vector<1x8x1xf32>
    %22 = vector.broadcast %20 : vector<1x1x1xf32> to vector<1x8x1xf32>
    %23 = arith.mulf %21, %22 : vector<1x8x1xf32>
    %24 = vector.broadcast %23 : vector<1x8x1xf32> to vector<1x8x256xf32>
    %25 = arith.mulf %6, %24 : vector<1x8x256xf32>
    %26 = vector.shape_cast %1 : vector<8x1xf32> to vector<1x8x1xf32>
    %27 = vector.broadcast %10 : vector<1x1x1xf32> to vector<1x8x1xf32>
    %28 = arith.mulf %27, %23 : vector<1x8x1xf32>
    %29 = arith.subf %26, %28 : vector<1x8x1xf32>
    %30 = vector.broadcast %29 : vector<1x8x1xf32> to vector<1x8x256xf32>
    %31 = arith.addf %25, %30 : vector<1x8x256xf32>
    "tpu.trace_start"() <{level = 10 : i32, message = "oc,bcs->bos"}> : () -> ()
    %cst_18 = arith.constant dense<0.000000e+00> : vector<1x256x24xf32>
    %32 = tpu.matmul %31, %2, %cst_18 {dimension_numbers = #tpu.dot_dimension_numbers<[1], [1], [0, 2], [0], [0, 0, 0, 2, 1, 0], [], []>, precision = #tpu.contract_precision<fp32>} : vector<1x8x256xf32>, vector<24x8xf32>, vector<1x256x24xf32> -> vector<1x256x24xf32>
    %33 = tpu.transpose %32, [0, 2, 1] : vector<1x256x24xf32> -> vector<1x24x256xf32>
    "tpu.trace_stop"() : () -> ()
    %34 = vector.shape_cast %3 : vector<24x1xf32> to vector<1x24x1xf32>
    %35 = vector.broadcast %34 : vector<1x24x1xf32> to vector<1x24x256xf32>
    %36 = arith.addf %33, %35 : vector<1x24x256xf32>
    %37 = vector.shape_cast %36 : vector<1x24x256xf32> to vector<1x3x2x4x256xf32>
    %38 = vector.extract_strided_slice %37 {offsets = [0, 0, 0, 0, 0], sizes = [1, 1, 2, 4, 256], strides = [1, 1, 1, 1, 1]} : vector<1x3x2x4x256xf32> to vector<1x1x2x4x256xf32>
    %39 = vector.shape_cast %38 : vector<1x1x2x4x256xf32> to vector<1x2x4x256xf32>
    %40 = vector.shape_cast %39 : vector<1x2x4x256xf32> to vector<2x4x256xf32>
    %41 = vector.extract_strided_slice %37 {offsets = [0, 1, 0, 0, 0], sizes = [1, 1, 2, 4, 256], strides = [1, 1, 1, 1, 1]} : vector<1x3x2x4x256xf32> to vector<1x1x2x4x256xf32>
    %42 = vector.shape_cast %41 : vector<1x1x2x4x256xf32> to vector<1x2x4x256xf32>
    %43 = vector.shape_cast %42 : vector<1x2x4x256xf32> to vector<2x4x256xf32>
    %44 = vector.extract_strided_slice %37 {offsets = [0, 2, 0, 0, 0], sizes = [1, 1, 2, 4, 256], strides = [1, 1, 1, 1, 1]} : vector<1x3x2x4x256xf32> to vector<1x1x2x4x256xf32>
    %45 = vector.shape_cast %44 : vector<1x1x2x4x256xf32> to vector<1x2x4x256xf32>
    %46 = vector.shape_cast %45 : vector<1x2x4x256xf32> to vector<2x4x256xf32>
    %cst_19 = arith.constant 1.000000e+00 : f32
    %47 = vector.broadcast %cst_19 : f32 to vector<2x1x256xf32>
    %48 = tpu.concatenate %46, %47 in 1 : vector<2x4x256xf32>, vector<2x1x256xf32> -> vector<2x5x256xf32>
    "tpu.trace_start"() <{level = 10 : i32, message = "gej,gei->gji"}> : () -> ()
    %cst_20 = arith.constant dense<0.000000e+00> : vector<2x256x256xf32>
    %49 = tpu.matmul %43, %40, %cst_20 {dimension_numbers = #tpu.dot_dimension_numbers<[1], [1], [2], [2], [0, 0, 0, 2, 1, 2], [0], [0]>, precision = #tpu.contract_precision<fp32>} : vector<2x4x256xf32>, vector<2x4x256xf32>, vector<2x256x256xf32> -> vector<2x256x256xf32>
    "tpu.trace_stop"() : () -> ()
    %cst_21 = arith.constant dense<0xFF800000> : vector<2x256xf32>
    %50 = vector.multi_reduction <maximumf>, %49, %cst_21 [1] : vector<2x256x256xf32> to vector<2x256xf32>
    %51 = vector.shape_cast %50 : vector<2x256xf32> to vector<2x1x256xf32>
    %52 = vector.broadcast %51 : vector<2x1x256xf32> to vector<2x256x256xf32>
    %53 = arith.subf %49, %52 : vector<2x256x256xf32>
    %54 = math.exp %53 : vector<2x256x256xf32>
    "tpu.trace_start"() <{level = 10 : i32, message = "gej,gji->gei"}> : () -> ()
    %cst_22 = arith.constant dense<0.000000e+00> : vector<2x5x256xf32>
    %55 = tpu.matmul %48, %54, %cst_22 {dimension_numbers = #tpu.dot_dimension_numbers<[2], [1], [1], [2], [0, 0, 0, 1, 1, 2], [0], [0]>, precision = #tpu.contract_precision<fp32>} : vector<2x5x256xf32>, vector<2x256x256xf32>, vector<2x5x256xf32> -> vector<2x5x256xf32>
    "tpu.trace_stop"() : () -> ()
    %56 = vector.extract_strided_slice %55 {offsets = [0, 0, 0], sizes = [2, 4, 256], strides = [1, 1, 1]} : vector<2x5x256xf32> to vector<2x4x256xf32>
    %57 = vector.extract_strided_slice %55 {offsets = [0, 4, 0], sizes = [2, 1, 256], strides = [1, 1, 1]} : vector<2x5x256xf32> to vector<2x1x256xf32>
    %cst_23 = arith.constant 1.000000e+00 : f32
    %58 = vector.broadcast %cst_23 : f32 to vector<2x1x256xf32>
    %59 = arith.divf %58, %57 : vector<2x1x256xf32>
    %60 = vector.broadcast %59 : vector<2x1x256xf32> to vector<2x4x256xf32>
    %61 = arith.mulf %56, %60 : vector<2x4x256xf32>
    %62 = vector.shape_cast %61 : vector<2x4x256xf32> to vector<1x8x256xf32>
    "tpu.trace_start"() <{level = 10 : i32, message = "oc,bcs->bos"}> : () -> ()
    %cst_24 = arith.constant dense<0.000000e+00> : vector<1x256x8xf32>
    %63 = tpu.matmul %62, %4, %cst_24 {dimension_numbers = #tpu.dot_dimension_numbers<[1], [1], [0, 2], [0], [0, 0, 0, 2, 1, 0], [], []>, precision = #tpu.contract_precision<fp32>} : vector<1x8x256xf32>, vector<8x8xf32>, vector<1x256x8xf32> -> vector<1x256x8xf32>
    %64 = tpu.transpose %63, [0, 2, 1] : vector<1x256x8xf32> -> vector<1x8x256xf32>
    "tpu.trace_stop"() : () -> ()
    %65 = vector.shape_cast %5 : vector<8x1xf32> to vector<1x8x1xf32>
    %66 = vector.broadcast %65 : vector<1x8x1xf32> to vector<1x8x256xf32>
    %67 = arith.addf %64, %66 : vector<1x8x256xf32>
    %68 = arith.addf %6, %67 : vector<1x8x256xf32>
    %c0_25 = arith.constant 0 : index
    %c0_26 = arith.constant 0 : index
    %c0_27 = arith.constant 0 : index
    %69 = vector.load %arg8[%c0_25, %c0_26, %c0_27] : memref<1x8x256xf32, #tpu.memory_space<vmem>>, vector<1x8x256xf32>
    tpu.vector_store %arg8[%c0_25, %c0_26, %c0_27], %68 {strides = array<i32>} : memref<1x8x256xf32, #tpu.memory_space<vmem>>, vector<1x8x256xf32>,
    return
  }
  func.func @transform_0(%arg0: i32) -> (i32, i32, i32) {
    %c0_i32 = arith.constant 0 : i32
    %c0_i32_0 = arith.constant 0 : i32
    %c0_i32_1 = arith.constant 0 : i32
    return %arg0, %c0_i32, %c0_i32_0 : i32, i32, i32
  }
  func.func @transform_1(%arg0: i32) -> (i32, i32) {
    %c0_i32 = arith.constant 0 : i32
    %c0_i32_0 = arith.constant 0 : i32
    %c0_i32_1 = arith.constant 0 : i32
    return %c0_i32, %c0_i32_0 : i32, i32
  }
  func.func @transform_2(%arg0: i32) -> (i32, i32) {
    %c0_i32 = arith.constant 0 : i32
    %c0_i32_0 = arith.constant 0 : i32
    %c0_i32_1 = arith.constant 0 : i32
    return %c0_i32, %c0_i32_0 : i32, i32
  }
  func.func @transform_3(%arg0: i32) -> (i32, i32) {
    %c0_i32 = arith.constant 0 : i32
    %c0_i32_0 = arith.constant 0 : i32
    %c0_i32_1 = arith.constant 0 : i32
    return %c0_i32, %c0_i32_0 : i32, i32
  }
  func.func @transform_4(%arg0: i32) -> (i32, i32) {
    %c0_i32 = arith.constant 0 : i32
    %c0_i32_0 = arith.constant 0 : i32
    %c0_i32_1 = arith.constant 0 : i32
    return %c0_i32, %c0_i32_0 : i32, i32
  }
  func.func @transform_5(%arg0: i32) -> (i32, i32) {
    %c0_i32 = arith.constant 0 : i32
    %c0_i32_0 = arith.constant 0 : i32
    %c0_i32_1 = arith.constant 0 : i32
    return %c0_i32, %c0_i32_0 : i32, i32
  }
  func.func @transform_6(%arg0: i32) -> (i32, i32) {
    %c0_i32 = arith.constant 0 : i32
    %c0_i32_0 = arith.constant 0 : i32
    %c0_i32_1 = arith.constant 0 : i32
    return %c0_i32, %c0_i32_0 : i32, i32
  }
  func.func @transform_7(%arg0: i32) -> (i32, i32, i32) {
    %c0_i32 = arith.constant 0 : i32
    %c0_i32_0 = arith.constant 0 : i32
    %c0_i32_1 = arith.constant 0 : i32
    return %arg0, %c0_i32, %c0_i32_0 : i32, i32, i32
  }
}

</mosaic_0001>

<bundles_post_ra>
// kernel: tpu_custom_call.1
= control target key start
LH: loop header
LB: loop body
LE: loop exit
PB: predicated region body
PF: predicated region fallthrough
CT: control target
= control target key end

     0   :  { %12 = vsyncpa [#allocation3], 0  ;;  %s21455_s0 = inlined_call_operand.vmem [shape: f32[2,8,256], index: 0, kind: input, shape index: {}]   ;;  %s21456_s1 = inlined_call_operand.vmem [shape: f32[8,1], index: 1, kind: input, shape index: {}]   ;;  %s21457_s2 = inlined_call_operand.vmem [shape: f32[8,1], index: 2, kind: input, shape index: {}]   ;;  %s21458_s3 = inlined_call_operand.vmem [shape: f32[24,8], index: 3, kind: input, shape index: {}]   ;;  %s21459_s4 = inlined_call_operand.vmem [shape: f32[24,1], index: 4, kind: input, shape index: {}]   ;;  %s21460_s5 = inlined_call_operand.vmem [shape: f32[8,8], index: 5, kind: input, shape index: {}]   ;;  %s21461_s6 = inlined_call_operand.vmem [shape: f32[8,1], index: 6, kind: input, shape index: {}]   ;;  %s21462_s7 = inlined_call_operand.hbm [shape: f32[2,8,256], index: 7, kind: output, shape index: {}]  }
   0x1   :  { %14 = vsyncpa [#allocation3 + $0x1], 0  ;;  %s15195_s24 = smov 0   ;;  %s15197_s25 = smov 0  }
   0x2   :  { %s15199_s26 = smov 0   ;;  %s15201_s27 = smov 0  }
   0x3 LB: > { %s15216_s28 = sadd.s32 4294967295, %s15150_s27   ;;  %s11949_s29 = sadd.s32 4294967294, %s15150_s27   ;;  %s15150_s27 = sphi %s15201_s27, %s24221_s27   ;;  %s15146_s26 = sphi %s15199_s26, %s24220_s26   ;;  %s15142_s25 = sphi %s15197_s25, %s24219_s25   ;;  %s15138_s24 = sphi %s15195_s24, %s24218_s24  }
   0x4   : > { %s15220_s30 = sadd.s32 1, %s15150_s27   ;;  %s179_s8 = sadd.s32 1, %s15146_s26 }
   0x5   : > { %s176_s9 = ssub.s32 %s15150_s27, %s15220_s30  ;;  %p189_p0 = scmp.ne.s32.totalorder %s15146_s26, %s15142_s25 }
   0x6   : > { %p177_p1 = scmp.eq.s32.totalorder %s176_s9, 0  ;;  %p190_p2 = scmp.eq.s32.totalorder %s15216_s28, 1 }
   0x7   : > { %p195_p3 = scmp.ne.s32.totalorder %s15142_s25, %s15138_s24  ;;  %p196_p4 = scmp.eq.s32.totalorder %s11949_s29, 1 }
   0x8   : > { %s15231_s10 = scalar_select %p177_p1, %s15146_s26, %s179_s8  }
   0x9   : > { %p15233_p5 = por %p190_p2, %p189_p0  ;;  %p15237_p6 = por %p196_p4, %p195_p3 }
   0xa   : > { %p11952_p7 = scmp.ge.s32.totalorder %s15150_s27, 1  ;;  %p240_p8 = scmp.lt.s32.totalorder %s15150_s27, 3 }
   0xc   : > { %p241_p9 = pnand %p11952_p7, %p240_p8 }
   0xe   : > { %244 = sbr.rel (%p241_p9) target bundleno = 4345 (0x10f9), region = 48 }
  0x15   : > { %p272_p10 = scmp.lt.s32.totalorder %s15216_s28, 1  ;;  %v21463_v6 = vmov 0   ;;  %v277_v26 = vld [vmem:[%s21456_s1] sm:$0xff]  ;;  %vm396_vm0 = vcmask 64512   ;;  %v280_v39 = vld [vmem:[%s21458_s3 + $0x8] sm:$0xff]  ;;  %v281_v45 = vld [vmem:[%s21458_s3 + $0x10] sm:$0xff] }
  0x16   : > { %14818 = vset.pattern.permute.xlu1 %v21463_v6  ;;  %v278_v29 = vld [vmem:[%s21457_s2] sm:$0xff]  ;;  %v497_v41 = vsel %vm396_vm0, %v280_v39, 0  ;;  %v500_v46 = vsel %vm396_vm0, %v281_v45, 0  ;;  %v283_v50 = vld [vmem:[%s21459_s4 + $0x8] sm:$0xff]  ;;  %vm2412_vm1 = vcmask 1043456   ;;  %vm2484_vm2 = vcmask 31744  }
  0x17   : > { %s273_s13 = scalar_select %p272_p10, %s15216_s28, 1  ;;  %v279_v38 = vld [vmem:[%s21458_s3] sm:$0xff]  ;;  %v506_v43 = vand.u32 4294901760, %v497_v41  ;;  %v15275_v47 = vand.u32 4294901760, %v500_v46 }
  0x18   : > { %v494_v40 = vsel %vm396_vm0, %v279_v38, 0  ;;  %s269_s8 = sand.u32 1, %s15142_s25  }
  0x19   : > { %s11969_s14 = sshll.u32 %s273_s13, 4  ;;  %v503_v42 = vand.u32 4294901760, %v494_v40  ;;  %v15281_v49 = vsub.f32 %v497_v41, %v506_v43  ;;  %v15300_v62 = vsub.f32 %v500_v46, %v15275_v47  ;;  %s11953_s9 = sshll.u32 %s269_s8, 4 }
  0x1a   : > { %s15248_s17 = scalar_lea.vmem %s21455_s0, %s11969_s14  ;;  %s271_s13 = scalar_lea.vmem [#allocation2], %s11953_s9 }
  0x1b   : > { %v287_v0 = vld [vmem:[%s15248_s17] sm:$0xff]  ;;  %v288_v1 = vld [vmem:[%s15248_s17 + $0x8] sm:$0xff]  ;;  %v15267_v44 = vpack.c.bf16 %v506_v43, %v503_v42  ;;  %v15279_v48 = vsub.f32 %v494_v40, %v503_v42  ;;  %v21477_v52 = vand.u32 4294901760, %v15281_v49  ;;  %s11970_s14 = sshll.u32 %s15216_s28, 8  ;;  %s11890_s15 = sshll.u32 %s271_s13, 4  ;;  %s21415_s15 = int_to_ptr.vmem [resolvable:$true] %s11890_s15 }
  0x1c   : > { %v289_v2 = vadd.f32 %v288_v1, %v287_v0  ;;  %v299_v3 = vmul.f32 %v287_v0, %v287_v0  ;;  %v300_v4 = vmul.f32 %v288_v1, %v288_v1  ;;  %s21413_s19 = scalar_lea.hbm %s21462_s7, %s11970_s14  ;;  %s11876_s20 = scalar_lea.sflag [#allocation3], %s269_s8 }
  0x1d   : > { %13004 = vmatprep.subr.bf16.mxu0 %v15267_v44  ;;  %v21479_v51 = vand.u32 4294901760, %v15279_v48  ;;  %v901_v54 = vsub.f32 %v15281_v49, %v21477_v52  ;;  %s15088_s21 = scalar_lea.vmem %s21415_s15, 256  ;;  %s15154_s28 = smov [#allocation2]  }
  0x1e   : > { %290 = vadd.xlane.f32.xlu0 %v289_v2  ;;  %v301_v5 = vadd.f32 %v300_v4, %v299_v3  ;;  %13006 = vmatpush3.bf16.xpose.msra.mxu0 %v15267_v44  ;;  %p15089_p11 = scmp.ne.s32.totalorder %s21415_s15, %s15088_s21 }
  0x1f   : > { %12383 = vmatprep.subr.mxu0 %v15275_v47  ;;  %v894_v53 = vsub.f32 %v15279_v48, %v21479_v51  ;;  %v902_v56 = vand.u32 4294901760, %v901_v54 }
  0x20   : > { %p15090_p12 = pnand %p15089_p11, %p15233_p5 }
  0x21   : > { %v895_v55 = vand.u32 4294901760, %v894_v53 }
  0x22   : > { %302 = vadd.xlane.f32.xlu0 %v301_v5  ;;  %v15312_v5 = vand.u32 4294901760, %v15300_v62  ;;  %p15091_p13 = pneg %p15090_p12 }
  0x23   : > { %v13007_v57 = vpack.c.bf16 %v902_v56, %v895_v55 }
  0x24   : > { %22439 = vst [vmem:[#allocation5_spill] sm:$0xff] %v15312_v5 }
  0x26   : > { %12384 = vmatpush3.xpose.msra.mxu0 %v15275_v47 }
  0x27   : > { %13008 = vmatprep.subr.bf16.mxu0 %v13007_v57 }
  0xab   : > { %v291_v7 = vpop.xlane.xlu0 %290 }
  0xac   : > { %v292_v8 = vrot.slane %v291_v7, 4 }
  0xae   : > { %v293_v9 = vadd.f32 %v292_v8, %v291_v7 }
  0xaf   : > { %v303_v10 = vpop.xlane.xlu0 %302 }
  0xb0   : > { %v294_v11 = vrot.slane %v293_v9, 2  ;;  %v304_v12 = vrot.slane %v303_v10, 4 }
  0xb2   : > { %v295_v13 = vadd.f32 %v294_v11, %v293_v9  ;;  %v305_v14 = vadd.f32 %v304_v12, %v303_v10 }
  0xb4   : > { %v296_v15 = vrot.slane %v295_v13, 1  ;;  %v306_v16 = vrot.slane %v305_v14, 2 }
  0xb6   : > { %v297_v17 = vadd.f32 %v296_v15, %v295_v13  ;;  %v307_v18 = vadd.f32 %v306_v16, %v305_v14  ;;  %v908_v15 = vsub.f32 %v15300_v62, %v15312_v5 }
  0xb8   : > { %v308_v19 = vrot.slane %v307_v18, 1  ;;  %v298_v20 = vmul.f32 0.00048828125, %v297_v17 }
  0xba   : > { %v309_v21 = vadd.f32 %v308_v19, %v307_v18  ;;  %v311_v23 = vmul.f32 %v298_v20, %v298_v20 }
  0xbc   : > { %v310_v22 = vmul.f32 0.00048828125, %v309_v21 }
  0xbe   : > { %v312_v24 = vsub.f32 %v310_v22, %v311_v23 }
  0xc0   : > { %v313_v25 = vadd.f32 1e-05, %v312_v24  ;;  %v909_v24 = vand.u32 4294901760, %v908_v15 }
  0xc2   : > { %14820 = vrsqrt.f32 %v313_v25 }
  0xcc   : > { %v14821_v27 = vpop.eup %14820 }
  0xcd   : > { %v315_v28 = vmul.f32 %v14821_v27, %v277_v26 }
  0xcf   : > { %318 = vperm.xlu1 %14818, %v315_v28   ;;  %v323_v30 = vmul.f32 %v315_v28, %v298_v20 }
  0xd1   : > { %v324_v31 = vsub.f32 %v278_v29, %v323_v30 }
  0xd3   : > { %327 = vperm.xlu1 %14818, %v324_v31  }
 0x14e   : > { %v319_v32 = vpop.permute.xlu1 %318 }
 0x14f   : > { %v321_v33 = vmul.f32 %v319_v32, %v287_v0  ;;  %v322_v34 = vmul.f32 %v319_v32, %v288_v1 }
 0x152   : > { %v328_v35 = vpop.permute.xlu1 %327 }
 0x153   : > { %v331_v36 = vadd.f32 %v328_v35, %v322_v34  ;;  %v330_v37 = vadd.f32 %v328_v35, %v321_v33 }
 0x155   : > { %364 = vxpose.xlu1.b32.start.end [1/1] (short) %v331_v36, 128  ;;  %332 = vxpose.xlu0.b32.start.end [1/1] (short) %v330_v37, 128 }
 0x1af   : > { %2378 = vperm.xlu1 %14818, %v283_v50  }
 0x1d5   : > { %v348_v58 = vpop.trf.xlu0  ;;  %v15294_v59 = vpop.trf.xlu1 }
 0x1d6   : > { %v398_v60 = vsel %vm396_vm0, %v348_v58, 0 }
 0x1d7   : > { %v15297_v61 = vand.u32 4294901760, %v398_v60 }
 0x1d9   : > { %v15303_v63 = vsub.f32 %v398_v60, %v15297_v61  ;;  %v349_v0 = vpop.trf.xlu0  ;;  %v15305_v1 = vpop.trf.xlu1 }
 0x1da   : > { %v401_v2 = vsel %vm396_vm0, %v349_v0, 0 }
 0x1db   : > { %v15308_v3 = vand.u32 4294901760, %v401_v2  ;;  %v21476_v4 = vand.u32 4294901760, %v15303_v63 }
 0x1dd   : > { %v15315_v7 = vsub.f32 %v401_v2, %v15308_v3  ;;  %v350_v8 = vpop.trf.xlu0  ;;  %v573_v9 = vsub.f32 %v15303_v63, %v21476_v4  ;;  %v15320_v10 = vpop.trf.xlu1 }
 0x1de   : > { %v404_v11 = vsel %vm396_vm0, %v350_v8, 0  ;;  %v15388_v8 = vpack.c.bf16 %v15281_v49, %v15279_v48 }
 0x1df   : > { %v21475_v12 = vand.u32 4294901760, %v15315_v7  ;;  %v15324_v13 = vand.u32 4294901760, %v404_v11  ;;  %v574_v14 = vand.u32 4294901760, %v573_v9 }
 0x1e1   : > { %v15329_v16 = vsub.f32 %v404_v11, %v15324_v13  ;;  %12385 = vmatprep.mubr.f32.mxu0 %v574_v14  ;;  %v351_v17 = vpop.trf.xlu0  ;;  %v583_v18 = vsub.f32 %v15315_v7, %v21475_v12  ;;  %v15334_v19 = vpop.trf.xlu1 }
 0x1e2   : > { %v407_v20 = vsel %vm396_vm0, %v351_v17, 0 }
 0x1e3   : > { %v15337_v21 = vand.u32 4294901760, %v407_v20  ;;  %v584_v22 = vand.u32 4294901760, %v583_v18  ;;  %v21474_v23 = vand.u32 4294901760, %v15329_v16 }
 0x1e5   : > { %v15341_v25 = vsub.f32 %v407_v20, %v15337_v21  ;;  %12386 = vmatmul.mubr.f32.vlgmr.msra.gmra.mrb[0].mxu0 %v584_v22  ;;  %v352_v26 = vpop.trf.xlu0  ;;  %v593_v27 = vsub.f32 %v15329_v16, %v21474_v23  ;;  %v15346_v28 = vpop.trf.xlu1 }
 0x1e6   : > { %v410_v29 = vsel %vm396_vm0, %v352_v26, 0  ;;  %13010 = vmatpush3.bf16.xpose.msra.mxu0 %v13007_v57 }
 0x1e7   : > { %v21472_v30 = vand.u32 4294901760, %v15341_v25  ;;  %v15350_v31 = vand.u32 4294901760, %v410_v29  ;;  %v594_v32 = vand.u32 4294901760, %v593_v27  ;;  %12437 = vmatprep.subr.mxu0 %v909_v24 }
 0x1e9   : > { %v15353_v33 = vsub.f32 %v410_v29, %v15350_v31  ;;  %12388 = vmatprep.mubr.f32.mxu0 %v594_v32  ;;  %v353_v34 = vpop.trf.xlu0  ;;  %v603_v35 = vsub.f32 %v15341_v25, %v21472_v30  ;;  %v15362_v40 = vpop.trf.xlu1 }
 0x1ea   : > { %v413_v36 = vsel %vm396_vm0, %v353_v34, 0 }
 0x1eb   : > { %v21471_v37 = vand.u32 4294901760, %v15353_v33  ;;  %v15360_v38 = vand.u32 4294901760, %v413_v36  ;;  %v604_v39 = vand.u32 4294901760, %v603_v35 }
 0x1ed   : > { %v15365_v41 = vsub.f32 %v413_v36, %v15360_v38  ;;  %12389 = vmatmul.mubr.f32.gmra.mrb[2].mxu0 %v604_v39  ;;  %v354_v42 = vpop.trf.xlu0  ;;  %v613_v43 = vsub.f32 %v15353_v33, %v21471_v37  ;;  %v15380_v57 = vpop.trf.xlu1 }
 0x1ee   : > { %v416_v45 = vsel %vm396_vm0, %v354_v42, 0  ;;  %12438 = vmatpush3.xpose.msra.mxu0 %v909_v24 }
 0x1ef   : > { %v21470_v46 = vand.u32 4294901760, %v15365_v41  ;;  %v15372_v50 = vand.u32 4294901760, %v416_v45  ;;  %v614_v53 = vand.u32 4294901760, %v613_v43  ;;  %13012 = vmatprep.subr.bf16.mxu0 %v15388_v8 }
 0x1f1   : > { %v15375_v54 = vsub.f32 %v416_v45, %v15372_v50  ;;  %12391 = vmatprep.mubr.f32.mxu0 %v614_v53  ;;  %v355_v55 = vpop.trf.xlu0  ;;  %v623_v56 = vsub.f32 %v15365_v41, %v21470_v46  ;;  %v15401_v22 = vpop.trf.xlu1 }
 0x1f2   : > { %v419_v58 = vsel %vm396_vm0, %v355_v55, 0 }
 0x1f3   : > { %22440 = vst [vmem:[#allocation6_spill] sm:$0xff] %v15375_v54  ;;  %v21469_v60 = vand.u32 4294901760, %v15375_v54  ;;  %v15384_v0 = vand.u32 4294901760, %v419_v58  ;;  %v624_v2 = vand.u32 4294901760, %v623_v56 }
 0x1f5   : > { %v15391_v9 = vsub.f32 %v419_v58, %v15384_v0  ;;  %12392 = vmatmul.mubr.f32.gmra.mrb[4].mxu0 %v624_v2  ;;  %v356_v11 = vpop.trf.xlu0  ;;  %v633_v14 = vsub.f32 %v15375_v54, %v21469_v60  ;;  %v15419_v43 = vpop.trf.xlu1 }
 0x1f6   : > { %v422_v15 = vsel %vm396_vm0, %v356_v11, 0 }
 0x1f7   : > { %22441 = vst [vmem:[#allocation7_spill] sm:$0xff] %v15391_v9  ;;  %v21467_v17 = vand.u32 4294901760, %v15391_v9  ;;  %v15399_v18 = vand.u32 4294901760, %v422_v15  ;;  %v634_v20 = vand.u32 4294901760, %v633_v14 }
 0x1f9   : > { %v15404_v24 = vsub.f32 %v422_v15, %v15399_v18  ;;  %12394 = vmatprep.mubr.f32.mxu0 %v634_v20  ;;  %v357_v26 = vpop.trf.xlu0  ;;  %v643_v27 = vsub.f32 %v15391_v9, %v21467_v17 }
 0x1fa   : > { %v425_v29 = vsel %vm396_vm0, %v357_v26, 0 }
 0x1fb   : > { %22442 = vst [vmem:[#allocation8_spill] sm:$0xff] %v15404_v24  ;;  %v21466_v32 = vand.u32 4294901760, %v15404_v24  ;;  %v15411_v34 = vand.u32 4294901760, %v425_v29  ;;  %v644_v35 = vand.u32 4294901760, %v643_v27  ;;  %v15435_v27 = vpop.trf.xlu1 }
 0x1fd   : > { %v15414_v36 = vsub.f32 %v425_v29, %v15411_v34  ;;  %12395 = vmatmul.mubr.f32.gmra.mrb[6].mxu0 %v644_v35  ;;  %v358_v39 = vpop.trf.xlu0  ;;  %v653_v42 = vsub.f32 %v15404_v24, %v21466_v32 }
 0x1fe   : > { %v428_v45 = vsel %vm396_vm0, %v358_v39, 0 }
 0x1ff   : > { %22443 = vst [vmem:[#allocation9_spill] sm:$0xff] %v15414_v36  ;;  %v21465_v53 = vand.u32 4294901760, %v15414_v36  ;;  %v15423_v55 = vand.u32 4294901760, %v428_v45  ;;  %v654_v56 = vand.u32 4294901760, %v653_v42 }
 0x201   : > { %v15426_v58 = vsub.f32 %v428_v45, %v15423_v55  ;;  %12397 = vmatprep.mubr.f32.mxu0 %v654_v56  ;;  %v359_v2 = vpop.trf.xlu0  ;;  %v663_v11 = vsub.f32 %v15414_v36, %v21465_v53  ;;  %v449_v53 = vsel %vm396_vm0, %v15305_v1, 0 }
 0x202   : > { %v431_v14 = vsel %vm396_vm0, %v359_v2, 0  ;;  %v15473_v1 = vand.u32 4294901760, %v449_v53 }
 0x203   : > { %22444 = vst [vmem:[#allocation10_spill] sm:$0xff] %v15426_v58  ;;  %v21464_v15 = vand.u32 4294901760, %v15426_v58  ;;  %v15433_v20 = vand.u32 4294901760, %v431_v14  ;;  %v664_v26 = vand.u32 4294901760, %v663_v11  ;;  %v446_v11 = vsel %vm396_vm0, %v15294_v59, 0 }
 0x205   : > { %v15438_v29 = vsub.f32 %v431_v14, %v15433_v20  ;;  %12398 = vmatmul.mubr.f32.gmra.mrb[8].mxu0 %v664_v26  ;;  %v360_v35 = vpop.trf.xlu0  ;;  %v673_v39 = vsub.f32 %v15426_v58, %v21464_v15  ;;  %v15455_v15 = vpop.trf.xlu1 }
 0x206   : > { %v434_v42 = vsel %vm396_vm0, %v360_v35, 0 }
 0x207   : > { %22445 = vst [vmem:[#allocation11_spill] sm:$0xff] %v15438_v29  ;;  %v21468_v45 = vand.u32 4294901760, %v15438_v29  ;;  %v15445_v56 = vand.u32 4294901760, %v434_v42  ;;  %v674_v2 = vand.u32 4294901760, %v673_v39 }
 0x209   : > { %v15450_v6 = vsub.f32 %v434_v42, %v15445_v56  ;;  %12400 = vmatprep.mubr.f32.mxu0 %v674_v2  ;;  %v361_v14 = vpop.trf.xlu0  ;;  %v683_v26 = vsub.f32 %v15438_v29, %v21468_v45  ;;  %v15463_v42 = vand.u32 4294901760, %v446_v11  ;;  %v452_v2 = vsel %vm396_vm0, %v15320_v10, 0 }
 0x20a   : > { %v437_v35 = vsel %vm396_vm0, %v361_v14, 0  ;;  %v15484_v30 = vand.u32 4294901760, %v452_v2 }
 0x20b   : > { %22446 = vst [vmem:[#allocation12_spill] sm:$0xff] %v15450_v6  ;;  %v21473_v39 = vand.u32 4294901760, %v15450_v6  ;;  %v15461_v32 = vand.u32 4294901760, %v437_v35  ;;  %v684_v59 = vand.u32 4294901760, %v683_v26  ;;  %v455_v26 = vsel %vm396_vm0, %v15334_v19, 0 }
 0x20c   : > { %v15497_v12 = vand.u32 4294901760, %v455_v26 }
 0x20d   : > { %v15468_v17 = vsub.f32 %v437_v35, %v15461_v32  ;;  %12401 = vmatmul.mubr.f32.gmra.mrb[10].mxu0 %v684_v59  ;;  %v362_v45 = vpop.trf.xlu0  ;;  %v693_v14 = vsub.f32 %v15450_v6, %v21473_v39  ;;  %v391_v35 = vpop.trf.xlu1  ;;  %v15482_v59 = vsub.f32 %v446_v11, %v15463_v42  ;;  %v458_v39 = vsel %vm396_vm0, %v15346_v28, 0 }
 0x20e   : > { %v440_v60 = vsel %vm396_vm0, %v362_v45, 0  ;;  %v461_v11 = vsel %vm396_vm0, %v15362_v40, 0  ;;  %v464_v28 = vsel %vm396_vm0, %v15380_v57, 0  ;;  %v15511_v51 = vand.u32 4294901760, %v458_v39 }
 0x20f   : > { %22447 = vst [vmem:[#allocation13_spill] sm:$0xff] %v15468_v17  ;;  %v21478_v46 = vand.u32 4294901760, %v15468_v17  ;;  %v15479_v37 = vand.u32 4294901760, %v440_v60  ;;  %v694_v10 = vand.u32 4294901760, %v693_v14  ;;  %22448 = vst [vmem:[#allocation14_spill] sm:$0xff] %v15482_v59  ;;  %v15495_v14 = vsub.f32 %v449_v53, %v15473_v1 }
 0x210   : > { %v15509_v53 = vsub.f32 %v452_v2, %v15484_v30  ;;  %v15525_v2 = vsub.f32 %v455_v26, %v15497_v12  ;;  %v15531_v6 = vsub.f32 %v458_v39, %v15511_v51 }
 0x211   : > { %v15489_v23 = vsub.f32 %v440_v60, %v15479_v37  ;;  %12403 = vmatprep.mubr.f32.mxu0 %v694_v10  ;;  %v363_v45 = vpop.trf.xlu0  ;;  %v703_v19 = vsub.f32 %v15468_v17, %v21478_v46  ;;  %22450 = vst [vmem:[#allocation16_spill] sm:$0xff] %v15495_v14  ;;  %v392_v57 = vpop.trf.xlu1  ;;  %v15520_v17 = vand.u32 4294901760, %v461_v11  ;;  %v467_v46 = vsel %vm396_vm0, %v15401_v22, 0 }
 0x212   : > { %v443_v4 = vsel %vm396_vm0, %v363_v45, 0  ;;  %22451 = vst [vmem:[#allocation17_spill] sm:$0xff] %v15509_v53  ;;  %22454 = vst [vmem:[#allocation20_spill] sm:$0xff] %v15525_v2  ;;  %v22456_v45 = vand.u32 4294901760, %v15482_v59  ;;  %v22466_v36 = vand.u32 4294901760, %v15525_v2 }
 0x213   : > { %22449 = vst [vmem:[#allocation15_spill] sm:$0xff] %v15489_v23  ;;  %v21486_v60 = vand.u32 4294901760, %v15489_v23  ;;  %v15505_v10 = vand.u32 4294901760, %v443_v4  ;;  %v704_v52 = vand.u32 4294901760, %v703_v19  ;;  %v15522_v19 = vand.u32 4294901760, %v464_v28  ;;  %22455 = vst [vmem:[#allocation21_spill] sm:$0xff] %v15531_v6 }
 0x214   : > { %v15543_v26 = vsub.f32 %v461_v11, %v15520_v17 }
 0x215   : > { %v15514_v5 = vsub.f32 %v443_v4, %v15505_v10  ;;  %12404 = vmatmul.mubr.f32.gmra.mrb[12].mxu0 %v704_v52  ;;  %v713_v40 = vsub.f32 %v15489_v23, %v21486_v60  ;;  %22453 = vst [vmem:[#allocation19_spill] sm:$0xff] %v15522_v19  ;;  %v470_v60 = vsel %vm396_vm0, %v15419_v43, 0  ;;  %v733_v23 = vsub.f32 %v15482_v59, %v22456_v45 }
 0x216   : > { %22457 = vst [vmem:[#allocation22_spill] sm:$0xff] %v15543_v26  ;;  %v15546_v39 = vsub.f32 %v464_v28, %v15522_v19  ;;  %v15550_v43 = vand.u32 4294901760, %v470_v60  ;;  %v22461_v45 = vand.u32 4294901760, %v15495_v14  ;;  %v482_v59 = vsel %vm396_vm0, %v392_v57, 0 }
 0x217   : > { %22452 = vst [vmem:[#allocation18_spill] sm:$0xff] %v15514_v5  ;;  %v21495_v4 = vand.u32 4294901760, %v15514_v5  ;;  %v714_v52 = vand.u32 4294901760, %v713_v40  ;;  %v15548_v40 = vand.u32 4294901760, %v467_v46  ;;  %v734_v11 = vand.u32 4294901760, %v733_v23 }
 0x218   : > { %22458 = vst [vmem:[#allocation23_spill] sm:$0xff] %v15546_v39  ;;  %22460 = vst [vmem:[#allocation25_spill] sm:$0xff] %v15550_v43  ;;  %v743_v29 = vsub.f32 %v15495_v14, %v22461_v45  ;;  %v15570_v23 = vsub.f32 %v470_v60, %v15550_v43 }
 0x219   : > { %12406 = vmatprep.mubr.f32.mxu0 %v714_v52  ;;  %v723_v22 = vsub.f32 %v15514_v5, %v21495_v4  ;;  %22459 = vst [vmem:[#allocation24_spill] sm:$0xff] %v15548_v40  ;;  %v393_v52 = vpop.trf.xlu1  ;;  %v473_v4 = vsel %vm396_vm0, %v15435_v27, 0  ;;  %v22462_v5 = vand.u32 4294901760, %v15509_v53  ;;  %v15566_v45 = vsub.f32 %v467_v46, %v15548_v40 }
 0x21a   : > { %22464 = vst [vmem:[#allocation27_spill] sm:$0xff] %v15570_v23  ;;  %v15572_v27 = vand.u32 4294901760, %v473_v4  ;;  %v22468_v46 = vand.u32 4294901760, %v15531_v6  ;;  %v485_v14 = vsel %vm396_vm0, %v393_v52, 0  ;;  %v22476_v52 = vand.u32 4294901760, %v15570_v23 }
 0x21b   : > { %v724_v58 = vand.u32 4294901760, %v723_v22  ;;  %v753_v28 = vsub.f32 %v15509_v53, %v22462_v5  ;;  %v476_v22 = vsel %vm396_vm0, %v15455_v15, 0  ;;  %22463 = vst [vmem:[#allocation26_spill] sm:$0xff] %v15566_v45  ;;  %v744_v5 = vand.u32 4294901760, %v743_v29 }
 0x21c   : > { %22465 = vst [vmem:[#allocation28_spill] sm:$0xff] %v15572_v27  ;;  %v763_v53 = vsub.f32 %v15525_v2, %v22466_v36  ;;  %v15577_v15 = vand.u32 4294901760, %v476_v22  ;;  %v22469_v29 = vand.u32 4294901760, %v15543_v26  ;;  %v22470_v2 = vand.u32 4294901760, %v15546_v39 }
 0x21d   : > { %12407 = vmatmul.mubr.f32.gmra.mrb[14].mxu0 %v724_v58  ;;  %v479_v58 = vsel %vm396_vm0, %v391_v35, 0  ;;  %v754_v24 = vand.u32 4294901760, %v753_v28  ;;  %v394_v60 = vpop.trf.xlu1  ;;  %v15593_v9 = vsub.f32 %v473_v4, %v15572_v27  ;;  %v22474_v4 = vand.u32 4294901760, %v15566_v45 }
 0x21e   : > { %12409 = vmatprep.mubr.f32.mxu0 %v734_v11  ;;  %22467 = vst [vmem:[#allocation29_spill] sm:$0xff] %v15577_v15  ;;  %v773_v11 = vsub.f32 %v15531_v6, %v22468_v46  ;;  %v783_v36 = vsub.f32 %v15543_v26, %v22469_v29  ;;  %v793_v35 = vsub.f32 %v15546_v39, %v22470_v2  ;;  %v15595_v46 = vand.u32 4294901760, %v479_v58 }
 0x21f   : > { %22471 = vst [vmem:[#allocation30_spill] sm:$0xff] %v15593_v9  ;;  %v764_v57 = vand.u32 4294901760, %v763_v53  ;;  %v488_v26 = vsel %vm396_vm0, %v394_v60, 0  ;;  %v803_v39 = vsub.f32 %v15566_v45, %v22474_v4  ;;  %v15611_v6 = vand.u32 4294901760, %v485_v14 }
 0x220   : > { %22472 = vst [vmem:[#allocation31_spill] sm:$0xff] %v15595_v46  ;;  %v774_v29 = vand.u32 4294901760, %v773_v11  ;;  %v784_v2 = vand.u32 4294901760, %v783_v36  ;;  %v794_v28 = vand.u32 4294901760, %v793_v35  ;;  %v813_v11 = vsub.f32 %v15570_v23, %v22476_v52 }
 0x221   : > { %12410 = vmatmul.mubr.f32.gmra.mrb[16].mxu0 %v744_v5  ;;  %v15598_v5 = vsub.f32 %v476_v22, %v15577_v15  ;;  %v15609_v22 = vsub.f32 %v479_v58, %v15595_v46  ;;  %22475 = vst [vmem:[#allocation33_spill] sm:$0xff] %v15611_v6  ;;  %v395_v54 = vpop.trf.xlu1  ;;  %v15620_v35 = vand.u32 4294901760, %v488_v26  ;;  %v804_v58 = vand.u32 4294901760, %v803_v39 }
 0x222   : > { %12412 = vmatprep.mubr.f32.mxu0 %v754_v24  ;;  %v15600_v24 = vand.u32 4294901760, %v482_v59  ;;  %v15625_v4 = vsub.f32 %v485_v14, %v15611_v6  ;;  %v22479_v52 = vand.u32 4294901760, %v15593_v9 }
 0x223   : > { %22477 = vst [vmem:[#allocation34_spill] sm:$0xff] %v15620_v35  ;;  %v15634_v23 = vsub.f32 %v488_v26, %v15620_v35 }
 0x224   : > { %22473 = vst [vmem:[#allocation32_spill] sm:$0xff] %v15600_v24  ;;  %v15618_v36 = vsub.f32 %v482_v59, %v15600_v24  ;;  %v823_v60 = vsub.f32 %v15593_v9, %v22479_v52  ;;  %v21526_v14 = vand.u32 4294901760, %v15625_v4  ;;  %v22481_v52 = vand.u32 4294901760, %v15609_v22 }
 0x225   : > { %12413 = vmatmul.mubr.f32.gmra.mrb[18].mxu0 %v764_v57  ;;  %v491_v57 = vsel %vm396_vm0, %v395_v54, 0  ;;  %v814_v54 = vand.u32 4294901760, %v813_v11  ;;  %v21525_v26 = vand.u32 4294901760, %v15634_v23 }
 0x226   : > { %12415 = vmatprep.mubr.f32.mxu0 %v774_v29  ;;  %v15627_v53 = vand.u32 4294901760, %v491_v57  ;;  %v824_v29 = vand.u32 4294901760, %v823_v60  ;;  %v843_v59 = vsub.f32 %v15609_v22, %v22481_v52  ;;  %v22482_v11 = vand.u32 4294901760, %v15618_v36  ;;  %v22485_v52 = vld [vmem:[#allocation6_spill] sm:$0xff] }
 0x227   : > { %v863_v60 = vsub.f32 %v15625_v4, %v21526_v14  ;;  %v22501_v14 = vld [vmem:[#allocation23_spill] sm:$0xff] }
 0x228   : > { %22478 = vst [vmem:[#allocation35_spill] sm:$0xff] %v15627_v53  ;;  %v853_v45 = vsub.f32 %v15618_v36, %v22482_v11  ;;  %v22486_v11 = vld [vmem:[#allocation7_spill] sm:$0xff] }
 0x229   : > { %12416 = vmatmul.mubr.f32.gmra.mrb[20].mxu0 %v784_v2  ;;  %v15641_v2 = vsub.f32 %v491_v57, %v15627_v53 }
 0x22a   : > { %12418 = vmatprep.mubr.f32.mxu0 %v794_v28  ;;  %v22480_v28 = vand.u32 4294901760, %v15598_v5  ;;  %v854_v57 = vand.u32 4294901760, %v853_v45 }
 0x22c   : > { %v833_v39 = vsub.f32 %v15598_v5, %v22480_v28  ;;  %v873_v28 = vsub.f32 %v15634_v23, %v21525_v26  ;;  %v22500_v26 = vld [vmem:[#allocation22_spill] sm:$0xff] }
 0x22d   : > { %12419 = vmatmul.mubr.f32.gmra.mrb[22].mxu0 %v804_v58  ;;  %v21524_v58 = vand.u32 4294901760, %v15641_v2 }
 0x22e   : > { %12421 = vmatprep.mubr.f32.mxu0 %v814_v54  ;;  %v834_v9 = vand.u32 4294901760, %v833_v39  ;;  %v844_v54 = vand.u32 4294901760, %v843_v59  ;;  %v864_v39 = vand.u32 4294901760, %v863_v60  ;;  %v22488_v60 = vld [vmem:[#allocation9_spill] sm:$0xff] }
 0x231   : > { %12422 = vmatmul.mubr.f32.gmra.mrb[24].mxu0 %v824_v29  ;;  %v883_v29 = vsub.f32 %v15641_v2, %v21524_v58  ;;  %v22499_v58 = vld [vmem:[#allocation21_spill] sm:$0xff] }
 0x232   : > { %12424 = vmatprep.mubr.f32.mxu0 %v834_v9  ;;  %v874_v9 = vand.u32 4294901760, %v873_v28  ;;  %v22490_v28 = vld [vmem:[#allocation11_spill] sm:$0xff] }
 0x233   : > { %v884_v59 = vand.u32 4294901760, %v883_v29  ;;  %v22494_v29 = vld [vmem:[#allocation18_spill] sm:$0xff] }
 0x235   : > { %12425 = vmatmul.mubr.f32.gmra.mrb[26].mxu0 %v844_v54  ;;  %v22487_v54 = vld [vmem:[#allocation8_spill] sm:$0xff] }
 0x236   : > { %12427 = vmatprep.mubr.f32.mxu0 %v854_v57  ;;  %v22489_v57 = vld [vmem:[#allocation10_spill] sm:$0xff] }
 0x239   : > { %12428 = vmatmul.mubr.f32.gmra.mrb[28].mxu0 %v864_v39  ;;  %v22493_v39 = vld [vmem:[#allocation15_spill] sm:$0xff] }
 0x23a   : > { %12430 = vmatprep.mubr.f32.mxu0 %v874_v9  ;;  %v22495_v9 = vld [vmem:[#allocation14_spill] sm:$0xff] }
 0x23d   : > { %12431 = vmatmul.mubr.f32.gmra.mrb[30].mxu0 %v884_v59  ;;  %v22496_v59 = vld [vmem:[#allocation16_spill] sm:$0xff] }
 0x23e   : > { %12439 = vmatprep.mubr.f32.mxu0 %v15297_v61 }
 0x241   : > { %12440 = vmatmul.mubr.f32.vlgmr.msra.gmra.mrb[0].mxu0 %v15308_v3 }
 0x242   : > { %12442 = vmatprep.mubr.f32.mxu0 %v15324_v13  ;;  %13014 = vmatpush3.bf16.xpose.msra.mxu0 %v15388_v8  ;;  %v22484_v8 = vand.u32 4294901760, %v15281_v49  ;;  %v22492_v49 = vld [vmem:[#allocation13_spill] sm:$0xff] }
 0x243   : > { %12491 = vmatprep.subr.mxu0 %v15300_v62 }
 0x245   : > { %12443 = vmatmul.mubr.f32.gmra.mrb[2].mxu0 %v15337_v21 }
 0x246   : > { %12445 = vmatprep.mubr.f32.mxu0 %v15350_v31 }
 0x249   : > { %12446 = vmatmul.mubr.f32.gmra.mrb[4].mxu0 %v15360_v38 }
 0x24a   : > { %12448 = vmatprep.mubr.f32.mxu0 %v15372_v50  ;;  %12492 = vmatpush3.xpose.msra.mxu0 %v15300_v62  ;;  %v22483_v62 = vand.u32 4294901760, %v15279_v48  ;;  %v22491_v48 = vld [vmem:[#allocation12_spill] sm:$0xff] }
 0x24b   : > { %13016 = vmatprep.subr.bf16.mxu0 %v15267_v44 }
 0x24c   : > { %v13019_v45 = vpack.c.bf16 %v22484_v8, %v22483_v62  ;;  %v22497_v62 = vld [vmem:[#allocation17_spill] sm:$0xff]  ;;  %v22498_v8 = vld [vmem:[#allocation20_spill] sm:$0xff] }
 0x24d   : > { %12449 = vmatmul.mubr.f32.gmra.mrb[6].mxu0 %v15384_v0 }
 0x24e   : > { %12451 = vmatprep.mubr.f32.mxu0 %v15399_v18 }
 0x251   : > { %12452 = vmatmul.mubr.f32.gmra.mrb[8].mxu0 %v15411_v34 }
 0x252   : > { %12454 = vmatprep.mubr.f32.mxu0 %v15423_v55 }
 0x255   : > { %12455 = vmatmul.mubr.f32.gmra.mrb[10].mxu0 %v15433_v20 }
 0x256   : > { %12457 = vmatprep.mubr.f32.mxu0 %v15445_v56 }
 0x259   : > { %12458 = vmatmul.mubr.f32.gmra.mrb[12].mxu0 %v15461_v32 }
 0x25a   : > { %12460 = vmatprep.mubr.f32.mxu0 %v15479_v37 }
 0x25d   : > { %12461 = vmatmul.mubr.f32.gmra.mrb[14].mxu0 %v15505_v10 }
 0x25e   : > { %12463 = vmatprep.mubr.f32.mxu0 %v15463_v42 }
 0x261   : > { %12464 = vmatmul.mubr.f32.gmra.mrb[16].mxu0 %v15473_v1 }
 0x262   : > { %12466 = vmatprep.mubr.f32.mxu0 %v15484_v30 }
 0x265   : > { %12467 = vmatmul.mubr.f32.gmra.mrb[18].mxu0 %v15497_v12 }
 0x266   : > { %12469 = vmatprep.mubr.f32.mxu0 %v15511_v51 }
 0x269   : > { %12470 = vmatmul.mubr.f32.gmra.mrb[20].mxu0 %v15520_v17 }
 0x26a   : > { %12472 = vmatprep.mubr.f32.mxu0 %v15522_v19  ;;  %v22511_v19 = vand.u32 4294901760, %v15365_v41 }
 0x26d   : > { %12473 = vmatmul.mubr.f32.gmra.mrb[22].mxu0 %v15548_v40  ;;  %v22510_v40 = vand.u32 4294901760, %v15353_v33 }
 0x26e   : > { %12475 = vmatprep.mubr.f32.mxu0 %v15550_v43  ;;  %v22509_v43 = vand.u32 4294901760, %v15341_v25 }
 0x271   : > { %12476 = vmatmul.mubr.f32.gmra.mrb[24].mxu0 %v15572_v27  ;;  %v22508_v27 = vld [vmem:[#allocation5_spill] sm:$0xff] }
 0x272   : > { %12478 = vmatprep.mubr.f32.mxu0 %v15577_v15  ;;  %v22507_v15 = vand.u32 4294901760, %v15329_v16 }
 0x275   : > { %12479 = vmatmul.mubr.f32.gmra.mrb[26].mxu0 %v15595_v46  ;;  %v22506_v46 = vand.u32 4294901760, %v15315_v7 }
 0x276   : > { %12481 = vmatprep.mubr.f32.mxu0 %v15600_v24  ;;  %v22505_v24 = vand.u32 4294901760, %v15303_v63 }
 0x279   : > { %12482 = vmatmul.mubr.f32.gmra.mrb[28].mxu0 %v15611_v6  ;;  %v22504_v6 = vld [vmem:[#allocation30_spill] sm:$0xff] }
 0x27a   : > { %12484 = vmatprep.mubr.f32.mxu0 %v15620_v35  ;;  %v22503_v35 = vld [vmem:[#allocation27_spill] sm:$0xff] }
 0x27d   : > { %12485 = vmatmul.mubr.f32.gmra.mrb[30].mxu0 %v15627_v53  ;;  %v22502_v53 = vld [vmem:[#allocation26_spill] sm:$0xff] }
 0x27e   : > { %12493 = vmatprep.mubr.f32.mxu0 %v15303_v63  ;;  %v22512_v63 = vand.u32 4294901760, %v22485_v52 }
 0x281   : > { %12494 = vmatmul.mubr.f32.vlgmr.msra.gmra.mrb[0].mxu0 %v15315_v7  ;;  %v22513_v7 = vand.u32 4294901760, %v22486_v11 }
 0x282   : > { %12496 = vmatprep.mubr.f32.mxu0 %v15329_v16  ;;  %13018 = vmatpush3.bf16.xpose.msra.mxu0 %v15267_v44  ;;  %v22514_v16 = vand.u32 4294901760, %v22487_v54 }
 0x283   : > { %12545 = vmatprep.subr.mxu0 %v15275_v47 }
 0x285   : > { %12497 = vmatmul.mubr.f32.gmra.mrb[2].mxu0 %v15341_v25  ;;  %v22515_v25 = vand.u32 4294901760, %v22488_v60 }
 0x286   : > { %12499 = vmatprep.mubr.f32.mxu0 %v15353_v33  ;;  %v22516_v33 = vand.u32 4294901760, %v22489_v57 }
 0x289   : > { %12500 = vmatmul.mubr.f32.gmra.mrb[4].mxu0 %v15365_v41  ;;  %v22517_v41 = vand.u32 4294901760, %v22490_v28 }
 0x28a   : > { %12502 = vmatprep.mubr.f32.mxu0 %v22485_v52  ;;  %12546 = vmatpush3.xpose.msra.mxu0 %v15275_v47  ;;  %v22526_v52 = vand.u32 4294901760, %v22499_v58 }
 0x28b   : > { %13020 = vmatprep.subr.bf16.mxu0 %v13019_v45 }
 0x28d   : > { %12503 = vmatmul.mubr.f32.gmra.mrb[6].mxu0 %v22486_v11  ;;  %v22527_v11 = vand.u32 4294901760, %v22500_v26 }
 0x28e   : > { %12505 = vmatprep.mubr.f32.mxu0 %v22487_v54  ;;  %v22528_v54 = vand.u32 4294901760, %v22501_v14 }
 0x291   : > { %12506 = vmatmul.mubr.f32.gmra.mrb[8].mxu0 %v22488_v60  ;;  %v22529_v60 = vand.u32 4294901760, %v22502_v53 }
 0x292   : > { %12508 = vmatprep.mubr.f32.mxu0 %v22489_v57  ;;  %v22530_v57 = vand.u32 4294901760, %v22503_v35 }
 0x295   : > { %12509 = vmatmul.mubr.f32.gmra.mrb[10].mxu0 %v22490_v28  ;;  %v22531_v28 = vand.u32 4294901760, %v22504_v6 }
 0x296   : > { %12511 = vmatprep.mubr.f32.mxu0 %v22491_v48 }
 0x299   : > { %12512 = vmatmul.mubr.f32.gmra.mrb[12].mxu0 %v22492_v49 }
 0x29a   : > { %12514 = vmatprep.mubr.f32.mxu0 %v22493_v39 }
 0x29d   : > { %12515 = vmatmul.mubr.f32.gmra.mrb[14].mxu0 %v22494_v29 }
 0x29e   : > { %12517 = vmatprep.mubr.f32.mxu0 %v22495_v9 }
 0x2a1   : > { %12518 = vmatmul.mubr.f32.gmra.mrb[16].mxu0 %v22496_v59 }
 0x2a2   : > { %12520 = vmatprep.mubr.f32.mxu0 %v22497_v62 }
 0x2a5   : > { %12521 = vmatmul.mubr.f32.gmra.mrb[18].mxu0 %v22498_v8 }
 0x2a6   : > { %12523 = vmatprep.mubr.f32.mxu0 %v22499_v58  ;;  %v22533_v58 = vand.u32 4294901760, %v15609_v22 }
 0x2a9   : > { %12524 = vmatmul.mubr.f32.gmra.mrb[20].mxu0 %v22500_v26  ;;  %v22534_v26 = vand.u32 4294901760, %v15618_v36 }
 0x2aa   : > { %12526 = vmatprep.mubr.f32.mxu0 %v22501_v14  ;;  %v22535_v14 = vand.u32 4294901760, %v15625_v4 }
 0x2ad   : > { %12527 = vmatmul.mubr.f32.gmra.mrb[22].mxu0 %v22502_v53  ;;  %v22536_v53 = vand.u32 4294901760, %v15634_v23 }
 0x2ae   : > { %12529 = vmatprep.mubr.f32.mxu0 %v22503_v35  ;;  %v22537_v35 = vand.u32 4294901760, %v15641_v2 }
 0x2b1   : > { %12530 = vmatmul.mubr.f32.gmra.mrb[24].mxu0 %v22504_v6  ;;  %v22538_v6 = vld [vmem:[#allocation19_spill] sm:$0xff] }
 0x2b2   : > { %12532 = vmatprep.mubr.f32.mxu0 %v15598_v5 }
 0x2b5   : > { %12533 = vmatmul.mubr.f32.gmra.mrb[26].mxu0 %v15609_v22  ;;  %v22543_v22 = vld [vmem:[#allocation31_spill] sm:$0xff] }
 0x2b6   : > { %12535 = vmatprep.mubr.f32.mxu0 %v15618_v36  ;;  %v22544_v36 = vld [vmem:[#allocation32_spill] sm:$0xff] }
 0x2b9   : > { %12536 = vmatmul.mubr.f32.gmra.mrb[28].mxu0 %v15625_v4  ;;  %v22545_v4 = vld [vmem:[#allocation33_spill] sm:$0xff] }
 0x2ba   : > { %12538 = vmatprep.mubr.f32.mxu0 %v15634_v23  ;;  %v22541_v23 = vld [vmem:[#allocation28_spill] sm:$0xff] }
 0x2bd   : > { %12539 = vmatmul.mubr.f32.gmra.mrb[30].mxu0 %v15641_v2  ;;  %v22546_v2 = vld [vmem:[#allocation34_spill] sm:$0xff] }
 0x2be   : > { %12547 = vmatprep.mubr.f32.mxu0 %v22505_v24  ;;  %v22524_v24 = vand.u32 4294901760, %v22497_v62 }
 0x2c1   : > { %12548 = vmatmul.mubr.f32.vlgmr.msra.gmra.mrb[0].mxu0 %v22506_v46  ;;  %v22523_v46 = vand.u32 4294901760, %v22496_v59 }
 0x2c2   : > { %12550 = vmatprep.mubr.f32.mxu0 %v22507_v15  ;;  %13022 = vmatpush3.bf16.xpose.msra.mxu0 %v13019_v45  ;;  %v22522_v15 = vand.u32 4294901760, %v22495_v9  ;;  %v22525_v45 = vand.u32 4294901760, %v22498_v8 }
 0x2c3   : > { %12599 = vmatprep.subr.mxu0 %v22508_v27 }
 0x2c5   : > { %12551 = vmatmul.mubr.f32.gmra.mrb[2].mxu0 %v22509_v43  ;;  %v22520_v43 = vand.u32 4294901760, %v22493_v39 }
 0x2c6   : > { %12553 = vmatprep.mubr.f32.mxu0 %v22510_v40  ;;  %v22519_v40 = vand.u32 4294901760, %v22492_v49  ;;  %v22547_v49 = vld [vmem:[#allocation35_spill] sm:$0xff] }
 0x2c9   : > { %12554 = vmatmul.mubr.f32.gmra.mrb[4].mxu0 %v22511_v19  ;;  %v22518_v19 = vand.u32 4294901760, %v22491_v48  ;;  %v22532_v48 = vand.u32 4294901760, %v15598_v5  ;;  %v22542_v5 = vld [vmem:[#allocation29_spill] sm:$0xff] }
 0x2ca   : > { %12556 = vmatprep.mubr.f32.mxu0 %v22512_v63  ;;  %12600 = vmatpush3.xpose.msra.mxu0 %v22508_v27  ;;  %v22521_v27 = vand.u32 4294901760, %v22494_v29 }
 0x2cb   : > { %13024 = vmatprep.subr.bf16.mxu0 %v15267_v44 }
 0x2cd   : > { %12557 = vmatmul.mubr.f32.gmra.mrb[6].mxu0 %v22513_v7 }
 0x2ce   : > { %12559 = vmatprep.mubr.f32.mxu0 %v22514_v16 }
 0x2d1   : > { %12560 = vmatmul.mubr.f32.gmra.mrb[8].mxu0 %v22515_v25 }
 0x2d2   : > { %12562 = vmatprep.mubr.f32.mxu0 %v22516_v33  ;;  %v282_v33 = vld [vmem:[%s21459_s4] sm:$0xff] }
 0x2d5   : > { %12563 = vmatmul.mubr.f32.gmra.mrb[10].mxu0 %v22517_v41  ;;  %v22548_v41 = vmov 0  }
 0x2d6   : > { %12565 = vmatprep.mubr.f32.mxu0 %v22518_v19  ;;  %v2379_v19 = vpop.permute.xlu1 %2378 }
 0x2d9   : > { %12566 = vmatmul.mubr.f32.gmra.mrb[12].mxu0 %v22519_v40 }
 0x2da   : > { %12568 = vmatprep.mubr.f32.mxu0 %v22520_v43 }
 0x2dd   : > { %12569 = vmatmul.mubr.f32.gmra.mrb[14].mxu0 %v22521_v27 }
 0x2de   : > { %12571 = vmatprep.mubr.f32.mxu0 %v22522_v15 }
 0x2e1   : > { %12572 = vmatmul.mubr.f32.gmra.mrb[16].mxu0 %v22523_v46 }
 0x2e2   : > { %12574 = vmatprep.mubr.f32.mxu0 %v22524_v24 }
 0x2e5   : > { %12575 = vmatmul.mubr.f32.gmra.mrb[18].mxu0 %v22525_v45 }
 0x2e6   : > { %12577 = vmatprep.mubr.f32.mxu0 %v22526_v52 }
 0x2e9   : > { %12578 = vmatmul.mubr.f32.gmra.mrb[20].mxu0 %v22527_v11  ;;  %v21567_v11 = vmov 0.0  }
 0x2ea   : > { %12580 = vmatprep.mubr.f32.mxu0 %v22528_v54  ;;  %2651 = vmatprep.mubr.f32.mxu1 %v21567_v11 }
 0x2ed   : > { %12581 = vmatmul.mubr.f32.gmra.mrb[22].mxu0 %v22529_v60 }
 0x2ee   : > { %12583 = vmatprep.mubr.f32.mxu0 %v22530_v57 }
 0x2f1   : > { %12584 = vmatmul.mubr.f32.gmra.mrb[24].mxu0 %v22531_v28 }
 0x2f2   : > { %12586 = vmatprep.mubr.f32.mxu0 %v22532_v48 }
 0x2f5   : > { %12587 = vmatmul.mubr.f32.gmra.mrb[26].mxu0 %v22533_v58 }
 0x2f6   : > { %12589 = vmatprep.mubr.f32.mxu0 %v22534_v26 }
 0x2f9   : > { %12590 = vmatmul.mubr.f32.gmra.mrb[28].mxu0 %v22535_v14 }
 0x2fa   : > { %12592 = vmatprep.mubr.f32.mxu0 %v22536_v53 }
 0x2fd   : > { %12593 = vmatmul.mubr.f32.gmra.mrb[30].mxu0 %v22537_v35 }
 0x2fe   : > { %12601 = vmatprep.mubr.f32.mxu0 %v15297_v61 }
 0x301   : > { %12602 = vmatmul.mubr.f32.vlgmr.msra.gmra.mrb[0].mxu0 %v15308_v3 }
 0x302   : > { %12604 = vmatprep.mubr.f32.mxu0 %v15324_v13  ;;  %13026 = vmatpush3.bf16.xpose.msra.mxu0 %v15267_v44  ;;  %v22539_v44 = vld [vmem:[#allocation24_spill] sm:$0xff] }
 0x303   : > { %12653 = vmatprep.subr.mxu0 %v15275_v47 }
 0x305   : > { %12605 = vmatmul.mubr.f32.gmra.mrb[2].mxu0 %v15337_v21 }
 0x306   : > { %12607 = vmatprep.mubr.f32.mxu0 %v15350_v31 }
 0x309   : > { %12608 = vmatmul.mubr.f32.gmra.mrb[4].mxu0 %v15360_v38 }
 0x30a   : > { %12610 = vmatprep.mubr.f32.mxu0 %v15372_v50  ;;  %12654 = vmatpush3.xpose.msra.mxu0 %v15275_v47  ;;  %v22540_v47 = vld [vmem:[#allocation25_spill] sm:$0xff] }
 0x30d   : > { %12611 = vmatmul.mubr.f32.gmra.mrb[6].mxu0 %v15384_v0 }
 0x30e   : > { %12613 = vmatprep.mubr.f32.mxu0 %v15399_v18 }
 0x311   : > { %12614 = vmatmul.mubr.f32.gmra.mrb[8].mxu0 %v15411_v34 }
 0x312   : > { %12616 = vmatprep.mubr.f32.mxu0 %v15423_v55 }
 0x315   : > { %12617 = vmatmul.mubr.f32.gmra.mrb[10].mxu0 %v15433_v20 }
 0x316   : > { %12619 = vmatprep.mubr.f32.mxu0 %v15445_v56 }
 0x319   : > { %12620 = vmatmul.mubr.f32.gmra.mrb[12].mxu0 %v15461_v32 }
 0x31a   : > { %12622 = vmatprep.mubr.f32.mxu0 %v15479_v37 }
 0x31d   : > { %12623 = vmatmul.mubr.f32.gmra.mrb[14].mxu0 %v15505_v10 }
 0x31e   : > { %12625 = vmatprep.mubr.f32.mxu0 %v15463_v42 }
 0x321   : > { %12626 = vmatmul.mubr.f32.gmra.mrb[16].mxu0 %v15473_v1 }
 0x322   : > { %12628 = vmatprep.mubr.f32.mxu0 %v15484_v30 }
 0x325   : > { %12629 = vmatmul.mubr.f32.gmra.mrb[18].mxu0 %v15497_v12 }
 0x326   : > { %12631 = vmatprep.mubr.f32.mxu0 %v15511_v51 }
 0x329   : > { %12632 = vmatmul.mubr.f32.gmra.mrb[20].mxu0 %v15520_v17 }
 0x32a   : > { %12634 = vmatprep.mubr.f32.mxu0 %v22538_v6 }
 0x32d   : > { %12635 = vmatmul.mubr.f32.gmra.mrb[22].mxu0 %v22539_v44 }
 0x32e   : > { %12637 = vmatprep.mubr.f32.mxu0 %v22540_v47 }
 0x331   : > { %12638 = vmatmul.mubr.f32.gmra.mrb[24].mxu0 %v22541_v23 }
 0x332   : > { %12640 = vmatprep.mubr.f32.mxu0 %v22542_v5 }
 0x335   : > { %12641 = vmatmul.mubr.f32.gmra.mrb[26].mxu0 %v22543_v22 }
 0x336   : > { %12643 = vmatprep.mubr.f32.mxu0 %v22544_v36 }
 0x339   : > { %12644 = vmatmul.mubr.f32.gmra.mrb[28].mxu0 %v22545_v4 }
 0x33a   : > { %12646 = vmatprep.mubr.f32.mxu0 %v22546_v2 }
 0x33d   : > { %12647 = vmatmul.mubr.f32.gmra.mrb[30].mxu0 %v22547_v49 }
 0x33e   : > { %12655 = vmatprep.mubr.f32.mxu0 %v15297_v61 }
 0x341   : > { %12656 = vmatmul.mubr.f32.vlgmr.msra.gmra.mrb[0].mxu0 %v15308_v3 }
 0x342   : > { %12658 = vmatprep.mubr.f32.mxu0 %v15324_v13 }
 0x345   : > { %12659 = vmatmul.mubr.f32.gmra.mrb[2].mxu0 %v15337_v21 }
 0x346   : > { %12661 = vmatprep.mubr.f32.mxu0 %v15350_v31 }
 0x349   : > { %12662 = vmatmul.mubr.f32.gmra.mrb[4].mxu0 %v15360_v38 }
 0x34a   : > { %12664 = vmatprep.mubr.f32.mxu0 %v15372_v50 }
 0x34d   : > { %12665 = vmatmul.mubr.f32.gmra.mrb[6].mxu0 %v15384_v0 }
 0x34e   : > { %12667 = vmatprep.mubr.f32.mxu0 %v15399_v18 }
 0x351   : > { %12668 = vmatmul.mubr.f32.gmra.mrb[8].mxu0 %v15411_v34 }
 0x352   : > { %12670 = vmatprep.mubr.f32.mxu0 %v15423_v55 }
 0x355   : > { %12671 = vmatmul.mubr.f32.gmra.mrb[10].mxu0 %v15433_v20 }
 0x356   : > { %12673 = vmatprep.mubr.f32.mxu0 %v15445_v56 }
 0x359   : > { %12674 = vmatmul.mubr.f32.gmra.mrb[12].mxu0 %v15461_v32 }
 0x35a   : > { %12676 = vmatprep.mubr.f32.mxu0 %v15479_v37 }
 0x35d   : > { %12677 = vmatmul.mubr.f32.gmra.mrb[14].mxu0 %v15505_v10 }
 0x35e   : > { %12679 = vmatprep.mubr.f32.mxu0 %v15463_v42 }
 0x361   : > { %12680 = vmatmul.mubr.f32.gmra.mrb[16].mxu0 %v15473_v1 }
 0x362   : > { %12682 = vmatprep.mubr.f32.mxu0 %v15484_v30 }
 0x365   : > { %12683 = vmatmul.mubr.f32.gmra.mrb[18].mxu0 %v15497_v12 }
 0x366   : > { %12685 = vmatprep.mubr.f32.mxu0 %v15511_v51 }
 0x369   : > { %12686 = vmatmul.mubr.f32.gmra.mrb[20].mxu0 %v15520_v17 }
 0x36a   : > { %12688 = vmatprep.mubr.f32.mxu0 %v22538_v6 }
 0x36d   : > { %12689 = vmatmul.mubr.f32.gmra.mrb[22].mxu0 %v22539_v44 }
 0x36e   : > { %12691 = vmatprep.mubr.f32.mxu0 %v22540_v47 }
 0x371   : > { %12692 = vmatmul.mubr.f32.gmra.mrb[24].mxu0 %v22541_v23 }
 0x372   : > { %12694 = vmatprep.mubr.f32.mxu0 %v22542_v5 }
 0x375   : > { %12695 = vmatmul.mubr.f32.gmra.mrb[26].mxu0 %v22543_v22 }
 0x376   : > { %12697 = vmatprep.mubr.f32.mxu0 %v22544_v36 }
 0x379   : > { %12698 = vmatmul.mubr.f32.gmra.mrb[28].mxu0 %v22545_v4 }
 0x37a   : > { %12700 = vmatprep.mubr.f32.mxu0 %v22546_v2 }
 0x37d   : > { %12701 = vmatmul.mubr.f32.gmra.mrb[30].mxu0 %v22547_v49 }
 0x37e   : > { %4802 = vmatprep.mubr.f32.mxu0 %v21567_v11 }
 0x414   : > { %v12657_v51 = vpop.f32.mrb[0].mxu0 }
 0x415   : > { %v2117_v61 = vpop.f32.mrb[1].mxu0 }
 0x416   : > { %2307 = vxpose.xlu0.b32.start [1/16] (narrow) %v2117_v61, 24 }
 0x418   : > { %v12660_v3 = vpop.f32.mrb[2].mxu0 }
 0x419   : > { %v2129_v12 = vpop.f32.mrb[3].mxu0 }
 0x41a   : > { %2308 = vxpose.xlu0.b32.cont [2/16] (narrow) %v12657_v51, 24 }
 0x41c   : > { %v12663_v13 = vpop.f32.mrb[4].mxu0 }
 0x41d   : > { %v2141_v21 = vpop.f32.mrb[5].mxu0 }
 0x41e   : > { %2309 = vxpose.xlu0.b32.cont [3/16] (narrow) %v2129_v12, 24 }
 0x420   : > { %v12666_v30 = vpop.f32.mrb[6].mxu0 }
 0x421   : > { %v2153_v31 = vpop.f32.mrb[7].mxu0 }
 0x422   : > { %2310 = vxpose.xlu0.b32.cont [4/16] (narrow) %v12660_v3, 24 }
 0x424   : > { %v12669_v37 = vpop.f32.mrb[8].mxu0 }
 0x425   : > { %v2165_v38 = vpop.f32.mrb[9].mxu0 }
 0x426   : > { %2311 = vxpose.xlu0.b32.cont [5/16] (narrow) %v2141_v21, 24 }
 0x428   : > { %v12672_v50 = vpop.f32.mrb[10].mxu0 }
 0x429   : > { %v2177_v0 = vpop.f32.mrb[11].mxu0 }
 0x42a   : > { %2312 = vxpose.xlu0.b32.cont [6/16] (narrow) %v12663_v13, 24 }
 0x42c   : > { %v12675_v17 = vpop.f32.mrb[12].mxu0 }
 0x42d   : > { %v2189_v18 = vpop.f32.mrb[13].mxu0 }
 0x42e   : > { %2313 = vxpose.xlu0.b32.cont [7/16] (narrow) %v2153_v31, 24 }
 0x430   : > { %v12678_v32 = vpop.f32.mrb[14].mxu0 }
 0x431   : > { %v2201_v34 = vpop.f32.mrb[15].mxu0 }
 0x432   : > { %2314 = vxpose.xlu0.b32.cont [8/16] (narrow) %v12666_v30, 24 }
 0x434   : > { %v12681_v55 = vpop.f32.mrb[16].mxu0 }
 0x435   : > { %v2213_v20 = vpop.f32.mrb[17].mxu0 }
 0x436   : > { %2315 = vxpose.xlu0.b32.cont [9/16] (narrow) %v2165_v38, 24  ;;  %2339 = vxpose.xlu1.b32.start [1/16] (narrow) %v2213_v20, 24 }
 0x438   : > { %v12684_v56 = vpop.f32.mrb[18].mxu0 }
 0x439   : > { %v2225_v42 = vpop.f32.mrb[19].mxu0 }
 0x43a   : > { %2316 = vxpose.xlu0.b32.cont [10/16] (narrow) %v12669_v37, 24  ;;  %2340 = vxpose.xlu1.b32.cont [2/16] (narrow) %v12681_v55, 24 }
 0x43c   : > { %v12687_v1 = vpop.f32.mrb[20].mxu0 }
 0x43d   : > { %v2237_v10 = vpop.f32.mrb[21].mxu0 }
 0x43e   : > { %2317 = vxpose.xlu0.b32.cont [11/16] (narrow) %v2177_v0, 24  ;;  %2341 = vxpose.xlu1.b32.cont [3/16] (narrow) %v2225_v42, 24 }
 0x440   : > { %v12690_v39 = vpop.f32.mrb[22].mxu0 }
 0x441   : > { %v2249_v29 = vpop.f32.mrb[23].mxu0 }
 0x442   : > { %2318 = vxpose.xlu0.b32.cont [12/16] (narrow) %v12672_v50, 24  ;;  %2342 = vxpose.xlu1.b32.cont [4/16] (narrow) %v12684_v56, 24 }
 0x444   : > { %v12693_v9 = vpop.f32.mrb[24].mxu0 }
 0x445   : > { %v2261_v59 = vpop.f32.mrb[25].mxu0 }
 0x446   : > { %2319 = vxpose.xlu0.b32.cont [13/16] (narrow) %v2189_v18, 24  ;;  %2343 = vxpose.xlu1.b32.cont [5/16] (narrow) %v2237_v10, 24 }
 0x448   : > { %v12696_v62 = vpop.f32.mrb[26].mxu0 }
 0x449   : > { %v2273_v8 = vpop.f32.mrb[27].mxu0 }
 0x44a   : > { %2320 = vxpose.xlu0.b32.cont [14/16] (narrow) %v12675_v17, 24  ;;  %2344 = vxpose.xlu1.b32.cont [6/16] (narrow) %v12687_v1, 24 }
 0x44c   : > { %v12699_v63 = vpop.f32.mrb[28].mxu0 }
 0x44d   : > { %v2285_v7 = vpop.f32.mrb[29].mxu0 }
 0x44e   : > { %2321 = vxpose.xlu0.b32.cont [15/16] (narrow) %v2201_v34, 24  ;;  %2345 = vxpose.xlu1.b32.cont [7/16] (narrow) %v2249_v29, 24 }
 0x450   : > { %v12702_v16 = vpop.f32.mrb[30].mxu0 }
 0x451   : > { %v2297_v25 = vpop.f32.mrb[31].mxu0 }
 0x452   : > { %2322 = vxpose.xlu0.b32.end [16/16] (narrow) %v12678_v32, 24  ;;  %2346 = vxpose.xlu1.b32.cont [8/16] (narrow) %v12690_v39, 24 }
 0x456   : > { %2347 = vxpose.xlu1.b32.cont [9/16] (narrow) %v2261_v59, 24 }
 0x45a   : > { %2348 = vxpose.xlu1.b32.cont [10/16] (narrow) %v12693_v9, 24 }
 0x45e   : > { %2349 = vxpose.xlu1.b32.cont [11/16] (narrow) %v2273_v8, 24 }
 0x462   : > { %2350 = vxpose.xlu1.b32.cont [12/16] (narrow) %v12696_v62, 24 }
 0x466   : > { %2351 = vxpose.xlu1.b32.cont [13/16] (narrow) %v2285_v7, 24 }
 0x46a   : > { %2352 = vxpose.xlu1.b32.cont [14/16] (narrow) %v12699_v63, 24 }
 0x46e   : > { %2353 = vxpose.xlu1.b32.cont [15/16] (narrow) %v2297_v25, 24 }
 0x472   : > { %2354 = vxpose.xlu1.b32.end [16/16] (narrow) %v12702_v16, 24 }
 0x47b   : > { %14819 = vset.pattern.permute.xlu0 %v22548_v41 }
 0x47c   : > { %2373 = vperm.xlu0 %14819, %v282_v33  }
 0x496   : > { %v2323_v40 = vpop.trf.xlu0 }
 0x49a   : > { %v2324_v27 = vpop.trf.xlu0 }
 0x49b   : > { %v2388_v46 = vadd.f32 %v2379_v19, %v2324_v27 }
 0x49e   : > { %v15875_v54 = vpop.trf.xlu0 }
 0x4b6   : > { %v2355_v43 = vpop.trf.xlu1 }
 0x4ba   : > { %v2356_v15 = vpop.trf.xlu1 }
 0x4bb   : > { %v2389_v24 = vadd.f32 %v2379_v19, %v2356_v15 }
 0x4bd   : > { %v11958_v45 = vcombine.low %v2389_v24, %v2389_v24  ;;  %v2400_v52 = vcombine.low %v2388_v46, %v2389_v24  ;;  %v2401_v60 = vcombine.high %v2388_v46, %v2389_v24  ;;  %v11960_v57 = vcombine.high %v2389_v24, %v2389_v24 }
 0x4be   : > { %v15910_v30 = vpop.trf.xlu1 }
 0x4bf   : > { %2451 = vxpose.xlu1.b32.start.end [1/1] (short) %v11958_v45, 128  ;;  %2419 = vxpose.xlu0.b32.start.end [1/1] (short) %v2400_v52, 128 }
 0x4fb   : > { %v2374_v28 = vpop.permute.xlu0 %2373 }
 0x4fc   : > { %v2386_v48 = vadd.f32 %v2374_v28, %v2323_v40  ;;  %v2387_v58 = vadd.f32 %v2374_v28, %v2355_v43  ;;  %4571 = vxpose.xlu1.b32.start.end [1/1] (short) %v2401_v60, 128  ;;  %4603 = vxpose.xlu0.b32.start.end [1/1] (short) %v11960_v57, 128 }
 0x4fe   : > { %v2398_v26 = vcombine.low %v2386_v48, %v2387_v58  ;;  %v2399_v14 = vcombine.high %v2386_v48, %v2387_v58  ;;  %v11959_v53 = vcombine.low %v2387_v58, %v2387_v58  ;;  %v11961_v35 = vcombine.high %v2387_v58, %v2387_v58 }
 0x500   : > { %v2581_v6 = vsel %vm2412_vm1, %v2398_v26, 0  ;;  %v15879_v44 = vsel %vm2412_vm1, %v2399_v14, 0  ;;  %v2583_v47 = vsel %vm2412_vm1, %v11959_v53, 0  ;;  %v4734_v23 = vsel %vm2412_vm1, %v11961_v35, 0  ;;  %v284_v26 = vld [vmem:[%s21459_s4 + $0x10] sm:$0xff] }
 0x501   : > { %v15883_v5 = vand.u32 4294901760, %v2581_v6  ;;  %v15886_v22 = vand.u32 4294901760, %v15879_v44  ;;  %v15888_v36 = vand.u32 4294901760, %v2583_v47  ;;  %v15890_v4 = vand.u32 4294901760, %v4734_v23 }
 0x503   : > { %22549 = vst [vmem:[#allocation6_spill] sm:$0xff] %v15883_v5  ;;  %22550 = vst [vmem:[#allocation7_spill] sm:$0xff] %v15886_v22  ;;  %2586 = vmatprep.subr.mxu1 %v15888_v36  ;;  %4737 = vmatprep.subr.mxu0 %v15890_v4  ;;  %v15895_v2 = vsub.f32 %v2583_v47, %v15888_v36  ;;  %v15900_v49 = vsub.f32 %v4734_v23, %v15890_v4 }
 0x504   : > { %2588 = vmatpush1.msra.mxu1 %v15883_v5  ;;  %4739 = vmatpush1.msra.mxu0 %v15886_v22  ;;  %v15913_v31 = vsub.f32 %v2581_v6, %v15883_v5 }
 0x505   : > { %22551 = vst [vmem:[#allocation8_spill] sm:$0xff] %v15895_v2  ;;  %22552 = vst [vmem:[#allocation9_spill] sm:$0xff] %v15900_v49  ;;  %v21561_v51 = vand.u32 4294901760, %v15895_v2  ;;  %v21559_v61 = vand.u32 4294901760, %v15900_v49 }
 0x506   : > { %v21557_v34 = vand.u32 4294901760, %v15913_v31 }
 0x507   : > { %v3007_v3 = vsub.f32 %v15895_v2, %v21561_v51  ;;  %v5158_v12 = vsub.f32 %v15900_v49, %v21559_v61 }
 0x508   : > { %v3013_v29 = vsub.f32 %v15913_v31, %v21557_v34 }
 0x509   : > { %v3008_v13 = vand.u32 4294901760, %v3007_v3  ;;  %v5159_v21 = vand.u32 4294901760, %v5158_v12 }
 0x50a   : > { %v3014_v7 = vand.u32 4294901760, %v3013_v29 }
 0x50b   : > { %3009 = vmatprep.subr.mxu1 %v3008_v13  ;;  %5160 = vmatprep.subr.mxu0 %v5159_v21  ;;  %v286_v13 = vld [vmem:[%s21461_s6] sm:$0xff] }
 0x53f   : > { %v2435_v37 = vpop.trf.xlu0  ;;  %v15915_v38 = vpop.trf.xlu1 }
 0x540   : > { %v2486_v50 = vsel %vm2484_vm2, %v2435_v37, 0 }
 0x541   : > { %v15918_v0 = vand.u32 4294901760, %v2486_v50 }
 0x543   : > { %22553 = vst [vmem:[#allocation10_spill] sm:$0xff] %v15918_v0  ;;  %v15921_v17 = vsub.f32 %v2486_v50, %v15918_v0  ;;  %v2436_v18 = vpop.trf.xlu0  ;;  %v15923_v32 = vpop.trf.xlu1 }
 0x544   : > { %v2489_v55 = vsel %vm2484_vm2, %v2436_v18, 0 }
 0x545   : > { %22554 = vst [vmem:[#allocation11_spill] sm:$0xff] %v15921_v17  ;;  %v21558_v20 = vand.u32 4294901760, %v15921_v17  ;;  %v15928_v56 = vand.u32 4294901760, %v2489_v55 }
 0x547   : > { %22555 = vst [vmem:[#allocation12_spill] sm:$0xff] %v15928_v56  ;;  %v15931_v42 = vsub.f32 %v2489_v55, %v15928_v56  ;;  %v2437_v1 = vpop.trf.xlu0  ;;  %v15933_v10 = vpop.trf.xlu1  ;;  %v2655_v39 = vsub.f32 %v15921_v17, %v21558_v20 }
 0x548   : > { %v2492_v9 = vsel %vm2484_vm2, %v2437_v1, 0 }
 0x549   : > { %22556 = vst [vmem:[#allocation13_spill] sm:$0xff] %v15931_v42  ;;  %v21556_v59 = vand.u32 4294901760, %v15931_v42  ;;  %v15943_v62 = vand.u32 4294901760, %v2492_v9  ;;  %v2656_v8 = vand.u32 4294901760, %v2655_v39 }
 0x54b   : > { %22557 = vst [vmem:[#allocation15_spill] sm:$0xff] %v15943_v62  ;;  %v15946_v63 = vsub.f32 %v2492_v9, %v15943_v62  ;;  %v2438_v16 = vpop.trf.xlu0  ;;  %v15948_v25 = vpop.trf.xlu1  ;;  %v2666_v33 = vsub.f32 %v15931_v42, %v21556_v59  ;;  %2657 = vmatmul.mubr.f32.vlgmr.msra.gmra.mrb[0].mxu1 %v2656_v8 }
 0x54c   : > { %v2495_v41 = vsel %vm2484_vm2, %v2438_v16, 0  ;;  %3015 = vmatpush1.msra.mxu1 %v3014_v7  ;;  %2662 = vmatprep.mubr.f32.mxu1 %v21567_v11 }
 0x54d   : > { %22558 = vst [vmem:[#allocation18_spill] sm:$0xff] %v15946_v63  ;;  %v21554_v19 = vand.u32 4294901760, %v15946_v63  ;;  %v15955_v40 = vand.u32 4294901760, %v2495_v41  ;;  %3305 = vmatprep.subr.mxu1 %v15895_v2  ;;  %v2667_v43 = vand.u32 4294901760, %v2666_v33 }
 0x54f   : > { %22559 = vst [vmem:[#allocation14_spill] sm:$0xff] %v15955_v40  ;;  %v15960_v27 = vsub.f32 %v2495_v41, %v15955_v40  ;;  %v2439_v15 = vpop.trf.xlu0  ;;  %v15962_v46 = vpop.trf.xlu1  ;;  %v2677_v24 = vsub.f32 %v15946_v63, %v21554_v19  ;;  %2668 = vmatmul.mubr.f32.gmra.mrb[2].mxu1 %v2667_v43 }
 0x550   : > { %v2498_v45 = vsel %vm2484_vm2, %v2439_v15, 0  ;;  %2673 = vmatprep.mubr.f32.mxu1 %v21567_v11 }
 0x551   : > { %22560 = vst [vmem:[#allocation16_spill] sm:$0xff] %v15960_v27  ;;  %v21553_v52 = vand.u32 4294901760, %v15960_v27  ;;  %v15969_v60 = vand.u32 4294901760, %v2498_v45  ;;  %v2678_v57 = vand.u32 4294901760, %v2677_v24 }
 0x553   : > { %22561 = vst [vmem:[#allocation17_spill] sm:$0xff] %v15969_v60  ;;  %v15973_v28 = vsub.f32 %v2498_v45, %v15969_v60  ;;  %v2440_v48 = vpop.trf.xlu0  ;;  %v15975_v58 = vpop.trf.xlu1  ;;  %v2688_v14 = vsub.f32 %v15960_v27, %v21553_v52  ;;  %2679 = vmatmul.mubr.f32.gmra.mrb[4].mxu1 %v2678_v57 }
 0x554   : > { %v2501_v53 = vsel %vm2484_vm2, %v2440_v48, 0  ;;  %2684 = vmatprep.mubr.f32.mxu1 %v21567_v11 }
 0x555   : > { %22562 = vst [vmem:[#allocation20_spill] sm:$0xff] %v15973_v28  ;;  %v21552_v35 = vand.u32 4294901760, %v15973_v28  ;;  %v15985_v6 = vand.u32 4294901760, %v2501_v53  ;;  %v2689_v47 = vand.u32 4294901760, %v2688_v14 }
 0x556   : > { %2383 = vperm.xlu1 %14818, %v284_v26  }
 0x557   : > { %22563 = vst [vmem:[#allocation21_spill] sm:$0xff] %v15985_v6  ;;  %v15989_v23 = vsub.f32 %v2501_v53, %v15985_v6  ;;  %v2441_v3 = vpop.trf.xlu0  ;;  %v15991_v12 = vpop.trf.xlu1  ;;  %v2699_v21 = vsub.f32 %v15973_v28, %v21552_v35  ;;  %2690 = vmatmul.mubr.f32.gmra.mrb[6].mxu1 %v2689_v47 }
 0x558   : > { %v2504_v37 = vsel %vm2484_vm2, %v2441_v3, 0  ;;  %2695 = vmatprep.mubr.f32.mxu1 %v21567_v11 }
 0x559   : > { %22564 = vst [vmem:[#allocation22_spill] sm:$0xff] %v15989_v23  ;;  %v21550_v50 = vand.u32 4294901760, %v15989_v23  ;;  %v16001_v18 = vand.u32 4294901760, %v2504_v37  ;;  %v2700_v55 = vand.u32 4294901760, %v2699_v21 }
 0x55a   : > { %11866 = vperm.xlu1 %14818, %v286_v13  }
 0x55b   : > { %22565 = vst [vmem:[#allocation23_spill] sm:$0xff] %v16001_v18  ;;  %v16005_v1 = vsub.f32 %v2504_v37, %v16001_v18  ;;  %v2442_v39 = vpop.trf.xlu0  ;;  %v16007_v29 = vpop.trf.xlu1  ;;  %v2710_v9 = vsub.f32 %v15989_v23, %v21550_v50  ;;  %2701 = vmatmul.mubr.f32.gmra.mrb[8].mxu1 %v2700_v55 }
 0x55c   : > { %v2507_v8 = vsel %vm2484_vm2, %v2442_v39, 0  ;;  %2706 = vmatprep.mubr.f32.mxu1 %v21567_v11 }
 0x55d   : > { %22566 = vst [vmem:[#allocation26_spill] sm:$0xff] %v16005_v1  ;;  %v21549_v7 = vand.u32 4294901760, %v16005_v1  ;;  %v16014_v16 = vand.u32 4294901760, %v2507_v8  ;;  %v2711_v33 = vand.u32 4294901760, %v2710_v9 }
 0x55f   : > { %22567 = vst [vmem:[#allocation27_spill] sm:$0xff] %v16014_v16  ;;  %v16018_v41 = vsub.f32 %v2507_v8, %v16014_v16  ;;  %v2443_v43 = vpop.trf.xlu0  ;;  %v16020_v15 = vpop.trf.xlu1  ;;  %v2721_v24 = vsub.f32 %v16005_v1, %v21549_v7  ;;  %2712 = vmatmul.mubr.f32.gmra.mrb[10].mxu1 %v2711_v33 }
 0x560   : > { %v2510_v45 = vsel %vm2484_vm2, %v2443_v43, 0  ;;  %2717 = vmatprep.mubr.f32.mxu1 %v21567_v11 }
 0x561   : > { %22568 = vst [vmem:[#allocation30_spill] sm:$0xff] %v16018_v41  ;;  %v21548_v57 = vand.u32 4294901760, %v16018_v41  ;;  %v16027_v48 = vand.u32 4294901760, %v2510_v45  ;;  %v2722_v26 = vand.u32 4294901760, %v2721_v24 }
 0x563   : > { %22569 = vst [vmem:[#allocation5_spill] sm:$0xff] %v16027_v48  ;;  %v16031_v14 = vsub.f32 %v2510_v45, %v16027_v48  ;;  %v2444_v53 = vpop.trf.xlu0  ;;  %v16033_v47 = vpop.trf.xlu1  ;;  %v2732_v3 = vsub.f32 %v16018_v41, %v21548_v57  ;;  %2723 = vmatmul.mubr.f32.gmra.mrb[12].mxu1 %v2722_v26  ;;  %v2543_v41 = vsel %vm2484_vm2, %v15948_v25, 0 }
 0x564   : > { %v2513_v13 = vsel %vm2484_vm2, %v2444_v53, 0  ;;  %2728 = vmatprep.mubr.f32.mxu1 %v21567_v11 }
 0x565   : > { %22570 = vst [vmem:[#allocation19_spill] sm:$0xff] %v16031_v14  ;;  %v21547_v21 = vand.u32 4294901760, %v16031_v14  ;;  %v16040_v37 = vand.u32 4294901760, %v2513_v13  ;;  %v2733_v55 = vand.u32 4294901760, %v2732_v3 }
 0x567   : > { %22571 = vst [vmem:[#allocation24_spill] sm:$0xff] %v16040_v37  ;;  %v16044_v39 = vsub.f32 %v2513_v13, %v16040_v37  ;;  %v2445_v9 = vpop.trf.xlu0  ;;  %v16046_v8 = vpop.trf.xlu1  ;;  %v2743_v33 = vsub.f32 %v16031_v14, %v21547_v21  ;;  %2734 = vmatmul.mubr.f32.gmra.mrb[14].mxu1 %v2733_v55 }
 0x568   : > { %v2516_v43 = vsel %vm2484_vm2, %v2445_v9, 0  ;;  %2739 = vmatprep.mubr.f32.mxu1 %v21567_v11 }
 0x569   : > { %22572 = vst [vmem:[#allocation25_spill] sm:$0xff] %v16044_v39  ;;  %v21551_v24 = vand.u32 4294901760, %v16044_v39  ;;  %v16053_v45 = vand.u32 4294901760, %v2516_v43  ;;  %v2744_v26 = vand.u32 4294901760, %v2743_v33 }
 0x56b   : > { %22573 = vst [vmem:[#allocation28_spill] sm:$0xff] %v16053_v45  ;;  %v16057_v53 = vsub.f32 %v2516_v43, %v16053_v45  ;;  %v2446_v3 = vpop.trf.xlu0  ;;  %v16059_v13 = vpop.trf.xlu1  ;;  %v2754_v21 = vsub.f32 %v16044_v39, %v21551_v24  ;;  %2745 = vmatmul.mubr.f32.gmra.mrb[16].mxu1 %v2744_v26 }
 0x56c   : > { %v2519_v55 = vsel %vm2484_vm2, %v2446_v3, 0  ;;  %2750 = vmatprep.mubr.f32.mxu1 %v21567_v11 }
 0x56d   : > { %22574 = vst [vmem:[#allocation29_spill] sm:$0xff] %v16057_v53  ;;  %v21555_v9 = vand.u32 4294901760, %v16057_v53  ;;  %v16066_v57 = vand.u32 4294901760, %v2519_v55  ;;  %v2755_v33 = vand.u32 4294901760, %v2754_v21 }
 0x56f   : > { %22575 = vst [vmem:[#allocation31_spill] sm:$0xff] %v16066_v57  ;;  %v16070_v43 = vsub.f32 %v2519_v55, %v16066_v57  ;;  %v2447_v7 = vpop.trf.xlu0  ;;  %v16072_v50 = vpop.trf.xlu1  ;;  %v2765_v24 = vsub.f32 %v16057_v53, %v21555_v9  ;;  %2756 = vmatmul.mubr.f32.gmra.mrb[18].mxu1 %v2755_v33 }
 0x570   : > { %v2522_v26 = vsel %vm2484_vm2, %v2447_v7, 0  ;;  %2761 = vmatprep.mubr.f32.mxu1 %v21567_v11 }
 0x571   : > { %22576 = vst [vmem:[#allocation32_spill] sm:$0xff] %v16070_v43  ;;  %v21560_v3 = vand.u32 4294901760, %v16070_v43  ;;  %v16079_v35 = vand.u32 4294901760, %v2522_v26  ;;  %v2766_v21 = vand.u32 4294901760, %v2765_v24 }
 0x573   : > { %22577 = vst [vmem:[#allocation33_spill] sm:$0xff] %v16079_v35  ;;  %v16083_v55 = vsub.f32 %v2522_v26, %v16079_v35  ;;  %v2448_v52 = vpop.trf.xlu0  ;;  %v16085_v19 = vpop.trf.xlu1  ;;  %v2776_v9 = vsub.f32 %v16070_v43, %v21560_v3  ;;  %2767 = vmatmul.mubr.f32.gmra.mrb[20].mxu1 %v2766_v21  ;;  %v2534_v26 = vsel %vm2484_vm2, %v15915_v38, 0 }
 0x574   : > { %v2525_v7 = vsel %vm2484_vm2, %v2448_v52, 0  ;;  %2772 = vmatprep.mubr.f32.mxu1 %v21567_v11  ;;  %v16110_v38 = vand.u32 4294901760, %v2534_v26 }
 0x575   : > { %22578 = vst [vmem:[#allocation34_spill] sm:$0xff] %v16083_v55  ;;  %v21566_v33 = vand.u32 4294901760, %v16083_v55  ;;  %v16092_v59 = vand.u32 4294901760, %v2525_v7  ;;  %v2777_v24 = vand.u32 4294901760, %v2776_v9 }
 0x576   : > { %22582 = vst [vmem:[#allocation38_spill] sm:$0xff] %v16110_v38 }
 0x577   : > { %22579 = vst [vmem:[#allocation35_spill] sm:$0xff] %v16092_v59  ;;  %v16098_v34 = vsub.f32 %v2525_v7, %v16092_v59  ;;  %v2449_v20 = vpop.trf.xlu0  ;;  %v16100_v61 = vpop.trf.xlu1  ;;  %v2787_v52 = vsub.f32 %v16083_v55, %v21566_v33  ;;  %2778 = vmatmul.mubr.f32.gmra.mrb[22].mxu1 %v2777_v24  ;;  %v2537_v7 = vsel %vm2484_vm2, %v15923_v32, 0  ;;  %v16124_v24 = vsub.f32 %v15879_v44, %v15886_v22 }
 0x578   : > { %v2528_v21 = vsel %vm2484_vm2, %v2449_v20, 0  ;;  %2783 = vmatprep.mubr.f32.mxu1 %v21567_v11  ;;  %v22585_v32 = vmov 0.0   ;;  %v16131_v55 = vsub.f32 %v2534_v26, %v16110_v38  ;;  %v16133_v39 = vand.u32 4294901760, %v2537_v7 }
 0x579   : > { %22580 = vst [vmem:[#allocation36_spill] sm:$0xff] %v16098_v34  ;;  %v21575_v3 = vand.u32 4294901760, %v16098_v34  ;;  %v16107_v51 = vand.u32 4294901760, %v2528_v21  ;;  %v2788_v9 = vand.u32 4294901760, %v2787_v52 }
 0x57a   : > { %22586 = vst [vmem:[#allocation41_spill] sm:$0xff] %v16131_v55  ;;  %22587 = vst [vmem:[#allocation42_spill] sm:$0xff] %v16133_v39 }
 0x57b   : > { %22581 = vst [vmem:[#allocation37_spill] sm:$0xff] %v16107_v51  ;;  %v16115_v43 = vsub.f32 %v2528_v21, %v16107_v51  ;;  %v2450_v53 = vpop.trf.xlu0  ;;  %v16117_v33 = vpop.trf.xlu1  ;;  %v2798_v20 = vsub.f32 %v16098_v34, %v21575_v3  ;;  %2789 = vmatmul.mubr.f32.gmra.mrb[24].mxu1 %v2788_v9  ;;  %v2540_v3 = vsel %vm2484_vm2, %v15933_v10, 0 }
 0x57c   : > { %v2531_v52 = vsel %vm2484_vm2, %v2450_v53, 0  ;;  %2794 = vmatprep.mubr.f32.mxu1 %v22585_v32 }
 0x57d   : > { %22583 = vst [vmem:[#allocation39_spill] sm:$0xff] %v16115_v43  ;;  %v16127_v11 = vand.u32 4294901760, %v2531_v52  ;;  %v2799_v21 = vand.u32 4294901760, %v2798_v20  ;;  %v21582_v14 = vand.u32 4294901760, %v16115_v43 }
 0x57f   : > { %22584 = vst [vmem:[#allocation40_spill] sm:$0xff] %v16127_v11  ;;  %v16139_v44 = vsub.f32 %v2531_v52, %v16127_v11  ;;  %v4587_v9 = vpop.trf.xlu1  ;;  %2800 = vmatmul.mubr.f32.gmra.mrb[26].mxu1 %v2799_v21  ;;  %v2809_v20 = vsub.f32 %v16115_v43, %v21582_v14  ;;  %v16152_v52 = vsub.f32 %v2537_v7, %v16133_v39  ;;  %v16154_v21 = vand.u32 4294901760, %v2540_v3 }
 0x580   : > { %v4637_v53 = vsel %vm2484_vm2, %v4587_v9, 0  ;;  %2805 = vmatprep.mubr.f32.mxu1 %v22585_v32  ;;  %v22593_v7 = vand.u32 4294901760, %v16124_v24 }
 0x581   : > { %22588 = vst [vmem:[#allocation43_spill] sm:$0xff] %v16139_v44  ;;  %v16146_v22 = vand.u32 4294901760, %v4637_v53  ;;  %v21591_v34 = vand.u32 4294901760, %v16139_v44  ;;  %22590 = vst [vmem:[#allocation45_spill] sm:$0xff] %v16152_v52  ;;  %v2810_v9 = vand.u32 4294901760, %v2809_v20  ;;  %v2546_v20 = vsel %vm2484_vm2, %v15962_v46, 0 }
 0x582   : > { %22591 = vst [vmem:[#allocation46_spill] sm:$0xff] %v16154_v21  ;;  %v5164_v1 = vsub.f32 %v16124_v24, %v22593_v7 }
 0x583   : > { %22589 = vst [vmem:[#allocation44_spill] sm:$0xff] %v16146_v22  ;;  %v16159_v14 = vsub.f32 %v4637_v53, %v16146_v22  ;;  %v4588_v26 = vpop.trf.xlu1  ;;  %v2820_v43 = vsub.f32 %v16139_v44, %v21591_v34  ;;  %2811 = vmatmul.mubr.f32.gmra.mrb[28].mxu1 %v2810_v9  ;;  %v16176_v9 = vsub.f32 %v2540_v3, %v16154_v21  ;;  %v22597_v34 = vand.u32 4294901760, %v16131_v55 }
 0x584   : > { %v4640_v10 = vsel %vm2484_vm2, %v4588_v26, 0  ;;  %2816 = vmatprep.mubr.f32.mxu1 %v22585_v32  ;;  %v16178_v26 = vand.u32 4294901760, %v2543_v41 }
 0x585   : > { %22592 = vst [vmem:[#allocation47_spill] sm:$0xff] %v16159_v14  ;;  %v21602_v25 = vand.u32 4294901760, %v16159_v14  ;;  %v16171_v23 = vand.u32 4294901760, %v4640_v10  ;;  %v2821_v53 = vand.u32 4294901760, %v2820_v43  ;;  %22595 = vst [vmem:[#allocation49_spill] sm:$0xff] %v16176_v9  ;;  %v2831_v7 = vsub.f32 %v16131_v55, %v22597_v34 }
 0x586   : > { %22596 = vst [vmem:[#allocation50_spill] sm:$0xff] %v16178_v26  ;;  %v16189_v43 = vand.u32 4294901760, %v2546_v20  ;;  %v5165_v34 = vand.u32 4294901760, %v5164_v1 }
 0x587   : > { %22594 = vst [vmem:[#allocation48_spill] sm:$0xff] %v16171_v23  ;;  %v4806_v46 = vsub.f32 %v16159_v14, %v21602_v25  ;;  %v16187_v44 = vsub.f32 %v4640_v10, %v16171_v23  ;;  %v4589_v27 = vpop.trf.xlu1  ;;  %2822 = vmatmul.mubr.f32.gmra.mrb[30].mxu1 %v2821_v53  ;;  %v16198_v25 = vsub.f32 %v2543_v41, %v16178_v26  ;;  %v2832_v10 = vand.u32 4294901760, %v2831_v7 }
 0x588   : > { %22599 = vst [vmem:[#allocation52_spill] sm:$0xff] %v16189_v43  ;;  %v4643_v3 = vsel %vm2484_vm2, %v4589_v27, 0  ;;  %2827 = vmatprep.mubr.f32.mxu1 %v22585_v32  ;;  %v22602_v14 = vand.u32 4294901760, %v16152_v52  ;;  %v2549_v27 = vsel %vm2484_vm2, %v15975_v58, 0  ;;  %v16212_v41 = vsub.f32 %v2546_v20, %v16189_v43 }
 0x589   : > { %22598 = vst [vmem:[#allocation51_spill] sm:$0xff] %v16187_v44  ;;  %v4807_v28 = vand.u32 4294901760, %v4806_v46  ;;  %v16193_v42 = vand.u32 4294901760, %v4643_v3  ;;  %22601 = vst [vmem:[#allocation54_spill] sm:$0xff] %v16198_v25  ;;  %v22604_v1 = vand.u32 4294901760, %v16187_v44 }
 0x58a   : > { %v2842_v53 = vsub.f32 %v16152_v52, %v22602_v14  ;;  %22605 = vst [vmem:[#allocation56_spill] sm:$0xff] %v16212_v41 }
 0x58b   : > { %22600 = vst [vmem:[#allocation53_spill] sm:$0xff] %v16193_v42  ;;  %v16206_v46 = vsub.f32 %v4643_v3, %v16193_v42  ;;  %4808 = vmatmul.mubr.f32.vlgmr.msra.gmra.mrb[32].mxu0 %v4807_v28  ;;  %v4590_v63 = vpop.trf.xlu1  ;;  %v4817_v55 = vsub.f32 %v16187_v44, %v22604_v1  ;;  %2833 = vmatmul.mubr.f32.gmra.mrb[32].mxu1 %v2832_v10  ;;  %v16221_v3 = vand.u32 4294901760, %v2549_v27  ;;  %v2552_v10 = vsel %vm2484_vm2, %v15991_v12, 0 }
 0x58c   : > { %5166 = vmatpush1.msra.mxu0 %v5165_v34  ;;  %v4646_v7 = vsel %vm2484_vm2, %v4590_v63, 0  ;;  %2838 = vmatprep.mubr.f32.mxu1 %v22585_v32  ;;  %v2843_v20 = vand.u32 4294901760, %v2842_v53  ;;  %v22608_v34 = vand.u32 4294901760, %v16176_v9  ;;  %v22614_v44 = vand.u32 4294901760, %v16198_v25 }
 0x58d   : > { %22603 = vst [vmem:[#allocation55_spill] sm:$0xff] %v16206_v46  ;;  %v16216_v52 = vand.u32 4294901760, %v4646_v7  ;;  %5456 = vmatprep.subr.mxu0 %v15900_v49  ;;  %v4818_v28 = vand.u32 4294901760, %v4817_v55  ;;  %22607 = vst [vmem:[#allocation58_spill] sm:$0xff] %v16221_v3  ;;  %4813 = vmatprep.mubr.f32.mxu0 %v22585_v32  ;;  %v22610_v55 = vand.u32 4294901760, %v16206_v46  ;;  %v16258_v49 = vpop.trf.xlu0 }
 0x58e   : > { %v2853_v63 = vsub.f32 %v16176_v9, %v22608_v34 }
 0x58f   : > { %22606 = vst [vmem:[#allocation57_spill] sm:$0xff] %v16216_v52  ;;  %v16230_v1 = vsub.f32 %v4646_v7, %v16216_v52  ;;  %4819 = vmatmul.mubr.f32.gmra.mrb[34].mxu0 %v4818_v28  ;;  %v4591_v14 = vpop.trf.xlu1  ;;  %v4828_v58 = vsub.f32 %v16206_v46, %v22610_v55  ;;  %2844 = vmatmul.mubr.f32.gmra.mrb[34].mxu1 %v2843_v20  ;;  %v16245_v28 = vand.u32 4294901760, %v2552_v10 }
 0x590   : > { %v4649_v53 = vsel %vm2484_vm2, %v4591_v14, 0  ;;  %4824 = vmatprep.mubr.f32.mxu0 %v22585_v32  ;;  %2849 = vmatprep.mubr.f32.mxu1 %v22585_v32  ;;  %v16243_v7 = vsub.f32 %v2549_v27, %v16221_v3  ;;  %v2854_v55 = vand.u32 4294901760, %v2853_v63  ;;  %v2864_v20 = vsub.f32 %v16198_v25, %v22614_v44 }
 0x591   : > { %22609 = vst [vmem:[#allocation59_spill] sm:$0xff] %v16230_v1  ;;  %v16239_v9 = vand.u32 4294901760, %v4649_v53  ;;  %v4829_v12 = vand.u32 4294901760, %v4828_v58  ;;  %22613 = vst [vmem:[#allocation62_spill] sm:$0xff] %v16245_v28  ;;  %v2555_v14 = vsel %vm2484_vm2, %v16007_v29, 0  ;;  %v22616_v58 = vand.u32 4294901760, %v16230_v1 }
 0x592   : > { %22612 = vst [vmem:[#allocation61_spill] sm:$0xff] %v16243_v7  ;;  %v22617_v44 = vand.u32 4294901760, %v16212_v41  ;;  %v2865_v2 = vand.u32 4294901760, %v2864_v20 }
 0x593   : > { %22611 = vst [vmem:[#allocation60_spill] sm:$0xff] %v16239_v9  ;;  %v16253_v34 = vsub.f32 %v4649_v53, %v16239_v9  ;;  %4830 = vmatmul.mubr.f32.gmra.mrb[36].mxu0 %v4829_v12  ;;  %v4592_v46 = vpop.trf.xlu1  ;;  %v4839_v27 = vsub.f32 %v16230_v1, %v22616_v58  ;;  %2855 = vmatmul.mubr.f32.gmra.mrb[36].mxu1 %v2854_v55  ;;  %v2558_v53 = vsel %vm2484_vm2, %v16020_v15, 0  ;;  %v16275_v1 = vand.u32 4294901760, %v2555_v14 }
 0x594   : > { %v4652_v63 = vsel %vm2484_vm2, %v4592_v46, 0  ;;  %4835 = vmatprep.mubr.f32.mxu0 %v22585_v32  ;;  %v2875_v29 = vsub.f32 %v16212_v41, %v22617_v44  ;;  %2860 = vmatprep.mubr.f32.mxu1 %v22585_v32  ;;  %v16273_v46 = vsub.f32 %v2552_v10, %v16245_v28  ;;  %v16283_v5 = vand.u32 4294901760, %v2558_v53 }
 0x595   : > { %22615 = vst [vmem:[#allocation63_spill] sm:$0xff] %v16253_v34  ;;  %v21625_v12 = vand.u32 4294901760, %v16253_v34  ;;  %v16268_v25 = vand.u32 4294901760, %v4652_v63  ;;  %v4840_v58 = vand.u32 4294901760, %v4839_v27  ;;  %22620 = vst [vmem:[#allocation66_spill] sm:$0xff] %v16275_v1 }
 0x596   : > { %22619 = vst [vmem:[#allocation65_spill] sm:$0xff] %v16273_v46  ;;  %22622 = vst [vmem:[#allocation68_spill] sm:$0xff] %v16283_v5  ;;  %v2876_v20 = vand.u32 4294901760, %v2875_v29  ;;  %v16309_v17 = vsub.f32 %v2558_v53, %v16283_v5  ;;  %v22631_v53 = vand.u32 4294901760, %v16273_v46 }
 0x597   : > { %22618 = vst [vmem:[#allocation64_spill] sm:$0xff] %v16268_v25  ;;  %v16278_v44 = vsub.f32 %v4652_v63, %v16268_v25  ;;  %4841 = vmatmul.mubr.f32.gmra.mrb[38].mxu0 %v4840_v58  ;;  %v4593_v15 = vpop.trf.xlu1  ;;  %v4850_v41 = vsub.f32 %v16253_v34, %v21625_v12  ;;  %2866 = vmatmul.mubr.f32.gmra.mrb[38].mxu1 %v2865_v2  ;;  %v16291_v58 = vpop.trf.xlu0  ;;  %v2561_v2 = vsel %vm2484_vm2, %v16033_v47, 0 }
 0x598   : > { %v4655_v27 = vsel %vm2484_vm2, %v4593_v15, 0  ;;  %4846 = vmatprep.mubr.f32.mxu0 %v22585_v32  ;;  %2871 = vmatprep.mubr.f32.mxu1 %v22585_v32  ;;  %v16295_v12 = vsub.f32 %v2555_v14, %v16275_v1  ;;  %v22625_v15 = vand.u32 4294901760, %v16243_v7  ;;  %22628 = vst [vmem:[#allocation72_spill] sm:$0xff] %v16309_v17  ;;  %v16313_v47 = vand.u32 4294901760, %v2561_v2 }
 0x599   : > { %22621 = vst [vmem:[#allocation67_spill] sm:$0xff] %v16278_v44  ;;  %v16288_v55 = vand.u32 4294901760, %v4655_v27  ;;  %v4851_v63 = vand.u32 4294901760, %v4850_v41  ;;  %v22627_v41 = vand.u32 4294901760, %v16278_v44 }
 0x59a   : > { %22624 = vst [vmem:[#allocation70_spill] sm:$0xff] %v16295_v12  ;;  %v2886_v10 = vsub.f32 %v16243_v7, %v22625_v15  ;;  %22629 = vst [vmem:[#allocation73_spill] sm:$0xff] %v16313_v47 }
 0x59b   : > { %22623 = vst [vmem:[#allocation69_spill] sm:$0xff] %v16288_v55  ;;  %v16303_v34 = vsub.f32 %v4655_v27, %v16288_v55  ;;  %4852 = vmatmul.mubr.f32.gmra.mrb[40].mxu0 %v4851_v63  ;;  %v4594_v29 = vpop.trf.xlu1  ;;  %v4861_v28 = vsub.f32 %v16278_v44, %v22627_v41  ;;  %2877 = vmatmul.mubr.f32.gmra.mrb[40].mxu1 %v2876_v20 }
 0x59c   : > { %v4658_v14 = vsel %vm2484_vm2, %v4594_v29, 0  ;;  %4857 = vmatprep.mubr.f32.mxu0 %v22585_v32  ;;  %2882 = vmatprep.mubr.f32.mxu1 %v22585_v32  ;;  %v2887_v41 = vand.u32 4294901760, %v2886_v10  ;;  %v2897_v20 = vsub.f32 %v16273_v46, %v22631_v53  ;;  %v2564_v29 = vsel %vm2484_vm2, %v16046_v8, 0 }
 0x59d   : > { %22626 = vst [vmem:[#allocation71_spill] sm:$0xff] %v16303_v34  ;;  %v16316_v27 = vand.u32 4294901760, %v4658_v14  ;;  %v4862_v63 = vand.u32 4294901760, %v4861_v28  ;;  %v22633_v5 = vand.u32 4294901760, %v16303_v34  ;;  %v16331_v28 = vpop.trf.xlu0  ;;  %v16337_v8 = vsub.f32 %v2561_v2, %v16313_v47 }
 0x59e   : > { %v2898_v46 = vand.u32 4294901760, %v2897_v20  ;;  %v22637_v10 = vand.u32 4294901760, %v16295_v12  ;;  %v22640_v20 = vand.u32 4294901760, %v16309_v17 }
 0x59f   : > { %22630 = vst [vmem:[#allocation74_spill] sm:$0xff] %v16316_v27  ;;  %v16326_v44 = vsub.f32 %v4658_v14, %v16316_v27  ;;  %4863 = vmatmul.mubr.f32.gmra.mrb[42].mxu0 %v4862_v63  ;;  %v4595_v15 = vpop.trf.xlu1  ;;  %v4872_v1 = vsub.f32 %v16303_v34, %v22633_v5  ;;  %2888 = vmatmul.mubr.f32.gmra.mrb[42].mxu1 %v2887_v41  ;;  %22634 = vst [vmem:[#allocation76_spill] sm:$0xff] %v16337_v8  ;;  %v16343_v5 = vand.u32 4294901760, %v2564_v29 }
 0x5a0   : > { %v4661_v7 = vsel %vm2484_vm2, %v4595_v15, 0  ;;  %4868 = vmatprep.mubr.f32.mxu0 %v22585_v32  ;;  %2893 = vmatprep.mubr.f32.mxu1 %v22585_v32  ;;  %v2908_v41 = vsub.f32 %v16295_v12, %v22637_v10  ;;  %v2567_v15 = vsel %vm2484_vm2, %v16059_v13, 0  ;;  %v2919_v10 = vsub.f32 %v16309_v17, %v22640_v20 }
 0x5a1   : > { %22632 = vst [vmem:[#allocation75_spill] sm:$0xff] %v16326_v44  ;;  %v16340_v63 = vand.u32 4294901760, %v4661_v7  ;;  %v4873_v53 = vand.u32 4294901760, %v4872_v1  ;;  %22636 = vst [vmem:[#allocation78_spill] sm:$0xff] %v16343_v5  ;;  %v22639_v34 = vand.u32 4294901760, %v16326_v44  ;;  %v2570_v20 = vsel %vm2484_vm2, %v16072_v50, 0 }
 0x5a3   : > { %22635 = vst [vmem:[#allocation77_spill] sm:$0xff] %v16340_v63  ;;  %v16351_v2 = vsub.f32 %v4661_v7, %v16340_v63  ;;  %4874 = vmatmul.mubr.f32.gmra.mrb[44].mxu0 %v4873_v53  ;;  %v4596_v14 = vpop.trf.xlu1  ;;  %v4883_v47 = vsub.f32 %v16326_v44, %v22639_v34  ;;  %2899 = vmatmul.mubr.f32.gmra.mrb[44].mxu1 %v2898_v46  ;;  %v16366_v63 = vpop.trf.xlu0  ;;  %v16371_v46 = vand.u32 4294901760, %v2567_v15 }
 0x5a4   : > { %v4664_v1 = vsel %vm2484_vm2, %v4596_v14, 0  ;;  %4879 = vmatprep.mubr.f32.mxu0 %v22585_v32  ;;  %2904 = vmatprep.mubr.f32.mxu1 %v22585_v32  ;;  %v16369_v34 = vsub.f32 %v2564_v29, %v16343_v5  ;;  %v2909_v14 = vand.u32 4294901760, %v2908_v41  ;;  %v2920_v29 = vand.u32 4294901760, %v2919_v10 }
 0x5a5   : > { %22638 = vst [vmem:[#allocation79_spill] sm:$0xff] %v16351_v2  ;;  %v16363_v12 = vand.u32 4294901760, %v4664_v1  ;;  %v4884_v53 = vand.u32 4294901760, %v4883_v47  ;;  %22643 = vst [vmem:[#allocation82_spill] sm:$0xff] %v16371_v46  ;;  %v22645_v17 = vand.u32 4294901760, %v16351_v2  ;;  %v2573_v10 = vsel %vm2484_vm2, %v16085_v19, 0 }
 0x5a6   : > { %22642 = vst [vmem:[#allocation81_spill] sm:$0xff] %v16369_v34 }
 0x5a7   : > { %22641 = vst [vmem:[#allocation80_spill] sm:$0xff] %v16363_v12  ;;  %v16376_v13 = vsub.f32 %v4664_v1, %v16363_v12  ;;  %4885 = vmatmul.mubr.f32.gmra.mrb[46].mxu0 %v4884_v53  ;;  %v4597_v7 = vpop.trf.xlu1  ;;  %v4894_v47 = vsub.f32 %v16351_v2, %v22645_v17  ;;  %2910 = vmatmul.mubr.f32.gmra.mrb[46].mxu1 %v2909_v14  ;;  %v22647_v1 = vand.u32 4294901760, %v16337_v8  ;;  %v16408_v12 = vand.u32 4294901760, %v2573_v10 }
 0x5a8   : > { %v4667_v44 = vsel %vm2484_vm2, %v4597_v7, 0  ;;  %4890 = vmatprep.mubr.f32.mxu0 %v22585_v32  ;;  %2915 = vmatprep.mubr.f32.mxu1 %v22585_v32  ;;  %v16392_v17 = vsub.f32 %v2567_v15, %v16371_v46  ;;  %v16394_v7 = vand.u32 4294901760, %v2570_v20  ;;  %v2576_v46 = vsel %vm2484_vm2, %v16100_v61, 0 }
 0x5a9   : > { %22644 = vst [vmem:[#allocation83_spill] sm:$0xff] %v16376_v13  ;;  %v16384_v5 = vand.u32 4294901760, %v4667_v44  ;;  %v4895_v50 = vand.u32 4294901760, %v4894_v47  ;;  %v2930_v53 = vsub.f32 %v16337_v8, %v22647_v1  ;;  %v22651_v47 = vand.u32 4294901760, %v16376_v13  ;;  %v16404_v1 = vpop.trf.xlu0  ;;  %22652 = vst [vmem:[#allocation88_spill] sm:$0xff] %v16408_v12 }
 0x5aa   : > { %22648 = vst [vmem:[#allocation85_spill] sm:$0xff] %v16392_v17  ;;  %22649 = vst [vmem:[#allocation86_spill] sm:$0xff] %v16394_v7 }
 0x5ab   : > { %22646 = vst [vmem:[#allocation84_spill] sm:$0xff] %v16384_v5  ;;  %v16399_v14 = vsub.f32 %v4667_v44, %v16384_v5  ;;  %4896 = vmatmul.mubr.f32.gmra.mrb[48].mxu0 %v4895_v50  ;;  %v4598_v41 = vpop.trf.xlu1  ;;  %v4905_v2 = vsub.f32 %v16376_v13, %v22651_v47  ;;  %2921 = vmatmul.mubr.f32.gmra.mrb[48].mxu1 %v2920_v29  ;;  %v2931_v13 = vand.u32 4294901760, %v2930_v53  ;;  %v22655_v29 = vand.u32 4294901760, %v16369_v34 }
 0x5ac   : > { %v4670_v15 = vsel %vm2484_vm2, %v4598_v41, 0  ;;  %4901 = vmatprep.mubr.f32.mxu0 %v22585_v32  ;;  %2926 = vmatprep.mubr.f32.mxu1 %v22585_v32  ;;  %v16416_v47 = vsub.f32 %v2570_v20, %v16394_v7  ;;  %v16432_v53 = vsub.f32 %v2573_v10, %v16408_v12  ;;  %v2579_v10 = vsel %vm2484_vm2, %v16117_v33, 0 }
 0x5ad   : > { %22650 = vst [vmem:[#allocation87_spill] sm:$0xff] %v16399_v14  ;;  %v16411_v8 = vand.u32 4294901760, %v4670_v15  ;;  %v4906_v44 = vand.u32 4294901760, %v4905_v2  ;;  %v2941_v41 = vsub.f32 %v16369_v34, %v22655_v29  ;;  %v22657_v2 = vand.u32 4294901760, %v16399_v14 }
 0x5ae   : > { %22654 = vst [vmem:[#allocation90_spill] sm:$0xff] %v16416_v47  ;;  %22658 = vst [vmem:[#allocation92_spill] sm:$0xff] %v16432_v53 }
 0x5af   : > { %22653 = vst [vmem:[#allocation89_spill] sm:$0xff] %v16411_v8  ;;  %v16424_v19 = vsub.f32 %v4670_v15, %v16411_v8  ;;  %4907 = vmatmul.mubr.f32.gmra.mrb[50].mxu0 %v4906_v44  ;;  %v4599_v5 = vpop.trf.xlu1  ;;  %v4916_v50 = vsub.f32 %v16399_v14, %v22657_v2  ;;  %2932 = vmatmul.mubr.f32.gmra.mrb[50].mxu1 %v2931_v13  ;;  %v16438_v44 = vpop.trf.xlu0  ;;  %v16441_v2 = vand.u32 4294901760, %v2576_v46  ;;  %v2942_v13 = vand.u32 4294901760, %v2941_v41 }
 0x5b0   : > { %v4673_v20 = vsel %vm2484_vm2, %v4599_v5, 0  ;;  %4912 = vmatprep.mubr.f32.mxu0 %v22585_v32  ;;  %2937 = vmatprep.mubr.f32.mxu1 %v22585_v32  ;;  %v22661_v5 = vand.u32 4294901760, %v16392_v17  ;;  %v4685_v41 = vsel %vm2484_vm2, %v16258_v49, 0 }
 0x5b1   : > { %22656 = vst [vmem:[#allocation91_spill] sm:$0xff] %v16424_v19  ;;  %v16435_v61 = vand.u32 4294901760, %v4673_v20  ;;  %v4917_v15 = vand.u32 4294901760, %v4916_v50  ;;  %22660 = vst [vmem:[#allocation94_spill] sm:$0xff] %v16441_v2  ;;  %v22663_v50 = vand.u32 4294901760, %v16424_v19 }
 0x5b2   : > { %v2952_v14 = vsub.f32 %v16392_v17, %v22661_v5  ;;  %v16464_v17 = vsub.f32 %v2576_v46, %v16441_v2  ;;  %v4688_v46 = vsel %vm2484_vm2, %v16291_v58, 0  ;;  %v4691_v58 = vsel %vm2484_vm2, %v16331_v28, 0 }
 0x5b3   : > { %22659 = vst [vmem:[#allocation93_spill] sm:$0xff] %v16435_v61  ;;  %v16449_v29 = vsub.f32 %v4673_v20, %v16435_v61  ;;  %4918 = vmatmul.mubr.f32.gmra.mrb[52].mxu0 %v4917_v15  ;;  %v4600_v12 = vpop.trf.xlu1  ;;  %v4927_v7 = vsub.f32 %v16424_v19, %v22663_v50  ;;  %2943 = vmatmul.mubr.f32.gmra.mrb[52].mxu1 %v2942_v13  ;;  %v16466_v13 = vand.u32 4294901760, %v2579_v10  ;;  %v22667_v50 = vand.u32 4294901760, %v16416_v47  ;;  %v16481_v2 = vpop.trf.xlu0 }
 0x5b4   : > { %v4676_v34 = vsel %vm2484_vm2, %v4600_v12, 0  ;;  %4923 = vmatprep.mubr.f32.mxu0 %v22585_v32  ;;  %2948 = vmatprep.mubr.f32.mxu1 %v22585_v32  ;;  %22665 = vst [vmem:[#allocation97_spill] sm:$0xff] %v16464_v17  ;;  %v2953_v12 = vand.u32 4294901760, %v2952_v14  ;;  %v22678_v28 = vand.u32 4294901760, %v16464_v17 }
 0x5b5   : > { %22662 = vst [vmem:[#allocation95_spill] sm:$0xff] %v16449_v29  ;;  %v21682_v33 = vand.u32 4294901760, %v16449_v29  ;;  %v16460_v20 = vand.u32 4294901760, %v4676_v34  ;;  %v4928_v15 = vand.u32 4294901760, %v4927_v7  ;;  %22666 = vst [vmem:[#allocation98_spill] sm:$0xff] %v16466_v13  ;;  %v2963_v19 = vsub.f32 %v16416_v47, %v22667_v50 }
 0x5b6   : > { %v16477_v7 = vand.u32 4294901760, %v4685_v41 }
 0x5b7   : > { %22664 = vst [vmem:[#allocation96_spill] sm:$0xff] %v16460_v20  ;;  %v16472_v49 = vsub.f32 %v4676_v34, %v16460_v20  ;;  %4929 = vmatmul.mubr.f32.gmra.mrb[54].mxu0 %v4928_v15  ;;  %v4601_v5 = vpop.trf.xlu1  ;;  %v4938_v61 = vsub.f32 %v16449_v29, %v21682_v33  ;;  %2954 = vmatmul.mubr.f32.gmra.mrb[54].mxu1 %v2953_v12  ;;  %v22671_v33 = vand.u32 4294901760, %v16432_v53  ;;  %v2964_v12 = vand.u32 4294901760, %v2963_v19 }
 0x5b8   : > { %22669 = vst [vmem:[#allocation100_spill] sm:$0xff] %v16477_v7  ;;  %v4679_v14 = vsel %vm2484_vm2, %v4601_v5, 0  ;;  %4934 = vmatprep.mubr.f32.mxu0 %v22585_v32  ;;  %2959 = vmatprep.mubr.f32.mxu1 %v22585_v32  ;;  %v16494_v29 = vsub.f32 %v2579_v10, %v16466_v13  ;;  %v16496_v5 = vand.u32 4294901760, %v4688_v46  ;;  %v16502_v8 = vsub.f32 %v4685_v41, %v16477_v7 }
 0x5b9   : > { %22668 = vst [vmem:[#allocation99_spill] sm:$0xff] %v16472_v49  ;;  %v16486_v15 = vand.u32 4294901760, %v4679_v14  ;;  %v4939_v50 = vand.u32 4294901760, %v4938_v61  ;;  %v2974_v47 = vsub.f32 %v16432_v53, %v22671_v33  ;;  %v22676_v61 = vand.u32 4294901760, %v16472_v49  ;;  %v4626_v53 = vpop.trf.xlu0 }
 0x5ba   : > { %22672 = vst [vmem:[#allocation102_spill] sm:$0xff] %v16494_v29  ;;  %22673 = vst [vmem:[#allocation103_spill] sm:$0xff] %v16496_v5 }
 0x5bb   : > { %22670 = vst [vmem:[#allocation101_spill] sm:$0xff] %v16486_v15  ;;  %v16499_v20 = vsub.f32 %v4679_v14, %v16486_v15  ;;  %4940 = vmatmul.mubr.f32.gmra.mrb[56].mxu0 %v4939_v50  ;;  %v4602_v34 = vpop.trf.xlu1  ;;  %22675 = vst [vmem:[#allocation105_spill] sm:$0xff] %v16502_v8  ;;  %v4949_v33 = vsub.f32 %v16472_v49, %v22676_v61  ;;  %2965 = vmatmul.mubr.f32.gmra.mrb[56].mxu1 %v2964_v12  ;;  %v2975_v41 = vand.u32 4294901760, %v2974_v47 }
 0x5bc   : > { %v4682_v19 = vsel %vm2484_vm2, %v4602_v34, 0  ;;  %4945 = vmatprep.mubr.f32.mxu0 %v22585_v32  ;;  %2970 = vmatprep.mubr.f32.mxu1 %v22585_v32  ;;  %v16517_v61 = vsub.f32 %v4688_v46, %v16496_v5  ;;  %v2985_v34 = vsub.f32 %v16464_v17, %v22678_v28  ;;  %v16522_v12 = vand.u32 4294901760, %v4691_v58 }
 0x5bd   : > { %22674 = vst [vmem:[#allocation104_spill] sm:$0xff] %v16499_v20  ;;  %v16512_v14 = vand.u32 4294901760, %v4682_v19  ;;  %v4950_v50 = vand.u32 4294901760, %v4949_v33  ;;  %v22680_v47 = vand.u32 4294901760, %v16499_v20  ;;  %v4694_v46 = vsel %vm2484_vm2, %v16366_v63, 0 }
 0x5be   : > { %22679 = vst [vmem:[#allocation107_spill] sm:$0xff] %v16522_v12  ;;  %v2986_v17 = vand.u32 4294901760, %v2985_v34  ;;  %v22682_v49 = vand.u32 4294901760, %v16494_v29 }
 0x5bf   : > { %22677 = vst [vmem:[#allocation106_spill] sm:$0xff] %v16512_v14  ;;  %v16525_v10 = vsub.f32 %v4682_v19, %v16512_v14  ;;  %4951 = vmatmul.mubr.f32.gmra.mrb[58].mxu0 %v4950_v50  ;;  %v4960_v33 = vsub.f32 %v16499_v20, %v22680_v47  ;;  %2976 = vmatmul.mubr.f32.gmra.mrb[58].mxu1 %v2975_v41  ;;  %v16546_v47 = vand.u32 4294901760, %v4694_v46  ;;  %v22684_v20 = vand.u32 4294901760, %v16502_v8  ;;  %v4627_v19 = vpop.trf.xlu0 }
 0x5c0   : > { %4956 = vmatprep.mubr.f32.mxu0 %v22585_v32  ;;  %2981 = vmatprep.mubr.f32.mxu1 %v22585_v32  ;;  %v16538_v50 = vsub.f32 %v4691_v58, %v16522_v12  ;;  %v2996_v41 = vsub.f32 %v16494_v29, %v22682_v49  ;;  %v4697_v58 = vsel %vm2484_vm2, %v16404_v1, 0  ;;  %v4700_v1 = vsel %vm2484_vm2, %v16438_v44, 0 }
 0x5c1   : > { %v21701_v28 = vand.u32 4294901760, %v16525_v10  ;;  %v4961_v7 = vand.u32 4294901760, %v4960_v33  ;;  %22683 = vst [vmem:[#allocation109_spill] sm:$0xff] %v16546_v47  ;;  %v4982_v33 = vsub.f32 %v16502_v8, %v22684_v20  ;;  %v16560_v20 = vsub.f32 %v4694_v46, %v16546_v47 }
 0x5c2   : > { %22681 = vst [vmem:[#allocation108_spill] sm:$0xff] %v16538_v50  ;;  %v2997_v34 = vand.u32 4294901760, %v2996_v41  ;;  %v16562_v8 = vand.u32 4294901760, %v4697_v58 }
 0x5c3   : > { %4962 = vmatmul.mubr.f32.gmra.mrb[60].mxu0 %v4961_v7  ;;  %v4971_v63 = vsub.f32 %v16525_v10, %v21701_v28  ;;  %2987 = vmatmul.mubr.f32.gmra.mrb[60].mxu1 %v2986_v17  ;;  %v21706_v7 = vand.u32 4294901760, %v16538_v50  ;;  %v22685_v28 = vand.u32 4294901760, %v16517_v61  ;;  %22686 = vst [vmem:[#allocation110_spill] sm:$0xff] %v16560_v20  ;;  %v4983_v17 = vand.u32 4294901760, %v4982_v33  ;;  %v4628_v41 = vpop.trf.xlu0 }
 0x5c4   : > { %4967 = vmatprep.mubr.f32.mxu0 %v22585_v32  ;;  %2992 = vmatprep.mubr.f32.mxu1 %v22585_v32  ;;  %22687 = vst [vmem:[#allocation111_spill] sm:$0xff] %v16562_v8  ;;  %v21709_v46 = vand.u32 4294901760, %v16560_v20  ;;  %v16573_v33 = vsub.f32 %v4697_v58, %v16562_v8 }
 0x5c5   : > { %v4972_v49 = vand.u32 4294901760, %v4971_v63  ;;  %v4993_v29 = vsub.f32 %v16517_v61, %v22685_v28  ;;  %v5004_v28 = vsub.f32 %v16538_v50, %v21706_v7  ;;  %v4706_v7 = vsel %vm2484_vm2, %v4626_v53, 0 }
 0x5c6   : > { %22688 = vst [vmem:[#allocation112_spill] sm:$0xff] %v16573_v33 }
 0x5c7   : > { %4973 = vmatmul.mubr.f32.gmra.mrb[62].mxu0 %v4972_v49  ;;  %2998 = vmatmul.mubr.f32.gmra.mrb[62].mxu1 %v2997_v34  ;;  %v4994_v63 = vand.u32 4294901760, %v4993_v29  ;;  %v16575_v49 = vand.u32 4294901760, %v4700_v1  ;;  %v4703_v34 = vsel %vm2484_vm2, %v16481_v2, 0  ;;  %v5005_v29 = vand.u32 4294901760, %v5004_v28 }
 0x5c8   : > { %4978 = vmatprep.mubr.f32.mxu0 %v22585_v32  ;;  %3078 = vmatprep.mubr.f32.mxu1 %v22585_v32  ;;  %v16584_v44 = vand.u32 4294901760, %v4703_v34  ;;  %v5015_v2 = vsub.f32 %v16560_v20, %v21709_v46  ;;  %v22692_v46 = vand.u32 4294901760, %v16573_v33 }
 0x5c9   : > { %22689 = vst [vmem:[#allocation113_spill] sm:$0xff] %v16575_v49 }
 0x5ca   : > { %22690 = vst [vmem:[#allocation114_spill] sm:$0xff] %v16584_v44  ;;  %v16598_v28 = vsub.f32 %v4703_v34, %v16584_v44  ;;  %v5016_v58 = vand.u32 4294901760, %v5015_v2  ;;  %v5026_v53 = vsub.f32 %v16573_v33, %v22692_v46 }
 0x5cb   : > { %4984 = vmatmul.mubr.f32.gmra.mrb[64].mxu0 %v4983_v17  ;;  %3080 = vmatmul.mubr.f32.vlgmr.msra.gmra.mrb[0].mxu1 %v15918_v0  ;;  %v16588_v17 = vsub.f32 %v4700_v1, %v16575_v49  ;;  %v4629_v0 = vpop.trf.xlu0 }
 0x5cc   : > { %4989 = vmatprep.mubr.f32.mxu0 %v22585_v32  ;;  %3308 = vmatpush1.msra.mxu1 %v15913_v31  ;;  %v21722_v2 = vand.u32 4294901760, %v16598_v28  ;;  %v5027_v1 = vand.u32 4294901760, %v5026_v53 }
 0x5cd   : > { %3085 = vmatprep.mubr.f32.mxu1 %v22585_v32  ;;  %3629 = vmatprep.subr.mxu1 %v15888_v36 }
 0x5cf   : > { %4995 = vmatmul.mubr.f32.gmra.mrb[66].mxu0 %v4994_v63  ;;  %3087 = vmatmul.mubr.f32.gmra.mrb[2].mxu1 %v15928_v56  ;;  %v16600_v63 = vand.u32 4294901760, %v4706_v7  ;;  %v4709_v56 = vsel %vm2484_vm2, %v4627_v19, 0  ;;  %v4630_v34 = vpop.trf.xlu0  ;;  %v22696_v19 = vand.u32 4294901760, %v16588_v17 }
 0x5d0   : > { %5000 = vmatprep.mubr.f32.mxu0 %v22585_v32  ;;  %3092 = vmatprep.mubr.f32.mxu1 %v22585_v32 }
 0x5d1   : > { %22691 = vst [vmem:[#allocation115_spill] sm:$0xff] %v16600_v63  ;;  %v16618_v46 = vsub.f32 %v4706_v7, %v16600_v63  ;;  %v5037_v33 = vsub.f32 %v16588_v17, %v22696_v19 }
 0x5d3   : > { %5006 = vmatmul.mubr.f32.gmra.mrb[68].mxu0 %v5005_v29  ;;  %3094 = vmatmul.mubr.f32.gmra.mrb[4].mxu1 %v15943_v62  ;;  %v16620_v62 = vand.u32 4294901760, %v4709_v56  ;;  %v5038_v19 = vand.u32 4294901760, %v5037_v33 }
 0x5d4   : > { %5011 = vmatprep.mubr.f32.mxu0 %v22585_v32  ;;  %3099 = vmatprep.mubr.f32.mxu1 %v22585_v32 }
 0x5d5   : > { %v2384_v20 = vpop.permute.xlu1 %2383  ;;  %22695 = vst [vmem:[#allocation118_spill] sm:$0xff] %v16620_v62  ;;  %v16638_v53 = vsub.f32 %v4709_v56, %v16620_v62 }
 0x5d6   : > { %v16611_v50 = vadd.f32 %v2384_v20, %v15875_v54  ;;  %v16614_v29 = vadd.f32 %v2384_v20, %v15910_v30  ;;  %v4712_v20 = vsel %vm2484_vm2, %v4628_v41, 0  ;;  %v4631_v54 = vpop.trf.xlu0  ;;  %v4715_v41 = vsel %vm2484_vm2, %v4629_v0, 0 }
 0x5d7   : > { %5017 = vmatmul.mubr.f32.gmra.mrb[70].mxu0 %v5016_v58  ;;  %3101 = vmatmul.mubr.f32.gmra.mrb[6].mxu1 %v15955_v40  ;;  %v5048_v58 = vsub.f32 %v16598_v28, %v21722_v2  ;;  %v16640_v30 = vand.u32 4294901760, %v4712_v20  ;;  %v21729_v56 = vand.u32 4294901760, %v16638_v53  ;;  %v16653_v2 = vand.u32 4294901760, %v4715_v41 }
 0x5d8   : > { %22693 = vst [vmem:[#allocation116_spill] sm:$0xff] %v16611_v50  ;;  %22694 = vst [vmem:[#allocation117_spill] sm:$0xff] %v16614_v29  ;;  %3106 = vmatprep.mubr.f32.mxu1 %v22585_v32  ;;  %5022 = vmatprep.mubr.f32.mxu0 %v22585_v32  ;;  %v22698_v50 = vand.u32 4294901760, %v16618_v46  ;;  %v4718_v29 = vsel %vm2484_vm2, %v4630_v34, 0 }
 0x5d9   : > { %22697 = vst [vmem:[#allocation119_spill] sm:$0xff] %v16640_v30  ;;  %v5049_v7 = vand.u32 4294901760, %v5048_v58  ;;  %v16651_v33 = vsub.f32 %v4712_v20, %v16640_v30  ;;  %22699 = vst [vmem:[#allocation120_spill] sm:$0xff] %v16653_v2  ;;  %v16659_v58 = vand.u32 4294901760, %v4718_v29  ;;  %v5070_v34 = vsub.f32 %v16638_v53, %v21729_v56 }
 0x5da   : > { %v4632_v0 = vpop.trf.xlu0 }
 0x5db   : > { %5028 = vmatmul.mubr.f32.gmra.mrb[72].mxu0 %v5027_v1  ;;  %3108 = vmatmul.mubr.f32.gmra.mrb[8].mxu1 %v15969_v60  ;;  %v5059_v1 = vsub.f32 %v16618_v46, %v22698_v50  ;;  %22700 = vst [vmem:[#allocation121_spill] sm:$0xff] %v16659_v58  ;;  %v21732_v50 = vand.u32 4294901760, %v16651_v33  ;;  %v16673_v60 = vsub.f32 %v4718_v29, %v16659_v58 }
 0x5dc   : > { %5033 = vmatprep.mubr.f32.mxu0 %v22585_v32  ;;  %3113 = vmatprep.mubr.f32.mxu1 %v22585_v32 }
 0x5dd   : > { %v5060_v20 = vand.u32 4294901760, %v5059_v1  ;;  %v5081_v56 = vsub.f32 %v16651_v33, %v21732_v50 }
 0x5df   : > { %5039 = vmatmul.mubr.f32.gmra.mrb[74].mxu0 %v5038_v19  ;;  %3115 = vmatmul.mubr.f32.gmra.mrb[10].mxu1 %v15985_v6  ;;  %v16663_v19 = vsub.f32 %v4715_v41, %v16653_v2  ;;  %v4721_v6 = vsel %vm2484_vm2, %v4631_v54, 0  ;;  %v5071_v41 = vand.u32 4294901760, %v5070_v34  ;;  %v4724_v54 = vsel %vm2484_vm2, %v4632_v0, 0 }
 0x5e0   : > { %5044 = vmatprep.mubr.f32.mxu0 %v22585_v32  ;;  %3120 = vmatprep.mubr.f32.mxu1 %v22585_v32  ;;  %v16676_v1 = vand.u32 4294901760, %v4721_v6  ;;  %v5082_v34 = vand.u32 4294901760, %v5081_v56 }
 0x5e1   : > { %22701 = vst [vmem:[#allocation122_spill] sm:$0xff] %v16663_v19  ;;  %v22704_v50 = vand.u32 4294901760, %v16663_v19 }
 0x5e2   : > { %22702 = vst [vmem:[#allocation123_spill] sm:$0xff] %v16676_v1 }
 0x5e3   : > { %5050 = vmatmul.mubr.f32.gmra.mrb[76].mxu0 %v5049_v7  ;;  %3122 = vmatmul.mubr.f32.gmra.mrb[12].mxu1 %v16001_v18  ;;  %v4633_v18 = vpop.trf.xlu0  ;;  %v16689_v7 = vand.u32 4294901760, %v4724_v54  ;;  %v5092_v40 = vsub.f32 %v16663_v19, %v22704_v50 }
 0x5e4   : > { %5055 = vmatprep.mubr.f32.mxu0 %v22585_v32  ;;  %3127 = vmatprep.mubr.f32.mxu1 %v22585_v32  ;;  %v4727_v0 = vsel %vm2484_vm2, %v4633_v18, 0 }
 0x5e5   : > { %22703 = vst [vmem:[#allocation124_spill] sm:$0xff] %v16689_v7  ;;  %v5093_v50 = vand.u32 4294901760, %v5092_v40  ;;  %v16705_v19 = vand.u32 4294901760, %v4727_v0 }
 0x5e7   : > { %5061 = vmatmul.mubr.f32.gmra.mrb[78].mxu0 %v5060_v20  ;;  %3129 = vmatmul.mubr.f32.gmra.mrb[14].mxu1 %v16014_v16  ;;  %v16687_v20 = vsub.f32 %v4721_v6, %v16676_v1  ;;  %v4634_v29 = vpop.trf.xlu0  ;;  %v16703_v16 = vsub.f32 %v4724_v54, %v16689_v7  ;;  %22706 = vst [vmem:[#allocation125_spill] sm:$0xff] %v16705_v19 }
 0x5e8   : > { %5066 = vmatprep.mubr.f32.mxu0 %v22585_v32  ;;  %3134 = vmatprep.mubr.f32.mxu1 %v22585_v32  ;;  %v4730_v18 = vsel %vm2484_vm2, %v4634_v29, 0 }
 0x5e9   : > { %v21741_v56 = vand.u32 4294901760, %v16687_v20  ;;  %v16715_v54 = vand.u32 4294901760, %v4730_v18 }
 0x5eb   : > { %5072 = vmatmul.mubr.f32.gmra.mrb[80].mxu0 %v5071_v41  ;;  %3136 = vmatmul.mubr.f32.gmra.mrb[16].mxu1 %v16027_v48  ;;  %v22705_v41 = vand.u32 4294901760, %v16673_v60  ;;  %22707 = vst [vmem:[#allocation126_spill] sm:$0xff] %v16715_v54  ;;  %v5114_v40 = vsub.f32 %v16687_v20, %v21741_v56 }
 0x5ec   : > { %5077 = vmatprep.mubr.f32.mxu0 %v22585_v32  ;;  %3141 = vmatprep.mubr.f32.mxu1 %v22585_v32 }
 0x5ed   : > { %v5103_v6 = vsub.f32 %v16673_v60, %v22705_v41  ;;  %v21746_v41 = vand.u32 4294901760, %v16703_v16 }
 0x5ef   : > { %5083 = vmatmul.mubr.f32.gmra.mrb[82].mxu0 %v5082_v34  ;;  %3143 = vmatmul.mubr.f32.gmra.mrb[18].mxu1 %v16040_v37  ;;  %v5104_v48 = vand.u32 4294901760, %v5103_v6  ;;  %v16713_v34 = vsub.f32 %v4727_v0, %v16705_v19  ;;  %v16725_v6 = vsub.f32 %v4730_v18, %v16715_v54  ;;  %v5115_v0 = vand.u32 4294901760, %v5114_v40  ;;  %v22775_v37 = vld [vmem:[#allocation97_spill] sm:$0xff] }
 0x5f0   : > { %5088 = vmatprep.mubr.f32.mxu0 %v22585_v32  ;;  %3148 = vmatprep.mubr.f32.mxu1 %v22585_v32 }
 0x5f1   : > { %v21745_v29 = vand.u32 4294901760, %v16713_v34  ;;  %v21744_v56 = vand.u32 4294901760, %v16725_v6 }
 0x5f3   : > { %5094 = vmatmul.mubr.f32.gmra.mrb[84].mxu0 %v5093_v50  ;;  %3150 = vmatmul.mubr.f32.gmra.mrb[20].mxu1 %v16053_v45  ;;  %v5125_v50 = vsub.f32 %v16703_v16, %v21746_v41  ;;  %v5147_v40 = vsub.f32 %v16725_v6, %v21744_v56  ;;  %v22714_v56 = vld [vmem:[#allocation84_spill] sm:$0xff]  ;;  %v22716_v41 = vld [vmem:[#allocation89_spill] sm:$0xff] }
 0x5f4   : > { %5099 = vmatprep.mubr.f32.mxu0 %v22585_v32  ;;  %3155 = vmatprep.mubr.f32.mxu1 %v22585_v32 }
 0x5f5   : > { %v5126_v45 = vand.u32 4294901760, %v5125_v50  ;;  %v22709_v50 = vld [vmem:[#allocation66_spill] sm:$0xff] }
 0x5f7   : > { %5105 = vmatmul.mubr.f32.gmra.mrb[86].mxu0 %v5104_v48  ;;  %3157 = vmatmul.mubr.f32.gmra.mrb[22].mxu1 %v16066_v57  ;;  %v5136_v48 = vsub.f32 %v16713_v34, %v21745_v29  ;;  %v22715_v29 = vld [vmem:[#allocation78_spill] sm:$0xff]  ;;  %v22774_v57 = vld [vmem:[#allocation104_spill] sm:$0xff] }
 0x5f8   : > { %5110 = vmatprep.mubr.f32.mxu0 %v22585_v32  ;;  %3162 = vmatprep.mubr.f32.mxu1 %v22585_v32 }
 0x5f9   : > { %v5137_v18 = vand.u32 4294901760, %v5136_v48  ;;  %v22710_v48 = vld [vmem:[#allocation77_spill] sm:$0xff] }
 0x5fb   : > { %5116 = vmatmul.mubr.f32.gmra.mrb[88].mxu0 %v5115_v0  ;;  %3164 = vmatmul.mubr.f32.gmra.mrb[24].mxu1 %v16079_v35  ;;  %v5148_v0 = vand.u32 4294901760, %v5147_v40  ;;  %v22712_v40 = vld [vmem:[#allocation80_spill] sm:$0xff] }
 0x5fc   : > { %5121 = vmatprep.mubr.f32.mxu0 %v22585_v32  ;;  %3169 = vmatprep.mubr.f32.mxu1 %v22585_v32  ;;  %v22773_v35 = vld [vmem:[#allocation92_spill] sm:$0xff] }
 0x5ff   : > { %5127 = vmatmul.mubr.f32.gmra.mrb[90].mxu0 %v5126_v45  ;;  %3171 = vmatmul.mubr.f32.gmra.mrb[26].mxu1 %v16092_v59  ;;  %v22708_v45 = vld [vmem:[#allocation62_spill] sm:$0xff]  ;;  %v22772_v59 = vld [vmem:[#allocation99_spill] sm:$0xff] }
 0x600   : > { %5132 = vmatprep.mubr.f32.mxu0 %v22585_v32  ;;  %3176 = vmatprep.mubr.f32.mxu1 %v22585_v32 }
 0x603   : > { %5138 = vmatmul.mubr.f32.gmra.mrb[92].mxu0 %v5137_v18  ;;  %3178 = vmatmul.mubr.f32.gmra.mrb[28].mxu1 %v16107_v51  ;;  %v22711_v18 = vld [vmem:[#allocation68_spill] sm:$0xff]  ;;  %v22771_v51 = vld [vmem:[#allocation90_spill] sm:$0xff] }
 0x604   : > { %5143 = vmatprep.mubr.f32.mxu0 %v22585_v32  ;;  %3183 = vmatprep.mubr.f32.mxu1 %v22585_v32 }
 0x607   : > { %5149 = vmatmul.mubr.f32.gmra.mrb[94].mxu0 %v5148_v0  ;;  %3185 = vmatmul.mubr.f32.gmra.mrb[30].mxu1 %v16127_v11  ;;  %v22713_v0 = vld [vmem:[#allocation73_spill] sm:$0xff]  ;;  %v22770_v11 = vld [vmem:[#allocation95_spill] sm:$0xff] }
 0x608   : > { %5229 = vmatprep.mubr.f32.mxu0 %v22585_v32  ;;  %3190 = vmatprep.mubr.f32.mxu1 %v22585_v32 }
 0x60b   : > { %5231 = vmatmul.mubr.f32.vlgmr.msra.gmra.mrb[32].mxu0 %v16146_v22  ;;  %3192 = vmatmul.mubr.f32.gmra.mrb[32].mxu1 %v16110_v38  ;;  %v22768_v38 = vld [vmem:[#allocation91_spill] sm:$0xff]  ;;  %v22769_v22 = vld [vmem:[#allocation85_spill] sm:$0xff] }
 0x60c   : > { %5459 = vmatpush1.msra.mxu0 %v16124_v24  ;;  %3197 = vmatprep.mubr.f32.mxu1 %v22585_v32 }
 0x60d   : > { %5780 = vmatprep.subr.mxu0 %v15890_v4  ;;  %5236 = vmatprep.mubr.f32.mxu0 %v22585_v32 }
 0x60f   : > { %5238 = vmatmul.mubr.f32.gmra.mrb[34].mxu0 %v16171_v23  ;;  %3199 = vmatmul.mubr.f32.gmra.mrb[34].mxu1 %v16133_v39  ;;  %v22765_v39 = vld [vmem:[#allocation76_spill] sm:$0xff]  ;;  %v22766_v23 = vld [vmem:[#allocation87_spill] sm:$0xff] }
 0x610   : > { %5243 = vmatprep.mubr.f32.mxu0 %v22585_v32  ;;  %3204 = vmatprep.mubr.f32.mxu1 %v22585_v32 }
 0x613   : > { %5245 = vmatmul.mubr.f32.gmra.mrb[36].mxu0 %v16193_v42  ;;  %3206 = vmatmul.mubr.f32.gmra.mrb[36].mxu1 %v16154_v21  ;;  %v22763_v21 = vld [vmem:[#allocation72_spill] sm:$0xff]  ;;  %v22764_v42 = vld [vmem:[#allocation83_spill] sm:$0xff] }
 0x614   : > { %5250 = vmatprep.mubr.f32.mxu0 %v22585_v32  ;;  %3211 = vmatprep.mubr.f32.mxu1 %v22585_v32 }
 0x617   : > { %5252 = vmatmul.mubr.f32.gmra.mrb[38].mxu0 %v16216_v52  ;;  %3213 = vmatmul.mubr.f32.gmra.mrb[38].mxu1 %v16178_v26  ;;  %v22761_v26 = vld [vmem:[#allocation70_spill] sm:$0xff]  ;;  %v22762_v52 = vld [vmem:[#allocation79_spill] sm:$0xff] }
 0x618   : > { %5257 = vmatprep.mubr.f32.mxu0 %v22585_v32  ;;  %3218 = vmatprep.mubr.f32.mxu1 %v22585_v32 }
 0x61b   : > { %5259 = vmatmul.mubr.f32.gmra.mrb[40].mxu0 %v16239_v9  ;;  %3220 = vmatmul.mubr.f32.gmra.mrb[40].mxu1 %v16189_v43  ;;  %v22759_v43 = vld [vmem:[#allocation65_spill] sm:$0xff]  ;;  %v22760_v9 = vld [vmem:[#allocation75_spill] sm:$0xff] }
 0x61c   : > { %5264 = vmatprep.mubr.f32.mxu0 %v22585_v32  ;;  %3225 = vmatprep.mubr.f32.mxu1 %v22585_v32 }
 0x61f   : > { %5266 = vmatmul.mubr.f32.gmra.mrb[42].mxu0 %v16268_v25  ;;  %3227 = vmatmul.mubr.f32.gmra.mrb[42].mxu1 %v16221_v3  ;;  %v22757_v3 = vld [vmem:[#allocation61_spill] sm:$0xff]  ;;  %v22758_v25 = vld [vmem:[#allocation71_spill] sm:$0xff] }
 0x620   : > { %5271 = vmatprep.mubr.f32.mxu0 %v22585_v32  ;;  %3232 = vmatprep.mubr.f32.mxu1 %v22585_v32 }
 0x623   : > { %5273 = vmatmul.mubr.f32.gmra.mrb[44].mxu0 %v16288_v55  ;;  %3234 = vmatmul.mubr.f32.gmra.mrb[44].mxu1 %v22708_v45  ;;  %v22755_v45 = vld [vmem:[#allocation56_spill] sm:$0xff]  ;;  %v22756_v55 = vld [vmem:[#allocation67_spill] sm:$0xff] }
 0x624   : > { %5278 = vmatprep.mubr.f32.mxu0 %v22585_v32  ;;  %3239 = vmatprep.mubr.f32.mxu1 %v22585_v32 }
 0x627   : > { %5280 = vmatmul.mubr.f32.gmra.mrb[46].mxu0 %v16316_v27  ;;  %3241 = vmatmul.mubr.f32.gmra.mrb[46].mxu1 %v22709_v50  ;;  %v22751_v50 = vld [vmem:[#allocation49_spill] sm:$0xff]  ;;  %v22754_v27 = vld [vmem:[#allocation63_spill] sm:$0xff] }
 0x628   : > { %5285 = vmatprep.mubr.f32.mxu0 %v22585_v32  ;;  %3246 = vmatprep.mubr.f32.mxu1 %v22585_v32 }
 0x62b   : > { %5287 = vmatmul.mubr.f32.gmra.mrb[48].mxu0 %v22710_v48  ;;  %3248 = vmatmul.mubr.f32.gmra.mrb[48].mxu1 %v22711_v18  ;;  %v22717_v18 = vld [vmem:[#allocation82_spill] sm:$0xff]  ;;  %v22750_v48 = vld [vmem:[#allocation55_spill] sm:$0xff] }
 0x62c   : > { %5292 = vmatprep.mubr.f32.mxu0 %v22585_v32  ;;  %3253 = vmatprep.mubr.f32.mxu1 %v22585_v32 }
 0x62f   : > { %5294 = vmatmul.mubr.f32.gmra.mrb[50].mxu0 %v22712_v40  ;;  %3255 = vmatmul.mubr.f32.gmra.mrb[50].mxu1 %v22713_v0  ;;  %v22718_v0 = vld [vmem:[#allocation93_spill] sm:$0xff]  ;;  %v22719_v40 = vld [vmem:[#allocation86_spill] sm:$0xff] }
 0x630   : > { %5299 = vmatprep.mubr.f32.mxu0 %v22585_v32  ;;  %3260 = vmatprep.mubr.f32.mxu1 %v22585_v32 }
 0x633   : > { %5301 = vmatmul.mubr.f32.gmra.mrb[52].mxu0 %v22714_v56  ;;  %3262 = vmatmul.mubr.f32.gmra.mrb[52].mxu1 %v22715_v29  ;;  %v22720_v29 = vld [vmem:[#allocation96_spill] sm:$0xff] }
 0x634   : > { %5306 = vmatprep.mubr.f32.mxu0 %v22585_v32  ;;  %3267 = vmatprep.mubr.f32.mxu1 %v22585_v32  ;;  %v22721_v56 = vld [vmem:[#allocation88_spill] sm:$0xff] }
 0x637   : > { %5308 = vmatmul.mubr.f32.gmra.mrb[54].mxu0 %v22716_v41  ;;  %3269 = vmatmul.mubr.f32.gmra.mrb[54].mxu1 %v22717_v18  ;;  %v22722_v18 = vld [vmem:[#allocation94_spill] sm:$0xff]  ;;  %v22749_v41 = vld [vmem:[#allocation45_spill] sm:$0xff] }
 0x638   : > { %5313 = vmatprep.mubr.f32.mxu0 %v22585_v32  ;;  %3274 = vmatprep.mubr.f32.mxu1 %v22585_v32 }
 0x63b   : > { %5315 = vmatmul.mubr.f32.gmra.mrb[56].mxu0 %v22718_v0  ;;  %3276 = vmatmul.mubr.f32.gmra.mrb[56].mxu1 %v22719_v40 }
 0x63c   : > { %5320 = vmatprep.mubr.f32.mxu0 %v22585_v32  ;;  %3281 = vmatprep.mubr.f32.mxu1 %v22585_v32 }
 0x63f   : > { %5322 = vmatmul.mubr.f32.gmra.mrb[58].mxu0 %v22720_v29  ;;  %3283 = vmatmul.mubr.f32.gmra.mrb[58].mxu1 %v22721_v56  ;;  %v22723_v56 = vld [vmem:[#allocation100_spill] sm:$0xff]  ;;  %v22724_v29 = vld [vmem:[#allocation11_spill] sm:$0xff] }
 0x640   : > { %5327 = vmatprep.mubr.f32.mxu0 %v22585_v32  ;;  %3288 = vmatprep.mubr.f32.mxu1 %v22585_v32 }
 0x643   : > { %5329 = vmatmul.mubr.f32.gmra.mrb[60].mxu0 %v16486_v15  ;;  %3290 = vmatmul.mubr.f32.gmra.mrb[60].mxu1 %v22722_v18  ;;  %v22725_v15 = vld [vmem:[#allocation6_spill] sm:$0xff]  ;;  %v22726_v18 = vld [vmem:[#allocation8_spill] sm:$0xff] }
 0x644   : > { %5334 = vmatprep.mubr.f32.mxu0 %v22585_v32  ;;  %3295 = vmatprep.mubr.f32.mxu1 %v22585_v32  ;;  %v22727_v40 = vand.u32 4294901760, %v22726_v18  ;;  %v22730_v18 = vld [vmem:[#allocation16_spill] sm:$0xff] }
 0x647   : > { %5336 = vmatmul.mubr.f32.gmra.mrb[62].mxu0 %v16512_v14  ;;  %3297 = vmatmul.mubr.f32.gmra.mrb[62].mxu1 %v16466_v13  ;;  %v22728_v13 = vld [vmem:[#allocation13_spill] sm:$0xff]  ;;  %v22745_v14 = vld [vmem:[#allocation7_spill] sm:$0xff] }
 0x648   : > { %5341 = vmatprep.mubr.f32.mxu0 %v22585_v32  ;;  %3371 = vmatprep.mubr.f32.mxu1 %v22585_v32 }
 0x64b   : > { %5343 = vmatmul.mubr.f32.gmra.mrb[64].mxu0 %v22723_v56  ;;  %3374 = vmatmul.mubr.f32.vlgmr.msra.gmra.mrb[0].mxu1 %v22724_v29  ;;  %v22729_v56 = vld [vmem:[#allocation18_spill] sm:$0xff] }
 0x64c   : > { %5348 = vmatprep.mubr.f32.mxu0 %v22585_v32  ;;  %3631 = vmatpush1.msra.mxu1 %v22725_v15  ;;  %v22776_v15 = vld [vmem:[#allocation102_spill] sm:$0xff] }
 0x64d   : > { %3379 = vmatprep.mubr.f32.mxu1 %v22585_v32  ;;  %3986 = vmatprep.subr.mxu1 %v22727_v40  ;;  %v22731_v40 = vld [vmem:[#allocation20_spill] sm:$0xff] }
 0x64f   : > { %5350 = vmatmul.mubr.f32.gmra.mrb[66].mxu0 %v16496_v5  ;;  %3382 = vmatmul.mubr.f32.gmra.mrb[2].mxu1 %v22728_v13  ;;  %v22744_v5 = vld [vmem:[#allocation41_spill] sm:$0xff] }
 0x650   : > { %5355 = vmatprep.mubr.f32.mxu0 %v22585_v32  ;;  %3387 = vmatprep.mubr.f32.mxu1 %v22585_v32 }
 0x653   : > { %5357 = vmatmul.mubr.f32.gmra.mrb[68].mxu0 %v16522_v12  ;;  %3390 = vmatmul.mubr.f32.gmra.mrb[4].mxu1 %v22729_v56  ;;  %v22732_v12 = vld [vmem:[#allocation22_spill] sm:$0xff] }
 0x654   : > { %5362 = vmatprep.mubr.f32.mxu0 %v22585_v32  ;;  %3395 = vmatprep.mubr.f32.mxu1 %v22585_v32 }
 0x657   : > { %5364 = vmatmul.mubr.f32.gmra.mrb[70].mxu0 %v16546_v47  ;;  %3398 = vmatmul.mubr.f32.gmra.mrb[6].mxu1 %v22730_v18  ;;  %v22733_v47 = vld [vmem:[#allocation26_spill] sm:$0xff] }
 0x658   : > { %5369 = vmatprep.mubr.f32.mxu0 %v22585_v32  ;;  %3403 = vmatprep.mubr.f32.mxu1 %v22585_v32 }
 0x65b   : > { %5371 = vmatmul.mubr.f32.gmra.mrb[72].mxu0 %v16562_v8  ;;  %3406 = vmatmul.mubr.f32.gmra.mrb[8].mxu1 %v22731_v40  ;;  %v22734_v8 = vld [vmem:[#allocation30_spill] sm:$0xff] }
 0x65c   : > { %5376 = vmatprep.mubr.f32.mxu0 %v22585_v32  ;;  %3411 = vmatprep.mubr.f32.mxu1 %v22585_v32 }
 0x65f   : > { %5378 = vmatmul.mubr.f32.gmra.mrb[74].mxu0 %v16575_v49  ;;  %3414 = vmatmul.mubr.f32.gmra.mrb[10].mxu1 %v22732_v12  ;;  %v22735_v49 = vld [vmem:[#allocation19_spill] sm:$0xff] }
 0x660   : > { %5383 = vmatprep.mubr.f32.mxu0 %v22585_v32  ;;  %3419 = vmatprep.mubr.f32.mxu1 %v22585_v32 }
 0x663   : > { %5385 = vmatmul.mubr.f32.gmra.mrb[76].mxu0 %v16584_v44  ;;  %3422 = vmatmul.mubr.f32.gmra.mrb[12].mxu1 %v22733_v47  ;;  %v22736_v44 = vld [vmem:[#allocation25_spill] sm:$0xff] }
 0x664   : > { %5390 = vmatprep.mubr.f32.mxu0 %v22585_v32  ;;  %3427 = vmatprep.mubr.f32.mxu1 %v22585_v32 }
 0x667   : > { %5392 = vmatmul.mubr.f32.gmra.mrb[78].mxu0 %v16600_v63  ;;  %3430 = vmatmul.mubr.f32.gmra.mrb[14].mxu1 %v22734_v8  ;;  %v22737_v63 = vld [vmem:[#allocation29_spill] sm:$0xff] }
 0x668   : > { %5397 = vmatprep.mubr.f32.mxu0 %v22585_v32  ;;  %3435 = vmatprep.mubr.f32.mxu1 %v22585_v32 }
 0x66b   : > { %5399 = vmatmul.mubr.f32.gmra.mrb[80].mxu0 %v16620_v62  ;;  %3438 = vmatmul.mubr.f32.gmra.mrb[16].mxu1 %v22735_v49  ;;  %v22738_v62 = vld [vmem:[#allocation32_spill] sm:$0xff] }
 0x66c   : > { %5404 = vmatprep.mubr.f32.mxu0 %v22585_v32  ;;  %3443 = vmatprep.mubr.f32.mxu1 %v22585_v32 }
 0x66f   : > { %5406 = vmatmul.mubr.f32.gmra.mrb[82].mxu0 %v16640_v30  ;;  %3446 = vmatmul.mubr.f32.gmra.mrb[18].mxu1 %v22736_v44  ;;  %v22739_v30 = vld [vmem:[#allocation34_spill] sm:$0xff] }
 0x670   : > { %5411 = vmatprep.mubr.f32.mxu0 %v22585_v32  ;;  %3451 = vmatprep.mubr.f32.mxu1 %v22585_v32 }
 0x673   : > { %5413 = vmatmul.mubr.f32.gmra.mrb[84].mxu0 %v16653_v2  ;;  %3454 = vmatmul.mubr.f32.gmra.mrb[20].mxu1 %v22737_v63  ;;  %v22740_v2 = vld [vmem:[#allocation36_spill] sm:$0xff] }
 0x674   : > { %5418 = vmatprep.mubr.f32.mxu0 %v22585_v32  ;;  %3459 = vmatprep.mubr.f32.mxu1 %v22585_v32 }
 0x677   : > { %5420 = vmatmul.mubr.f32.gmra.mrb[86].mxu0 %v16659_v58  ;;  %3462 = vmatmul.mubr.f32.gmra.mrb[22].mxu1 %v22738_v62  ;;  %v22741_v58 = vld [vmem:[#allocation39_spill] sm:$0xff] }
 0x678   : > { %5425 = vmatprep.mubr.f32.mxu0 %v22585_v32  ;;  %3467 = vmatprep.mubr.f32.mxu1 %v22585_v32 }
 0x67b   : > { %5427 = vmatmul.mubr.f32.gmra.mrb[88].mxu0 %v16676_v1  ;;  %3470 = vmatmul.mubr.f32.gmra.mrb[24].mxu1 %v22739_v30  ;;  %v22742_v1 = vld [vmem:[#allocation43_spill] sm:$0xff] }
 0x67c   : > { %5432 = vmatprep.mubr.f32.mxu0 %v22585_v32  ;;  %3475 = vmatprep.mubr.f32.mxu1 %v22585_v32 }
 0x67f   : > { %5434 = vmatmul.mubr.f32.gmra.mrb[90].mxu0 %v16689_v7  ;;  %3478 = vmatmul.mubr.f32.gmra.mrb[26].mxu1 %v22740_v2  ;;  %v22743_v7 = vld [vmem:[#allocation47_spill] sm:$0xff] }
 0x680   : > { %5439 = vmatprep.mubr.f32.mxu0 %v22585_v32  ;;  %3483 = vmatprep.mubr.f32.mxu1 %v22585_v32 }
 0x683   : > { %5441 = vmatmul.mubr.f32.gmra.mrb[92].mxu0 %v16705_v19  ;;  %3486 = vmatmul.mubr.f32.gmra.mrb[28].mxu1 %v22741_v58  ;;  %v22746_v19 = vld [vmem:[#allocation9_spill] sm:$0xff] }
 0x684   : > { %5446 = vmatprep.mubr.f32.mxu0 %v22585_v32  ;;  %3491 = vmatprep.mubr.f32.mxu1 %v22585_v32  ;;  %v22747_v0 = vand.u32 4294901760, %v22746_v19  ;;  %v22752_v19 = vld [vmem:[#allocation59_spill] sm:$0xff] }
 0x687   : > { %5448 = vmatmul.mubr.f32.gmra.mrb[94].mxu0 %v16715_v54  ;;  %3494 = vmatmul.mubr.f32.gmra.mrb[30].mxu1 %v22742_v1  ;;  %v22748_v54 = vld [vmem:[#allocation51_spill] sm:$0xff] }
 0x688   : > { %5522 = vmatprep.mubr.f32.mxu0 %v22585_v32  ;;  %3499 = vmatprep.mubr.f32.mxu1 %v22585_v32 }
 0x68b   : > { %5525 = vmatmul.mubr.f32.vlgmr.msra.gmra.mrb[32].mxu0 %v22743_v7  ;;  %3502 = vmatmul.mubr.f32.gmra.mrb[32].mxu1 %v22744_v5 }
 0x68c   : > { %5782 = vmatpush1.msra.mxu0 %v22745_v14  ;;  %3507 = vmatprep.mubr.f32.mxu1 %v22585_v32  ;;  %v22767_v14 = vld [vmem:[#allocation81_spill] sm:$0xff] }
 0x68d   : > { %6137 = vmatprep.subr.mxu0 %v22747_v0  ;;  %5530 = vmatprep.mubr.f32.mxu0 %v22585_v32  ;;  %v22753_v0 = vld [vmem:[#allocation54_spill] sm:$0xff] }
 0x68f   : > { %5533 = vmatmul.mubr.f32.gmra.mrb[34].mxu0 %v22748_v54  ;;  %3510 = vmatmul.mubr.f32.gmra.mrb[34].mxu1 %v22749_v41 }
 0x690   : > { %5538 = vmatprep.mubr.f32.mxu0 %v22585_v32  ;;  %3515 = vmatprep.mubr.f32.mxu1 %v22585_v32 }
 0x693   : > { %5541 = vmatmul.mubr.f32.gmra.mrb[36].mxu0 %v22750_v48  ;;  %3518 = vmatmul.mubr.f32.gmra.mrb[36].mxu1 %v22751_v50 }
 0x694   : > { %5546 = vmatprep.mubr.f32.mxu0 %v22585_v32  ;;  %3523 = vmatprep.mubr.f32.mxu1 %v22585_v32 }
 0x697   : > { %5549 = vmatmul.mubr.f32.gmra.mrb[38].mxu0 %v22752_v19  ;;  %3526 = vmatmul.mubr.f32.gmra.mrb[38].mxu1 %v22753_v0 }
 0x698   : > { %5554 = vmatprep.mubr.f32.mxu0 %v22585_v32  ;;  %3531 = vmatprep.mubr.f32.mxu1 %v22585_v32 }
 0x69b   : > { %5557 = vmatmul.mubr.f32.gmra.mrb[40].mxu0 %v22754_v27  ;;  %3534 = vmatmul.mubr.f32.gmra.mrb[40].mxu1 %v22755_v45 }
 0x69c   : > { %5562 = vmatprep.mubr.f32.mxu0 %v22585_v32  ;;  %3539 = vmatprep.mubr.f32.mxu1 %v22585_v32 }
 0x69f   : > { %5565 = vmatmul.mubr.f32.gmra.mrb[42].mxu0 %v22756_v55  ;;  %3542 = vmatmul.mubr.f32.gmra.mrb[42].mxu1 %v22757_v3 }
 0x6a0   : > { %5570 = vmatprep.mubr.f32.mxu0 %v22585_v32  ;;  %3547 = vmatprep.mubr.f32.mxu1 %v22585_v32 }
 0x6a3   : > { %5573 = vmatmul.mubr.f32.gmra.mrb[44].mxu0 %v22758_v25  ;;  %3550 = vmatmul.mubr.f32.gmra.mrb[44].mxu1 %v22759_v43 }
 0x6a4   : > { %5578 = vmatprep.mubr.f32.mxu0 %v22585_v32  ;;  %3555 = vmatprep.mubr.f32.mxu1 %v22585_v32 }
 0x6a7   : > { %5581 = vmatmul.mubr.f32.gmra.mrb[46].mxu0 %v22760_v9  ;;  %3558 = vmatmul.mubr.f32.gmra.mrb[46].mxu1 %v22761_v26 }
 0x6a8   : > { %5586 = vmatprep.mubr.f32.mxu0 %v22585_v32  ;;  %3563 = vmatprep.mubr.f32.mxu1 %v22585_v32 }
 0x6ab   : > { %5589 = vmatmul.mubr.f32.gmra.mrb[48].mxu0 %v22762_v52  ;;  %3566 = vmatmul.mubr.f32.gmra.mrb[48].mxu1 %v22763_v21 }
 0x6ac   : > { %5594 = vmatprep.mubr.f32.mxu0 %v22585_v32  ;;  %3571 = vmatprep.mubr.f32.mxu1 %v22585_v32 }
 0x6af   : > { %5597 = vmatmul.mubr.f32.gmra.mrb[50].mxu0 %v22764_v42  ;;  %3574 = vmatmul.mubr.f32.gmra.mrb[50].mxu1 %v22765_v39 }
 0x6b0   : > { %5602 = vmatprep.mubr.f32.mxu0 %v22585_v32  ;;  %3579 = vmatprep.mubr.f32.mxu1 %v22585_v32 }
 0x6b3   : > { %5605 = vmatmul.mubr.f32.gmra.mrb[52].mxu0 %v22766_v23  ;;  %3582 = vmatmul.mubr.f32.gmra.mrb[52].mxu1 %v22767_v14 }
 0x6b4   : > { %5610 = vmatprep.mubr.f32.mxu0 %v22585_v32  ;;  %3587 = vmatprep.mubr.f32.mxu1 %v22585_v32 }
 0x6b7   : > { %5613 = vmatmul.mubr.f32.gmra.mrb[54].mxu0 %v22768_v38  ;;  %3590 = vmatmul.mubr.f32.gmra.mrb[54].mxu1 %v22769_v22 }
 0x6b8   : > { %5618 = vmatprep.mubr.f32.mxu0 %v22585_v32  ;;  %3595 = vmatprep.mubr.f32.mxu1 %v22585_v32 }
 0x6bb   : > { %5621 = vmatmul.mubr.f32.gmra.mrb[56].mxu0 %v22770_v11  ;;  %3598 = vmatmul.mubr.f32.gmra.mrb[56].mxu1 %v22771_v51 }
 0x6bc   : > { %5626 = vmatprep.mubr.f32.mxu0 %v22585_v32  ;;  %3603 = vmatprep.mubr.f32.mxu1 %v22585_v32 }
 0x6bf   : > { %5629 = vmatmul.mubr.f32.gmra.mrb[58].mxu0 %v22772_v59  ;;  %3606 = vmatmul.mubr.f32.gmra.mrb[58].mxu1 %v22773_v35  ;;  %v22777_v35 = vld [vmem:[#allocation105_spill] sm:$0xff]  ;;  %v22778_v59 = vand.u32 4294901760, %v22724_v29  ;;  %v22781_v29 = vld [vmem:[#allocation108_spill] sm:$0xff] }
 0x6c0   : > { %5634 = vmatprep.mubr.f32.mxu0 %v22585_v32  ;;  %3611 = vmatprep.mubr.f32.mxu1 %v22585_v32 }
 0x6c3   : > { %5637 = vmatmul.mubr.f32.gmra.mrb[60].mxu0 %v22774_v57  ;;  %3614 = vmatmul.mubr.f32.gmra.mrb[60].mxu1 %v22775_v37  ;;  %v22779_v37 = vand.u32 4294901760, %v15913_v31  ;;  %v22783_v31 = vld [vmem:[#allocation110_spill] sm:$0xff] }
 0x6c4   : > { %5642 = vmatprep.mubr.f32.mxu0 %v22585_v32  ;;  %3619 = vmatprep.mubr.f32.mxu1 %v22585_v32 }
 0x6c7   : > { %5645 = vmatmul.mubr.f32.gmra.mrb[62].mxu0 %v16525_v10  ;;  %3622 = vmatmul.mubr.f32.gmra.mrb[62].mxu1 %v22776_v15  ;;  %v22780_v15 = vand.u32 4294901760, %v22728_v13  ;;  %v22786_v13 = vand.u32 4294901760, %v22731_v40  ;;  %v22793_v40 = vand.u32 4294901760, %v22737_v63  ;;  %v22796_v63 = vand.u32 4294901760, %v22740_v2 }
 0x6c8   : > { %5650 = vmatprep.mubr.f32.mxu0 %v22585_v32  ;;  %3694 = vmatprep.mubr.f32.mxu1 %v22585_v32  ;;  %v22799_v2 = vand.u32 4294901760, %v22743_v7  ;;  %v22807_v7 = vand.u32 4294901760, %v22753_v0  ;;  %v22828_v0 = vld [vmem:[#allocation92_spill] sm:$0xff] }
 0x6cb   : > { %5653 = vmatmul.mubr.f32.gmra.mrb[64].mxu0 %v22777_v35  ;;  %3698 = vmatmul.mubr.f32.vlgmr.msra.gmra.mrb[0].mxu1 %v22778_v59  ;;  %v22782_v59 = vand.u32 4294901760, %v22729_v56  ;;  %v22788_v56 = vand.u32 4294901760, %v22733_v47  ;;  %v22791_v47 = vand.u32 4294901760, %v22736_v44  ;;  %v22795_v44 = vand.u32 4294901760, %v22739_v30 }
 0x6cc   : > { %5658 = vmatprep.mubr.f32.mxu0 %v22585_v32  ;;  %3990 = vmatpush1.msra.mxu1 %v22779_v37  ;;  %v22785_v37 = vld [vmem:[#allocation112_spill] sm:$0xff]  ;;  %v22798_v30 = vand.u32 4294901760, %v22742_v1  ;;  %v22802_v1 = vand.u32 4294901760, %v22748_v54  ;;  %v22809_v54 = vand.u32 4294901760, %v22755_v45  ;;  %v22813_v45 = vand.u32 4294901760, %v22759_v43 }
 0x6cd   : > { %3703 = vmatprep.mubr.f32.mxu1 %v22585_v32  ;;  %4279 = vmatprep.subr.mxu1 %v15888_v36  ;;  %v22784_v36 = vand.u32 4294901760, %v22730_v18  ;;  %v22789_v18 = vand.u32 4294901760, %v22734_v8  ;;  %v22792_v8 = vld [vmem:[#allocation122_spill] sm:$0xff]  ;;  %v22817_v43 = vand.u32 4294901760, %v22763_v21  ;;  %v22821_v21 = vand.u32 4294901760, %v22767_v14 }
 0x6ce   : > { %v22825_v14 = vand.u32 4294901760, %v22771_v51 }
 0x6cf   : > { %5661 = vmatmul.mubr.f32.gmra.mrb[66].mxu0 %v16517_v61  ;;  %3707 = vmatmul.mubr.f32.gmra.mrb[2].mxu1 %v22780_v15  ;;  %v22787_v15 = vand.u32 4294901760, %v22732_v12  ;;  %v22790_v12 = vand.u32 4294901760, %v22735_v49  ;;  %v22794_v49 = vand.u32 4294901760, %v22738_v62  ;;  %v22797_v62 = vand.u32 4294901760, %v22741_v58 }
 0x6d0   : > { %5666 = vmatprep.mubr.f32.mxu0 %v22585_v32  ;;  %3712 = vmatprep.mubr.f32.mxu1 %v22585_v32  ;;  %v22801_v58 = vand.u32 4294901760, %v16124_v24  ;;  %v22805_v24 = vand.u32 4294901760, %v22751_v50  ;;  %v22810_v50 = vand.u32 4294901760, %v22756_v55  ;;  %v22814_v55 = vand.u32 4294901760, %v22760_v9 }
 0x6d1   : > { %v22818_v9 = vand.u32 4294901760, %v22764_v42  ;;  %v22822_v42 = vand.u32 4294901760, %v22768_v38 }
 0x6d3   : > { %5669 = vmatmul.mubr.f32.gmra.mrb[68].mxu0 %v22781_v29  ;;  %3716 = vmatmul.mubr.f32.gmra.mrb[4].mxu1 %v22782_v59  ;;  %v22800_v59 = vand.u32 4294901760, %v22744_v5  ;;  %v22804_v5 = vand.u32 4294901760, %v22750_v48  ;;  %v22811_v48 = vand.u32 4294901760, %v22757_v3  ;;  %v22815_v3 = vand.u32 4294901760, %v22761_v26 }
 0x6d4   : > { %5674 = vmatprep.mubr.f32.mxu0 %v22585_v32  ;;  %3721 = vmatprep.mubr.f32.mxu1 %v22585_v32  ;;  %v22819_v26 = vand.u32 4294901760, %v22765_v39  ;;  %v22823_v39 = vand.u32 4294901760, %v22769_v22  ;;  %v22829_v22 = vand.u32 4294901760, %v22828_v0  ;;  %v22891_v0 = vld [vmem:[#allocation78_spill] sm:$0xff] }
 0x6d7   : > { %5677 = vmatmul.mubr.f32.gmra.mrb[70].mxu0 %v22783_v31  ;;  %3725 = vmatmul.mubr.f32.gmra.mrb[6].mxu1 %v22784_v36  ;;  %v22803_v36 = vand.u32 4294901760, %v22749_v41  ;;  %v22808_v41 = vand.u32 4294901760, %v22754_v27  ;;  %v22812_v27 = vand.u32 4294901760, %v22758_v25  ;;  %v22816_v25 = vand.u32 4294901760, %v22762_v52 }
 0x6d8   : > { %5682 = vmatprep.mubr.f32.mxu0 %v22585_v32  ;;  %3730 = vmatprep.mubr.f32.mxu1 %v22585_v32  ;;  %v22820_v52 = vand.u32 4294901760, %v22766_v23  ;;  %v22824_v23 = vand.u32 4294901760, %v22770_v11  ;;  %v22830_v11 = vand.u32 4294901760, %v22774_v57  ;;  %v22836_v57 = vand.u32 4294901760, %v22777_v35 }
 0x6d9   : > { %v22841_v35 = vand.u32 4294901760, %v22781_v29  ;;  %v22846_v29 = vld [vmem:[#allocation17_spill] sm:$0xff] }
 0x6db   : > { %5685 = vmatmul.mubr.f32.gmra.mrb[72].mxu0 %v22785_v37  ;;  %3734 = vmatmul.mubr.f32.gmra.mrb[8].mxu1 %v22786_v13  ;;  %v22831_v13 = vld [vmem:[#allocation97_spill] sm:$0xff] }
 0x6dc   : > { %5690 = vmatprep.mubr.f32.mxu0 %v22585_v32  ;;  %3739 = vmatprep.mubr.f32.mxu1 %v22585_v32  ;;  %v22832_v51 = vand.u32 4294901760, %v22831_v13  ;;  %v22894_v13 = vld [vmem:[#allocation93_spill] sm:$0xff] }
 0x6df   : > { %5693 = vmatmul.mubr.f32.gmra.mrb[74].mxu0 %v16588_v17  ;;  %3743 = vmatmul.mubr.f32.gmra.mrb[10].mxu1 %v22787_v15  ;;  %v22833_v15 = vand.u32 4294901760, %v16525_v10  ;;  %v22839_v10 = vand.u32 4294901760, %v16517_v61  ;;  %v22844_v61 = vld [vmem:[#allocation14_spill] sm:$0xff] }
 0x6e0   : > { %5698 = vmatprep.mubr.f32.mxu0 %v22585_v32  ;;  %3748 = vmatprep.mubr.f32.mxu1 %v22585_v32 }
 0x6e3   : > { %5701 = vmatmul.mubr.f32.gmra.mrb[76].mxu0 %v16598_v28  ;;  %3752 = vmatmul.mubr.f32.gmra.mrb[12].mxu1 %v22788_v56  ;;  %v22834_v56 = vld [vmem:[#allocation102_spill] sm:$0xff] }
 0x6e4   : > { %5706 = vmatprep.mubr.f32.mxu0 %v22585_v32  ;;  %3757 = vmatprep.mubr.f32.mxu1 %v22585_v32 }
 0x6e7   : > { %5709 = vmatmul.mubr.f32.gmra.mrb[78].mxu0 %v16618_v46  ;;  %3761 = vmatmul.mubr.f32.gmra.mrb[14].mxu1 %v22789_v18  ;;  %v22835_v18 = vand.u32 4294901760, %v22834_v56  ;;  %v22897_v56 = vld [vmem:[#allocation88_spill] sm:$0xff] }
 0x6e8   : > { %5714 = vmatprep.mubr.f32.mxu0 %v22585_v32  ;;  %3766 = vmatprep.mubr.f32.mxu1 %v22585_v32 }
 0x6eb   : > { %5717 = vmatmul.mubr.f32.gmra.mrb[80].mxu0 %v16638_v53  ;;  %3770 = vmatmul.mubr.f32.gmra.mrb[16].mxu1 %v22790_v12  ;;  %v22837_v12 = vld [vmem:[#allocation10_spill] sm:$0xff] }
 0x6ec   : > { %5722 = vmatprep.mubr.f32.mxu0 %v22585_v32  ;;  %3775 = vmatprep.mubr.f32.mxu1 %v22585_v32 }
 0x6ef   : > { %5725 = vmatmul.mubr.f32.gmra.mrb[82].mxu0 %v16651_v33  ;;  %3779 = vmatmul.mubr.f32.gmra.mrb[18].mxu1 %v22791_v47  ;;  %v22838_v47 = vld [vmem:[#allocation6_spill] sm:$0xff] }
 0x6f0   : > { %5730 = vmatprep.mubr.f32.mxu0 %v22585_v32  ;;  %3784 = vmatprep.mubr.f32.mxu1 %v22585_v32 }
 0x6f3   : > { %5733 = vmatmul.mubr.f32.gmra.mrb[84].mxu0 %v22792_v8  ;;  %3788 = vmatmul.mubr.f32.gmra.mrb[20].mxu1 %v22793_v40  ;;  %v22840_v40 = vld [vmem:[#allocation12_spill] sm:$0xff] }
 0x6f4   : > { %5738 = vmatprep.mubr.f32.mxu0 %v22585_v32  ;;  %3793 = vmatprep.mubr.f32.mxu1 %v22585_v32 }
 0x6f7   : > { %5741 = vmatmul.mubr.f32.gmra.mrb[86].mxu0 %v16673_v60  ;;  %3797 = vmatmul.mubr.f32.gmra.mrb[22].mxu1 %v22794_v49  ;;  %v22842_v49 = vld [vmem:[#allocation15_spill] sm:$0xff] }
 0x6f8   : > { %5746 = vmatprep.mubr.f32.mxu0 %v22585_v32  ;;  %3802 = vmatprep.mubr.f32.mxu1 %v22585_v32 }
 0x6fb   : > { %5749 = vmatmul.mubr.f32.gmra.mrb[88].mxu0 %v16687_v20  ;;  %3806 = vmatmul.mubr.f32.gmra.mrb[24].mxu1 %v22795_v44  ;;  %v22843_v44 = vand.u32 4294901760, %v22783_v31  ;;  %v22848_v31 = vld [vmem:[#allocation21_spill] sm:$0xff] }
 0x6fc   : > { %5754 = vmatprep.mubr.f32.mxu0 %v22585_v32  ;;  %3811 = vmatprep.mubr.f32.mxu1 %v22585_v32 }
 0x6ff   : > { %5757 = vmatmul.mubr.f32.gmra.mrb[90].mxu0 %v16703_v16  ;;  %3815 = vmatmul.mubr.f32.gmra.mrb[26].mxu1 %v22796_v63  ;;  %v22845_v63 = vand.u32 4294901760, %v22785_v37  ;;  %v22850_v37 = vld [vmem:[#allocation23_spill] sm:$0xff] }
 0x700   : > { %5762 = vmatprep.mubr.f32.mxu0 %v22585_v32  ;;  %3820 = vmatprep.mubr.f32.mxu1 %v22585_v32 }
 0x703   : > { %5765 = vmatmul.mubr.f32.gmra.mrb[92].mxu0 %v16713_v34  ;;  %3824 = vmatmul.mubr.f32.gmra.mrb[28].mxu1 %v22797_v62  ;;  %v22847_v62 = vand.u32 4294901760, %v16588_v17  ;;  %v22852_v17 = vld [vmem:[#allocation27_spill] sm:$0xff] }
 0x704   : > { %5770 = vmatprep.mubr.f32.mxu0 %v22585_v32  ;;  %3829 = vmatprep.mubr.f32.mxu1 %v22585_v32 }
 0x707   : > { %5773 = vmatmul.mubr.f32.gmra.mrb[94].mxu0 %v16725_v6  ;;  %3833 = vmatmul.mubr.f32.gmra.mrb[30].mxu1 %v22798_v30  ;;  %v22849_v30 = vand.u32 4294901760, %v16598_v28  ;;  %v22854_v28 = vld [vmem:[#allocation5_spill] sm:$0xff] }
 0x708   : > { %5845 = vmatprep.mubr.f32.mxu0 %v22585_v32  ;;  %3838 = vmatprep.mubr.f32.mxu1 %v22585_v32 }
 0x70b   : > { %5849 = vmatmul.mubr.f32.vlgmr.msra.gmra.mrb[32].mxu0 %v22799_v2  ;;  %3842 = vmatmul.mubr.f32.gmra.mrb[32].mxu1 %v22800_v59  ;;  %v22851_v2 = vand.u32 4294901760, %v16618_v46  ;;  %v22853_v59 = vand.u32 4294901760, %v16638_v53  ;;  %v22856_v46 = vld [vmem:[#allocation24_spill] sm:$0xff] }
 0x70c   : > { %6141 = vmatpush1.msra.mxu0 %v22801_v58  ;;  %3847 = vmatprep.mubr.f32.mxu1 %v22585_v32  ;;  %v22855_v58 = vand.u32 4294901760, %v16651_v33  ;;  %v22858_v53 = vld [vmem:[#allocation28_spill] sm:$0xff]  ;;  %v22860_v33 = vld [vmem:[#allocation31_spill] sm:$0xff] }
 0x70d   : > { %6430 = vmatprep.subr.mxu0 %v15890_v4  ;;  %5854 = vmatprep.mubr.f32.mxu0 %v22585_v32  ;;  %v22806_v4 = vand.u32 4294901760, %v22752_v19  ;;  %v22826_v19 = vld [vmem:[#allocation99_spill] sm:$0xff] }
 0x70e   : > { %v22827_v38 = vand.u32 4294901760, %v22826_v19  ;;  %v22889_v19 = vld [vmem:[#allocation73_spill] sm:$0xff] }
 0x70f   : > { %5858 = vmatmul.mubr.f32.gmra.mrb[34].mxu0 %v22802_v1  ;;  %3851 = vmatmul.mubr.f32.gmra.mrb[34].mxu1 %v22803_v36  ;;  %v22857_v1 = vand.u32 4294901760, %v22792_v8  ;;  %v22859_v36 = vand.u32 4294901760, %v16673_v60  ;;  %v22862_v8 = vld [vmem:[#allocation33_spill] sm:$0xff]  ;;  %v22864_v60 = vld [vmem:[#allocation35_spill] sm:$0xff] }
 0x710   : > { %5863 = vmatprep.mubr.f32.mxu0 %v22585_v32  ;;  %3856 = vmatprep.mubr.f32.mxu1 %v22585_v32 }
 0x713   : > { %5867 = vmatmul.mubr.f32.gmra.mrb[36].mxu0 %v22804_v5  ;;  %3860 = vmatmul.mubr.f32.gmra.mrb[36].mxu1 %v22805_v24  ;;  %v22861_v5 = vand.u32 4294901760, %v16687_v20  ;;  %v22863_v24 = vand.u32 4294901760, %v16703_v16  ;;  %v22866_v20 = vld [vmem:[#allocation37_spill] sm:$0xff]  ;;  %v22868_v16 = vld [vmem:[#allocation40_spill] sm:$0xff] }
 0x714   : > { %5872 = vmatprep.mubr.f32.mxu0 %v22585_v32  ;;  %3865 = vmatprep.mubr.f32.mxu1 %v22585_v32 }
 0x717   : > { %5876 = vmatmul.mubr.f32.gmra.mrb[38].mxu0 %v22806_v4  ;;  %3869 = vmatmul.mubr.f32.gmra.mrb[38].mxu1 %v22807_v7  ;;  %v22865_v4 = vand.u32 4294901760, %v16713_v34  ;;  %v22867_v7 = vand.u32 4294901760, %v16725_v6  ;;  %v22871_v34 = vld [vmem:[#allocation7_spill] sm:$0xff]  ;;  %v22873_v6 = vld [vmem:[#allocation42_spill] sm:$0xff] }
 0x718   : > { %5881 = vmatprep.mubr.f32.mxu0 %v22585_v32  ;;  %3874 = vmatprep.mubr.f32.mxu1 %v22585_v32 }
 0x71b   : > { %5885 = vmatmul.mubr.f32.gmra.mrb[40].mxu0 %v22808_v41  ;;  %3878 = vmatmul.mubr.f32.gmra.mrb[40].mxu1 %v22809_v54  ;;  %v22869_v41 = vld [vmem:[#allocation44_spill] sm:$0xff]  ;;  %v22870_v54 = vld [vmem:[#allocation38_spill] sm:$0xff] }
 0x71c   : > { %5890 = vmatprep.mubr.f32.mxu0 %v22585_v32  ;;  %3883 = vmatprep.mubr.f32.mxu1 %v22585_v32 }
 0x71f   : > { %5894 = vmatmul.mubr.f32.gmra.mrb[42].mxu0 %v22810_v50  ;;  %3887 = vmatmul.mubr.f32.gmra.mrb[42].mxu1 %v22811_v48  ;;  %v22872_v50 = vld [vmem:[#allocation48_spill] sm:$0xff]  ;;  %v22874_v48 = vld [vmem:[#allocation53_spill] sm:$0xff] }
 0x720   : > { %5899 = vmatprep.mubr.f32.mxu0 %v22585_v32  ;;  %3892 = vmatprep.mubr.f32.mxu1 %v22585_v32 }
 0x723   : > { %5903 = vmatmul.mubr.f32.gmra.mrb[44].mxu0 %v22812_v27  ;;  %3896 = vmatmul.mubr.f32.gmra.mrb[44].mxu1 %v22813_v45  ;;  %v22875_v27 = vld [vmem:[#allocation46_spill] sm:$0xff]  ;;  %v22876_v45 = vld [vmem:[#allocation57_spill] sm:$0xff] }
 0x724   : > { %5908 = vmatprep.mubr.f32.mxu0 %v22585_v32  ;;  %3901 = vmatprep.mubr.f32.mxu1 %v22585_v32 }
 0x727   : > { %5912 = vmatmul.mubr.f32.gmra.mrb[46].mxu0 %v22814_v55  ;;  %3905 = vmatmul.mubr.f32.gmra.mrb[46].mxu1 %v22815_v3  ;;  %v22877_v55 = vld [vmem:[#allocation50_spill] sm:$0xff]  ;;  %v22878_v3 = vld [vmem:[#allocation60_spill] sm:$0xff] }
 0x728   : > { %5917 = vmatprep.mubr.f32.mxu0 %v22585_v32  ;;  %3910 = vmatprep.mubr.f32.mxu1 %v22585_v32 }
 0x72b   : > { %5921 = vmatmul.mubr.f32.gmra.mrb[48].mxu0 %v22816_v25  ;;  %3914 = vmatmul.mubr.f32.gmra.mrb[48].mxu1 %v22817_v43  ;;  %v22879_v25 = vld [vmem:[#allocation52_spill] sm:$0xff] }
 0x72c   : > { %5926 = vmatprep.mubr.f32.mxu0 %v22585_v32  ;;  %3919 = vmatprep.mubr.f32.mxu1 %v22585_v32  ;;  %v22880_v43 = vld [vmem:[#allocation64_spill] sm:$0xff] }
 0x72f   : > { %5930 = vmatmul.mubr.f32.gmra.mrb[50].mxu0 %v22818_v9  ;;  %3923 = vmatmul.mubr.f32.gmra.mrb[50].mxu1 %v22819_v26  ;;  %v22881_v9 = vld [vmem:[#allocation58_spill] sm:$0xff]  ;;  %v22882_v26 = vld [vmem:[#allocation69_spill] sm:$0xff] }
 0x730   : > { %5935 = vmatprep.mubr.f32.mxu0 %v22585_v32  ;;  %3928 = vmatprep.mubr.f32.mxu1 %v22585_v32 }
 0x733   : > { %5939 = vmatmul.mubr.f32.gmra.mrb[52].mxu0 %v22820_v52  ;;  %3932 = vmatmul.mubr.f32.gmra.mrb[52].mxu1 %v22821_v21  ;;  %v22883_v52 = vld [vmem:[#allocation62_spill] sm:$0xff] }
 0x734   : > { %5944 = vmatprep.mubr.f32.mxu0 %v22585_v32  ;;  %3937 = vmatprep.mubr.f32.mxu1 %v22585_v32  ;;  %v22884_v21 = vld [vmem:[#allocation74_spill] sm:$0xff] }
 0x737   : > { %5948 = vmatmul.mubr.f32.gmra.mrb[54].mxu0 %v22822_v42  ;;  %3941 = vmatmul.mubr.f32.gmra.mrb[54].mxu1 %v22823_v39  ;;  %v22885_v42 = vld [vmem:[#allocation66_spill] sm:$0xff]  ;;  %v22886_v39 = vld [vmem:[#allocation77_spill] sm:$0xff] }
 0x738   : > { %5953 = vmatprep.mubr.f32.mxu0 %v22585_v32  ;;  %3946 = vmatprep.mubr.f32.mxu1 %v22585_v32 }
 0x73b   : > { %5957 = vmatmul.mubr.f32.gmra.mrb[56].mxu0 %v22824_v23  ;;  %3950 = vmatmul.mubr.f32.gmra.mrb[56].mxu1 %v22825_v14  ;;  %v22887_v23 = vld [vmem:[#allocation68_spill] sm:$0xff] }
 0x73c   : > { %5962 = vmatprep.mubr.f32.mxu0 %v22585_v32  ;;  %3955 = vmatprep.mubr.f32.mxu1 %v22585_v32  ;;  %v22888_v14 = vld [vmem:[#allocation80_spill] sm:$0xff] }
 0x73f   : > { %5966 = vmatmul.mubr.f32.gmra.mrb[58].mxu0 %v22827_v38  ;;  %3959 = vmatmul.mubr.f32.gmra.mrb[58].mxu1 %v22829_v22  ;;  %v22890_v38 = vld [vmem:[#allocation84_spill] sm:$0xff]  ;;  %v22892_v22 = vld [vmem:[#allocation89_spill] sm:$0xff] }
 0x740   : > { %5971 = vmatprep.mubr.f32.mxu0 %v22585_v32  ;;  %3964 = vmatprep.mubr.f32.mxu1 %v22585_v32 }
 0x743   : > { %5975 = vmatmul.mubr.f32.gmra.mrb[60].mxu0 %v22830_v11  ;;  %3968 = vmatmul.mubr.f32.gmra.mrb[60].mxu1 %v22832_v51  ;;  %v22893_v11 = vld [vmem:[#allocation82_spill] sm:$0xff] }
 0x744   : > { %5980 = vmatprep.mubr.f32.mxu0 %v22585_v32  ;;  %3973 = vmatprep.mubr.f32.mxu1 %v22585_v32  ;;  %v22895_v51 = vld [vmem:[#allocation86_spill] sm:$0xff] }
 0x747   : > { %5984 = vmatmul.mubr.f32.gmra.mrb[62].mxu0 %v22833_v15  ;;  %3977 = vmatmul.mubr.f32.gmra.mrb[62].mxu1 %v22835_v18  ;;  %v22896_v15 = vld [vmem:[#allocation96_spill] sm:$0xff]  ;;  %v22898_v18 = vld [vmem:[#allocation101_spill] sm:$0xff] }
 0x748   : > { %5989 = vmatprep.mubr.f32.mxu0 %v22585_v32  ;;  %4053 = vmatprep.mubr.f32.mxu1 %v22585_v32 }
 0x74b   : > { %5993 = vmatmul.mubr.f32.gmra.mrb[64].mxu0 %v22836_v57  ;;  %4055 = vmatmul.mubr.f32.vlgmr.msra.gmra.mrb[0].mxu1 %v22837_v12  ;;  %v22899_v57 = vld [vmem:[#allocation94_spill] sm:$0xff] }
 0x74c   : > { %5998 = vmatprep.mubr.f32.mxu0 %v22585_v32  ;;  %4281 = vmatpush1.msra.mxu1 %v22838_v47  ;;  %v22900_v47 = vld [vmem:[#allocation106_spill] sm:$0xff] }
 0x74d   : > { %4060 = vmatprep.mubr.f32.mxu1 %v22585_v32 }
 0x74f   : > { %6002 = vmatmul.mubr.f32.gmra.mrb[66].mxu0 %v22839_v10  ;;  %4062 = vmatmul.mubr.f32.gmra.mrb[2].mxu1 %v22840_v40  ;;  %v22901_v10 = vld [vmem:[#allocation98_spill] sm:$0xff] }
 0x750   : > { %6007 = vmatprep.mubr.f32.mxu0 %v22585_v32  ;;  %4067 = vmatprep.mubr.f32.mxu1 %v22585_v32 }
 0x753   : > { %6011 = vmatmul.mubr.f32.gmra.mrb[68].mxu0 %v22841_v35  ;;  %4069 = vmatmul.mubr.f32.gmra.mrb[4].mxu1 %v22842_v49  ;;  %v22902_v35 = vld [vmem:[#allocation100_spill] sm:$0xff] }
 0x754   : > { %6016 = vmatprep.mubr.f32.mxu0 %v22585_v32  ;;  %4074 = vmatprep.mubr.f32.mxu1 %v22585_v32 }
 0x757   : > { %6020 = vmatmul.mubr.f32.gmra.mrb[70].mxu0 %v22843_v44  ;;  %4076 = vmatmul.mubr.f32.gmra.mrb[6].mxu1 %v22844_v61  ;;  %v22903_v44 = vld [vmem:[#allocation103_spill] sm:$0xff] }
 0x758   : > { %6025 = vmatprep.mubr.f32.mxu0 %v22585_v32  ;;  %4081 = vmatprep.mubr.f32.mxu1 %v22585_v32 }
 0x75b   : > { %6029 = vmatmul.mubr.f32.gmra.mrb[72].mxu0 %v22845_v63  ;;  %4083 = vmatmul.mubr.f32.gmra.mrb[8].mxu1 %v22846_v29  ;;  %v22904_v63 = vld [vmem:[#allocation107_spill] sm:$0xff] }
 0x75c   : > { %6034 = vmatprep.mubr.f32.mxu0 %v22585_v32  ;;  %4088 = vmatprep.mubr.f32.mxu1 %v22585_v32 }
 0x75f   : > { %6038 = vmatmul.mubr.f32.gmra.mrb[74].mxu0 %v22847_v62  ;;  %4090 = vmatmul.mubr.f32.gmra.mrb[10].mxu1 %v22848_v31  ;;  %v22910_v62 = vld [vmem:[#allocation118_spill] sm:$0xff] }
 0x760   : > { %6043 = vmatprep.mubr.f32.mxu0 %v22585_v32  ;;  %4095 = vmatprep.mubr.f32.mxu1 %v22585_v32 }
 0x763   : > { %6047 = vmatmul.mubr.f32.gmra.mrb[76].mxu0 %v22849_v30  ;;  %4097 = vmatmul.mubr.f32.gmra.mrb[12].mxu1 %v22850_v37  ;;  %v22912_v30 = vld [vmem:[#allocation120_spill] sm:$0xff] }
 0x764   : > { %6052 = vmatprep.mubr.f32.mxu0 %v22585_v32  ;;  %4102 = vmatprep.mubr.f32.mxu1 %v22585_v32 }
 0x767   : > { %6056 = vmatmul.mubr.f32.gmra.mrb[78].mxu0 %v22851_v2  ;;  %4104 = vmatmul.mubr.f32.gmra.mrb[14].mxu1 %v22852_v17  ;;  %v22914_v2 = vld [vmem:[#allocation123_spill] sm:$0xff] }
 0x768   : > { %6061 = vmatprep.mubr.f32.mxu0 %v22585_v32  ;;  %4109 = vmatprep.mubr.f32.mxu1 %v22585_v32 }
 0x76b   : > { %6065 = vmatmul.mubr.f32.gmra.mrb[80].mxu0 %v22853_v59  ;;  %4111 = vmatmul.mubr.f32.gmra.mrb[16].mxu1 %v22854_v28  ;;  %v22916_v59 = vld [vmem:[#allocation125_spill] sm:$0xff] }
 0x76c   : > { %6070 = vmatprep.mubr.f32.mxu0 %v22585_v32  ;;  %4116 = vmatprep.mubr.f32.mxu1 %v22585_v32 }
 0x76f   : > { %6074 = vmatmul.mubr.f32.gmra.mrb[82].mxu0 %v22855_v58  ;;  %4118 = vmatmul.mubr.f32.gmra.mrb[18].mxu1 %v22856_v46  ;;  %v22918_v58 = vld [vmem:[#allocation117_spill] sm:$0xff] }
 0x770   : > { %6079 = vmatprep.mubr.f32.mxu0 %v22585_v32  ;;  %4123 = vmatprep.mubr.f32.mxu1 %v22585_v32 }
 0x773   : > { %6083 = vmatmul.mubr.f32.gmra.mrb[84].mxu0 %v22857_v1  ;;  %4125 = vmatmul.mubr.f32.gmra.mrb[20].mxu1 %v22858_v53 }
 0x774   : > { %6088 = vmatprep.mubr.f32.mxu0 %v22585_v32  ;;  %4130 = vmatprep.mubr.f32.mxu1 %v22585_v32 }
 0x777   : > { %6092 = vmatmul.mubr.f32.gmra.mrb[86].mxu0 %v22859_v36  ;;  %4132 = vmatmul.mubr.f32.gmra.mrb[22].mxu1 %v22860_v33 }
 0x778   : > { %6097 = vmatprep.mubr.f32.mxu0 %v22585_v32  ;;  %4137 = vmatprep.mubr.f32.mxu1 %v22585_v32 }
 0x77b   : > { %6101 = vmatmul.mubr.f32.gmra.mrb[88].mxu0 %v22861_v5  ;;  %4139 = vmatmul.mubr.f32.gmra.mrb[24].mxu1 %v22862_v8 }
 0x77c   : > { %6106 = vmatprep.mubr.f32.mxu0 %v22585_v32  ;;  %4144 = vmatprep.mubr.f32.mxu1 %v22585_v32 }
 0x77f   : > { %6110 = vmatmul.mubr.f32.gmra.mrb[90].mxu0 %v22863_v24  ;;  %4146 = vmatmul.mubr.f32.gmra.mrb[26].mxu1 %v22864_v60 }
 0x780   : > { %6115 = vmatprep.mubr.f32.mxu0 %v22585_v32  ;;  %4151 = vmatprep.mubr.f32.mxu1 %v22585_v32 }
 0x783   : > { %6119 = vmatmul.mubr.f32.gmra.mrb[92].mxu0 %v22865_v4  ;;  %4153 = vmatmul.mubr.f32.gmra.mrb[28].mxu1 %v22866_v20 }
 0x784   : > { %6124 = vmatprep.mubr.f32.mxu0 %v22585_v32  ;;  %4158 = vmatprep.mubr.f32.mxu1 %v22585_v32 }
 0x787   : > { %6128 = vmatmul.mubr.f32.gmra.mrb[94].mxu0 %v22867_v7  ;;  %4160 = vmatmul.mubr.f32.gmra.mrb[30].mxu1 %v22868_v16 }
 0x788   : > { %6204 = vmatprep.mubr.f32.mxu0 %v22585_v32  ;;  %4165 = vmatprep.mubr.f32.mxu1 %v22585_v32 }
 0x78b   : > { %6206 = vmatmul.mubr.f32.vlgmr.msra.gmra.mrb[32].mxu0 %v22869_v41  ;;  %4167 = vmatmul.mubr.f32.gmra.mrb[32].mxu1 %v22870_v54 }
 0x78c   : > { %6432 = vmatpush1.msra.mxu0 %v22871_v34  ;;  %4172 = vmatprep.mubr.f32.mxu1 %v22585_v32 }
 0x78d   : > { %6211 = vmatprep.mubr.f32.mxu0 %v22585_v32 }
 0x78f   : > { %6213 = vmatmul.mubr.f32.gmra.mrb[34].mxu0 %v22872_v50  ;;  %4174 = vmatmul.mubr.f32.gmra.mrb[34].mxu1 %v22873_v6 }
 0x790   : > { %6218 = vmatprep.mubr.f32.mxu0 %v22585_v32  ;;  %4179 = vmatprep.mubr.f32.mxu1 %v22585_v32 }
 0x793   : > { %6220 = vmatmul.mubr.f32.gmra.mrb[36].mxu0 %v22874_v48  ;;  %4181 = vmatmul.mubr.f32.gmra.mrb[36].mxu1 %v22875_v27 }
 0x794   : > { %6225 = vmatprep.mubr.f32.mxu0 %v22585_v32  ;;  %4186 = vmatprep.mubr.f32.mxu1 %v22585_v32 }
 0x797   : > { %6227 = vmatmul.mubr.f32.gmra.mrb[38].mxu0 %v22876_v45  ;;  %4188 = vmatmul.mubr.f32.gmra.mrb[38].mxu1 %v22877_v55 }
 0x798   : > { %6232 = vmatprep.mubr.f32.mxu0 %v22585_v32  ;;  %4193 = vmatprep.mubr.f32.mxu1 %v22585_v32 }
 0x79b   : > { %6234 = vmatmul.mubr.f32.gmra.mrb[40].mxu0 %v22878_v3  ;;  %4195 = vmatmul.mubr.f32.gmra.mrb[40].mxu1 %v22879_v25 }
 0x79c   : > { %6239 = vmatprep.mubr.f32.mxu0 %v22585_v32  ;;  %4200 = vmatprep.mubr.f32.mxu1 %v22585_v32 }
 0x79f   : > { %6241 = vmatmul.mubr.f32.gmra.mrb[42].mxu0 %v22880_v43  ;;  %4202 = vmatmul.mubr.f32.gmra.mrb[42].mxu1 %v22881_v9 }
 0x7a0   : > { %6246 = vmatprep.mubr.f32.mxu0 %v22585_v32  ;;  %4207 = vmatprep.mubr.f32.mxu1 %v22585_v32 }
 0x7a3   : > { %6248 = vmatmul.mubr.f32.gmra.mrb[44].mxu0 %v22882_v26  ;;  %4209 = vmatmul.mubr.f32.gmra.mrb[44].mxu1 %v22883_v52 }
 0x7a4   : > { %6253 = vmatprep.mubr.f32.mxu0 %v22585_v32  ;;  %4214 = vmatprep.mubr.f32.mxu1 %v22585_v32 }
 0x7a7   : > { %6255 = vmatmul.mubr.f32.gmra.mrb[46].mxu0 %v22884_v21  ;;  %4216 = vmatmul.mubr.f32.gmra.mrb[46].mxu1 %v22885_v42 }
 0x7a8   : > { %6260 = vmatprep.mubr.f32.mxu0 %v22585_v32  ;;  %4221 = vmatprep.mubr.f32.mxu1 %v22585_v32 }
 0x7ab   : > { %6262 = vmatmul.mubr.f32.gmra.mrb[48].mxu0 %v22886_v39  ;;  %4223 = vmatmul.mubr.f32.gmra.mrb[48].mxu1 %v22887_v23 }
 0x7ac   : > { %6267 = vmatprep.mubr.f32.mxu0 %v22585_v32  ;;  %4228 = vmatprep.mubr.f32.mxu1 %v22585_v32 }
 0x7af   : > { %6269 = vmatmul.mubr.f32.gmra.mrb[50].mxu0 %v22888_v14  ;;  %4230 = vmatmul.mubr.f32.gmra.mrb[50].mxu1 %v22889_v19 }
 0x7b0   : > { %6274 = vmatprep.mubr.f32.mxu0 %v22585_v32  ;;  %4235 = vmatprep.mubr.f32.mxu1 %v22585_v32 }
 0x7b3   : > { %6276 = vmatmul.mubr.f32.gmra.mrb[52].mxu0 %v22890_v38  ;;  %4237 = vmatmul.mubr.f32.gmra.mrb[52].mxu1 %v22891_v0 }
 0x7b4   : > { %6281 = vmatprep.mubr.f32.mxu0 %v22585_v32  ;;  %4242 = vmatprep.mubr.f32.mxu1 %v22585_v32 }
 0x7b7   : > { %6283 = vmatmul.mubr.f32.gmra.mrb[54].mxu0 %v22892_v22  ;;  %4244 = vmatmul.mubr.f32.gmra.mrb[54].mxu1 %v22893_v11 }
 0x7b8   : > { %6288 = vmatprep.mubr.f32.mxu0 %v22585_v32  ;;  %4249 = vmatprep.mubr.f32.mxu1 %v22585_v32 }
 0x7bb   : > { %6290 = vmatmul.mubr.f32.gmra.mrb[56].mxu0 %v22894_v13  ;;  %4251 = vmatmul.mubr.f32.gmra.mrb[56].mxu1 %v22895_v51 }
 0x7bc   : > { %6295 = vmatprep.mubr.f32.mxu0 %v22585_v32  ;;  %4256 = vmatprep.mubr.f32.mxu1 %v22585_v32 }
 0x7bf   : > { %6297 = vmatmul.mubr.f32.gmra.mrb[58].mxu0 %v22896_v15  ;;  %4258 = vmatmul.mubr.f32.gmra.mrb[58].mxu1 %v22897_v56 }
 0x7c0   : > { %6302 = vmatprep.mubr.f32.mxu0 %v22585_v32  ;;  %4263 = vmatprep.mubr.f32.mxu1 %v22585_v32 }
 0x7c3   : > { %6304 = vmatmul.mubr.f32.gmra.mrb[60].mxu0 %v22898_v18  ;;  %4265 = vmatmul.mubr.f32.gmra.mrb[60].mxu1 %v22899_v57 }
 0x7c4   : > { %6309 = vmatprep.mubr.f32.mxu0 %v22585_v32  ;;  %4270 = vmatprep.mubr.f32.mxu1 %v22585_v32 }
 0x7c7   : > { %6311 = vmatmul.mubr.f32.gmra.mrb[62].mxu0 %v22900_v47  ;;  %4272 = vmatmul.mubr.f32.gmra.mrb[62].mxu1 %v22901_v10 }
 0x7c8   : > { %6316 = vmatprep.mubr.f32.mxu0 %v22585_v32  ;;  %4344 = vmatprep.mubr.f32.mxu1 %v22585_v32 }
 0x7cb   : > { %6318 = vmatmul.mubr.f32.gmra.mrb[64].mxu0 %v22902_v35  ;;  %4346 = vmatmul.mubr.f32.vlgmr.msra.gmra.mrb[0].mxu1 %v22837_v12  ;;  %v22905_v12 = vld [vmem:[#allocation109_spill] sm:$0xff] }
 0x7cc   : > { %6323 = vmatprep.mubr.f32.mxu0 %v22585_v32  ;;  %4351 = vmatprep.mubr.f32.mxu1 %v22585_v32 }
 0x7cf   : > { %6325 = vmatmul.mubr.f32.gmra.mrb[66].mxu0 %v22903_v44  ;;  %4353 = vmatmul.mubr.f32.gmra.mrb[2].mxu1 %v22840_v40  ;;  %v22906_v40 = vld [vmem:[#allocation111_spill] sm:$0xff] }
 0x7d0   : > { %6330 = vmatprep.mubr.f32.mxu0 %v22585_v32  ;;  %4358 = vmatprep.mubr.f32.mxu1 %v22585_v32 }
 0x7d3   : > { %6332 = vmatmul.mubr.f32.gmra.mrb[68].mxu0 %v22904_v63  ;;  %4360 = vmatmul.mubr.f32.gmra.mrb[4].mxu1 %v22842_v49  ;;  %v22907_v49 = vld [vmem:[#allocation113_spill] sm:$0xff] }
 0x7d4   : > { %6337 = vmatprep.mubr.f32.mxu0 %v22585_v32  ;;  %4365 = vmatprep.mubr.f32.mxu1 %v22585_v32 }
 0x7d7   : > { %6339 = vmatmul.mubr.f32.gmra.mrb[70].mxu0 %v22905_v12  ;;  %4367 = vmatmul.mubr.f32.gmra.mrb[6].mxu1 %v22844_v61  ;;  %v22908_v61 = vld [vmem:[#allocation114_spill] sm:$0xff] }
 0x7d8   : > { %6344 = vmatprep.mubr.f32.mxu0 %v22585_v32  ;;  %4372 = vmatprep.mubr.f32.mxu1 %v22585_v32 }
 0x7db   : > { %6346 = vmatmul.mubr.f32.gmra.mrb[72].mxu0 %v22906_v40  ;;  %4374 = vmatmul.mubr.f32.gmra.mrb[8].mxu1 %v22846_v29  ;;  %v22909_v29 = vld [vmem:[#allocation115_spill] sm:$0xff] }
 0x7dc   : > { %6351 = vmatprep.mubr.f32.mxu0 %v22585_v32  ;;  %4379 = vmatprep.mubr.f32.mxu1 %v22585_v32 }
 0x7df   : > { %6353 = vmatmul.mubr.f32.gmra.mrb[74].mxu0 %v22907_v49  ;;  %4381 = vmatmul.mubr.f32.gmra.mrb[10].mxu1 %v22848_v31  ;;  %v22911_v31 = vld [vmem:[#allocation119_spill] sm:$0xff] }
 0x7e0   : > { %6358 = vmatprep.mubr.f32.mxu0 %v22585_v32  ;;  %4386 = vmatprep.mubr.f32.mxu1 %v22585_v32 }
 0x7e3   : > { %6360 = vmatmul.mubr.f32.gmra.mrb[76].mxu0 %v22908_v61  ;;  %4388 = vmatmul.mubr.f32.gmra.mrb[12].mxu1 %v22850_v37  ;;  %v22913_v37 = vld [vmem:[#allocation121_spill] sm:$0xff] }
 0x7e4   : > { %6365 = vmatprep.mubr.f32.mxu0 %v22585_v32  ;;  %4393 = vmatprep.mubr.f32.mxu1 %v22585_v32 }
 0x7e7   : > { %6367 = vmatmul.mubr.f32.gmra.mrb[78].mxu0 %v22909_v29  ;;  %4395 = vmatmul.mubr.f32.gmra.mrb[14].mxu1 %v22852_v17  ;;  %v22915_v17 = vld [vmem:[#allocation124_spill] sm:$0xff] }
 0x7e8   : > { %6372 = vmatprep.mubr.f32.mxu0 %v22585_v32  ;;  %4400 = vmatprep.mubr.f32.mxu1 %v22585_v32 }
 0x7eb   : > { %6374 = vmatmul.mubr.f32.gmra.mrb[80].mxu0 %v22910_v62  ;;  %4402 = vmatmul.mubr.f32.gmra.mrb[16].mxu1 %v22854_v28  ;;  %v22917_v28 = vld [vmem:[#allocation126_spill] sm:$0xff] }
 0x7ec   : > { %6379 = vmatprep.mubr.f32.mxu0 %v22585_v32  ;;  %4407 = vmatprep.mubr.f32.mxu1 %v22585_v32 }
 0x7ef   : > { %6381 = vmatmul.mubr.f32.gmra.mrb[82].mxu0 %v22911_v31  ;;  %4409 = vmatmul.mubr.f32.gmra.mrb[18].mxu1 %v22856_v46  ;;  %v11956_v46 = vcombine.low %v22918_v58, %v22918_v58 }
 0x7f0   : > { %6386 = vmatprep.mubr.f32.mxu0 %v22585_v32  ;;  %4414 = vmatprep.mubr.f32.mxu1 %v22585_v32 }
 0x7f1   : > { %v2414_v1 = vsel %vm2412_vm1, %v11956_v46, 1.0 }
 0x7f3   : > { %6388 = vmatmul.mubr.f32.gmra.mrb[84].mxu0 %v22912_v30  ;;  %4416 = vmatmul.mubr.f32.gmra.mrb[20].mxu1 %v22858_v53  ;;  %v17392_v53 = vand.u32 4294901760, %v2414_v1 }
 0x7f4   : > { %6393 = vmatprep.mubr.f32.mxu0 %v22585_v32  ;;  %4421 = vmatprep.mubr.f32.mxu1 %v22585_v32 }
 0x7f5   : > { %22919 = vst [vmem:[#allocation11_spill] sm:$0xff] %v17392_v53  ;;  %v17399_v36 = vsub.f32 %v2414_v1, %v17392_v53 }
 0x7f7   : > { %6395 = vmatmul.mubr.f32.gmra.mrb[86].mxu0 %v22913_v37  ;;  %4423 = vmatmul.mubr.f32.gmra.mrb[22].mxu1 %v22860_v33  ;;  %22920 = vst [vmem:[#allocation8_spill] sm:$0xff] %v17399_v36  ;;  %v21823_v33 = vand.u32 4294901760, %v17399_v36 }
 0x7f8   : > { %6400 = vmatprep.mubr.f32.mxu0 %v22585_v32  ;;  %4428 = vmatprep.mubr.f32.mxu1 %v22585_v32 }
 0x7f9   : > { %v7383_v5 = vsub.f32 %v17399_v36, %v21823_v33 }
 0x7fb   : > { %6402 = vmatmul.mubr.f32.gmra.mrb[88].mxu0 %v22914_v2  ;;  %4430 = vmatmul.mubr.f32.gmra.mrb[24].mxu1 %v22862_v8  ;;  %v7384_v8 = vand.u32 4294901760, %v7383_v5 }
 0x7fc   : > { %6407 = vmatprep.mubr.f32.mxu0 %v22585_v32  ;;  %4435 = vmatprep.mubr.f32.mxu1 %v22585_v32 }
 0x7ff   : > { %6409 = vmatmul.mubr.f32.gmra.mrb[90].mxu0 %v22915_v17  ;;  %4437 = vmatmul.mubr.f32.gmra.mrb[26].mxu1 %v22864_v60 }
 0x800   : > { %6414 = vmatprep.mubr.f32.mxu0 %v22585_v32  ;;  %4442 = vmatprep.mubr.f32.mxu1 %v22585_v32 }
 0x803   : > { %6416 = vmatmul.mubr.f32.gmra.mrb[92].mxu0 %v22916_v59  ;;  %4444 = vmatmul.mubr.f32.gmra.mrb[28].mxu1 %v22866_v20 }
 0x804   : > { %6421 = vmatprep.mubr.f32.mxu0 %v22585_v32  ;;  %4449 = vmatprep.mubr.f32.mxu1 %v22585_v32 }
 0x807   : > { %6423 = vmatmul.mubr.f32.gmra.mrb[94].mxu0 %v22917_v28  ;;  %4451 = vmatmul.mubr.f32.gmra.mrb[30].mxu1 %v22868_v16 }
 0x808   : > { %6495 = vmatprep.mubr.f32.mxu0 %v22585_v32  ;;  %4456 = vmatprep.mubr.f32.mxu1 %v22585_v32 }
 0x80b   : > { %6497 = vmatmul.mubr.f32.vlgmr.msra.gmra.mrb[32].mxu0 %v22869_v41  ;;  %4458 = vmatmul.mubr.f32.gmra.mrb[32].mxu1 %v22870_v54 }
 0x80c   : > { %6502 = vmatprep.mubr.f32.mxu0 %v22585_v32  ;;  %4463 = vmatprep.mubr.f32.mxu1 %v22585_v32 }
 0x80f   : > { %6504 = vmatmul.mubr.f32.gmra.mrb[34].mxu0 %v22872_v50  ;;  %4465 = vmatmul.mubr.f32.gmra.mrb[34].mxu1 %v22873_v6 }
 0x810   : > { %6509 = vmatprep.mubr.f32.mxu0 %v22585_v32  ;;  %4470 = vmatprep.mubr.f32.mxu1 %v22585_v32 }
 0x813   : > { %6511 = vmatmul.mubr.f32.gmra.mrb[36].mxu0 %v22874_v48  ;;  %4472 = vmatmul.mubr.f32.gmra.mrb[36].mxu1 %v22875_v27 }
 0x814   : > { %6516 = vmatprep.mubr.f32.mxu0 %v22585_v32  ;;  %4477 = vmatprep.mubr.f32.mxu1 %v22585_v32 }
 0x817   : > { %6518 = vmatmul.mubr.f32.gmra.mrb[38].mxu0 %v22876_v45  ;;  %4479 = vmatmul.mubr.f32.gmra.mrb[38].mxu1 %v22877_v55 }
 0x818   : > { %6523 = vmatprep.mubr.f32.mxu0 %v22585_v32  ;;  %4484 = vmatprep.mubr.f32.mxu1 %v22585_v32 }
 0x81b   : > { %6525 = vmatmul.mubr.f32.gmra.mrb[40].mxu0 %v22878_v3  ;;  %4486 = vmatmul.mubr.f32.gmra.mrb[40].mxu1 %v22879_v25 }
 0x81c   : > { %6530 = vmatprep.mubr.f32.mxu0 %v22585_v32  ;;  %4491 = vmatprep.mubr.f32.mxu1 %v22585_v32 }
 0x81f   : > { %6532 = vmatmul.mubr.f32.gmra.mrb[42].mxu0 %v22880_v43  ;;  %4493 = vmatmul.mubr.f32.gmra.mrb[42].mxu1 %v22881_v9 }
 0x820   : > { %6537 = vmatprep.mubr.f32.mxu0 %v22585_v32  ;;  %4498 = vmatprep.mubr.f32.mxu1 %v22585_v32 }
 0x823   : > { %6539 = vmatmul.mubr.f32.gmra.mrb[44].mxu0 %v22882_v26  ;;  %4500 = vmatmul.mubr.f32.gmra.mrb[44].mxu1 %v22883_v52 }
 0x824   : > { %6544 = vmatprep.mubr.f32.mxu0 %v22585_v32  ;;  %4505 = vmatprep.mubr.f32.mxu1 %v22585_v32 }
 0x827   : > { %6546 = vmatmul.mubr.f32.gmra.mrb[46].mxu0 %v22884_v21  ;;  %4507 = vmatmul.mubr.f32.gmra.mrb[46].mxu1 %v22885_v42 }
 0x828   : > { %6551 = vmatprep.mubr.f32.mxu0 %v22585_v32  ;;  %4512 = vmatprep.mubr.f32.mxu1 %v22585_v32 }
 0x82b   : > { %6553 = vmatmul.mubr.f32.gmra.mrb[48].mxu0 %v22886_v39  ;;  %4514 = vmatmul.mubr.f32.gmra.mrb[48].mxu1 %v22887_v23 }
 0x82c   : > { %6558 = vmatprep.mubr.f32.mxu0 %v22585_v32  ;;  %4519 = vmatprep.mubr.f32.mxu1 %v22585_v32 }
 0x82f   : > { %6560 = vmatmul.mubr.f32.gmra.mrb[50].mxu0 %v22888_v14  ;;  %4521 = vmatmul.mubr.f32.gmra.mrb[50].mxu1 %v22889_v19 }
 0x830   : > { %6565 = vmatprep.mubr.f32.mxu0 %v22585_v32  ;;  %4526 = vmatprep.mubr.f32.mxu1 %v22585_v32 }
 0x833   : > { %6567 = vmatmul.mubr.f32.gmra.mrb[52].mxu0 %v22890_v38  ;;  %4528 = vmatmul.mubr.f32.gmra.mrb[52].mxu1 %v22891_v0 }
 0x834   : > { %6572 = vmatprep.mubr.f32.mxu0 %v22585_v32  ;;  %4533 = vmatprep.mubr.f32.mxu1 %v22585_v32 }
 0x837   : > { %6574 = vmatmul.mubr.f32.gmra.mrb[54].mxu0 %v22892_v22  ;;  %4535 = vmatmul.mubr.f32.gmra.mrb[54].mxu1 %v22893_v11 }
 0x838   : > { %6579 = vmatprep.mubr.f32.mxu0 %v22585_v32  ;;  %4540 = vmatprep.mubr.f32.mxu1 %v22585_v32 }
 0x83b   : > { %6581 = vmatmul.mubr.f32.gmra.mrb[56].mxu0 %v22894_v13  ;;  %4542 = vmatmul.mubr.f32.gmra.mrb[56].mxu1 %v22895_v51 }
 0x83c   : > { %6586 = vmatprep.mubr.f32.mxu0 %v22585_v32  ;;  %4547 = vmatprep.mubr.f32.mxu1 %v22585_v32 }
 0x83f   : > { %6588 = vmatmul.mubr.f32.gmra.mrb[58].mxu0 %v22896_v15  ;;  %4549 = vmatmul.mubr.f32.gmra.mrb[58].mxu1 %v22897_v56 }
 0x840   : > { %6593 = vmatprep.mubr.f32.mxu0 %v22585_v32  ;;  %4554 = vmatprep.mubr.f32.mxu1 %v22585_v32 }
 0x843   : > { %6595 = vmatmul.mubr.f32.gmra.mrb[60].mxu0 %v22898_v18  ;;  %4556 = vmatmul.mubr.f32.gmra.mrb[60].mxu1 %v22899_v57 }
 0x844   : > { %6600 = vmatprep.mubr.f32.mxu0 %v22585_v32  ;;  %4561 = vmatprep.mubr.f32.mxu1 %v22585_v32 }
 0x847   : > { %6602 = vmatmul.mubr.f32.gmra.mrb[62].mxu0 %v22900_v47  ;;  %4563 = vmatmul.mubr.f32.gmra.mrb[62].mxu1 %v22901_v10 }
 0x848   : > { %6607 = vmatprep.mubr.f32.mxu0 %v22585_v32  ;;  %7385 = vmatprep.mubr.f32.mxu1 %v7384_v8 }
 0x84b   : > { %6609 = vmatmul.mubr.f32.gmra.mrb[64].mxu0 %v22902_v35 }
 0x84c   : > { %6614 = vmatprep.mubr.f32.mxu0 %v22585_v32 }
 0x84f   : > { %6616 = vmatmul.mubr.f32.gmra.mrb[66].mxu0 %v22903_v44 }
 0x850   : > { %6621 = vmatprep.mubr.f32.mxu0 %v22585_v32 }
 0x853   : > { %6623 = vmatmul.mubr.f32.gmra.mrb[68].mxu0 %v22904_v63 }
 0x854   : > { %6628 = vmatprep.mubr.f32.mxu0 %v22585_v32 }
 0x857   : > { %6630 = vmatmul.mubr.f32.gmra.mrb[70].mxu0 %v22905_v12 }
 0x858   : > { %6635 = vmatprep.mubr.f32.mxu0 %v22585_v32 }
 0x85b   : > { %6637 = vmatmul.mubr.f32.gmra.mrb[72].mxu0 %v22906_v40 }
 0x85c   : > { %6642 = vmatprep.mubr.f32.mxu0 %v22585_v32 }
 0x85f   : > { %6644 = vmatmul.mubr.f32.gmra.mrb[74].mxu0 %v22907_v49 }
 0x860   : > { %6649 = vmatprep.mubr.f32.mxu0 %v22585_v32 }
 0x863   : > { %6651 = vmatmul.mubr.f32.gmra.mrb[76].mxu0 %v22908_v61 }
 0x864   : > { %6656 = vmatprep.mubr.f32.mxu0 %v22585_v32 }
 0x867   : > { %6658 = vmatmul.mubr.f32.gmra.mrb[78].mxu0 %v22909_v29 }
 0x868   : > { %6663 = vmatprep.mubr.f32.mxu0 %v22585_v32 }
 0x86b   : > { %6665 = vmatmul.mubr.f32.gmra.mrb[80].mxu0 %v22910_v62 }
 0x86c   : > { %6670 = vmatprep.mubr.f32.mxu0 %v22585_v32 }
 0x86f   : > { %6672 = vmatmul.mubr.f32.gmra.mrb[82].mxu0 %v22911_v31 }
 0x870   : > { %6677 = vmatprep.mubr.f32.mxu0 %v22585_v32 }
 0x873   : > { %6679 = vmatmul.mubr.f32.gmra.mrb[84].mxu0 %v22912_v30 }
 0x874   : > { %6684 = vmatprep.mubr.f32.mxu0 %v22585_v32 }
 0x877   : > { %6686 = vmatmul.mubr.f32.gmra.mrb[86].mxu0 %v22913_v37 }
 0x878   : > { %6691 = vmatprep.mubr.f32.mxu0 %v22585_v32 }
 0x87b   : > { %6693 = vmatmul.mubr.f32.gmra.mrb[88].mxu0 %v22914_v2 }
 0x87c   : > { %6698 = vmatprep.mubr.f32.mxu0 %v22585_v32 }
 0x87f   : > { %6700 = vmatmul.mubr.f32.gmra.mrb[90].mxu0 %v22915_v17 }
 0x880   : > { %6705 = vmatprep.mubr.f32.mxu0 %v22585_v32 }
 0x883   : > { %6707 = vmatmul.mubr.f32.gmra.mrb[92].mxu0 %v22916_v59 }
 0x884   : > { %6712 = vmatprep.mubr.f32.mxu0 %v22585_v32 }
 0x887   : > { %6714 = vmatmul.mubr.f32.gmra.mrb[94].mxu0 %v22917_v28 }
 0x89e   : > { %v17450_v24 = vpop.f32.mrb[0].mxu1 }
 0x89f   : > { %v17452_v60 = vpop.f32.mrb[1].mxu1 }
 0x8a2   : > { %v17454_v4 = vpop.f32.mrb[2].mxu1 }
 0x8a3   : > { %v6720_v20 = vmax.f32 %v17450_v24, %v17454_v4  ;;  %v17458_v7 = vpop.f32.mrb[3].mxu1 }
 0x8a4   : > { %v6757_v16 = vmax.f32 %v17452_v60, %v17458_v7 }
 0x8a6   : > { %v17462_v41 = vpop.f32.mrb[4].mxu1 }
 0x8a7   : > { %v6721_v32 = vmax.f32 %v6720_v20, %v17462_v41  ;;  %v17465_v54 = vpop.f32.mrb[5].mxu1 }
 0x8a8   : > { %v6758_v34 = vmax.f32 %v6757_v16, %v17465_v54 }
 0x8aa   : > { %v17468_v50 = vpop.f32.mrb[6].mxu1 }
 0x8ab   : > { %v6722_v6 = vmax.f32 %v6721_v32, %v17468_v50  ;;  %v17471_v48 = vpop.f32.mrb[7].mxu1 }
 0x8ac   : > { %v6759_v27 = vmax.f32 %v6758_v34, %v17471_v48 }
 0x8ae   : > { %v17474_v45 = vpop.f32.mrb[8].mxu1 }
 0x8af   : > { %v6723_v55 = vmax.f32 %v6722_v6, %v17474_v45  ;;  %v17477_v3 = vpop.f32.mrb[9].mxu1 }
 0x8b0   : > { %v6760_v25 = vmax.f32 %v6759_v27, %v17477_v3 }
 0x8b2   : > { %v17480_v43 = vpop.f32.mrb[10].mxu1 }
 0x8b3   : > { %v6724_v9 = vmax.f32 %v6723_v55, %v17480_v43  ;;  %v17483_v26 = vpop.f32.mrb[11].mxu1 }
 0x8b4   : > { %v6761_v52 = vmax.f32 %v6760_v25, %v17483_v26 }
 0x8b6   : > { %v17486_v21 = vpop.f32.mrb[12].mxu1 }
 0x8b7   : > { %v6725_v42 = vmax.f32 %v6724_v9, %v17486_v21  ;;  %v17489_v39 = vpop.f32.mrb[13].mxu1 }
 0x8b8   : > { %v6762_v23 = vmax.f32 %v6761_v52, %v17489_v39 }
 0x8ba   : > { %v17492_v14 = vpop.f32.mrb[14].mxu1 }
 0x8bb   : > { %v6726_v19 = vmax.f32 %v6725_v42, %v17492_v14  ;;  %v17495_v38 = vpop.f32.mrb[15].mxu1 }
 0x8bc   : > { %v6763_v0 = vmax.f32 %v6762_v23, %v17495_v38 }
 0x8be   : > { %v17498_v22 = vpop.f32.mrb[16].mxu1 }
 0x8bf   : > { %v6727_v11 = vmax.f32 %v6726_v19, %v17498_v22  ;;  %v17501_v13 = vpop.f32.mrb[17].mxu1 }
 0x8c0   : > { %v6764_v51 = vmax.f32 %v6763_v0, %v17501_v13 }
 0x8c2   : > { %v17504_v15 = vpop.f32.mrb[18].mxu1 }
 0x8c3   : > { %v6728_v56 = vmax.f32 %v6727_v11, %v17504_v15  ;;  %v17507_v18 = vpop.f32.mrb[19].mxu1 }
 0x8c4   : > { %v6765_v57 = vmax.f32 %v6764_v51, %v17507_v18 }
 0x8c6   : > { %v17510_v47 = vpop.f32.mrb[20].mxu1 }
 0x8c7   : > { %v6729_v10 = vmax.f32 %v6728_v56, %v17510_v47  ;;  %v17513_v35 = vpop.f32.mrb[21].mxu1 }
 0x8c8   : > { %22921 = vst [vmem:[#allocation13_spill] sm:$0xff] %v17513_v35  ;;  %v6766_v44 = vmax.f32 %v6765_v57, %v17513_v35 }
 0x8ca   : > { %v17516_v63 = vpop.f32.mrb[22].mxu1 }
 0x8cb   : > { %v6730_v12 = vmax.f32 %v6729_v10, %v17516_v63  ;;  %v17519_v40 = vpop.f32.mrb[23].mxu1 }
 0x8cc   : > { %22922 = vst [vmem:[#allocation18_spill] sm:$0xff] %v17519_v40  ;;  %v6767_v49 = vmax.f32 %v6766_v44, %v17519_v40 }
 0x8ce   : > { %v17522_v61 = vpop.f32.mrb[24].mxu1 }
 0x8cf   : > { %v6731_v29 = vmax.f32 %v6730_v12, %v17522_v61  ;;  %v17525_v62 = vpop.f32.mrb[25].mxu1 }
 0x8d0   : > { %22923 = vst [vmem:[#allocation16_spill] sm:$0xff] %v17525_v62  ;;  %v6768_v31 = vmax.f32 %v6767_v49, %v17525_v62 }
 0x8d2   : > { %v17528_v30 = vpop.f32.mrb[26].mxu1 }
 0x8d3   : > { %v6732_v37 = vmax.f32 %v6731_v29, %v17528_v30  ;;  %v17531_v2 = vpop.f32.mrb[27].mxu1 }
 0x8d4   : > { %22924 = vst [vmem:[#allocation20_spill] sm:$0xff] %v17531_v2  ;;  %v6769_v17 = vmax.f32 %v6768_v31, %v17531_v2 }
 0x8d6   : > { %v17534_v59 = vpop.f32.mrb[28].mxu1 }
 0x8d7   : > { %v6733_v28 = vmax.f32 %v6732_v37, %v17534_v59  ;;  %v17537_v46 = vpop.f32.mrb[29].mxu1 }
 0x8d8   : > { %22925 = vst [vmem:[#allocation22_spill] sm:$0xff] %v17537_v46  ;;  %v6770_v1 = vmax.f32 %v6769_v17, %v17537_v46 }
 0x8da   : > { %v17540_v5 = vpop.f32.mrb[30].mxu1 }
 0x8db   : > { %v6734_v8 = vmax.f32 %v6733_v28, %v17540_v5  ;;  %v17543_v20 = vpop.f32.mrb[31].mxu1 }
 0x8dc   : > { %22926 = vst [vmem:[#allocation26_spill] sm:$0xff] %v17543_v20  ;;  %v6771_v16 = vmax.f32 %v6770_v1, %v17543_v20 }
 0x8de   : > { %v17546_v32 = vpop.f32.mrb[32].mxu0  ;;  %v17548_v34 = vpop.f32.mrb[32].mxu1 }
 0x8df   : > { %22927 = vst [vmem:[#allocation30_spill] sm:$0xff] %v17546_v32  ;;  %v17550_v6 = vpop.f32.mrb[33].mxu0  ;;  %v6735_v27 = vmax.f32 %v6734_v8, %v17548_v34  ;;  %v17553_v55 = vpop.f32.mrb[33].mxu1 }
 0x8e0   : > { %22928 = vst [vmem:[#allocation19_spill] sm:$0xff] %v17550_v6  ;;  %22929 = vst [vmem:[#allocation25_spill] sm:$0xff] %v17553_v55  ;;  %v6772_v25 = vmax.f32 %v6771_v16, %v17553_v55 }
 0x8e2   : > { %v17556_v9 = vpop.f32.mrb[34].mxu0  ;;  %v17558_v52 = vpop.f32.mrb[34].mxu1 }
 0x8e3   : > { %22930 = vst [vmem:[#allocation29_spill] sm:$0xff] %v17556_v9  ;;  %v6794_v42 = vmax.f32 %v17546_v32, %v17556_v9  ;;  %v17562_v23 = vpop.f32.mrb[35].mxu0  ;;  %v6736_v19 = vmax.f32 %v6735_v27, %v17558_v52  ;;  %v17565_v0 = vpop.f32.mrb[35].mxu1 }
 0x8e4   : > { %22931 = vst [vmem:[#allocation32_spill] sm:$0xff] %v17562_v23  ;;  %22932 = vst [vmem:[#allocation34_spill] sm:$0xff] %v17565_v0  ;;  %v6831_v11 = vmax.f32 %v17550_v6, %v17562_v23  ;;  %v6773_v51 = vmax.f32 %v6772_v25, %v17565_v0  ;;  %v22969_v0 = vld [vmem:[#allocation116_spill] sm:$0xff] }
 0x8e6   : > { %v17570_v56 = vpop.f32.mrb[36].mxu0  ;;  %v17572_v57 = vpop.f32.mrb[36].mxu1 }
 0x8e7   : > { %22933 = vst [vmem:[#allocation36_spill] sm:$0xff] %v17570_v56  ;;  %v6795_v10 = vmax.f32 %v6794_v42, %v17570_v56  ;;  %v17575_v44 = vpop.f32.mrb[37].mxu0  ;;  %v6737_v12 = vmax.f32 %v6736_v19, %v17572_v57  ;;  %v17578_v49 = vpop.f32.mrb[37].mxu1 }
 0x8e8   : > { %22934 = vst [vmem:[#allocation39_spill] sm:$0xff] %v17575_v44  ;;  %22935 = vst [vmem:[#allocation43_spill] sm:$0xff] %v17578_v49  ;;  %v6832_v29 = vmax.f32 %v6831_v11, %v17575_v44  ;;  %v6774_v31 = vmax.f32 %v6773_v51, %v17578_v49 }
 0x8ea   : > { %v17582_v37 = vpop.f32.mrb[38].mxu0  ;;  %v17584_v17 = vpop.f32.mrb[38].mxu1 }
 0x8eb   : > { %22936 = vst [vmem:[#allocation47_spill] sm:$0xff] %v17582_v37  ;;  %v6796_v28 = vmax.f32 %v6795_v10, %v17582_v37  ;;  %v17587_v1 = vpop.f32.mrb[39].mxu0  ;;  %v6738_v8 = vmax.f32 %v6737_v12, %v17584_v17  ;;  %v17590_v16 = vpop.f32.mrb[39].mxu1 }
 0x8ec   : > { %22937 = vst [vmem:[#allocation41_spill] sm:$0xff] %v17587_v1  ;;  %22938 = vst [vmem:[#allocation9_spill] sm:$0xff] %v17590_v16  ;;  %v6833_v27 = vmax.f32 %v6832_v29, %v17587_v1  ;;  %v6775_v25 = vmax.f32 %v6774_v31, %v17590_v16 }
 0x8ee   : > { %v17594_v42 = vpop.f32.mrb[40].mxu0  ;;  %v17596_v19 = vpop.f32.mrb[40].mxu1 }
 0x8ef   : > { %22939 = vst [vmem:[#allocation51_spill] sm:$0xff] %v17594_v42  ;;  %v6797_v11 = vmax.f32 %v6796_v28, %v17594_v42  ;;  %v17599_v51 = vpop.f32.mrb[41].mxu0  ;;  %v6739_v10 = vmax.f32 %v6738_v8, %v17596_v19  ;;  %v17602_v33 = vpop.f32.mrb[41].mxu1 }
 0x8f0   : > { %22940 = vst [vmem:[#allocation45_spill] sm:$0xff] %v17599_v51  ;;  %22941 = vst [vmem:[#allocation55_spill] sm:$0xff] %v17602_v33  ;;  %v6834_v12 = vmax.f32 %v6833_v27, %v17599_v51  ;;  %v6776_v36 = vmax.f32 %v6775_v25, %v17602_v33 }
 0x8f2   : > { %v17606_v53 = vpop.f32.mrb[42].mxu0  ;;  %v17608_v29 = vpop.f32.mrb[42].mxu1 }
 0x8f3   : > { %22942 = vst [vmem:[#allocation49_spill] sm:$0xff] %v17606_v53  ;;  %v6798_v31 = vmax.f32 %v6797_v11, %v17606_v53  ;;  %v17611_v1 = vpop.f32.mrb[43].mxu0  ;;  %v6740_v28 = vmax.f32 %v6739_v10, %v17608_v29  ;;  %v17614_v44 = vpop.f32.mrb[43].mxu1 }
 0x8f4   : > { %22943 = vst [vmem:[#allocation59_spill] sm:$0xff] %v17611_v1  ;;  %22944 = vst [vmem:[#allocation54_spill] sm:$0xff] %v17614_v44  ;;  %v6835_v8 = vmax.f32 %v6834_v12, %v17611_v1  ;;  %v6777_v23 = vmax.f32 %v6776_v36, %v17614_v44 }
 0x8f6   : > { %v17618_v6 = vpop.f32.mrb[44].mxu0  ;;  %v17620_v27 = vpop.f32.mrb[44].mxu1 }
 0x8f7   : > { %22945 = vst [vmem:[#allocation63_spill] sm:$0xff] %v17618_v6  ;;  %v6799_v25 = vmax.f32 %v6798_v31, %v17618_v6  ;;  %v17623_v51 = vpop.f32.mrb[45].mxu0  ;;  %v6741_v11 = vmax.f32 %v6740_v28, %v17620_v27  ;;  %v17626_v53 = vpop.f32.mrb[45].mxu1 }
 0x8f8   : > { %22946 = vst [vmem:[#allocation56_spill] sm:$0xff] %v17623_v51  ;;  %22947 = vst [vmem:[#allocation67_spill] sm:$0xff] %v17626_v53  ;;  %v6836_v10 = vmax.f32 %v6835_v8, %v17623_v51  ;;  %v6778_v42 = vmax.f32 %v6777_v23, %v17626_v53 }
 0x8fa   : > { %v17630_v37 = vpop.f32.mrb[46].mxu0  ;;  %v17632_v12 = vpop.f32.mrb[46].mxu1 }
 0x8fb   : > { %22948 = vst [vmem:[#allocation61_spill] sm:$0xff] %v17630_v37  ;;  %v6800_v36 = vmax.f32 %v6799_v25, %v17630_v37  ;;  %v17635_v1 = vpop.f32.mrb[47].mxu0  ;;  %v6742_v31 = vmax.f32 %v6741_v11, %v17632_v12  ;;  %v17638_v6 = vpop.f32.mrb[47].mxu1 }
 0x8fc   : > { %22949 = vst [vmem:[#allocation71_spill] sm:$0xff] %v17635_v1  ;;  %22950 = vst [vmem:[#allocation65_spill] sm:$0xff] %v17638_v6  ;;  %v6837_v28 = vmax.f32 %v6836_v10, %v17635_v1  ;;  %v6779_v56 = vmax.f32 %v6778_v42, %v17638_v6 }
 0x8fe   : > { %v17642_v9 = vpop.f32.mrb[48].mxu0  ;;  %v17644_v8 = vpop.f32.mrb[48].mxu1 }
 0x8ff   : > { %22951 = vst [vmem:[#allocation75_spill] sm:$0xff] %v17642_v9  ;;  %v6801_v23 = vmax.f32 %v6800_v36, %v17642_v9  ;;  %v17647_v51 = vpop.f32.mrb[49].mxu0  ;;  %v6743_v25 = vmax.f32 %v6742_v31, %v17644_v8  ;;  %v17650_v37 = vpop.f32.mrb[49].mxu1 }
 0x900   : > { %22952 = vst [vmem:[#allocation70_spill] sm:$0xff] %v17647_v51  ;;  %22953 = vst [vmem:[#allocation79_spill] sm:$0xff] %v17650_v37  ;;  %v6838_v11 = vmax.f32 %v6837_v28, %v17647_v51  ;;  %v6780_v32 = vmax.f32 %v6779_v56, %v17650_v37 }
 0x902   : > { %v17654_v53 = vpop.f32.mrb[50].mxu0  ;;  %v17656_v10 = vpop.f32.mrb[50].mxu1 }
 0x903   : > { %22954 = vst [vmem:[#allocation72_spill] sm:$0xff] %v17654_v53  ;;  %v6802_v42 = vmax.f32 %v6801_v23, %v17654_v53  ;;  %v17659_v1 = vpop.f32.mrb[51].mxu0  ;;  %v6744_v36 = vmax.f32 %v6743_v25, %v17656_v10  ;;  %v17662_v9 = vpop.f32.mrb[51].mxu1 }
 0x904   : > { %22955 = vst [vmem:[#allocation83_spill] sm:$0xff] %v17659_v1  ;;  %22956 = vst [vmem:[#allocation76_spill] sm:$0xff] %v17662_v9  ;;  %v6839_v31 = vmax.f32 %v6838_v11, %v17659_v1  ;;  %v6781_v6 = vmax.f32 %v6780_v32, %v17662_v9 }
 0x906   : > { %v17666_v44 = vpop.f32.mrb[52].mxu0  ;;  %v17668_v28 = vpop.f32.mrb[52].mxu1 }
 0x907   : > { %22957 = vst [vmem:[#allocation87_spill] sm:$0xff] %v17666_v44  ;;  %v6803_v56 = vmax.f32 %v6802_v42, %v17666_v44  ;;  %v17671_v51 = vpop.f32.mrb[53].mxu0  ;;  %v6745_v23 = vmax.f32 %v6744_v36, %v17668_v28  ;;  %v17674_v53 = vpop.f32.mrb[53].mxu1 }
 0x908   : > { %22958 = vst [vmem:[#allocation81_spill] sm:$0xff] %v17671_v51  ;;  %22959 = vst [vmem:[#allocation91_spill] sm:$0xff] %v17674_v53  ;;  %v6840_v25 = vmax.f32 %v6839_v31, %v17671_v51  ;;  %v6782_v37 = vmax.f32 %v6781_v6, %v17674_v53 }
 0x90a   : > { %v17678_v33 = vpop.f32.mrb[54].mxu0  ;;  %v17680_v11 = vpop.f32.mrb[54].mxu1 }
 0x90b   : > { %22960 = vst [vmem:[#allocation85_spill] sm:$0xff] %v17678_v33  ;;  %v6804_v32 = vmax.f32 %v6803_v56, %v17678_v33  ;;  %v17683_v1 = vpop.f32.mrb[55].mxu0  ;;  %v6746_v42 = vmax.f32 %v6745_v23, %v17680_v11  ;;  %v17686_v44 = vpop.f32.mrb[55].mxu1 }
 0x90c   : > { %22961 = vst [vmem:[#allocation95_spill] sm:$0xff] %v17683_v1  ;;  %22962 = vst [vmem:[#allocation90_spill] sm:$0xff] %v17686_v44  ;;  %v6841_v36 = vmax.f32 %v6840_v25, %v17683_v1  ;;  %v6783_v9 = vmax.f32 %v6782_v37, %v17686_v44 }
 0x90e   : > { %v17690_v16 = vpop.f32.mrb[56].mxu0  ;;  %v17692_v31 = vpop.f32.mrb[56].mxu1 }
 0x90f   : > { %22963 = vst [vmem:[#allocation104_spill] sm:$0xff] %v17690_v16  ;;  %v6805_v6 = vmax.f32 %v6804_v32, %v17690_v16  ;;  %v17695_v51 = vpop.f32.mrb[57].mxu0  ;;  %v6747_v56 = vmax.f32 %v6746_v42, %v17692_v31  ;;  %v17698_v33 = vpop.f32.mrb[57].mxu1 }
 0x910   : > { %22964 = vst [vmem:[#allocation105_spill] sm:$0xff] %v17695_v51  ;;  %22965 = vst [vmem:[#allocation108_spill] sm:$0xff] %v17698_v33  ;;  %v6842_v23 = vmax.f32 %v6841_v36, %v17695_v51  ;;  %v6784_v53 = vmax.f32 %v6783_v9, %v17698_v33  ;;  %v22970_v36 = vcombine.low %v22969_v0, %v22918_v58 }
 0x912   : > { %v17702_v49 = vpop.f32.mrb[58].mxu0  ;;  %v17704_v25 = vpop.f32.mrb[58].mxu1  ;;  %v2413_v9 = vsel %vm2412_vm1, %v22970_v36, 1.0 }
 0x913   : > { %22966 = vst [vmem:[#allocation110_spill] sm:$0xff] %v17702_v49  ;;  %v6806_v37 = vmax.f32 %v6805_v6, %v17702_v49  ;;  %v17707_v1 = vpop.f32.mrb[59].mxu0  ;;  %v6748_v32 = vmax.f32 %v6747_v56, %v17704_v25  ;;  %v17710_v16 = vpop.f32.mrb[59].mxu1 }
 0x914   : > { %22967 = vst [vmem:[#allocation112_spill] sm:$0xff] %v17707_v1  ;;  %22968 = vst [vmem:[#allocation122_spill] sm:$0xff] %v17710_v16  ;;  %v6843_v42 = vmax.f32 %v6842_v23, %v17707_v1  ;;  %v6785_v44 = vmax.f32 %v6784_v53, %v17710_v16  ;;  %v17729_v53 = vand.u32 4294901760, %v2413_v9 }
 0x916   : > { %v17718_v51 = vpop.f32.mrb[60].mxu0  ;;  %v17720_v33 = vpop.f32.mrb[60].mxu1  ;;  %22974 = vst [vmem:[#allocation102_spill] sm:$0xff] %v17729_v53  ;;  %v17741_v20 = vsub.f32 %v2413_v9, %v17729_v53 }
 0x917   : > { %22971 = vst [vmem:[#allocation99_spill] sm:$0xff] %v17718_v51  ;;  %v6807_v6 = vmax.f32 %v6806_v37, %v17718_v51  ;;  %v17723_v49 = vpop.f32.mrb[61].mxu0  ;;  %v6749_v56 = vmax.f32 %v6748_v32, %v17720_v33  ;;  %v17726_v55 = vpop.f32.mrb[61].mxu1 }
 0x918   : > { %22972 = vst [vmem:[#allocation92_spill] sm:$0xff] %v17723_v49  ;;  %22973 = vst [vmem:[#allocation97_spill] sm:$0xff] %v17726_v55  ;;  %v6844_v23 = vmax.f32 %v6843_v42, %v17723_v49  ;;  %v6786_v0 = vmax.f32 %v6785_v44, %v17726_v55 }
 0x919   : > { %22977 = vst [vmem:[#allocation12_spill] sm:$0xff] %v17741_v20 }
 0x91a   : > { %v17732_v58 = vpop.f32.mrb[62].mxu0  ;;  %v4564_v36 = vpop.f32.mrb[62].mxu1 }
 0x91b   : > { %22975 = vst [vmem:[#allocation10_spill] sm:$0xff] %v17732_v58  ;;  %v6808_v1 = vmax.f32 %v6807_v6, %v17732_v58  ;;  %v17735_v16 = vpop.f32.mrb[63].mxu0  ;;  %v6750_v37 = vmax.f32 %v6749_v56, %v4564_v36  ;;  %v17737_v51 = vpop.f32.mrb[63].mxu1  ;;  %v21886_v58 = vand.u32 4294901760, %v17741_v20 }
 0x91c   : > { %22976 = vst [vmem:[#allocation6_spill] sm:$0xff] %v17735_v16  ;;  %v6845_v32 = vmax.f32 %v6844_v23, %v17735_v16  ;;  %v6787_v42 = vmax.f32 %v6786_v0, %v17737_v51 }
 0x91d   : > { %v6751_v49 = vrot.slane %v6750_v37, 4 }
 0x91e   : > { %v17744_v46 = vpop.f32.mrb[64].mxu0  ;;  %v6788_v44 = vrot.slane %v6787_v42, 4 }
 0x91f   : > { %22978 = vst [vmem:[#allocation15_spill] sm:$0xff] %v17744_v46  ;;  %v6809_v55 = vmax.f32 %v6808_v1, %v17744_v46  ;;  %v17747_v2 = vpop.f32.mrb[65].mxu0  ;;  %v6752_v6 = vmax.f32 %v6750_v37, %v6751_v49  ;;  %v17760_v49 = vsub.f32 %v17741_v20, %v21886_v58 }
 0x920   : > { %22979 = vst [vmem:[#allocation14_spill] sm:$0xff] %v17747_v2  ;;  %v6846_v56 = vmax.f32 %v6845_v32, %v17747_v2  ;;  %v6789_v62 = vmax.f32 %v6787_v42, %v6788_v44 }
 0x921   : > { %v6753_v23 = vrot.slane %v6752_v6, 2  ;;  %22982 = vst [vmem:[#allocation23_spill] sm:$0xff] %v17760_v49 }
 0x922   : > { %v17751_v16 = vpop.f32.mrb[66].mxu0  ;;  %v6790_v9 = vrot.slane %v6789_v62, 2 }
 0x923   : > { %22980 = vst [vmem:[#allocation17_spill] sm:$0xff] %v17751_v16  ;;  %v6810_v0 = vmax.f32 %v6809_v55, %v17751_v16  ;;  %v17754_v53 = vpop.f32.mrb[67].mxu0  ;;  %v6754_v40 = vmax.f32 %v6752_v6, %v6753_v23 }
 0x924   : > { %22981 = vst [vmem:[#allocation21_spill] sm:$0xff] %v17754_v53  ;;  %v6847_v35 = vmax.f32 %v6846_v56, %v17754_v53  ;;  %v6791_v1 = vmax.f32 %v6789_v62, %v6790_v9 }
 0x925   : > { %v6755_v37 = vrot.slane %v6754_v40, 1 }
 0x926   : > { %v17762_v32 = vpop.f32.mrb[68].mxu0  ;;  %v6792_v2 = vrot.slane %v6791_v1, 1 }
 0x927   : > { %22983 = vst [vmem:[#allocation27_spill] sm:$0xff] %v17762_v32  ;;  %v17765_v42 = vmax.f32 %v6810_v0, %v17762_v32  ;;  %v17767_v44 = vpop.f32.mrb[69].mxu0  ;;  %v17769_v55 = vmax.f32 %v6754_v40, %v6755_v37 }
 0x928   : > { %22984 = vst [vmem:[#allocation5_spill] sm:$0xff] %v17767_v44  ;;  %v17772_v6 = vmax.f32 %v6847_v35, %v17767_v44  ;;  %v17800_v56 = vmax.f32 %v6791_v1, %v6792_v2 }
 0x929   : > { %v6930_v23 = vsub.f32 %v4564_v36, %v17769_v55  ;;  %v6868_v62 = vsub.f32 %v17450_v24, %v17769_v55  ;;  %v6870_v9 = vsub.f32 %v17454_v4, %v17769_v55  ;;  %v6872_v0 = vsub.f32 %v17462_v41, %v17769_v55 }
 0x92a   : > { %v17782_v58 = vpop.f32.mrb[70].mxu0  ;;  %v6874_v40 = vsub.f32 %v17468_v50, %v17769_v55  ;;  %v6876_v35 = vsub.f32 %v17474_v45, %v17769_v55  ;;  %v6878_v36 = vsub.f32 %v17480_v43, %v17769_v55  ;;  %v6880_v24 = vsub.f32 %v17486_v21, %v17769_v55 }
 0x92b   : > { %22985 = vst [vmem:[#allocation24_spill] sm:$0xff] %v17782_v58  ;;  %v17792_v37 = vpop.f32.mrb[71].mxu0  ;;  %v6882_v4 = vsub.f32 %v17492_v14, %v17769_v55  ;;  %v6884_v41 = vsub.f32 %v17498_v22, %v17769_v55  ;;  %v6886_v50 = vsub.f32 %v17504_v15, %v17769_v55  ;;  %v6888_v45 = vsub.f32 %v17510_v47, %v17769_v55 }
 0x92c   : > { %22986 = vst [vmem:[#allocation28_spill] sm:$0xff] %v17792_v37  ;;  %v6890_v43 = vsub.f32 %v17516_v63, %v17769_v55  ;;  %v6892_v21 = vsub.f32 %v17522_v61, %v17769_v55  ;;  %v6894_v14 = vsub.f32 %v17528_v30, %v17769_v55  ;;  %v7120_v20 = vmul.f32 1.442695, %v6930_v23 }
 0x92d   : > { %v6896_v22 = vsub.f32 %v17534_v59, %v17769_v55  ;;  %v6898_v15 = vsub.f32 %v17540_v5, %v17769_v55  ;;  %v6900_v2 = vsub.f32 %v17548_v34, %v17769_v55  ;;  %v6902_v63 = vsub.f32 %v17558_v52, %v17769_v55 }
 0x92e   : > { %v17816_v47 = vpop.f32.mrb[72].mxu0  ;;  %v6904_v61 = vsub.f32 %v17572_v57, %v17769_v55  ;;  %v6906_v30 = vsub.f32 %v17584_v17, %v17769_v55  ;;  %v6908_v59 = vsub.f32 %v17596_v19, %v17769_v55  ;;  %v6910_v5 = vsub.f32 %v17608_v29, %v17769_v55 }
 0x92f   : > { %22987 = vst [vmem:[#allocation31_spill] sm:$0xff] %v17816_v47  ;;  %v17826_v1 = vpop.f32.mrb[73].mxu0  ;;  %v6912_v34 = vsub.f32 %v17620_v27, %v17769_v55  ;;  %v6914_v52 = vsub.f32 %v17632_v12, %v17769_v55  ;;  %v6916_v57 = vsub.f32 %v17644_v8, %v17769_v55  ;;  %v6918_v17 = vsub.f32 %v17656_v10, %v17769_v55 }
 0x930   : > { %22988 = vst [vmem:[#allocation33_spill] sm:$0xff] %v17826_v1  ;;  %v6920_v19 = vsub.f32 %v17668_v28, %v17769_v55  ;;  %v6922_v23 = vsub.f32 %v17680_v11, %v17769_v55  ;;  %v6924_v29 = vsub.f32 %v17692_v31, %v17769_v55  ;;  %14822 = vpow2.f32 %v7120_v20 }
 0x931   : > { %v6926_v27 = vsub.f32 %v17704_v25, %v17769_v55  ;;  %v17848_v8 = vmul.f32 1.442695, %v6868_v62  ;;  %v17852_v10 = vmul.f32 1.442695, %v6870_v9  ;;  %v17854_v28 = vmul.f32 1.442695, %v6872_v0 }
 0x932   : > { %v17850_v49 = vpop.f32.mrb[74].mxu0  ;;  %v17856_v44 = vmul.f32 1.442695, %v6874_v40  ;;  %v6931_v11 = vsub.f32 %v17737_v51, %v17800_v56  ;;  %v17860_v20 = vmul.f32 1.442695, %v6876_v35  ;;  %v6871_v40 = vsub.f32 %v17458_v7, %v17800_v56 }
 0x933   : > { %22989 = vst [vmem:[#allocation35_spill] sm:$0xff] %v17850_v49  ;;  %v17862_v31 = vmul.f32 1.442695, %v6878_v36  ;;  %v17864_v25 = vmul.f32 1.442695, %v6880_v24  ;;  %v6873_v36 = vsub.f32 %v17465_v54, %v17800_v56 }
 0x934   : > { %v17868_v12 = vmul.f32 1.442695, %v6882_v4  ;;  %v17870_v9 = vmul.f32 1.442695, %v6884_v41  ;;  %v17872_v0 = vmul.f32 1.442695, %v6886_v50  ;;  %v6875_v50 = vsub.f32 %v17471_v48, %v17800_v56 }
 0x935   : > { %v17876_v53 = vmul.f32 1.442695, %v6888_v45  ;;  %v17878_v51 = vmul.f32 1.442695, %v6890_v43  ;;  %v17880_v35 = vmul.f32 1.442695, %v6892_v21  ;;  %v6877_v43 = vsub.f32 %v17477_v3, %v17800_v56 }
 0x936   : > { %v17884_v24 = vmul.f32 1.442695, %v6894_v14  ;;  %v17886_v4 = vmul.f32 1.442695, %v6896_v22  ;;  %v17888_v41 = vmul.f32 1.442695, %v6898_v15  ;;  %v6879_v22 = vsub.f32 %v17483_v26, %v17800_v56 }
 0x937   : > { %v17892_v62 = vmul.f32 1.442695, %v6900_v2  ;;  %v17894_v7 = vmul.f32 1.442695, %v6902_v63  ;;  %v17896_v45 = vmul.f32 1.442695, %v6904_v61  ;;  %v6881_v63 = vsub.f32 %v17489_v39, %v17800_v56 }
 0x938   : > { %v17900_v21 = vmul.f32 1.442695, %v6906_v30  ;;  %v17902_v54 = vmul.f32 1.442695, %v6908_v59  ;;  %v17904_v14 = vmul.f32 1.442695, %v6910_v5  ;;  %v6883_v59 = vsub.f32 %v17495_v38, %v17800_v56 }
 0x939   : > { %22990 = vst [vmem:[#allocation37_spill] sm:$0xff] %v17892_v62  ;;  %22991 = vst [vmem:[#allocation40_spill] sm:$0xff] %v17894_v7  ;;  %v17908_v15 = vmul.f32 1.442695, %v6912_v34  ;;  %v17910_v48 = vmul.f32 1.442695, %v6914_v52  ;;  %v6887_v39 = vsub.f32 %v17507_v18, %v17800_v56 }
 0x93a   : > { %22992 = vst [vmem:[#allocation44_spill] sm:$0xff] %v17896_v45  ;;  %22993 = vst [vmem:[#allocation38_spill] sm:$0xff] %v17900_v21  ;;  %v17912_v2 = vmul.f32 1.442695, %v6916_v57  ;;  %v17916_v61 = vmul.f32 1.442695, %v6918_v17  ;;  %v17924_v5 = vpop.eup %14822  ;;  %v6885_v57 = vsub.f32 %v17501_v13, %v17800_v56 }
 0x93b   : > { %22994 = vst [vmem:[#allocation7_spill] sm:$0xff] %v17902_v54  ;;  %22995 = vst [vmem:[#allocation48_spill] sm:$0xff] %v17904_v14  ;;  %v17918_v3 = vmul.f32 1.442695, %v6920_v19  ;;  %v17920_v30 = vmul.f32 1.442695, %v6922_v23 }
 0x93c   : > { %22996 = vst [vmem:[#allocation42_spill] sm:$0xff] %v17908_v15  ;;  %22997 = vst [vmem:[#allocation53_spill] sm:$0xff] %v17910_v48  ;;  %v17926_v26 = vmul.f32 1.442695, %v6924_v29  ;;  %v17928_v34 = vmul.f32 1.442695, %v6926_v27 }
 0x93d   : > { %22998 = vst [vmem:[#allocation46_spill] sm:$0xff] %v17912_v2  ;;  %22999 = vst [vmem:[#allocation57_spill] sm:$0xff] %v17916_v61  ;;  %v7122_v52 = vmul.f32 1.442695, %v6931_v11  ;;  %v23005_v17 = vld [vmem:[#allocation13_spill] sm:$0xff]  ;;  %v23006_v23 = vld [vmem:[#allocation18_spill] sm:$0xff] }
 0x93e   : > { %23000 = vst [vmem:[#allocation50_spill] sm:$0xff] %v17918_v3  ;;  %23001 = vst [vmem:[#allocation60_spill] sm:$0xff] %v17920_v30  ;;  %v6889_v19 = vsub.f32 %v23005_v17, %v17800_v56  ;;  %v6891_v32 = vsub.f32 %v23006_v23, %v17800_v56  ;;  %v23007_v38 = vld [vmem:[#allocation16_spill] sm:$0xff]  ;;  %v17940_v29 = vpop.f32.mrb[75].mxu0  ;;  %v23010_v13 = vld [vmem:[#allocation22_spill] sm:$0xff] }
 0x93f   : > { %23002 = vst [vmem:[#allocation52_spill] sm:$0xff] %v17924_v5  ;;  %23003 = vst [vmem:[#allocation64_spill] sm:$0xff] %v17926_v26  ;;  %v6893_v5 = vsub.f32 %v23007_v38, %v17800_v56  ;;  %14824 = vpow2.f32 %v7122_v52  ;;  %v23009_v27 = vld [vmem:[#allocation20_spill] sm:$0xff]  ;;  %v6897_v16 = vsub.f32 %v23010_v13, %v17800_v56  ;;  %v23011_v18 = vld [vmem:[#allocation26_spill] sm:$0xff] }
 0x940   : > { %23004 = vst [vmem:[#allocation58_spill] sm:$0xff] %v17928_v34  ;;  %23008 = vst [vmem:[#allocation69_spill] sm:$0xff] %v17940_v29  ;;  %v6895_v11 = vsub.f32 %v23009_v27, %v17800_v56  ;;  %v6899_v46 = vsub.f32 %v23011_v18, %v17800_v56  ;;  %v17948_v34 = vpop.f32.mrb[76].mxu0  ;;  %v23013_v17 = vld [vmem:[#allocation25_spill] sm:$0xff]  ;;  %v23014_v26 = vld [vmem:[#allocation34_spill] sm:$0xff]  ;;  %14826 = vpow2.f32 %v17848_v8 }
 0x941   : > { %23012 = vst [vmem:[#allocation62_spill] sm:$0xff] %v17948_v34  ;;  %v6901_v23 = vsub.f32 %v23013_v17, %v17800_v56  ;;  %v6903_v38 = vsub.f32 %v23014_v26, %v17800_v56  ;;  %v23015_v30 = vld [vmem:[#allocation43_spill] sm:$0xff]  ;;  %v23016_v3 = vld [vmem:[#allocation9_spill] sm:$0xff]  ;;  %v17958_v61 = vpop.f32.mrb[77].mxu0  ;;  %v23019_v18 = vld [vmem:[#allocation54_spill] sm:$0xff]  ;;  %14828 = vpow2.f32 %v17852_v10 }
 0x942   : > { %v6905_v52 = vsub.f32 %v23015_v30, %v17800_v56  ;;  %v6907_v27 = vsub.f32 %v23016_v3, %v17800_v56  ;;  %23017 = vst [vmem:[#allocation74_spill] sm:$0xff] %v17958_v61  ;;  %v23018_v13 = vld [vmem:[#allocation55_spill] sm:$0xff]  ;;  %v6911_v48 = vsub.f32 %v23019_v18, %v17800_v56  ;;  %v23021_v14 = vld [vmem:[#allocation65_spill] sm:$0xff]  ;;  %v17968_v54 = vpop.f32.mrb[78].mxu0  ;;  %v23024_v3 = vld [vmem:[#allocation76_spill] sm:$0xff]  ;;  %14830 = vpow2.f32 %v17854_v28 }
 0x943   : > { %v6909_v2 = vsub.f32 %v23018_v13, %v17800_v56  ;;  %v23020_v15 = vld [vmem:[#allocation67_spill] sm:$0xff]  ;;  %v6915_v26 = vsub.f32 %v23021_v14, %v17800_v56  ;;  %23022 = vst [vmem:[#allocation66_spill] sm:$0xff] %v17968_v54  ;;  %v6919_v45 = vsub.f32 %v23024_v3, %v17800_v56  ;;  %v23026_v34 = vld [vmem:[#allocation90_spill] sm:$0xff]  ;;  %v17978_v7 = vpop.f32.mrb[79].mxu0  ;;  %v23030_v29 = vld [vmem:[#allocation97_spill] sm:$0xff]  ;;  %14832 = vpow2.f32 %v17856_v44 }
 0x944   : > { %v6913_v17 = vsub.f32 %v23020_v15, %v17800_v56  ;;  %v23023_v30 = vld [vmem:[#allocation79_spill] sm:$0xff]  ;;  %v6923_v18 = vsub.f32 %v23026_v34, %v17800_v56  ;;  %23027 = vst [vmem:[#allocation77_spill] sm:$0xff] %v17978_v7  ;;  %v23028_v15 = vld [vmem:[#allocation108_spill] sm:$0xff]  ;;  %v23029_v14 = vld [vmem:[#allocation122_spill] sm:$0xff]  ;;  %v17987_v3 = vpop.f32.mrb[80].mxu0  ;;  %v23033_v34 = vsub.f32 %v17452_v60, %v17800_v56  ;;  %14834 = vpow2.f32 %v17860_v20 }
 0x945   : > { %v6917_v21 = vsub.f32 %v23023_v30, %v17800_v56  ;;  %v23025_v61 = vld [vmem:[#allocation91_spill] sm:$0xff]  ;;  %v6925_v62 = vsub.f32 %v23028_v15, %v17800_v56  ;;  %v6927_v54 = vsub.f32 %v23029_v14, %v17800_v56  ;;  %v6929_v30 = vsub.f32 %v23030_v29, %v17800_v56  ;;  %23031 = vst [vmem:[#allocation68_spill] sm:$0xff] %v17987_v3 }
 0x946   : > { %v6921_v13 = vsub.f32 %v23025_v61, %v17800_v56  ;;  %v23032_v61 = vsub.f32 %v17720_v33, %v17769_v55  ;;  %v17998_v15 = vmul.f32 1.442695, %v23033_v34  ;;  %v18000_v14 = vmul.f32 1.442695, %v6871_v40 }
 0x947   : > { %v18003_v29 = vmul.f32 1.442695, %v6873_v36  ;;  %v18005_v8 = vmul.f32 1.442695, %v6875_v50  ;;  %v18007_v3 = vmul.f32 1.442695, %v6877_v43  ;;  %14836 = vpow2.f32 %v17862_v31 }
 0x948   : > { %v17992_v49 = vmul.f32 1.442695, %v23032_v61  ;;  %v18010_v33 = vmul.f32 1.442695, %v6879_v22  ;;  %v18012_v55 = vmul.f32 1.442695, %v6881_v63  ;;  %14838 = vpow2.f32 %v17864_v25 }
 0x949   : > { %v18014_v10 = vmul.f32 1.442695, %v6883_v59  ;;  %v18017_v60 = vmul.f32 1.442695, %v6885_v57  ;;  %v18019_v56 = vmul.f32 1.442695, %v6887_v39  ;;  %v18030_v50 = vpop.eup %14824  ;;  %14840 = vpow2.f32 %v17868_v12 }
 0x94a   : > { %v18021_v28 = vmul.f32 1.442695, %v6889_v19  ;;  %v18024_v40 = vmul.f32 1.442695, %v6891_v32  ;;  %v18026_v36 = vmul.f32 1.442695, %v6893_v5  ;;  %14842 = vpow2.f32 %v17870_v9  ;;  %v14827_v57 = vpop.eup %14826 }
 0x94b   : > { %v18028_v44 = vmul.f32 1.442695, %v6895_v11  ;;  %23034 = vst [vmem:[#allocation80_spill] sm:$0xff] %v18030_v50  ;;  %v18033_v43 = vmul.f32 1.442695, %v6897_v16  ;;  %14844 = vpow2.f32 %v17872_v0  ;;  %v6812_v0 = vmax.f32 %v17765_v42, %v17782_v58  ;;  %v23049_v61 = vld [vmem:[#allocation69_spill] sm:$0xff] }
 0x94c   : > { %v18035_v20 = vmul.f32 1.442695, %v6899_v46  ;;  %v18037_v22 = vmul.f32 1.442695, %v6901_v23  ;;  %v18040_v63 = vmul.f32 1.442695, %v6903_v38  ;;  %14846 = vpow2.f32 %v17876_v53 }
 0x94d   : > { %v18042_v32 = vmul.f32 1.442695, %v6905_v52  ;;  %v18044_v31 = vmul.f32 1.442695, %v6907_v27  ;;  %v18047_v59 = vmul.f32 1.442695, %v6909_v2  ;;  %14848 = vpow2.f32 %v17878_v51 }
 0x94e   : > { %v18049_v5 = vmul.f32 1.442695, %v6911_v48  ;;  %v18051_v16 = vmul.f32 1.442695, %v6913_v17  ;;  %v18054_v46 = vmul.f32 1.442695, %v6915_v26  ;;  %v14829_v48 = vpop.eup %14828  ;;  %14850 = vpow2.f32 %v17880_v35 }
 0x94f   : > { %v18056_v25 = vmul.f32 1.442695, %v6917_v21  ;;  %v18058_v12 = vmul.f32 1.442695, %v6919_v45  ;;  %v18061_v39 = vmul.f32 1.442695, %v6921_v13  ;;  %v6849_v45 = vmax.f32 %v17772_v6, %v17792_v37  ;;  %v14831_v53 = vpop.eup %14830 }
 0x950   : > { %v18063_v9 = vmul.f32 1.442695, %v6923_v18  ;;  %v18065_v2 = vmul.f32 1.442695, %v6925_v62  ;;  %v18068_v19 = vmul.f32 1.442695, %v6927_v54  ;;  %v14833_v51 = vpop.eup %14832  ;;  %14852 = vpow2.f32 %v17884_v24 }
 0x951   : > { %23035 = vst [vmem:[#allocation73_spill] sm:$0xff] %v18058_v12  ;;  %23036 = vst [vmem:[#allocation84_spill] sm:$0xff] %v18061_v39  ;;  %v18074_v21 = vpop.f32.mrb[81].mxu0  ;;  %v18077_v11 = vmul.f32 1.442695, %v6929_v30  ;;  %v7254_v62 = vand.u32 4294901760, %v14827_v57  ;;  %v6813_v54 = vmax.f32 %v6812_v0, %v17816_v47  ;;  %v6850_v42 = vmax.f32 %v6849_v45, %v17826_v1  ;;  %v14835_v27 = vpop.eup %14834 }
 0x952   : > { %23037 = vst [vmem:[#allocation78_spill] sm:$0xff] %v18063_v9  ;;  %23038 = vst [vmem:[#allocation89_spill] sm:$0xff] %v18065_v2  ;;  %v7258_v23 = vand.u32 4294901760, %v14829_v48  ;;  %v18079_v38 = vpop.f32.mrb[82].mxu0  ;;  %v7262_v52 = vand.u32 4294901760, %v14831_v53  ;;  %14854 = vpow2.f32 %v17886_v4  ;;  %v14837_v18 = vpop.eup %14836  ;;  %v23048_v24 = vld [vmem:[#allocation35_spill] sm:$0xff] }
 0x953   : > { %23039 = vst [vmem:[#allocation82_spill] sm:$0xff] %v18068_v19  ;;  %23040 = vst [vmem:[#allocation93_spill] sm:$0xff] %v18074_v21  ;;  %v18084_v6 = vpop.f32.mrb[83].mxu0  ;;  %v18089_v17 = vsub.f32 %v14827_v57, %v7254_v62  ;;  %14856 = vpow2.f32 %v17888_v41  ;;  %v6814_v30 = vmax.f32 %v6813_v54, %v23048_v24  ;;  %v6851_v34 = vmax.f32 %v6850_v42, %v23049_v61  ;;  %v14839_v1 = vpop.eup %14838  ;;  %v23051_v4 = vld [vmem:[#allocation37_spill] sm:$0xff]  ;;  %v23055_v41 = vld [vmem:[#allocation62_spill] sm:$0xff] }
 0x954   : > { %23041 = vst [vmem:[#allocation86_spill] sm:$0xff] %v18077_v11  ;;  %23042 = vst [vmem:[#allocation96_spill] sm:$0xff] %v18079_v38  ;;  %v18087_v35 = vpack.c.bf16 %v7258_v23, %v7254_v62  ;;  %v18091_v26 = vsub.f32 %v14829_v48, %v7258_v23  ;;  %v18093_v13 = vpop.f32.mrb[84].mxu0  ;;  %v7266_v0 = vand.u32 4294901760, %v14833_v51  ;;  %14858 = vpow2.f32 %v23051_v4  ;;  %v14841_v23 = vpop.eup %14840  ;;  %v23056_v54 = vld [vmem:[#allocation74_spill] sm:$0xff]  ;;  %v23058_v58 = vld [vmem:[#allocation44_spill] sm:$0xff] }
 0x955   : > { %23043 = vst [vmem:[#allocation88_spill] sm:$0xff] %v18084_v6  ;;  %23045 = vst [vmem:[#allocation94_spill] sm:$0xff] %v18089_v17  ;;  %v18098_v45 = vpop.f32.mrb[85].mxu0  ;;  %v18101_v37 = vsub.f32 %v14831_v53, %v7262_v52  ;;  %v7270_v57 = vand.u32 4294901760, %v14835_v27  ;;  %v7274_v48 = vand.u32 4294901760, %v14837_v18  ;;  %v6815_v17 = vmax.f32 %v6814_v30, %v23055_v41  ;;  %v14843_v47 = vpop.eup %14842  ;;  %v23062_v19 = vld [vmem:[#allocation38_spill] sm:$0xff] }
 0x956   : > { %23044 = vst [vmem:[#allocation101_spill] sm:$0xff] %v18087_v35  ;;  %23046 = vst [vmem:[#allocation106_spill] sm:$0xff] %v18091_v26  ;;  %v18103_v62 = vpop.f32.mrb[86].mxu0  ;;  %v23054_v26 = vld [vmem:[#allocation40_spill] sm:$0xff]  ;;  %v6852_v24 = vmax.f32 %v6851_v34, %v23056_v54  ;;  %v18108_v42 = vpack.c.bf16 %v7266_v0, %v7262_v52  ;;  %v18113_v53 = vsub.f32 %v14833_v51, %v7266_v0  ;;  %v23063_v30 = vld [vmem:[#allocation66_spill] sm:$0xff]  ;;  %v7278_v0 = vand.u32 4294901760, %v14839_v1 }
 0x957   : > { %23047 = vst [vmem:[#allocation98_spill] sm:$0xff] %v18093_v13  ;;  %23050 = vst [vmem:[#allocation100_spill] sm:$0xff] %v18098_v45  ;;  %14860 = vpow2.f32 %v23054_v26  ;;  %v18110_v61 = vpop.f32.mrb[87].mxu0  ;;  %v18115_v4 = vpack.c.bf16 %v7274_v48, %v7270_v57  ;;  %v14845_v26 = vpop.eup %14844  ;;  %v6816_v34 = vmax.f32 %v6815_v17, %v23063_v30  ;;  %v18124_v54 = vsub.f32 %v14837_v18, %v7274_v48  ;;  %v23065_v51 = vld [vmem:[#allocation7_spill] sm:$0xff]  ;;  %v23066_v2 = vld [vmem:[#allocation48_spill] sm:$0xff] }
 0x958   : > { %23052 = vst [vmem:[#allocation103_spill] sm:$0xff] %v18101_v37  ;;  %23053 = vst [vmem:[#allocation107_spill] sm:$0xff] %v18103_v62  ;;  %14862 = vpow2.f32 %v23058_v58  ;;  %v18117_v37 = vsub.f32 %v14835_v27, %v7270_v57  ;;  %v18119_v11 = vpop.f32.mrb[88].mxu0  ;;  %v6853_v52 = vmax.f32 %v6852_v24, %v17978_v7  ;;  %v14847_v58 = vpop.eup %14846  ;;  %v7286_v27 = vand.u32 4294901760, %v14843_v47 }
 0x959   : > { %23057 = vst [vmem:[#allocation109_spill] sm:$0xff] %v18108_v42  ;;  %23059 = vst [vmem:[#allocation111_spill] sm:$0xff] %v18113_v53  ;;  %14864 = vpow2.f32 %v23062_v19  ;;  %v18126_v41 = vpop.f32.mrb[89].mxu0  ;;  %v7282_v53 = vand.u32 4294901760, %v14841_v23  ;;  %v23067_v19 = vld [vmem:[#allocation68_spill] sm:$0xff]  ;;  %v7290_v24 = vand.u32 4294901760, %v14845_v26 }
 0x95a   : > { %23060 = vst [vmem:[#allocation113_spill] sm:$0xff] %v18115_v4  ;;  %23061 = vst [vmem:[#allocation114_spill] sm:$0xff] %v18117_v37  ;;  %14866 = vpow2.f32 %v23065_v51  ;;  %v18129_v57 = vpop.f32.mrb[90].mxu0  ;;  %v14849_v37 = vpop.eup %14848  ;;  %v6817_v9 = vmax.f32 %v6816_v34, %v23067_v19  ;;  %v6854_v17 = vmax.f32 %v6853_v52, %v18074_v21  ;;  %v18139_v51 = vsub.f32 %v14839_v1, %v7278_v0  ;;  %v23074_v4 = vld [vmem:[#allocation46_spill] sm:$0xff] }
 0x95b   : > { %23064 = vst [vmem:[#allocation115_spill] sm:$0xff] %v18124_v54  ;;  %14868 = vpow2.f32 %v23066_v2  ;;  %v18134_v18 = vpop.f32.mrb[91].mxu0  ;;  %v14851_v48 = vpop.eup %14850  ;;  %v23068_v54 = vld [vmem:[#allocation42_spill] sm:$0xff]  ;;  %v18137_v7 = vpack.c.bf16 %v7282_v53, %v7278_v0  ;;  %v18141_v30 = vsub.f32 %v14841_v23, %v7282_v53  ;;  %v23072_v2 = vld [vmem:[#allocation53_spill] sm:$0xff]  ;;  %v18148_v21 = vpack.c.bf16 %v7290_v24, %v7286_v27 }
 0x95c   : > { %14870 = vpow2.f32 %v23068_v54  ;;  %23070 = vst [vmem:[#allocation119_spill] sm:$0xff] %v18139_v51  ;;  %v18143_v39 = vpop.f32.mrb[92].mxu0  ;;  %v14853_v12 = vpop.eup %14852  ;;  %v6818_v34 = vmax.f32 %v6817_v9, %v18079_v38  ;;  %v6855_v52 = vmax.f32 %v6854_v17, %v18084_v6  ;;  %v18153_v1 = vsub.f32 %v14843_v47, %v7286_v27 }
 0x95d   : > { %23069 = vst [vmem:[#allocation118_spill] sm:$0xff] %v18137_v7  ;;  %23071 = vst [vmem:[#allocation120_spill] sm:$0xff] %v18141_v30  ;;  %14872 = vpow2.f32 %v23072_v2  ;;  %v18150_v19 = vpop.f32.mrb[93].mxu0  ;;  %v14855_v54 = vpop.eup %14854  ;;  %v18155_v23 = vsub.f32 %v14845_v26, %v7290_v24  ;;  %v7294_v53 = vand.u32 4294901760, %v14847_v58  ;;  %v23077_v2 = vld [vmem:[#allocation57_spill] sm:$0xff]  ;;  %v7298_v51 = vand.u32 4294901760, %v14849_v37 }
 0x95e   : > { %23073 = vst [vmem:[#allocation121_spill] sm:$0xff] %v18148_v21  ;;  %14874 = vpow2.f32 %v23074_v4  ;;  %23075 = vst [vmem:[#allocation123_spill] sm:$0xff] %v18153_v1  ;;  %v18157_v0 = vpop.f32.mrb[94].mxu0  ;;  %v14857_v30 = vpop.eup %14856  ;;  %v6819_v9 = vmax.f32 %v6818_v34, %v18093_v13  ;;  %v6856_v17 = vmax.f32 %v6855_v52, %v18098_v45  ;;  %v23078_v21 = vld [vmem:[#allocation50_spill] sm:$0xff]  ;;  %v7302_v4 = vand.u32 4294901760, %v14851_v48  ;;  %v23080_v24 = vld [vmem:[#allocation60_spill] sm:$0xff] }
 0x95f   : > { %23076 = vst [vmem:[#allocation124_spill] sm:$0xff] %v18155_v23  ;;  %14876 = vpow2.f32 %v23077_v2  ;;  %v18162_v6 = vpop.f32.mrb[95].mxu0  ;;  %v14859_v38 = vpop.eup %14858  ;;  %v18165_v47 = vsub.f32 %v14847_v58, %v7294_v53  ;;  %v7306_v26 = vand.u32 4294901760, %v14853_v12  ;;  %v18170_v34 = vpack.c.bf16 %v7298_v51, %v7294_v53  ;;  %v23082_v1 = vld [vmem:[#allocation64_spill] sm:$0xff] }
 0x960   : > { %14878 = vpow2.f32 %v23078_v21  ;;  %v6820_v23 = vmax.f32 %v6819_v9, %v18103_v62  ;;  %v6857_v2 = vmax.f32 %v6856_v17, %v18110_v61  ;;  %v18173_v45 = vsub.f32 %v14849_v37, %v7298_v51 }
 0x961   : > { %23079 = vst [vmem:[#allocation125_spill] sm:$0xff] %v18165_v47  ;;  %v14861_v27 = vpop.eup %14860  ;;  %14880 = vpow2.f32 %v23080_v24  ;;  %23081 = vst [vmem:[#allocation126_spill] sm:$0xff] %v18170_v34  ;;  %v18175_v13 = vpack.c.bf16 %v7306_v26, %v7302_v4  ;;  %v18177_v21 = vsub.f32 %v14851_v48, %v7302_v4  ;;  %v23086_v47 = vld [vmem:[#allocation58_spill] sm:$0xff]  ;;  %v18182_v62 = vsub.f32 %v14853_v12, %v7306_v26 }
 0x962   : > { %v14863_v52 = vpop.eup %14862  ;;  %14882 = vpow2.f32 %v23082_v1  ;;  %23083 = vst [vmem:[#allocation13_spill] sm:$0xff] %v18173_v45  ;;  %v6821_v24 = vmax.f32 %v6820_v23, %v18119_v11  ;;  %v6858_v9 = vmax.f32 %v6857_v2, %v18126_v41  ;;  %v7310_v17 = vand.u32 4294901760, %v14855_v54 }
 0x963   : > { %23084 = vst [vmem:[#allocation18_spill] sm:$0xff] %v18175_v13  ;;  %23085 = vst [vmem:[#allocation16_spill] sm:$0xff] %v18177_v21  ;;  %v14865_v58 = vpop.eup %14864  ;;  %14884 = vpow2.f32 %v23086_v47  ;;  %v7314_v1 = vand.u32 4294901760, %v14857_v30  ;;  %v7318_v37 = vand.u32 4294901760, %v14859_v38  ;;  %v7322_v47 = vand.u32 4294901760, %v14861_v27 }
 0x964   : > { %23087 = vst [vmem:[#allocation20_spill] sm:$0xff] %v18182_v62  ;;  %v14867_v53 = vpop.eup %14866  ;;  %14886 = vpow2.f32 %v17992_v49  ;;  %v6822_v48 = vmax.f32 %v6821_v24, %v18129_v57  ;;  %v6859_v4 = vmax.f32 %v6858_v9, %v18134_v18  ;;  %v18191_v12 = vsub.f32 %v14855_v54, %v7310_v17 }
 0x965   : > { %v14869_v51 = vpop.eup %14868  ;;  %14888 = vpow2.f32 %v17998_v15  ;;  %v18189_v23 = vpack.c.bf16 %v7314_v1, %v7310_v17  ;;  %v18193_v26 = vsub.f32 %v14857_v30, %v7314_v1  ;;  %v18198_v24 = vpack.c.bf16 %v7322_v47, %v7318_v37 }
 0x966   : > { %v14871_v21 = vpop.eup %14870  ;;  %14890 = vpow2.f32 %v18000_v14  ;;  %23089 = vst [vmem:[#allocation26_spill] sm:$0xff] %v18191_v12  ;;  %v6823_v2 = vmax.f32 %v6822_v48, %v18143_v39  ;;  %v6860_v15 = vmax.f32 %v6859_v4, %v18150_v19  ;;  %v18203_v14 = vsub.f32 %v14859_v38, %v7318_v37 }
 0x967   : > { %23088 = vst [vmem:[#allocation22_spill] sm:$0xff] %v18189_v23  ;;  %23090 = vst [vmem:[#allocation25_spill] sm:$0xff] %v18193_v26  ;;  %v14873_v49 = vpop.eup %14872  ;;  %14892 = vpow2.f32 %v18003_v29  ;;  %v18205_v62 = vsub.f32 %v14861_v27, %v7322_v47  ;;  %v7326_v54 = vand.u32 4294901760, %v14863_v52  ;;  %v7330_v1 = vand.u32 4294901760, %v14865_v58  ;;  %v23136_v26 = vld [vmem:[#allocation47_spill] sm:$0xff] }
 0x968   : > { %23091 = vst [vmem:[#allocation34_spill] sm:$0xff] %v18198_v24  ;;  %v18200_v9 = vpop.eup %14874  ;;  %14894 = vpow2.f32 %v18005_v8  ;;  %23092 = vst [vmem:[#allocation43_spill] sm:$0xff] %v18203_v14  ;;  %v6824_v29 = vmax.f32 %v6823_v2, %v18157_v0  ;;  %v6861_v17 = vmax.f32 %v6860_v15, %v18162_v6  ;;  %v7334_v8 = vand.u32 4294901760, %v14867_v53 }
 0x969   : > { %23093 = vst [vmem:[#allocation9_spill] sm:$0xff] %v18205_v62  ;;  %v18207_v30 = vpop.eup %14876  ;;  %14896 = vpow2.f32 %v18007_v3  ;;  %v18215_v4 = vsub.f32 %v14863_v52, %v7326_v54  ;;  %v7338_v38 = vand.u32 4294901760, %v14869_v51  ;;  %v18220_v3 = vpack.c.bf16 %v7330_v1, %v7326_v54 }
 0x96a   : > { %v18212_v48 = vpop.eup %14878  ;;  %14898 = vpow2.f32 %v18010_v33  ;;  %v6825_v37 = vrot.slane %v6824_v29, 4  ;;  %v6862_v47 = vrot.slane %v6861_v17, 4  ;;  %v18225_v15 = vsub.f32 %v14865_v58, %v7330_v1 }
 0x96b   : > { %23094 = vst [vmem:[#allocation55_spill] sm:$0xff] %v18212_v48  ;;  %23095 = vst [vmem:[#allocation54_spill] sm:$0xff] %v18215_v4  ;;  %v18217_v27 = vpop.eup %14880  ;;  %14900 = vpow2.f32 %v18012_v55  ;;  %v18227_v62 = vpack.c.bf16 %v7338_v38, %v7334_v8  ;;  %v18229_v33 = vsub.f32 %v14867_v53, %v7334_v8  ;;  %v18236_v14 = vsub.f32 %v14869_v51, %v7338_v38  ;;  %v23171_v48 = vld [vmem:[#allocation107_spill] sm:$0xff] }
 0x96c   : > { %23096 = vst [vmem:[#allocation67_spill] sm:$0xff] %v18217_v27  ;;  %23097 = vst [vmem:[#allocation65_spill] sm:$0xff] %v18220_v3  ;;  %v18222_v2 = vpop.eup %14882  ;;  %14902 = vpow2.f32 %v18014_v10  ;;  %v6826_v4 = vmax.f32 %v6824_v29, %v6825_v37  ;;  %v18234_v55 = vmax.f32 %v6861_v17, %v6862_v47  ;;  %v7342_v10 = vand.u32 4294901760, %v14871_v21 }
 0x96d   : > { %23098 = vst [vmem:[#allocation79_spill] sm:$0xff] %v18222_v2  ;;  %23099 = vst [vmem:[#allocation76_spill] sm:$0xff] %v18225_v15  ;;  %v18231_v52 = vpop.eup %14884  ;;  %14904 = vpow2.f32 %v18017_v60  ;;  %v7346_v58 = vand.u32 4294901760, %v14873_v49 }
 0x96e   : > { %23100 = vst [vmem:[#allocation91_spill] sm:$0xff] %v18227_v62  ;;  %23101 = vst [vmem:[#allocation90_spill] sm:$0xff] %v18229_v33  ;;  %v18238_v54 = vpop.eup %14886  ;;  %14906 = vpow2.f32 %v18019_v56  ;;  %v6827_v53 = vrot.slane %v6826_v4, 2  ;;  %v6864_v8 = vrot.slane %v18234_v55, 2  ;;  %v18248_v38 = vsub.f32 %v14871_v21, %v7342_v10 }
 0x96f   : > { %23102 = vst [vmem:[#allocation108_spill] sm:$0xff] %v18231_v52  ;;  %23103 = vst [vmem:[#allocation122_spill] sm:$0xff] %v18236_v14  ;;  %v14889_v15 = vpop.eup %14888  ;;  %14908 = vpow2.f32 %v18021_v28  ;;  %v18246_v17 = vpack.c.bf16 %v7346_v58, %v7342_v10  ;;  %v18255_v33 = vsub.f32 %v14873_v49, %v7346_v58 }
 0x970   : > { %23104 = vst [vmem:[#allocation97_spill] sm:$0xff] %v18238_v54  ;;  %v14891_v29 = vpop.eup %14890  ;;  %14910 = vpow2.f32 %v18024_v40  ;;  %v7252_v51 = vand.u32 4294901760, %v14889_v15  ;;  %23106 = vst [vmem:[#allocation40_spill] sm:$0xff] %v18248_v38  ;;  %v6828_v47 = vmax.f32 %v6826_v4, %v6827_v53 }
 0x971   : > { %23105 = vst [vmem:[#allocation37_spill] sm:$0xff] %v18246_v17  ;;  %v14893_v56 = vpop.eup %14892  ;;  %14912 = vpow2.f32 %v18026_v36  ;;  %v7256_v37 = vand.u32 4294901760, %v14891_v29  ;;  %23108 = vst [vmem:[#allocation38_spill] sm:$0xff] %v18255_v33  ;;  %v23130_v33 = vld [vmem:[#allocation73_spill] sm:$0xff] }
 0x972   : > { %v14895_v1 = vpop.eup %14894  ;;  %14914 = vpow2.f32 %v18028_v44  ;;  %v18253_v14 = vsub.f32 %v14889_v15, %v7252_v51  ;;  %v7260_v60 = vand.u32 4294901760, %v14893_v56  ;;  %v6829_v44 = vrot.slane %v6828_v47, 1 }
 0x973   : > { %v14897_v40 = vpop.eup %14896  ;;  %14916 = vpow2.f32 %v18033_v43  ;;  %v18258_v21 = vpack.c.bf16 %v7256_v37, %v7252_v51  ;;  %v18260_v10 = vsub.f32 %v14891_v29, %v7256_v37  ;;  %v7264_v36 = vand.u32 4294901760, %v14895_v1 }
 0x974   : > { %23107 = vst [vmem:[#allocation44_spill] sm:$0xff] %v18253_v14  ;;  %v14899_v38 = vpop.eup %14898  ;;  %14918 = vpow2.f32 %v18035_v20  ;;  %v18263_v4 = vsub.f32 %v14893_v56, %v7260_v60  ;;  %v7268_v53 = vand.u32 4294901760, %v14897_v40  ;;  %v18275_v56 = vmax.f32 %v6828_v47, %v6829_v44 }
 0x975   : > { %23109 = vst [vmem:[#allocation7_spill] sm:$0xff] %v18258_v21  ;;  %23110 = vst [vmem:[#allocation48_spill] sm:$0xff] %v18260_v10  ;;  %v14901_v15 = vpop.eup %14900  ;;  %14920 = vpow2.f32 %v18037_v22  ;;  %13028 = vmatprep.subr.bf16.mxu1 %v18258_v21  ;;  %v18267_v49 = vpack.c.bf16 %v7264_v36, %v7260_v60  ;;  %v18269_v43 = vsub.f32 %v14895_v1, %v7264_v36  ;;  %v7272_v58 = vand.u32 4294901760, %v14899_v38 }
 0x976   : > { %23111 = vst [vmem:[#allocation42_spill] sm:$0xff] %v18263_v4  ;;  %v14903_v29 = vpop.eup %14902  ;;  %14922 = vpow2.f32 %v18040_v63  ;;  %13030 = vmatpush1.bf16.msra.mxu1 %v18087_v35  ;;  %v18273_v20 = vsub.f32 %v14897_v40, %v7268_v53  ;;  %v7276_v51 = vand.u32 4294901760, %v14901_v15  ;;  %v6994_v47 = vsub.f32 %v18157_v0, %v18275_v56  ;;  %v23129_v35 = vld [vmem:[#allocation29_spill] sm:$0xff] }
 0x977   : > { %23112 = vst [vmem:[#allocation53_spill] sm:$0xff] %v18267_v49  ;;  %23113 = vst [vmem:[#allocation46_spill] sm:$0xff] %v18269_v43  ;;  %v14905_v37 = vpop.eup %14904  ;;  %14924 = vpow2.f32 %v18042_v32  ;;  %13032 = vmatprep.subr.bf16.mxu1 %v18267_v49  ;;  %v18279_v22 = vpack.c.bf16 %v7272_v58, %v7268_v53  ;;  %v18281_v1 = vsub.f32 %v14899_v38, %v7272_v58  ;;  %v7280_v60 = vand.u32 4294901760, %v14903_v29 }
 0x978   : > { %23114 = vst [vmem:[#allocation57_spill] sm:$0xff] %v18273_v20  ;;  %v14907_v36 = vpop.eup %14906  ;;  %14926 = vpow2.f32 %v18044_v31  ;;  %v18284_v63 = vsub.f32 %v14901_v15, %v7276_v51  ;;  %v7284_v40 = vand.u32 4294901760, %v14905_v37  ;;  %v18298_v58 = vmax.f32 %v18234_v55, %v6864_v8 }
 0x979   : > { %23115 = vst [vmem:[#allocation50_spill] sm:$0xff] %v18279_v22  ;;  %23116 = vst [vmem:[#allocation60_spill] sm:$0xff] %v18281_v1  ;;  %v14909_v44 = vpop.eup %14908  ;;  %14928 = vpow2.f32 %v18047_v59  ;;  %v18289_v32 = vpack.c.bf16 %v7280_v60, %v7276_v51  ;;  %v18291_v28 = vsub.f32 %v14903_v29, %v7280_v60  ;;  %v7288_v53 = vand.u32 4294901760, %v14907_v36 }
 0x97a   : > { %23117 = vst [vmem:[#allocation64_spill] sm:$0xff] %v18284_v63  ;;  %v14911_v38 = vpop.eup %14910  ;;  %14930 = vpow2.f32 %v18049_v5  ;;  %13034 = vmatpush1.bf16.msra.mxu1 %v18108_v42  ;;  %v18295_v31 = vsub.f32 %v14905_v37, %v7284_v40  ;;  %v7292_v15 = vand.u32 4294901760, %v14909_v44  ;;  %v18305_v60 = vmul.f32 1.442695, %v6994_v47  ;;  %v23124_v42 = vld [vmem:[#allocation30_spill] sm:$0xff]  ;;  %v23127_v47 = vld [vmem:[#allocation113_spill] sm:$0xff] }
 0x97b   : > { %23118 = vst [vmem:[#allocation58_spill] sm:$0xff] %v18289_v32  ;;  %23119 = vst [vmem:[#allocation127_spill] sm:$0xff] %v18291_v28  ;;  %v14913_v0 = vpop.eup %14912  ;;  %13036 = vmatprep.subr.bf16.mxu1 %v18279_v22  ;;  %v18301_v59 = vpack.c.bf16 %v7288_v53, %v7284_v40  ;;  %v18303_v51 = vsub.f32 %v14907_v36, %v7288_v53  ;;  %v7296_v29 = vand.u32 4294901760, %v14911_v38  ;;  %14932 = vpow2.f32 %v18051_v16 }
 0x97c   : > { %23120 = vst [vmem:[#allocation128_spill] sm:$0xff] %v18295_v31  ;;  %v14915_v49 = vpop.eup %14914  ;;  %v18308_v5 = vsub.f32 %v14909_v44, %v7292_v15  ;;  %v7300_v37 = vand.u32 4294901760, %v14913_v0  ;;  %14934 = vpow2.f32 %v18054_v46  ;;  %v6934_v21 = vsub.f32 %v23129_v35, %v18275_v56 }
 0x97d   : > { %23121 = vst [vmem:[#allocation129_spill] sm:$0xff] %v18301_v59  ;;  %23122 = vst [vmem:[#allocation130_spill] sm:$0xff] %v18303_v51  ;;  %v14917_v8 = vpop.eup %14916  ;;  %v18313_v22 = vpack.c.bf16 %v7296_v29, %v7292_v15  ;;  %v18315_v40 = vsub.f32 %v14911_v38, %v7296_v29  ;;  %v7304_v36 = vand.u32 4294901760, %v14915_v49  ;;  %14936 = vpow2.f32 %v18056_v25  ;;  %v23133_v29 = vld [vmem:[#allocation84_spill] sm:$0xff] }
 0x97e   : > { %23123 = vst [vmem:[#allocation131_spill] sm:$0xff] %v18308_v5  ;;  %v14919_v53 = vpop.eup %14918  ;;  %13038 = vmatpush1.bf16.msra.mxu1 %v23127_v47  ;;  %v18319_v16 = vsub.f32 %v14913_v0, %v7300_v37  ;;  %v7308_v44 = vand.u32 4294901760, %v14917_v8  ;;  %14938 = vpow2.f32 %v23130_v33  ;;  %v23135_v47 = vld [vmem:[#allocation36_spill] sm:$0xff]  ;;  %v6938_v12 = vsub.f32 %v23136_v26, %v18275_v56 }
 0x97f   : > { %23125 = vst [vmem:[#allocation30_spill] sm:$0xff] %v18313_v22  ;;  %23126 = vst [vmem:[#allocation132_spill] sm:$0xff] %v18315_v40  ;;  %v18323_v55 = vpop.eup %14920  ;;  %13040 = vmatprep.subr.bf16.mxu1 %v18289_v32  ;;  %v18327_v46 = vpack.c.bf16 %v7304_v36, %v7300_v37  ;;  %v18329_v38 = vsub.f32 %v14915_v49, %v7304_v36  ;;  %v7312_v15 = vand.u32 4294901760, %v14919_v53  ;;  %14940 = vpow2.f32 %v23133_v29  ;;  %v23137_v32 = vld [vmem:[#allocation78_spill] sm:$0xff]  ;;  %v23140_v36 = vld [vmem:[#allocation51_spill] sm:$0xff] }
 0x980   : > { %23128 = vst [vmem:[#allocation133_spill] sm:$0xff] %v18319_v16  ;;  %v18331_v25 = vpop.eup %14922  ;;  %v18334_v0 = vsub.f32 %v14917_v8, %v7308_v44  ;;  %v6936_v35 = vsub.f32 %v23135_v47, %v18275_v56  ;;  %14942 = vpow2.f32 %v23137_v32  ;;  %v23141_v8 = vld [vmem:[#allocation89_spill] sm:$0xff] }
 0x981   : > { %23131 = vst [vmem:[#allocation29_spill] sm:$0xff] %v18327_v46  ;;  %23132 = vst [vmem:[#allocation73_spill] sm:$0xff] %v18329_v38  ;;  %v18340_v33 = vpop.eup %14924  ;;  %v18343_v37 = vpack.c.bf16 %v7312_v15, %v7308_v44  ;;  %v18345_v49 = vsub.f32 %v14919_v53, %v7312_v15  ;;  %v6940_v38 = vsub.f32 %v23140_v36, %v18275_v56  ;;  %14944 = vpow2.f32 %v23141_v8  ;;  %v23142_v47 = vld [vmem:[#allocation49_spill] sm:$0xff]  ;;  %v23145_v15 = vld [vmem:[#allocation82_spill] sm:$0xff] }
 0x982   : > { %23134 = vst [vmem:[#allocation84_spill] sm:$0xff] %v18334_v0  ;;  %v18349_v29 = vpop.eup %14926  ;;  %13042 = vmatpush1.bf16.msra.mxu1 %v18137_v7  ;;  %v6942_v26 = vsub.f32 %v23142_v47, %v18275_v56  ;;  %v23143_v0 = vld [vmem:[#allocation63_spill] sm:$0xff]  ;;  %v23144_v32 = vld [vmem:[#allocation61_spill] sm:$0xff]  ;;  %14946 = vpow2.f32 %v23145_v15  ;;  %v23147_v7 = vld [vmem:[#allocation72_spill] sm:$0xff] }
 0x983   : > { %23138 = vst [vmem:[#allocation36_spill] sm:$0xff] %v18343_v37  ;;  %23139 = vst [vmem:[#allocation47_spill] sm:$0xff] %v18345_v49  ;;  %v6944_v16 = vsub.f32 %v23143_v0, %v18275_v56  ;;  %v6946_v44 = vsub.f32 %v23144_v32, %v18275_v56  ;;  %v18359_v53 = vpop.eup %14928  ;;  %13044 = vmatprep.subr.bf16.mxu1 %v18301_v59  ;;  %v23146_v36 = vld [vmem:[#allocation75_spill] sm:$0xff]  ;;  %v6950_v49 = vsub.f32 %v23147_v7, %v18275_v56  ;;  %v23150_v0 = vld [vmem:[#allocation86_spill] sm:$0xff] }
 0x984   : > { %v6948_v8 = vsub.f32 %v23146_v36, %v18275_v56  ;;  %v23148_v47 = vld [vmem:[#allocation87_spill] sm:$0xff]  ;;  %v18369_v40 = vpop.eup %14930  ;;  %14948 = vpow2.f32 %v23150_v0  ;;  %v23151_v32 = vld [vmem:[#allocation85_spill] sm:$0xff]  ;;  %v23152_v15 = vld [vmem:[#allocation104_spill] sm:$0xff] }
 0x985   : > { %v6952_v45 = vsub.f32 %v23148_v47, %v18275_v56  ;;  %23149 = vst [vmem:[#allocation78_spill] sm:$0xff] %v18369_v40  ;;  %v6954_v5 = vsub.f32 %v23151_v32, %v18275_v56  ;;  %v6956_v51 = vsub.f32 %v23152_v15, %v18275_v56  ;;  %v23153_v59 = vld [vmem:[#allocation110_spill] sm:$0xff]  ;;  %v23154_v36 = vld [vmem:[#allocation99_spill] sm:$0xff]  ;;  %v23157_v0 = vld [vmem:[#allocation17_spill] sm:$0xff]  ;;  %v18386_v43 = vpop.eup %14932  ;;  %14950 = vpow2.f32 %v18305_v60 }
 0x986   : > { %v6958_v31 = vsub.f32 %v23153_v59, %v18275_v56  ;;  %v6960_v28 = vsub.f32 %v23154_v36, %v18275_v56  ;;  %v23155_v7 = vld [vmem:[#allocation10_spill] sm:$0xff]  ;;  %v23156_v47 = vld [vmem:[#allocation15_spill] sm:$0xff]  ;;  %v6966_v20 = vsub.f32 %v23157_v0, %v18275_v56  ;;  %23158 = vst [vmem:[#allocation51_spill] sm:$0xff] %v18386_v43  ;;  %v23159_v32 = vld [vmem:[#allocation121_spill] sm:$0xff]  ;;  %v7156_v60 = vmul.f32 1.442695, %v6948_v8 }
 0x987   : > { %v6962_v63 = vsub.f32 %v23155_v7, %v18275_v56  ;;  %v6964_v1 = vsub.f32 %v23156_v47, %v18275_v56  ;;  %13046 = vmatpush1.bf16.msra.mxu1 %v23159_v32  ;;  %v23160_v15 = vld [vmem:[#allocation27_spill] sm:$0xff]  ;;  %v23161_v59 = vld [vmem:[#allocation24_spill] sm:$0xff]  ;;  %v18397_v47 = vpop.eup %14934  ;;  %v23165_v0 = vld [vmem:[#allocation62_spill] sm:$0xff] }
 0x988   : > { %v6968_v4 = vsub.f32 %v23160_v15, %v18275_v56  ;;  %v6970_v10 = vsub.f32 %v23161_v59, %v18275_v56  ;;  %v23162_v36 = vld [vmem:[#allocation31_spill] sm:$0xff]  ;;  %23164 = vst [vmem:[#allocation89_spill] sm:$0xff] %v18397_v47  ;;  %13048 = vmatprep.subr.bf16.mxu1 %v18313_v22  ;;  %v6976_v50 = vsub.f32 %v23165_v0, %v18275_v56  ;;  %v23166_v32 = vld [vmem:[#allocation66_spill] sm:$0xff]  ;;  %v23167_v15 = vld [vmem:[#allocation68_spill] sm:$0xff]  ;;  %v7128_v47 = vmul.f32 1.442695, %v6934_v21 }
 0x989   : > { %v6972_v14 = vsub.f32 %v23162_v36, %v18275_v56  ;;  %v23163_v7 = vld [vmem:[#allocation35_spill] sm:$0xff]  ;;  %v6978_v52 = vsub.f32 %v23166_v32, %v18275_v56  ;;  %v6980_v2 = vsub.f32 %v23167_v15, %v18275_v56  ;;  %v23168_v59 = vld [vmem:[#allocation96_spill] sm:$0xff]  ;;  %v18408_v36 = vpop.eup %14936  ;;  %v6986_v22 = vsub.f32 %v23171_v48, %v18275_v56 }
 0x98a   : > { %v6974_v54 = vsub.f32 %v23163_v7, %v18275_v56  ;;  %v6982_v17 = vsub.f32 %v23168_v59, %v18275_v56  ;;  %23169 = vst [vmem:[#allocation49_spill] sm:$0xff] %v18408_v36  ;;  %v23170_v7 = vld [vmem:[#allocation98_spill] sm:$0xff]  ;;  %v6988_v0 = vsub.f32 %v18119_v11, %v18275_v56  ;;  %v6990_v32 = vsub.f32 %v18129_v57, %v18275_v56  ;;  %v18418_v62 = vpop.eup %14938 }
 0x98b   : > { %v6984_v27 = vsub.f32 %v23170_v7, %v18275_v56  ;;  %23172 = vst [vmem:[#allocation63_spill] sm:$0xff] %v18418_v62  ;;  %v6992_v15 = vsub.f32 %v18143_v39, %v18275_v56  ;;  %v23173_v59 = vsub.f32 %v23124_v42, %v18275_v56  ;;  %v7132_v7 = vmul.f32 1.442695, %v6936_v35  ;;  %v18425_v43 = vpop.eup %14940  ;;  %13050 = vmatpush1.bf16.msra.mxu1 %v18170_v34 }
 0x98c   : > { %v7136_v11 = vmul.f32 1.442695, %v6938_v12  ;;  %v7140_v48 = vmul.f32 1.442695, %v6940_v38  ;;  %v23174_v57 = vand.u32 4294901760, %v18200_v9  ;;  %v23175_v62 = vand.u32 4294901760, %v18207_v30  ;;  %v18435_v39 = vpop.eup %14942  ;;  %13052 = vmatprep.subr.bf16.mxu1 %v18327_v46 }
 0x98d   : > { %v7124_v36 = vmul.f32 1.442695, %v23173_v59  ;;  %v7144_v42 = vmul.f32 1.442695, %v6942_v26  ;;  %v7148_v21 = vmul.f32 1.442695, %v6944_v16  ;;  %v18438_v35 = vpop.eup %14944 }
 0x98e   : > { %v18433_v40 = vpack.c.bf16 %v23175_v62, %v23174_v57  ;;  %v7152_v56 = vmul.f32 1.442695, %v6946_v44  ;;  %v7160_v12 = vmul.f32 1.442695, %v6950_v49  ;;  %v7164_v38 = vmul.f32 1.442695, %v6952_v45  ;;  %v18440_v59 = vpop.eup %14946 }
 0x98f   : > { %14952 = vpow2.f32 %v7124_v36  ;;  %v7168_v34 = vmul.f32 1.442695, %v6954_v5  ;;  %v7172_v62 = vmul.f32 1.442695, %v6956_v51  ;;  %v7176_v57 = vmul.f32 1.442695, %v6958_v31  ;;  %13054 = vmatpush1.bf16.msra.mxu1 %v18175_v13 }
 0x990   : > { %23176 = vst [vmem:[#allocation61_spill] sm:$0xff] %v18433_v40  ;;  %14954 = vpow2.f32 %v7128_v47  ;;  %v18442_v40 = vpop.eup %14948  ;;  %v7180_v26 = vmul.f32 1.442695, %v6960_v28  ;;  %v7184_v16 = vmul.f32 1.442695, %v6962_v63  ;;  %13056 = vmatprep.subr.bf16.mxu1 %v18343_v37 }
 0x991   : > { %14956 = vpow2.f32 %v7132_v7  ;;  %v7188_v44 = vmul.f32 1.442695, %v6964_v1  ;;  %v18446_v8 = vmul.f32 1.442695, %v6966_v20  ;;  %v18448_v45 = vmul.f32 1.442695, %v6968_v4 }
 0x992   : > { %14958 = vpow2.f32 %v7136_v11  ;;  %v18450_v49 = vmul.f32 1.442695, %v6970_v10  ;;  %v18452_v51 = vmul.f32 1.442695, %v6972_v14  ;;  %v18454_v31 = vmul.f32 1.442695, %v6974_v54 }
 0x993   : > { %14960 = vpow2.f32 %v7140_v48  ;;  %v18456_v5 = vmul.f32 1.442695, %v6976_v50  ;;  %v18458_v28 = vmul.f32 1.442695, %v6978_v52  ;;  %v18460_v1 = vmul.f32 1.442695, %v6980_v2  ;;  %13058 = vmatpush1.bf16.msra.mxu1 %v18189_v23  ;;  %v18475_v2 = vpop.eup %14950 }
 0x994   : > { %14962 = vpow2.f32 %v7144_v42  ;;  %v18462_v63 = vmul.f32 1.442695, %v6982_v17  ;;  %v18464_v20 = vmul.f32 1.442695, %v6984_v27  ;;  %v18466_v4 = vmul.f32 1.442695, %v6986_v22 }
 0x995   : > { %14964 = vpow2.f32 %v7148_v21  ;;  %v18468_v10 = vmul.f32 1.442695, %v6988_v0  ;;  %v18471_v14 = vmul.f32 1.442695, %v6990_v32  ;;  %v6866_v50 = vrot.slane %v18298_v58, 1  ;;  %23177 = vst [vmem:[#allocation82_spill] sm:$0xff] %v18475_v2 }
 0x996   : > { %14966 = vpow2.f32 %v7152_v56  ;;  %v7316_v52 = vand.u32 4294901760, %v18323_v55  ;;  %v7320_v54 = vand.u32 4294901760, %v18331_v25  ;;  %v21991_v27 = vand.u32 4294901760, %v18340_v33  ;;  %v23186_v42 = vld [vmem:[#allocation32_spill] sm:$0xff]  ;;  %v23188_v56 = vld [vmem:[#allocation39_spill] sm:$0xff]  ;;  %v23201_v23 = vld [vmem:[#allocation105_spill] sm:$0xff] }
 0x997   : > { %14968 = vpow2.f32 %v7156_v60  ;;  %v21990_v17 = vand.u32 4294901760, %v18349_v29  ;;  %v18482_v47 = vmul.f32 1.442695, %v6992_v15  ;;  %v18485_v36 = vmax.f32 %v18298_v58, %v6866_v50  ;;  %v23208_v2 = vld [vmem:[#allocation21_spill] sm:$0xff] }
 0x998   : > { %14970 = vpow2.f32 %v7160_v12  ;;  %v18488_v0 = vsub.f32 %v18323_v55, %v7316_v52  ;;  %v18492_v7 = vpack.c.bf16 %v7320_v54, %v7316_v52  ;;  %v18495_v11 = vsub.f32 %v18331_v25, %v7320_v54  ;;  %v23185_v55 = vld [vmem:[#allocation19_spill] sm:$0xff]  ;;  %v23189_v12 = vld [vmem:[#allocation41_spill] sm:$0xff] }
 0x999   : > { %v18480_v22 = vpop.eup %14952  ;;  %14972 = vpow2.f32 %v7164_v38  ;;  %v18501_v15 = vpack.c.bf16 %v21990_v17, %v21991_v27  ;;  %v6995_v58 = vsub.f32 %v18162_v6, %v18485_v36  ;;  %v6935_v21 = vsub.f32 %v23186_v42, %v18485_v36  ;;  %v23192_v52 = vld [vmem:[#allocation59_spill] sm:$0xff]  ;;  %v23196_v17 = vld [vmem:[#allocation70_spill] sm:$0xff] }
 0x99a   : > { %23178 = vst [vmem:[#allocation75_spill] sm:$0xff] %v18480_v22  ;;  %23179 = vst [vmem:[#allocation72_spill] sm:$0xff] %v18488_v0  ;;  %v18490_v32 = vpop.eup %14954  ;;  %14974 = vpow2.f32 %v7168_v34  ;;  %v6933_v34 = vsub.f32 %v23185_v55, %v18485_v36  ;;  %v6937_v60 = vsub.f32 %v23188_v56, %v18485_v36  ;;  %v6939_v38 = vsub.f32 %v23189_v12, %v18485_v36  ;;  %v23193_v55 = vld [vmem:[#allocation56_spill] sm:$0xff]  ;;  %v23195_v12 = vld [vmem:[#allocation71_spill] sm:$0xff] }
 0x99b   : > { %23180 = vst [vmem:[#allocation87_spill] sm:$0xff] %v18490_v32  ;;  %23181 = vst [vmem:[#allocation86_spill] sm:$0xff] %v18492_v7  ;;  %v18503_v48 = vpop.eup %14956  ;;  %14976 = vpow2.f32 %v7172_v62  ;;  %v23190_v62 = vld [vmem:[#allocation45_spill] sm:$0xff]  ;;  %13060 = vmatprep.subr.bf16.mxu1 %v18492_v7  ;;  %v6943_v54 = vsub.f32 %v23192_v52, %v18485_v36  ;;  %v6949_v27 = vsub.f32 %v23196_v17, %v18485_v36  ;;  %v23203_v17 = vld [vmem:[#allocation112_spill] sm:$0xff] }
 0x99c   : > { %23182 = vst [vmem:[#allocation85_spill] sm:$0xff] %v18495_v11  ;;  %23183 = vst [vmem:[#allocation104_spill] sm:$0xff] %v18501_v15  ;;  %v18511_v25 = vpop.eup %14958  ;;  %14978 = vpow2.f32 %v7176_v57  ;;  %v6941_v50 = vsub.f32 %v23190_v62, %v18485_v36  ;;  %v6945_v57 = vsub.f32 %v23193_v55, %v18485_v36  ;;  %13062 = vmatpush1.bf16.msra.mxu1 %v18198_v24  ;;  %v23199_v55 = vld [vmem:[#allocation81_spill] sm:$0xff]  ;;  %v23200_v24 = vld [vmem:[#allocation95_spill] sm:$0xff] }
 0x99d   : > { %23184 = vst [vmem:[#allocation110_spill] sm:$0xff] %v18503_v48  ;;  %23187 = vst [vmem:[#allocation99_spill] sm:$0xff] %v18511_v25  ;;  %v18520_v6 = vpop.eup %14960  ;;  %14980 = vpow2.f32 %v7180_v26  ;;  %v6947_v62 = vsub.f32 %v23195_v12, %v18485_v36  ;;  %v23197_v26 = vld [vmem:[#allocation83_spill] sm:$0xff]  ;;  %13064 = vmatprep.subr.bf16.mxu1 %v18501_v15  ;;  %v6953_v42 = vsub.f32 %v23199_v55, %v18485_v36  ;;  %v23204_v15 = vld [vmem:[#allocation92_spill] sm:$0xff] }
 0x99e   : > { %23191 = vst [vmem:[#allocation10_spill] sm:$0xff] %v18520_v6  ;;  %v18528_v56 = vpop.eup %14962  ;;  %14982 = vpow2.f32 %v7184_v16  ;;  %v6951_v7 = vsub.f32 %v23197_v26, %v18485_v36  ;;  %v6955_v16 = vsub.f32 %v23200_v24, %v18485_v36  ;;  %v6957_v12 = vsub.f32 %v23201_v23, %v18485_v36  ;;  %v23207_v24 = vld [vmem:[#allocation14_spill] sm:$0xff] }
 0x99f   : > { %23194 = vst [vmem:[#allocation15_spill] sm:$0xff] %v18528_v56  ;;  %v18537_v52 = vpop.eup %14964  ;;  %14984 = vpow2.f32 %v7188_v44  ;;  %v6959_v26 = vsub.f32 %v23203_v17, %v18485_v36  ;;  %v6961_v13 = vsub.f32 %v23204_v15, %v18485_v36  ;;  %v23205_v44 = vld [vmem:[#allocation6_spill] sm:$0xff]  ;;  %v6965_v23 = vsub.f32 %v23207_v24, %v18485_v36  ;;  %v23211_v15 = vld [vmem:[#allocation28_spill] sm:$0xff]  ;;  %v23213_v24 = vld [vmem:[#allocation69_spill] sm:$0xff] }
 0x9a0   : > { %23198 = vst [vmem:[#allocation17_spill] sm:$0xff] %v18537_v52  ;;  %v18545_v37 = vpop.eup %14966  ;;  %14986 = vpow2.f32 %v18446_v8  ;;  %v6963_v46 = vsub.f32 %v23205_v44, %v18485_v36  ;;  %v23209_v8 = vld [vmem:[#allocation5_spill] sm:$0xff]  ;;  %13066 = vmatpush1.bf16.msra.mxu1 %v18220_v3  ;;  %v6971_v44 = vsub.f32 %v23211_v15, %v18485_v36  ;;  %v6975_v56 = vsub.f32 %v23213_v24, %v18485_v36 }
 0x9a1   : > { %23202 = vst [vmem:[#allocation27_spill] sm:$0xff] %v18545_v37  ;;  %v18554_v55 = vpop.eup %14968  ;;  %14988 = vpow2.f32 %v18448_v45  ;;  %v6967_v37 = vsub.f32 %v23208_v2, %v18485_v36  ;;  %v6969_v52 = vsub.f32 %v23209_v8, %v18485_v36  ;;  %v23212_v45 = vld [vmem:[#allocation33_spill] sm:$0xff]  ;;  %v23215_v2 = vld [vmem:[#allocation74_spill] sm:$0xff]  ;;  %v18609_v11 = vmul.f32 1.442695, %v6947_v62 }
 0x9a2   : > { %23206 = vst [vmem:[#allocation24_spill] sm:$0xff] %v18554_v55  ;;  %v18564_v17 = vpop.eup %14970  ;;  %14990 = vpow2.f32 %v18450_v49  ;;  %v6973_v55 = vsub.f32 %v23212_v45, %v18485_v36  ;;  %v6977_v8 = vsub.f32 %v23215_v2, %v18485_v36  ;;  %v23216_v3 = vld [vmem:[#allocation77_spill] sm:$0xff]  ;;  %v23219_v45 = vld [vmem:[#allocation88_spill] sm:$0xff] }
 0x9a3   : > { %23210 = vst [vmem:[#allocation31_spill] sm:$0xff] %v18564_v17  ;;  %v18573_v6 = vpop.eup %14972  ;;  %14992 = vpow2.f32 %v18452_v51  ;;  %v6979_v17 = vsub.f32 %v23216_v3, %v18485_v36  ;;  %v23217_v49 = vld [vmem:[#allocation93_spill] sm:$0xff]  ;;  %v6983_v24 = vsub.f32 %v23219_v45, %v18485_v36  ;;  %v6987_v51 = vsub.f32 %v18110_v61, %v18485_v36 }
 0x9a4   : > { %23214 = vst [vmem:[#allocation35_spill] sm:$0xff] %v18573_v6  ;;  %v6981_v25 = vsub.f32 %v23217_v49, %v18485_v36  ;;  %v18582_v15 = vpop.eup %14974  ;;  %14994 = vpow2.f32 %v18454_v31  ;;  %v23220_v6 = vld [vmem:[#allocation100_spill] sm:$0xff]  ;;  %v6989_v3 = vsub.f32 %v18126_v41, %v18485_v36  ;;  %v6991_v49 = vsub.f32 %v18134_v18, %v18485_v36 }
 0x9a5   : > { %23218 = vst [vmem:[#allocation62_spill] sm:$0xff] %v18582_v15  ;;  %v6985_v48 = vsub.f32 %v23220_v6, %v18485_v36  ;;  %v18591_v2 = vpop.eup %14976  ;;  %14996 = vpow2.f32 %v18456_v5  ;;  %v7250_v6 = vmul.f32 1.442695, %v6995_v58  ;;  %v7126_v15 = vmul.f32 1.442695, %v6933_v34 }
 0x9a6   : > { %23221 = vst [vmem:[#allocation66_spill] sm:$0xff] %v18591_v2  ;;  %v18600_v45 = vpop.eup %14978  ;;  %14998 = vpow2.f32 %v18458_v28  ;;  %v7130_v61 = vmul.f32 1.442695, %v6935_v21  ;;  %v7134_v5 = vmul.f32 1.442695, %v6937_v60 }
 0x9a7   : > { %23222 = vst [vmem:[#allocation68_spill] sm:$0xff] %v18600_v45  ;;  %v18603_v32 = vpop.eup %14980  ;;  %15000 = vpow2.f32 %v18460_v1  ;;  %v7138_v2 = vmul.f32 1.442695, %v6939_v38  ;;  %v7142_v41 = vmul.f32 1.442695, %v6941_v50 }
 0x9a8   : > { %23223 = vst [vmem:[#allocation96_spill] sm:$0xff] %v18603_v32  ;;  %v18606_v22 = vpop.eup %14982  ;;  %15002 = vpow2.f32 %v18462_v63  ;;  %v7146_v18 = vmul.f32 1.442695, %v6943_v54  ;;  %v7150_v31 = vmul.f32 1.442695, %v6945_v57 }
 0x9a9   : > { %23224 = vst [vmem:[#allocation98_spill] sm:$0xff] %v18606_v22  ;;  %v18611_v45 = vpop.eup %14984  ;;  %15004 = vpow2.f32 %v18464_v20  ;;  %v18614_v28 = vmul.f32 1.442695, %v6949_v27  ;;  %v18616_v58 = vmul.f32 1.442695, %v6951_v7 }
 0x9aa   : > { %23225 = vst [vmem:[#allocation107_spill] sm:$0xff] %v18611_v45  ;;  %v18618_v1 = vmul.f32 1.442695, %v6953_v42  ;;  %v18620_v34 = vpop.eup %14986  ;;  %15006 = vpow2.f32 %v18466_v4  ;;  %v18623_v21 = vmul.f32 1.442695, %v6955_v16 }
 0x9ab   : > { %23226 = vst [vmem:[#allocation19_spill] sm:$0xff] %v18620_v34  ;;  %v18625_v63 = vmul.f32 1.442695, %v6957_v12  ;;  %v18627_v60 = vmul.f32 1.442695, %v6959_v26  ;;  %v18629_v38 = vpop.eup %14988  ;;  %15008 = vpow2.f32 %v18468_v10 }
 0x9ac   : > { %23227 = vst [vmem:[#allocation32_spill] sm:$0xff] %v18629_v38  ;;  %v18632_v20 = vmul.f32 1.442695, %v6961_v13  ;;  %v18634_v27 = vmul.f32 1.442695, %v6963_v46  ;;  %v18638_v50 = vpop.eup %14990  ;;  %15010 = vpow2.f32 %v18471_v14 }
 0x9ad   : > { %v18636_v7 = vmul.f32 1.442695, %v6965_v23  ;;  %23228 = vst [vmem:[#allocation39_spill] sm:$0xff] %v18638_v50  ;;  %v18641_v4 = vmul.f32 1.442695, %v6967_v37  ;;  %v18647_v42 = vpop.eup %14992  ;;  %15012 = vpow2.f32 %v18482_v47  ;;  %v23233_v23 = vand.u32 4294901760, %v18340_v33 }
 0x9ae   : > { %v18643_v54 = vmul.f32 1.442695, %v6969_v52  ;;  %v18645_v57 = vmul.f32 1.442695, %v6971_v44  ;;  %23229 = vst [vmem:[#allocation41_spill] sm:$0xff] %v18647_v42  ;;  %v18656_v62 = vpop.eup %14994  ;;  %15014 = vpow2.f32 %v7250_v6 }
 0x9af   : > { %v18650_v13 = vmul.f32 1.442695, %v6973_v55  ;;  %v18652_v46 = vmul.f32 1.442695, %v6975_v56  ;;  %v18654_v10 = vmul.f32 1.442695, %v6977_v8  ;;  %v18664_v16 = vpop.eup %14996  ;;  %15016 = vpow2.f32 %v7126_v15 }
 0x9b0   : > { %23230 = vst [vmem:[#allocation45_spill] sm:$0xff] %v18656_v62  ;;  %v18658_v14 = vmul.f32 1.442695, %v6979_v17  ;;  %v18660_v37 = vmul.f32 1.442695, %v6981_v25  ;;  %23231 = vst [vmem:[#allocation59_spill] sm:$0xff] %v18664_v16  ;;  %v18672_v26 = vpop.eup %14998  ;;  %15018 = vpow2.f32 %v7130_v61  ;;  %v18679_v25 = vsub.f32 %v18340_v33, %v23233_v23 }
 0x9b1   : > { %v18662_v52 = vmul.f32 1.442695, %v6983_v24  ;;  %v18666_v12 = vmul.f32 1.442695, %v6985_v48  ;;  %v18668_v47 = vmul.f32 1.442695, %v6987_v51  ;;  %v18686_v48 = vpop.eup %15000  ;;  %15020 = vpow2.f32 %v7134_v5 }
 0x9b2   : > { %v18670_v56 = vmul.f32 1.442695, %v6989_v3  ;;  %23232 = vst [vmem:[#allocation56_spill] sm:$0xff] %v18672_v26  ;;  %v18674_v55 = vmul.f32 1.442695, %v6991_v49  ;;  %v23234_v17 = vand.u32 4294901760, %v18349_v29  ;;  %v18695_v6 = vpop.eup %15002  ;;  %15022 = vpow2.f32 %v7138_v2 }
 0x9b3   : > { %23235 = vst [vmem:[#allocation71_spill] sm:$0xff] %v18686_v48  ;;  %v23236_v8 = vld [vmem:[#allocation78_spill] sm:$0xff]  ;;  %v23237_v24 = vand.u32 4294901760, %v18359_v53  ;;  %v23239_v3 = vld [vmem:[#allocation51_spill] sm:$0xff]  ;;  %23240 = vst [vmem:[#allocation83_spill] sm:$0xff] %v18695_v6  ;;  %v18700_v48 = vpop.eup %15004  ;;  %15024 = vpow2.f32 %v7142_v41 }
 0x9b4   : > { %v18684_v44 = vsub.f32 %v18349_v29, %v23234_v17  ;;  %v7336_v15 = vand.u32 4294901760, %v23236_v8  ;;  %v7340_v49 = vand.u32 4294901760, %v23239_v3  ;;  %v23241_v33 = vld [vmem:[#allocation89_spill] sm:$0xff]  ;;  %v23243_v17 = vld [vmem:[#allocation63_spill] sm:$0xff]  ;;  %23244 = vst [vmem:[#allocation81_spill] sm:$0xff] %v18700_v48  ;;  %v18712_v2 = vpop.eup %15006  ;;  %15026 = vpow2.f32 %v7146_v18 }
 0x9b5   : > { %v18692_v51 = vsub.f32 %v18359_v53, %v23237_v24  ;;  %v7344_v61 = vand.u32 4294901760, %v23241_v33  ;;  %v23242_v23 = vld [vmem:[#allocation49_spill] sm:$0xff]  ;;  %v7352_v26 = vand.u32 4294901760, %v23243_v17  ;;  %v23245_v5 = vmov %v23237_v24  ;;  %23249 = vst [vmem:[#allocation92_spill] sm:$0xff] %v18712_v2  ;;  %v18721_v41 = vpop.eup %15008 }
 0x9b6   : > { %v7348_v29 = vand.u32 4294901760, %v23242_v23  ;;  %v18704_v16 = vpack.c.bf16 %v7336_v15, %v23245_v5  ;;  %v18707_v24 = vsub.f32 %v23236_v8, %v7336_v15  ;;  %v18710_v62 = vsub.f32 %v23239_v3, %v7340_v49  ;;  %23252 = vst [vmem:[#allocation21_spill] sm:$0xff] %v18721_v41  ;;  %v18735_v3 = vpop.eup %15010 }
 0x9b7   : > { %23238 = vst [vmem:[#allocation70_spill] sm:$0xff] %v18692_v51  ;;  %v18714_v6 = vpack.c.bf16 %v7344_v61, %v7340_v49  ;;  %v18717_v42 = vsub.f32 %v23241_v33, %v7344_v61  ;;  %15028 = vpow2.f32 %v7150_v31  ;;  %v18728_v8 = vsub.f32 %v23243_v17, %v7352_v26  ;;  %23257 = vst [vmem:[#allocation69_spill] sm:$0xff] %v18735_v3  ;;  %v23258_v49 = vld [vmem:[#allocation91_spill] sm:$0xff] }
 0x9b8   : > { %23246 = vst [vmem:[#allocation95_spill] sm:$0xff] %v18704_v16  ;;  %23247 = vst [vmem:[#allocation105_spill] sm:$0xff] %v18707_v24  ;;  %v18719_v48 = vpack.c.bf16 %v7352_v26, %v7348_v29  ;;  %13068 = vmatprep.subr.bf16.mxu1 %v18704_v16  ;;  %v18725_v53 = vsub.f32 %v23242_v23, %v7348_v29  ;;  %v23255_v18 = vand.u32 4294901760, %v18200_v9  ;;  %15030 = vpow2.f32 %v18609_v11  ;;  %v18746_v23 = vpop.eup %15012  ;;  %v23263_v11 = vld [vmem:[#allocation67_spill] sm:$0xff] }
 0x9b9   : > { %23248 = vst [vmem:[#allocation112_spill] sm:$0xff] %v18710_v62  ;;  %23250 = vst [vmem:[#allocation6_spill] sm:$0xff] %v18714_v6  ;;  %13070 = vmatpush1.bf16.msra.mxu1 %v23258_v49  ;;  %v23259_v31 = vand.u32 4294901760, %v18207_v30  ;;  %v7356_v61 = vand.u32 4294901760, %v18425_v43  ;;  %v7360_v26 = vand.u32 4294901760, %v18435_v39  ;;  %15032 = vpow2.f32 %v18614_v28 }
 0x9ba   : > { %23251 = vst [vmem:[#allocation14_spill] sm:$0xff] %v18719_v48  ;;  %23253 = vst [vmem:[#allocation5_spill] sm:$0xff] %v18725_v53  ;;  %v18733_v15 = vsub.f32 %v18200_v9, %v23255_v18  ;;  %13072 = vmatprep.subr.bf16.mxu1 %v18714_v6  ;;  %v23262_v9 = vld [vmem:[#allocation55_spill] sm:$0xff]  ;;  %v7362_v17 = vand.u32 4294901760, %v23263_v11  ;;  %v7364_v5 = vand.u32 4294901760, %v18438_v35  ;;  %v18753_v18 = vpop.eup %15014  ;;  %15034 = vpow2.f32 %v18616_v58 }
 0x9bb   : > { %23254 = vst [vmem:[#allocation28_spill] sm:$0xff] %v18728_v8  ;;  %v18742_v33 = vsub.f32 %v18207_v30, %v23259_v31  ;;  %23261 = vst [vmem:[#allocation77_spill] sm:$0xff] %v18746_v23  ;;  %v7358_v29 = vand.u32 4294901760, %v23262_v9  ;;  %v18756_v30 = vpack.c.bf16 %v7360_v26, %v7356_v61  ;;  %v18759_v31 = vsub.f32 %v18425_v43, %v7356_v61  ;;  %v18764_v28 = vpop.eup %15016  ;;  %v23273_v43 = vld [vmem:[#allocation37_spill] sm:$0xff] }
 0x9bc   : > { %23256 = vst [vmem:[#allocation33_spill] sm:$0xff] %v18733_v15  ;;  %23264 = vst [vmem:[#allocation93_spill] sm:$0xff] %v18753_v18  ;;  %v18762_v49 = vsub.f32 %v18435_v39, %v7360_v26  ;;  %15036 = vpow2.f32 %v18618_v1  ;;  %v18773_v23 = vsub.f32 %v23263_v11, %v7362_v17  ;;  %v18775_v58 = vpop.eup %15018  ;;  %v7368_v39 = vand.u32 4294901760, %v18440_v59  ;;  %v23275_v1 = vld [vmem:[#allocation79_spill] sm:$0xff] }
 0x9bd   : > { %23260 = vst [vmem:[#allocation74_spill] sm:$0xff] %v18742_v33  ;;  %23265 = vst [vmem:[#allocation88_spill] sm:$0xff] %v18756_v30  ;;  %v18767_v6 = vpack.c.bf16 %v7362_v17, %v7358_v29  ;;  %v18770_v16 = vsub.f32 %v23262_v9, %v7358_v29  ;;  %15038 = vpow2.f32 %v18623_v21  ;;  %13074 = vmatpush1.bf16.msra.mxu1 %v23273_v43  ;;  %v7366_v26 = vand.u32 4294901760, %v23275_v1  ;;  %v18784_v18 = vpop.eup %15020  ;;  %v23277_v9 = vld [vmem:[#allocation108_spill] sm:$0xff] }
 0x9be   : > { %23266 = vst [vmem:[#allocation100_spill] sm:$0xff] %v18759_v31  ;;  %23267 = vst [vmem:[#allocation78_spill] sm:$0xff] %v18762_v49  ;;  %v18781_v61 = vsub.f32 %v18438_v35, %v7364_v5  ;;  %15040 = vpow2.f32 %v18625_v63  ;;  %13076 = vmatprep.subr.bf16.mxu1 %v18719_v48  ;;  %v7370_v29 = vand.u32 4294901760, %v23277_v9  ;;  %v7372_v11 = vand.u32 4294901760, %v18442_v40  ;;  %v23278_v21 = vld [vmem:[#allocation80_spill] sm:$0xff]  ;;  %v18795_v3 = vpop.eup %15022 }
 0x9bf   : > { %23268 = vst [vmem:[#allocation51_spill] sm:$0xff] %v18764_v28  ;;  %23269 = vst [vmem:[#allocation89_spill] sm:$0xff] %v18767_v6  ;;  %v23279_v17 = vand.u32 4294901760, %v23278_v21  ;;  %15042 = vpow2.f32 %v18627_v60  ;;  %v18798_v35 = vpack.c.bf16 %v7368_v39, %v7364_v5  ;;  %v18801_v41 = vsub.f32 %v18440_v59, %v7368_v39  ;;  %v18806_v48 = vpop.eup %15024  ;;  %v23291_v59 = vld [vmem:[#allocation61_spill] sm:$0xff] }
 0x9c0   : > { %23270 = vst [vmem:[#allocation49_spill] sm:$0xff] %v18770_v16  ;;  %23271 = vst [vmem:[#allocation63_spill] sm:$0xff] %v18773_v23  ;;  %v18804_v63 = vsub.f32 %v23275_v1, %v7366_v26  ;;  %15044 = vpow2.f32 %v18632_v20  ;;  %v18809_v2 = vpack.c.bf16 %v7370_v29, %v7366_v26  ;;  %v23288_v50 = vand.u32 4294901760, %v23278_v21  ;;  %v18818_v5 = vpop.eup %15026  ;;  %v23293_v1 = vld [vmem:[#allocation97_spill] sm:$0xff]  ;;  %v23294_v26 = vld [vmem:[#allocation52_spill] sm:$0xff] }
 0x9c1   : > { %23272 = vst [vmem:[#allocation55_spill] sm:$0xff] %v18775_v58  ;;  %23274 = vst [vmem:[#allocation67_spill] sm:$0xff] %v18781_v61  ;;  %v18793_v43 = vsub.f32 %v23278_v21, %v23279_v17  ;;  %v18812_v17 = vsub.f32 %v23277_v9, %v7370_v29  ;;  %15046 = vpow2.f32 %v18634_v27  ;;  %13078 = vmatpush1.bf16.msra.mxu1 %v23291_v59  ;;  %v7374_v20 = vand.u32 4294901760, %v23293_v1  ;;  %v18827_v34 = vpop.eup %15028  ;;  %v23297_v29 = vld [vmem:[#allocation48_spill] sm:$0xff]  ;;  %v23298_v27 = vld [vmem:[#allocation94_spill] sm:$0xff] }
 0x9c2   : > { %23276 = vst [vmem:[#allocation79_spill] sm:$0xff] %v18784_v18  ;;  %23281 = vst [vmem:[#allocation80_spill] sm:$0xff] %v18795_v3  ;;  %v18816_v60 = vpack.c.bf16 %v23288_v50, %v7372_v11  ;;  %v18823_v39 = vsub.f32 %v18442_v40, %v7372_v11  ;;  %v7378_v38 = vand.u32 4294901760, %v23294_v26  ;;  %15048 = vpow2.f32 %v18636_v7  ;;  %13080 = vmatprep.subr.bf16.mxu1 %v18756_v30  ;;  %v23296_v50 = vld [vmem:[#allocation44_spill] sm:$0xff]  ;;  %v18834_v59 = vpop.eup %15030 }
 0x9c3   : > { %23280 = vst [vmem:[#allocation108_spill] sm:$0xff] %v18793_v43  ;;  %23282 = vst [vmem:[#allocation134_spill] sm:$0xff] %v18798_v35  ;;  %v22051_v9 = vand.u32 4294901760, %v23296_v50  ;;  %v22053_v21 = vand.u32 4294901760, %v23297_v29  ;;  %15050 = vpow2.f32 %v18641_v4  ;;  %v18840_v11 = vsub.f32 %v23293_v1, %v7374_v20  ;;  %v18845_v7 = vpop.eup %15032  ;;  %v23344_v18 = vld [vmem:[#allocation124_spill] sm:$0xff] }
 0x9c4   : > { %23283 = vst [vmem:[#allocation135_spill] sm:$0xff] %v18801_v41  ;;  %23284 = vst [vmem:[#allocation136_spill] sm:$0xff] %v18804_v63  ;;  %v18837_v40 = vpack.c.bf16 %v7378_v38, %v7374_v20  ;;  %v18843_v22 = vsub.f32 %v23294_v26, %v7378_v38  ;;  %15052 = vpow2.f32 %v18643_v54  ;;  %v23304_v30 = vand.u32 4294901760, %v23298_v27  ;;  %v18857_v20 = vpop.eup %15034  ;;  %v23306_v38 = vld [vmem:[#allocation106_spill] sm:$0xff] }
 0x9c5   : > { %23285 = vst [vmem:[#allocation137_spill] sm:$0xff] %v18806_v48  ;;  %23286 = vst [vmem:[#allocation138_spill] sm:$0xff] %v18809_v2  ;;  %v7400_v45 = vsub.f32 %v23296_v50, %v22051_v9  ;;  %v7412_v4 = vsub.f32 %v23297_v29, %v22053_v21  ;;  %15054 = vpow2.f32 %v18645_v57  ;;  %13082 = vmatpush1.bf16.msra.mxu1 %v18767_v6  ;;  %v23307_v26 = vld [vmem:[#allocation42_spill] sm:$0xff]  ;;  %v23313_v32 = vand.u32 4294901760, %v23306_v38  ;;  %v23381_v29 = vld [vmem:[#allocation133_spill] sm:$0xff] }
 0x9c6   : > { %23287 = vst [vmem:[#allocation139_spill] sm:$0xff] %v18812_v17  ;;  %23289 = vst [vmem:[#allocation140_spill] sm:$0xff] %v18816_v60  ;;  %v7406_v1 = vsub.f32 %v23298_v27, %v23304_v30  ;;  %15056 = vpow2.f32 %v18650_v13  ;;  %v23310_v21 = vsub.f32 %v18150_v19, %v18485_v36  ;;  %13084 = vmatprep.subr.bf16.mxu1 %v18798_v35  ;;  %v22103_v58 = vand.u32 4294901760, %v23344_v18  ;;  %v23394_v27 = vld [vmem:[#allocation28_spill] sm:$0xff] }
 0x9c7   : > { %23290 = vst [vmem:[#allocation141_spill] sm:$0xff] %v18818_v5  ;;  %23292 = vst [vmem:[#allocation142_spill] sm:$0xff] %v18823_v39  ;;  %v7401_v57 = vand.u32 4294901760, %v7400_v45  ;;  %v7418_v9 = vsub.f32 %v23306_v38, %v23313_v32  ;;  %15058 = vpow2.f32 %v18652_v46  ;;  %v23379_v38 = vld [vmem:[#allocation125_spill] sm:$0xff] }
 0x9c8   : > { %23295 = vst [vmem:[#allocation97_spill] sm:$0xff] %v18827_v34  ;;  %23299 = vst [vmem:[#allocation52_spill] sm:$0xff] %v18834_v59  ;;  %v18864_v59 = vpop.eup %15036  ;;  %v18870_v30 = vmul.f32 1.442695, %v23310_v21  ;;  %v7407_v54 = vand.u32 4294901760, %v7406_v1  ;;  %v23317_v21 = vld [vmem:[#allocation103_spill] sm:$0xff]  ;;  %15060 = vpow2.f32 %v18654_v10 }
 0x9c9   : > { %23300 = vst [vmem:[#allocation143_spill] sm:$0xff] %v18837_v40  ;;  %23301 = vst [vmem:[#allocation144_spill] sm:$0xff] %v18840_v11  ;;  %v18873_v6 = vpop.eup %15038  ;;  %v23318_v1 = vld [vmem:[#allocation111_spill] sm:$0xff]  ;;  %13086 = vmatpush1.bf16.msra.mxu1 %v18809_v2  ;;  %v7419_v32 = vand.u32 4294901760, %v7418_v9  ;;  %15062 = vpow2.f32 %v18658_v14  ;;  %v23321_v10 = vld [vmem:[#allocation57_spill] sm:$0xff] }
 0x9ca   : > { %23302 = vst [vmem:[#allocation145_spill] sm:$0xff] %v18843_v22  ;;  %23303 = vst [vmem:[#allocation146_spill] sm:$0xff] %v18845_v7  ;;  %v23308_v7 = vld [vmem:[#allocation46_spill] sm:$0xff]  ;;  %v18884_v36 = vpop.eup %15040  ;;  %v22069_v35 = vand.u32 4294901760, %v23318_v1  ;;  %13088 = vmatprep.subr.bf16.mxu1 %v18816_v60  ;;  %15064 = vpow2.f32 %v18660_v37 }
 0x9cb   : > { %23305 = vst [vmem:[#allocation147_spill] sm:$0xff] %v18857_v20  ;;  %23309 = vst [vmem:[#allocation46_spill] sm:$0xff] %v18864_v59  ;;  %v7413_v20 = vand.u32 4294901760, %v7412_v4  ;;  %v23314_v59 = vand.u32 4294901760, %v23307_v26  ;;  %v23315_v34 = vand.u32 4294901760, %v23308_v7  ;;  %v22068_v4 = vand.u32 4294901760, %v23317_v21 }
 0x9cc   : > { %23311 = vst [vmem:[#allocation148_spill] sm:$0xff] %v18870_v30  ;;  %23312 = vst [vmem:[#allocation149_spill] sm:$0xff] %v18873_v6  ;;  %v18889_v6 = vpop.eup %15042  ;;  %v7442_v46 = vsub.f32 %v23318_v1, %v22069_v35  ;;  %v13093_v9 = vpack.c.bf16 %v7419_v32, %v7407_v54  ;;  %15066 = vpow2.f32 %v18662_v52  ;;  %v23327_v32 = vld [vmem:[#allocation115_spill] sm:$0xff]  ;;  %v23397_v50 = vand.u32 4294901760, %v23308_v7 }
 0x9cd   : > { %v7424_v13 = vsub.f32 %v23307_v26, %v23314_v59  ;;  %v7436_v19 = vsub.f32 %v23308_v7, %v23315_v34  ;;  %23316 = vst [vmem:[#allocation150_spill] sm:$0xff] %v18884_v36  ;;  %v13091_v45 = vpack.c.bf16 %v7413_v20, %v7401_v57  ;;  %23319 = vst [vmem:[#allocation111_spill] sm:$0xff] %v18889_v6  ;;  %v18893_v48 = vpop.eup %15044  ;;  %v22071_v20 = vand.u32 4294901760, %v23321_v10 }
 0x9ce   : > { %23320 = vst [vmem:[#allocation151_spill] sm:$0xff] %v18893_v48  ;;  %v7430_v34 = vsub.f32 %v23317_v21, %v22068_v4  ;;  %v18904_v57 = vpop.eup %15046  ;;  %v7443_v4 = vand.u32 4294901760, %v7442_v46  ;;  %15068 = vpow2.f32 %v18666_v12  ;;  %13090 = vmatpush1.bf16.msra.mxu1 %v18837_v40  ;;  %v22080_v52 = vand.u32 4294901760, %v23327_v32 }
 0x9cf   : > { %v7425_v59 = vand.u32 4294901760, %v7424_v13  ;;  %v7437_v5 = vand.u32 4294901760, %v7436_v19  ;;  %23322 = vst [vmem:[#allocation57_spill] sm:$0xff] %v18904_v57  ;;  %v23323_v19 = vld [vmem:[#allocation60_spill] sm:$0xff]  ;;  %v18908_v2 = vpop.eup %15048  ;;  %v7448_v35 = vsub.f32 %v23321_v10, %v22071_v20  ;;  %15070 = vpow2.f32 %v18668_v47  ;;  %13092 = vmatprep.subr.bf16.mxu1 %v13091_v45  ;;  %v23332_v47 = vld [vmem:[#allocation23_spill] sm:$0xff] }
 0x9d0   : > { %v22075_v14 = vand.u32 4294901760, %v23323_v19  ;;  %23324 = vst [vmem:[#allocation60_spill] sm:$0xff] %v18908_v2  ;;  %v7431_v60 = vand.u32 4294901760, %v7430_v34  ;;  %v18914_v48 = vpop.eup %15050  ;;  %v23329_v20 = vld [vmem:[#allocation64_spill] sm:$0xff]  ;;  %15072 = vpow2.f32 %v18670_v56 }
 0x9d1   : > { %v13095_v13 = vpack.c.bf16 %v7437_v5, %v7425_v59  ;;  %23325 = vst [vmem:[#allocation152_spill] sm:$0xff] %v18914_v48  ;;  %v23326_v5 = vld [vmem:[#allocation114_spill] sm:$0xff]  ;;  %v18923_v59 = vpop.eup %15052  ;;  %v7449_v46 = vand.u32 4294901760, %v7448_v35  ;;  %v22084_v48 = vand.u32 4294901760, %v23329_v20  ;;  %15074 = vpow2.f32 %v18674_v55 }
 0x9d2   : > { %v7460_v37 = vsub.f32 %v23323_v19, %v22075_v14  ;;  %v22078_v54 = vand.u32 4294901760, %v23326_v5  ;;  %23328 = vst [vmem:[#allocation115_spill] sm:$0xff] %v18923_v59  ;;  %v13097_v34 = vpack.c.bf16 %v7443_v4, %v7431_v60  ;;  %v18927_v12 = vpop.eup %15054  ;;  %v7466_v59 = vsub.f32 %v23327_v32, %v22080_v52  ;;  %v23334_v60 = vld [vmem:[#allocation127_spill] sm:$0xff] }
 0x9d3   : > { %23330 = vst [vmem:[#allocation153_spill] sm:$0xff] %v18927_v12  ;;  %v18936_v2 = vpop.eup %15056  ;;  %v23333_v35 = vand.u32 4294901760, %v23332_v47  ;;  %v7472_v56 = vsub.f32 %v23329_v20, %v22084_v48  ;;  %v22087_v45 = vand.u32 4294901760, %v23334_v60  ;;  %v23335_v4 = vld [vmem:[#allocation119_spill] sm:$0xff] }
 0x9d4   : > { %v7461_v40 = vand.u32 4294901760, %v7460_v37  ;;  %v7454_v14 = vsub.f32 %v23326_v5, %v22078_v54  ;;  %23331 = vst [vmem:[#allocation154_spill] sm:$0xff] %v18936_v2  ;;  %v22089_v37 = vand.u32 4294901760, %v23335_v4  ;;  %v23336_v54 = vld [vmem:[#allocation11_spill] sm:$0xff]  ;;  %v7467_v57 = vand.u32 4294901760, %v7466_v59  ;;  %v23337_v2 = vld [vmem:[#allocation120_spill] sm:$0xff]  ;;  %v18948_v55 = vpop.eup %15058 }
 0x9d5   : > { %7391 = vmatmul.mubr.f32.vlgmr.msra.gmra.mrb[64].mxu1 %v23333_v35  ;;  %v22093_v6 = vand.u32 4294901760, %v23337_v2  ;;  %23338 = vst [vmem:[#allocation23_spill] sm:$0xff] %v18948_v55  ;;  %v7473_v47 = vand.u32 4294901760, %v7472_v56  ;;  %v7484_v35 = vsub.f32 %v23334_v60, %v22087_v45  ;;  %v23341_v59 = vld [vmem:[#allocation130_spill] sm:$0xff]  ;;  %v23390_v60 = vld [vmem:[#allocation76_spill] sm:$0xff] }
 0x9d6   : > { %13094 = vmatpush1.bf16.msra.mxu1 %v13093_v9  ;;  %7782 = vmatprep.mubr.f32.mxu1 %v23336_v54  ;;  %v13099_v12 = vpack.c.bf16 %v7461_v40, %v7449_v46  ;;  %v7455_v52 = vand.u32 4294901760, %v7454_v14  ;;  %v7478_v48 = vsub.f32 %v23335_v4, %v22089_v37  ;;  %v23339_v9 = vld [vmem:[#allocation128_spill] sm:$0xff]  ;;  %v18957_v54 = vpop.eup %15060  ;;  %v23342_v46 = vld [vmem:[#allocation123_spill] sm:$0xff] }
 0x9d7   : > { %13096 = vmatprep.subr.bf16.mxu1 %v13095_v13  ;;  %v22095_v36 = vand.u32 4294901760, %v23339_v9  ;;  %23340 = vst [vmem:[#allocation155_spill] sm:$0xff] %v18957_v54  ;;  %v7490_v14 = vsub.f32 %v23337_v2, %v22093_v6  ;;  %v22098_v13 = vand.u32 4294901760, %v23341_v59  ;;  %v22101_v56 = vand.u32 4294901760, %v23342_v46  ;;  %v18964_v55 = vpop.eup %15062 }
 0x9d8   : > { %v13101_v40 = vpack.c.bf16 %v7467_v57, %v7455_v52  ;;  %23343 = vst [vmem:[#allocation156_spill] sm:$0xff] %v18964_v55  ;;  %v7485_v45 = vand.u32 4294901760, %v7484_v35  ;;  %v7479_v3 = vand.u32 4294901760, %v7478_v48  ;;  %v18970_v54 = vpop.eup %15064  ;;  %v23346_v35 = vld [vmem:[#allocation131_spill] sm:$0xff] }
 0x9d9   : > { %v7496_v37 = vsub.f32 %v23339_v9, %v22095_v36  ;;  %23345 = vst [vmem:[#allocation157_spill] sm:$0xff] %v18970_v54  ;;  %v7491_v57 = vand.u32 4294901760, %v7490_v14  ;;  %v7508_v52 = vsub.f32 %v23341_v59, %v22098_v13  ;;  %v7502_v6 = vsub.f32 %v23342_v46, %v22101_v56  ;;  %v18979_v55 = vpop.eup %15066  ;;  %v23348_v14 = vld [vmem:[#allocation132_spill] sm:$0xff] }
 0x9da   : > { %13098 = vmatpush1.bf16.msra.mxu1 %v13097_v34  ;;  %v22107_v48 = vand.u32 4294901760, %v23346_v35  ;;  %23347 = vst [vmem:[#allocation158_spill] sm:$0xff] %v18979_v55  ;;  %v13103_v36 = vpack.c.bf16 %v7485_v45, %v7473_v47  ;;  %v7514_v34 = vsub.f32 %v23344_v18, %v22103_v58  ;;  %v22110_v54 = vand.u32 4294901760, %v23348_v14  ;;  %v18985_v30 = vpop.eup %15068  ;;  %v23352_v58 = vld [vmem:[#allocation13_spill] sm:$0xff] }
 0x9db   : > { %13100 = vmatprep.subr.bf16.mxu1 %v13099_v12  ;;  %v7497_v28 = vand.u32 4294901760, %v7496_v37  ;;  %23349 = vst [vmem:[#allocation159_spill] sm:$0xff] %v18985_v30  ;;  %v13105_v13 = vpack.c.bf16 %v7491_v57, %v7479_v3  ;;  %v7509_v59 = vand.u32 4294901760, %v7508_v52  ;;  %v7503_v9 = vand.u32 4294901760, %v7502_v6  ;;  %v18990_v46 = vpop.eup %15070  ;;  %v23351_v37 = vld [vmem:[#allocation125_spill] sm:$0xff] }
 0x9dc   : > { %v7520_v56 = vsub.f32 %v23346_v35, %v22107_v48  ;;  %23350 = vst [vmem:[#allocation160_spill] sm:$0xff] %v18990_v46  ;;  %v7515_v12 = vand.u32 4294901760, %v7514_v34  ;;  %v7532_v45 = vsub.f32 %v23348_v14, %v22110_v54  ;;  %v22113_v47 = vand.u32 4294901760, %v23351_v37  ;;  %v18997_v18 = vpop.eup %15072  ;;  %v23354_v57 = vld [vmem:[#allocation133_spill] sm:$0xff] }
 0x9dd   : > { %v22116_v55 = vand.u32 4294901760, %v23352_v58  ;;  %23353 = vst [vmem:[#allocation161_spill] sm:$0xff] %v18997_v18  ;;  %v13107_v3 = vpack.c.bf16 %v7509_v59, %v7497_v28  ;;  %v22117_v52 = vand.u32 4294901760, %v23354_v57  ;;  %v23355_v30 = vld [vmem:[#allocation73_spill] sm:$0xff]  ;;  %v19001_v35 = vpop.eup %15074  ;;  %v23357_v59 = vld [vmem:[#allocation16_spill] sm:$0xff] }
 0x9de   : > { %13102 = vmatpush1.bf16.msra.mxu1 %v13101_v40  ;;  %v7521_v6 = vand.u32 4294901760, %v7520_v56  ;;  %v22118_v48 = vand.u32 4294901760, %v23355_v30  ;;  %23356 = vst [vmem:[#allocation162_spill] sm:$0xff] %v19001_v35  ;;  %v13109_v34 = vpack.c.bf16 %v7515_v12, %v7503_v9  ;;  %v7533_v46 = vand.u32 4294901760, %v7532_v45  ;;  %v23358_v9 = vld [vmem:[#allocation20_spill] sm:$0xff] }
 0x9df   : > { %13104 = vmatprep.subr.bf16.mxu1 %v13103_v36  ;;  %v7526_v54 = vsub.f32 %v23351_v37, %v22113_v47  ;;  %v7538_v18 = vsub.f32 %v23352_v58, %v22116_v55  ;;  %v7544_v28 = vsub.f32 %v23354_v57, %v22117_v52  ;;  %v22123_v36 = vand.u32 4294901760, %v23357_v59  ;;  %v23359_v47 = vld [vmem:[#allocation84_spill] sm:$0xff]  ;;  %v23362_v58 = vld [vmem:[#allocation25_spill] sm:$0xff] }
 0x9e0   : > { %v7556_v40 = vsub.f32 %v23355_v30, %v22118_v48  ;;  %v22124_v56 = vand.u32 4294901760, %v23358_v9  ;;  %v13111_v12 = vpack.c.bf16 %v7533_v46, %v7521_v6  ;;  %v22125_v37 = vand.u32 4294901760, %v23359_v47  ;;  %v23361_v6 = vld [vmem:[#allocation26_spill] sm:$0xff] }
 0x9e1   : > { %v7527_v45 = vand.u32 4294901760, %v7526_v54  ;;  %v7539_v35 = vand.u32 4294901760, %v7538_v18  ;;  %v7545_v14 = vand.u32 4294901760, %v7544_v28  ;;  %v7550_v52 = vsub.f32 %v23357_v59, %v22123_v36  ;;  %v23360_v18 = vld [vmem:[#allocation47_spill] sm:$0xff] }
 0x9e2   : > { %13106 = vmatpush1.bf16.msra.mxu1 %v13105_v13  ;;  %v7557_v55 = vand.u32 4294901760, %v7556_v40  ;;  %v7562_v48 = vsub.f32 %v23358_v9, %v22124_v56  ;;  %v7568_v54 = vsub.f32 %v23359_v47, %v22125_v37  ;;  %v22127_v46 = vand.u32 4294901760, %v23360_v18 }
 0x9e3   : > { %13108 = vmatprep.subr.bf16.mxu1 %v13107_v3  ;;  %v13113_v30 = vpack.c.bf16 %v7539_v35, %v7527_v45  ;;  %v22128_v13 = vand.u32 4294901760, %v23361_v6  ;;  %v7551_v40 = vand.u32 4294901760, %v7550_v52  ;;  %v22132_v2 = vand.u32 4294901760, %v23362_v58  ;;  %v23364_v52 = vld [vmem:[#allocation43_spill] sm:$0xff] }
 0x9e4   : > { %v13115_v28 = vpack.c.bf16 %v7557_v55, %v7545_v14  ;;  %v7563_v57 = vand.u32 4294901760, %v7562_v48  ;;  %v7569_v36 = vand.u32 4294901760, %v7568_v54  ;;  %v7580_v56 = vsub.f32 %v23360_v18, %v22127_v46  ;;  %v23363_v48 = vld [vmem:[#allocation85_spill] sm:$0xff] }
 0x9e5   : > { %v7574_v35 = vsub.f32 %v23361_v6, %v22128_v13  ;;  %v22131_v3 = vand.u32 4294901760, %v18488_v0  ;;  %v7586_v55 = vsub.f32 %v23362_v58, %v22132_v2  ;;  %v22135_v14 = vand.u32 4294901760, %v23363_v48  ;;  %v23365_v13 = vld [vmem:[#allocation9_spill] sm:$0xff] }
 0x9e6   : > { %13110 = vmatpush1.bf16.msra.mxu1 %v13109_v34  ;;  %v13117_v45 = vpack.c.bf16 %v7563_v57, %v7551_v40  ;;  %v22136_v54 = vand.u32 4294901760, %v23364_v52  ;;  %v7581_v37 = vand.u32 4294901760, %v7580_v56  ;;  %v22138_v6 = vand.u32 4294901760, %v23365_v13 }
 0x9e7   : > { %13112 = vmatprep.subr.bf16.mxu1 %v13111_v12  ;;  %v7575_v47 = vand.u32 4294901760, %v7574_v35  ;;  %v7592_v46 = vsub.f32 %v18488_v0, %v22131_v3  ;;  %v7587_v18 = vand.u32 4294901760, %v7586_v55  ;;  %v7604_v57 = vsub.f32 %v23363_v48, %v22135_v14 }
 0x9e8   : > { %v7598_v34 = vsub.f32 %v23364_v52, %v22136_v54  ;;  %v22143_v40 = vand.u32 4294901760, %v18679_v25  ;;  %v13119_v12 = vpack.c.bf16 %v7581_v37, %v7569_v36  ;;  %v7610_v35 = vsub.f32 %v23365_v13, %v22138_v6  ;;  %v23366_v36 = vld [vmem:[#allocation54_spill] sm:$0xff]  ;;  %v23367_v52 = vld [vmem:[#allocation76_spill] sm:$0xff] }
 0x9e9   : > { %v7593_v56 = vand.u32 4294901760, %v7592_v46  ;;  %v22142_v3 = vand.u32 4294901760, %v18684_v44  ;;  %v13121_v55 = vpack.c.bf16 %v7587_v18, %v7575_v47  ;;  %v7605_v2 = vand.u32 4294901760, %v7604_v57 }
 0x9ea   : > { %13114 = vmatpush1.bf16.msra.mxu1 %v13113_v30  ;;  %v7599_v0 = vand.u32 4294901760, %v7598_v34  ;;  %v7616_v14 = vsub.f32 %v18679_v25, %v22143_v40  ;;  %v7611_v54 = vand.u32 4294901760, %v7610_v35  ;;  %v22141_v46 = vand.u32 4294901760, %v23366_v36 }
 0x9eb   : > { %13116 = vmatprep.subr.bf16.mxu1 %v13115_v28  ;;  %v7628_v37 = vsub.f32 %v18684_v44, %v22142_v3  ;;  %v22144_v6 = vand.u32 4294901760, %v23367_v52  ;;  %v13123_v13 = vpack.c.bf16 %v7605_v2, %v7593_v56  ;;  %v22145_v30 = vand.u32 4294901760, %v18692_v51  ;;  %v23368_v56 = vld [vmem:[#allocation90_spill] sm:$0xff] }
 0x9ec   : > { %v7617_v48 = vand.u32 4294901760, %v7616_v14  ;;  %v22146_v47 = vand.u32 4294901760, %v18707_v24  ;;  %v13125_v18 = vpack.c.bf16 %v7611_v54, %v7599_v0  ;;  %v7622_v28 = vsub.f32 %v23366_v36, %v22141_v46  ;;  %v23369_v54 = vld [vmem:[#allocation122_spill] sm:$0xff] }
 0x9ed   : > { %v7629_v57 = vand.u32 4294901760, %v7628_v37  ;;  %v7634_v34 = vsub.f32 %v23367_v52, %v22144_v6  ;;  %v7640_v2 = vsub.f32 %v18692_v51, %v22145_v30  ;;  %v22152_v0 = vand.u32 4294901760, %v23368_v56  ;;  %v23371_v51 = vld [vmem:[#allocation38_spill] sm:$0xff] }
 0x9ee   : > { %13118 = vmatpush1.bf16.msra.mxu1 %v13117_v45  ;;  %v7652_v14 = vsub.f32 %v18707_v24, %v22146_v47  ;;  %v22154_v35 = vand.u32 4294901760, %v23369_v54  ;;  %v7623_v46 = vand.u32 4294901760, %v7622_v28  ;;  %v22153_v40 = vand.u32 4294901760, %v18710_v62 }
 0x9ef   : > { %13120 = vmatprep.subr.bf16.mxu1 %v13119_v12  ;;  %v13127_v37 = vpack.c.bf16 %v7629_v57, %v7617_v48  ;;  %v7635_v3 = vand.u32 4294901760, %v7634_v34  ;;  %v7641_v6 = vand.u32 4294901760, %v7640_v2  ;;  %v7646_v30 = vsub.f32 %v23368_v56, %v22152_v0  ;;  %v23370_v57 = vld [vmem:[#allocation40_spill] sm:$0xff] }
 0x9f0   : > { %v7653_v45 = vand.u32 4294901760, %v7652_v14  ;;  %v7658_v47 = vsub.f32 %v23369_v54, %v22154_v35  ;;  %v7664_v12 = vsub.f32 %v18710_v62, %v22153_v40  ;;  %v22158_v48 = vand.u32 4294901760, %v18717_v42 }
 0x9f1   : > { %v13129_v24 = vpack.c.bf16 %v7635_v3, %v7623_v46  ;;  %v22155_v28 = vand.u32 4294901760, %v23370_v57  ;;  %v7647_v2 = vand.u32 4294901760, %v7646_v30  ;;  %v22156_v52 = vand.u32 4294901760, %v23371_v51 }
 0x9f2   : > { %13122 = vmatpush1.bf16.msra.mxu1 %v13121_v55  ;;  %v13131_v34 = vpack.c.bf16 %v7653_v45, %v7641_v6  ;;  %v7659_v14 = vand.u32 4294901760, %v7658_v47  ;;  %v7665_v0 = vand.u32 4294901760, %v7664_v12  ;;  %v7676_v3 = vsub.f32 %v18717_v42, %v22158_v48 }
 0x9f3   : > { %13124 = vmatprep.subr.bf16.mxu1 %v13123_v13  ;;  %v7670_v46 = vsub.f32 %v23370_v57, %v22155_v28  ;;  %v22157_v40 = vand.u32 4294901760, %v18725_v53  ;;  %v7682_v6 = vsub.f32 %v23371_v51, %v22156_v52  ;;  %v22161_v55 = vand.u32 4294901760, %v18728_v8 }
 0x9f4   : > { %v13133_v35 = vpack.c.bf16 %v7659_v14, %v7647_v2  ;;  %v22177_v13 = vand.u32 4294901760, %v18733_v15  ;;  %v7677_v30 = vand.u32 4294901760, %v7676_v3  ;;  %v22164_v12 = vand.u32 4294901760, %v18742_v33 }
 0x9f5   : > { %v7671_v47 = vand.u32 4294901760, %v7670_v46  ;;  %v7688_v45 = vsub.f32 %v18725_v53, %v22157_v40  ;;  %v7683_v28 = vand.u32 4294901760, %v7682_v6  ;;  %v7700_v2 = vsub.f32 %v18728_v8, %v22161_v55 }
 0x9f6   : > { %13126 = vmatpush1.bf16.msra.mxu1 %v13125_v18  ;;  %v7694_v14 = vsub.f32 %v18733_v15, %v22177_v13  ;;  %v22170_v52 = vand.u32 4294901760, %v18759_v31  ;;  %v13135_v3 = vpack.c.bf16 %v7677_v30, %v7665_v0  ;;  %v7706_v40 = vsub.f32 %v18742_v33, %v22164_v12  ;;  %v23377_v13 = vld [vmem:[#allocation131_spill] sm:$0xff] }
 0x9f7   : > { %13128 = vmatprep.subr.bf16.mxu1 %v13127_v37  ;;  %v7689_v46 = vand.u32 4294901760, %v7688_v45  ;;  %v22165_v18 = vand.u32 4294901760, %v18762_v49  ;;  %v13137_v6 = vpack.c.bf16 %v7683_v28, %v7671_v47  ;;  %v7701_v48 = vand.u32 4294901760, %v7700_v2 }
 0x9f8   : > { %v7695_v53 = vand.u32 4294901760, %v7694_v14  ;;  %v7712_v55 = vsub.f32 %v18759_v31, %v22170_v52  ;;  %v7707_v8 = vand.u32 4294901760, %v7706_v40  ;;  %v22166_v0 = vand.u32 4294901760, %v18770_v16 }
 0x9f9   : > { %v7724_v37 = vsub.f32 %v18762_v49, %v22165_v18  ;;  %v22167_v30 = vand.u32 4294901760, %v18773_v23  ;;  %v13139_v45 = vpack.c.bf16 %v7701_v48, %v7689_v46  ;;  %v22168_v28 = vand.u32 4294901760, %v18781_v61 }
 0x9fa   : > { %13130 = vmatpush1.bf16.msra.mxu1 %v13129_v24  ;;  %v7713_v12 = vand.u32 4294901760, %v7712_v55  ;;  %v22169_v47 = vand.u32 4294901760, %v18801_v41  ;;  %v13141_v2 = vpack.c.bf16 %v7707_v8, %v7695_v53  ;;  %v7718_v40 = vsub.f32 %v18770_v16, %v22166_v0 }
 0x9fb   : > { %13132 = vmatprep.subr.bf16.mxu1 %v13131_v34  ;;  %v7725_v14 = vand.u32 4294901760, %v7724_v37  ;;  %v7730_v18 = vsub.f32 %v18773_v23, %v22167_v30  ;;  %v7736_v24 = vsub.f32 %v18781_v61, %v22168_v28  ;;  %v22171_v34 = vand.u32 4294901760, %v18804_v63 }
 0x9fc   : > { %v7748_v48 = vsub.f32 %v18801_v41, %v22169_v47  ;;  %v22172_v53 = vand.u32 4294901760, %v18812_v17  ;;  %v7719_v55 = vand.u32 4294901760, %v7718_v40  ;;  %v22176_v37 = vand.u32 4294901760, %v18823_v39 }
 0x9fd   : > { %v13143_v8 = vpack.c.bf16 %v7725_v14, %v7713_v12  ;;  %v7731_v46 = vand.u32 4294901760, %v7730_v18  ;;  %v7737_v0 = vand.u32 4294901760, %v7736_v24  ;;  %v7742_v28 = vsub.f32 %v18804_v63, %v22171_v34 }
 0x9fe   : > { %13134 = vmatpush1.bf16.msra.mxu1 %v13133_v35  ;;  %v7749_v30 = vand.u32 4294901760, %v7748_v48  ;;  %v7754_v47 = vsub.f32 %v18812_v17, %v22172_v53  ;;  %v7760_v12 = vsub.f32 %v18823_v39, %v22176_v37  ;;  %v22175_v18 = vand.u32 4294901760, %v18793_v43  ;;  %v23375_v37 = vld [vmem:[#allocation123_spill] sm:$0xff] }
 0x9ff   : > { %13136 = vmatprep.subr.bf16.mxu1 %v13135_v3  ;;  %v13145_v52 = vpack.c.bf16 %v7731_v46, %v7719_v55  ;;  %v22173_v35 = vand.u32 4294901760, %v18840_v11  ;;  %v7743_v40 = vand.u32 4294901760, %v7742_v28  ;;  %v22174_v48 = vand.u32 4294901760, %v18843_v22  ;;  %v23386_v55 = vld [vmem:[#allocation72_spill] sm:$0xff] }
 0xa00   : > { %v13147_v14 = vpack.c.bf16 %v7749_v30, %v7737_v0  ;;  %v7755_v24 = vand.u32 4294901760, %v7754_v47  ;;  %v7761_v34 = vand.u32 4294901760, %v7760_v12  ;;  %v7772_v53 = vsub.f32 %v18793_v43, %v22175_v18  ;;  %v23372_v30 = vld [vmem:[#allocation120_spill] sm:$0xff] }
 0xa01   : > { %v7766_v3 = vsub.f32 %v18840_v11, %v22173_v35  ;;  %v7778_v0 = vsub.f32 %v18843_v22, %v22174_v48  ;;  %v23396_v48 = vand.u32 4294901760, %v23307_v26  ;;  %v23399_v18 = vand.u32 4294901760, %v23317_v21 }
 0xa02   : > { %13138 = vmatpush1.bf16.msra.mxu1 %v13137_v6  ;;  %v13149_v46 = vpack.c.bf16 %v7755_v24, %v7743_v40  ;;  %v7773_v47 = vand.u32 4294901760, %v7772_v53  ;;  %v23380_v24 = vld [vmem:[#allocation13_spill] sm:$0xff]  ;;  %v23385_v53 = vld [vmem:[#allocation26_spill] sm:$0xff]  ;;  %v23400_v41 = vand.u32 4294901760, %v23318_v1  ;;  %v23406_v26 = vand.u32 4294901760, %v23327_v32 }
 0xa03   : > { %13140 = vmatprep.subr.bf16.mxu1 %v13139_v45  ;;  %v7767_v12 = vand.u32 4294901760, %v7766_v3  ;;  %v7779_v40 = vand.u32 4294901760, %v7778_v0  ;;  %v23373_v45 = vld [vmem:[#allocation128_spill] sm:$0xff]  ;;  %v23384_v3 = vld [vmem:[#allocation47_spill] sm:$0xff]  ;;  %v23393_v6 = vld [vmem:[#allocation5_spill] sm:$0xff]  ;;  %v19236_v9 = vpack.c.bf16 %v23397_v50, %v23396_v48  ;;  %v23408_v50 = vand.u32 4294901760, %v23329_v20 }
 0xa04   : > { %v13151_v28 = vpack.c.bf16 %v7773_v47, %v7761_v34  ;;  %v23383_v47 = vld [vmem:[#allocation84_spill] sm:$0xff]  ;;  %v23391_v34 = vld [vmem:[#allocation70_spill] sm:$0xff]  ;;  %v19242_v35 = vpack.c.bf16 %v23400_v41, %v23399_v18  ;;  %v23409_v48 = vld [vmem:[#allocation127_spill] sm:$0xff]  ;;  %v23412_v41 = vand.u32 4294901760, %v23335_v4  ;;  %v23413_v18 = vand.u32 4294901760, %v23372_v30 }
 0xa05   : > { %v13153_v0 = vpack.c.bf16 %v7779_v40, %v7767_v12  ;;  %v23388_v12 = vld [vmem:[#allocation43_spill] sm:$0xff]  ;;  %23398 = vst [vmem:[#allocation25_spill] sm:$0xff] %v19236_v9  ;;  %v23410_v9 = vand.u32 4294901760, %v23409_v48 }
 0xa06   : > { %13142 = vmatpush1.bf16.msra.mxu1 %v13141_v2  ;;  %v23395_v2 = vld [vmem:[#allocation148_spill] sm:$0xff]  ;;  %23401 = vst [vmem:[#allocation54_spill] sm:$0xff] %v19242_v35  ;;  %v19266_v35 = vpack.c.bf16 %v23413_v18, %v23412_v41  ;;  %v23427_v41 = vand.u32 4294901760, %v23379_v38  ;;  %v23428_v18 = vand.u32 4294901760, %v23380_v24 }
 0xa07   : > { %13144 = vmatprep.subr.bf16.mxu1 %v13143_v8  ;;  %v23392_v8 = vld [vmem:[#allocation105_spill] sm:$0xff]  ;;  %15076 = vpow2.f32 %v23395_v2  ;;  %v23403_v2 = vand.u32 4294901760, %v23323_v19  ;;  %v19260_v21 = vpack.c.bf16 %v23410_v9, %v23408_v50  ;;  %v23423_v9 = vand.u32 4294901760, %v23377_v13  ;;  %v23424_v50 = vld [vmem:[#allocation132_spill] sm:$0xff] }
 0xa08   : > { %23414 = vst [vmem:[#allocation128_spill] sm:$0xff] %v19266_v35  ;;  %v19290_v35 = vpack.c.bf16 %v23428_v18, %v23427_v41  ;;  %v23441_v41 = vand.u32 4294901760, %v23385_v53  ;;  %v23442_v18 = vand.u32 4294901760, %v23362_v58 }
 0xa09   : > { %23411 = vst [vmem:[#allocation120_spill] sm:$0xff] %v19260_v21  ;;  %v23425_v21 = vand.u32 4294901760, %v23424_v50 }
 0xa0a   : > { %13146 = vmatpush1.bf16.msra.mxu1 %v13145_v52  ;;  %v23405_v52 = vand.u32 4294901760, %v23326_v5  ;;  %23429 = vst [vmem:[#allocation133_spill] sm:$0xff] %v19290_v35  ;;  %v19314_v35 = vpack.c.bf16 %v23442_v18, %v23441_v41  ;;  %v23455_v41 = vand.u32 4294901760, %v23366_v36  ;;  %v23456_v18 = vand.u32 4294901760, %v23390_v60 }
 0xa0b   : > { %13148 = vmatprep.subr.bf16.mxu1 %v13147_v14  ;;  %v23402_v14 = vand.u32 4294901760, %v23321_v10  ;;  %v19284_v4 = vpack.c.bf16 %v23425_v21, %v23423_v9  ;;  %v23438_v21 = vand.u32 4294901760, %v23383_v47  ;;  %v23439_v9 = vand.u32 4294901760, %v23384_v3 }
 0xa0c   : > { %v19254_v22 = vpack.c.bf16 %v23406_v26, %v23405_v52  ;;  %v23419_v26 = vand.u32 4294901760, %v23375_v37  ;;  %v23420_v52 = vld [vmem:[#allocation124_spill] sm:$0xff]  ;;  %23443 = vst [vmem:[#allocation72_spill] sm:$0xff] %v19314_v35  ;;  %v19338_v35 = vpack.c.bf16 %v23456_v18, %v23455_v41  ;;  %v23467_v41 = vand.u32 4294901760, %v23370_v57 }
 0xa0d   : > { %v19248_v40 = vpack.c.bf16 %v23403_v2, %v23402_v14  ;;  %v23415_v14 = vand.u32 4294901760, %v23373_v45  ;;  %v23416_v2 = vld [vmem:[#allocation130_spill] sm:$0xff]  ;;  %23426 = vst [vmem:[#allocation13_spill] sm:$0xff] %v19284_v4  ;;  %v19308_v4 = vpack.c.bf16 %v23439_v9, %v23438_v21  ;;  %v23452_v21 = vand.u32 4294901760, %v18679_v25 }
 0xa0e   : > { %23407 = vst [vmem:[#allocation122_spill] sm:$0xff] %v19254_v22  ;;  %v23421_v22 = vand.u32 4294901760, %v23420_v52  ;;  %13150 = vmatpush1.bf16.msra.mxu1 %v13149_v46  ;;  %v23435_v46 = vld [vmem:[#allocation20_spill] sm:$0xff]  ;;  %v23453_v9 = vand.u32 4294901760, %v18684_v44  ;;  %23457 = vst [vmem:[#allocation105_spill] sm:$0xff] %v19338_v35  ;;  %v23468_v18 = vand.u32 4294901760, %v23371_v51  ;;  %v23529_v57 = vpack.c.bf16 %v23323_v19, %v23321_v10 }
 0xa0f   : > { %23404 = vst [vmem:[#allocation90_spill] sm:$0xff] %v19248_v40  ;;  %v23417_v40 = vand.u32 4294901760, %v23416_v2  ;;  %13152 = vmatprep.subr.bf16.mxu1 %v13151_v28  ;;  %23440 = vst [vmem:[#allocation26_spill] sm:$0xff] %v19308_v4  ;;  %v23448_v28 = vand.u32 4294901760, %v23388_v12  ;;  %v23538_v19 = vld [vmem:[#allocation146_spill] sm:$0xff] }
 0xa10   : > { %v19278_v20 = vpack.c.bf16 %v23421_v22, %v23419_v26  ;;  %v23434_v22 = vand.u32 4294901760, %v23357_v59  ;;  %v23436_v26 = vand.u32 4294901760, %v23435_v46  ;;  %v19332_v4 = vpack.c.bf16 %v23453_v9, %v23452_v21 }
 0xa11   : > { %v19272_v5 = vpack.c.bf16 %v23417_v40, %v23415_v14  ;;  %v23430_v40 = vand.u32 4294901760, %v23381_v29  ;;  %v23431_v14 = vld [vmem:[#allocation73_spill] sm:$0xff]  ;;  %v23464_v21 = vand.u32 4294901760, %v18710_v62  ;;  %v23465_v9 = vand.u32 4294901760, %v18717_v42 }
 0xa12   : > { %23422 = vst [vmem:[#allocation125_spill] sm:$0xff] %v19278_v20  ;;  %v19302_v20 = vpack.c.bf16 %v23436_v26, %v23434_v22  ;;  %v23449_v22 = vld [vmem:[#allocation9_spill] sm:$0xff]  ;;  %23454 = vst [vmem:[#allocation70_spill] sm:$0xff] %v19332_v4  ;;  %v19362_v35 = vpack.c.bf16 %v23468_v18, %v23467_v41  ;;  %13154 = vmatpush1.bf16.msra.mxu1 %v13153_v0  ;;  %v23479_v41 = vand.u32 4294901760, %v18770_v16  ;;  %v23480_v18 = vand.u32 4294901760, %v18773_v23  ;;  %v23510_v16 = vld [vmem:[#allocation94_spill] sm:$0xff] }
 0xa13   : > { %23418 = vst [vmem:[#allocation131_spill] sm:$0xff] %v19272_v5  ;;  %v23432_v5 = vand.u32 4294901760, %v23431_v14  ;;  %v23450_v26 = vand.u32 4294901760, %v23449_v22  ;;  %v19356_v4 = vpack.c.bf16 %v23465_v9, %v23464_v21  ;;  %v23476_v21 = vand.u32 4294901760, %v18759_v31  ;;  %v23512_v31 = vld [vmem:[#allocation8_spill] sm:$0xff] }
 0xa14   : > { %23437 = vst [vmem:[#allocation47_spill] sm:$0xff] %v19302_v20  ;;  %23469 = vst [vmem:[#allocation124_spill] sm:$0xff] %v19362_v35  ;;  %v23477_v9 = vand.u32 4294901760, %v18762_v49  ;;  %v19386_v35 = vpack.c.bf16 %v23480_v18, %v23479_v41  ;;  %v23486_v0 = vand.u32 4294901760, %v18804_v63  ;;  %v23493_v41 = vand.u32 4294901760, %v18793_v43  ;;  %v23499_v63 = vld [vmem:[#allocation51_spill] sm:$0xff] }
 0xa15   : > { %v19296_v37 = vpack.c.bf16 %v23432_v5, %v23430_v40  ;;  %v23444_v5 = vand.u32 4294901760, %v23386_v55  ;;  %v23445_v40 = vld [vmem:[#allocation85_spill] sm:$0xff]  ;;  %v19326_v20 = vpack.c.bf16 %v23450_v26, %v23448_v28  ;;  %v23461_v28 = vand.u32 4294901760, %v23368_v56  ;;  %23466 = vst [vmem:[#allocation130_spill] sm:$0xff] %v19356_v4 }
 0xa16   : > { %v23462_v26 = vand.u32 4294901760, %v23369_v54  ;;  %v19380_v4 = vpack.c.bf16 %v23477_v9, %v23476_v21  ;;  %23481 = vst [vmem:[#allocation85_spill] sm:$0xff] %v19386_v35  ;;  %v23489_v21 = vld [vmem:[#allocation48_spill] sm:$0xff]  ;;  %v23495_v35 = vand.u32 4294901760, %v18840_v11 }
 0xa17   : > { %23433 = vst [vmem:[#allocation84_spill] sm:$0xff] %v19296_v37  ;;  %v23446_v37 = vand.u32 4294901760, %v23445_v40  ;;  %23451 = vst [vmem:[#allocation76_spill] sm:$0xff] %v19326_v20  ;;  %v23490_v9 = vld [vmem:[#allocation44_spill] sm:$0xff] }
 0xa18   : > { %v19350_v20 = vpack.c.bf16 %v23462_v26, %v23461_v28  ;;  %v23473_v28 = vand.u32 4294901760, %v18733_v15  ;;  %v23474_v26 = vand.u32 4294901760, %v18742_v33  ;;  %23478 = vst [vmem:[#allocation20_spill] sm:$0xff] %v19380_v4  ;;  %v23491_v4 = vpack.c.bf16 %v23489_v21, %v23490_v9  ;;  %v23502_v21 = vld [vmem:[#allocation87_spill] sm:$0xff] }
 0xa19   : > { %v19320_v59 = vpack.c.bf16 %v23446_v37, %v23444_v5  ;;  %v23458_v37 = vand.u32 4294901760, %v23391_v34  ;;  %v23459_v5 = vand.u32 4294901760, %v23392_v8  ;;  %v23503_v9 = vld [vmem:[#allocation79_spill] sm:$0xff] }
 0xa1a   : > { %23463 = vst [vmem:[#allocation127_spill] sm:$0xff] %v19350_v20  ;;  %v19374_v20 = vpack.c.bf16 %v23474_v26, %v23473_v28  ;;  %v23487_v28 = vand.u32 4294901760, %v18812_v17  ;;  %13156 = vmatprep.subr.bf16.mxu1 %v23491_v4  ;;  %v8536_v17 = vand.u32 4294901760, %v23499_v63  ;;  %v8542_v4 = vand.u32 4294901760, %v23502_v21 }
 0xa1b   : > { %23447 = vst [vmem:[#allocation43_spill] sm:$0xff] %v19320_v59  ;;  %v19344_v59 = vpack.c.bf16 %v23459_v5, %v23458_v37  ;;  %v23470_v37 = vand.u32 4294901760, %v23393_v6  ;;  %v23471_v5 = vand.u32 4294901760, %v23394_v27 }
 0xa1c   : > { %23475 = vst [vmem:[#allocation73_spill] sm:$0xff] %v19374_v20  ;;  %v19398_v26 = vpack.c.bf16 %v23487_v28, %v23486_v0  ;;  %v23492_v20 = vand.u32 4294901760, %v18823_v39  ;;  %v23500_v0 = vld [vmem:[#allocation55_spill] sm:$0xff]  ;;  %v8544_v39 = vand.u32 4294901760, %v23503_v9 }
 0xa1d   : > { %23460 = vst [vmem:[#allocation148_spill] sm:$0xff] %v19344_v59  ;;  %v19368_v59 = vpack.c.bf16 %v23471_v5, %v23470_v37  ;;  %v23482_v37 = vand.u32 4294901760, %v18781_v61  ;;  %v23483_v5 = vld [vmem:[#allocation135_spill] sm:$0xff]  ;;  %v8540_v28 = vand.u32 4294901760, %v23500_v0 }
 0xa1e   : > { %23488 = vst [vmem:[#allocation163_spill] sm:$0xff] %v19398_v26  ;;  %v19407_v18 = vpack.c.bf16 %v23493_v41, %v23492_v20  ;;  %v23501_v26 = vld [vmem:[#allocation75_spill] sm:$0xff]  ;;  %v19421_v20 = vpop.eup %15076  ;;  %v23505_v41 = vld [vmem:[#allocation102_spill] sm:$0xff] }
 0xa1f   : > { %23472 = vst [vmem:[#allocation132_spill] sm:$0xff] %v19368_v59  ;;  %v23484_v59 = vand.u32 4294901760, %v23483_v5  ;;  %v8538_v61 = vand.u32 4294901760, %v23501_v26  ;;  %v23504_v5 = vld [vmem:[#allocation80_spill] sm:$0xff]  ;;  %7784 = vmatmul.mubr.f32.vlgmr.msra.gmra.mrb[64].mxu1 %v23505_v41 }
 0xa20   : > { %23494 = vst [vmem:[#allocation164_spill] sm:$0xff] %v19407_v18  ;;  %v8548_v43 = vand.u32 4294901760, %v23504_v5  ;;  %v19424_v18 = vpack.c.bf16 %v8540_v28, %v8536_v17  ;;  %7984 = vmatprep.mubr.f32.mxu1 %v23512_v31 }
 0xa21   : > { %v19392_v15 = vpack.c.bf16 %v23484_v59, %v23482_v37  ;;  %v23496_v59 = vld [vmem:[#allocation145_spill] sm:$0xff]  ;;  %v19437_v49 = vpack.c.bf16 %v8542_v4, %v8538_v61  ;;  %v19440_v41 = vsub.f32 %v23501_v26, %v8538_v61 }
 0xa22   : > { %v23497_v37 = vand.u32 4294901760, %v23496_v59  ;;  %23506 = vst [vmem:[#allocation51_spill] sm:$0xff] %v19424_v18  ;;  %v23509_v59 = vld [vmem:[#allocation106_spill] sm:$0xff]  ;;  %v19443_v18 = vsub.f32 %v23502_v21, %v8542_v4  ;;  %v19449_v33 = vpack.c.bf16 %v8548_v43, %v8544_v39  ;;  %v23519_v4 = vld [vmem:[#allocation137_spill] sm:$0xff] }
 0xa23   : > { %23485 = vst [vmem:[#allocation9_spill] sm:$0xff] %v19392_v15  ;;  %v23511_v23 = vpack.c.bf16 %v23509_v59, %v23510_v16  ;;  %23513 = vst [vmem:[#allocation75_spill] sm:$0xff] %v19437_v49  ;;  %v19455_v59 = vsub.f32 %v23504_v5, %v8548_v43  ;;  %v8552_v49 = vand.u32 4294901760, %v23519_v4  ;;  %v23522_v16 = vld [vmem:[#allocation15_spill] sm:$0xff]  ;;  %v23524_v43 = vld [vmem:[#allocation52_spill] sm:$0xff] }
 0xa24   : > { %v19413_v15 = vpack.c.bf16 %v23497_v37, %v23495_v35  ;;  %v19427_v35 = vsub.f32 %v23499_v63, %v8536_v17  ;;  %v19430_v37 = vsub.f32 %v23500_v0, %v8540_v28  ;;  %v23514_v63 = vld [vmem:[#allocation99_spill] sm:$0xff]  ;;  %v23515_v0 = vld [vmem:[#allocation42_spill] sm:$0xff]  ;;  %23517 = vst [vmem:[#allocation87_spill] sm:$0xff] %v19449_v33  ;;  %v8564_v5 = vand.u32 4294901760, %v23524_v43 }
 0xa25   : > { %13158 = vmatpush1.bf16.msra.mxu1 %v23511_v23  ;;  %v8550_v17 = vand.u32 4294901760, %v23514_v63  ;;  %v23516_v28 = vpack.c.bf16 %v23308_v7, %v23515_v0  ;;  %v19452_v23 = vsub.f32 %v23503_v9, %v8544_v39  ;;  %v23520_v7 = vld [vmem:[#allocation141_spill] sm:$0xff]  ;;  %v8558_v39 = vand.u32 4294901760, %v23522_v16 }
 0xa26   : > { %23498 = vst [vmem:[#allocation165_spill] sm:$0xff] %v19413_v15  ;;  %23507 = vst [vmem:[#allocation55_spill] sm:$0xff] %v19427_v35  ;;  %v23508_v15 = vld [vmem:[#allocation110_spill] sm:$0xff]  ;;  %v8556_v0 = vand.u32 4294901760, %v23520_v7  ;;  %v23523_v9 = vld [vmem:[#allocation97_spill] sm:$0xff] }
 0xa27   : > { %v8546_v11 = vand.u32 4294901760, %v23508_v15  ;;  %13160 = vmatprep.subr.bf16.mxu1 %v23516_v28  ;;  %v19463_v21 = vsub.f32 %v23514_v63, %v8550_v17  ;;  %v23521_v28 = vld [vmem:[#allocation10_spill] sm:$0xff]  ;;  %v8560_v31 = vand.u32 4294901760, %v23523_v9  ;;  %v19477_v63 = vsub.f32 %v23519_v4, %v8552_v49 }
 0xa28   : > { %v8554_v33 = vand.u32 4294901760, %v23521_v28  ;;  %v19500_v4 = vsub.f32 %v23524_v43, %v8564_v5 }
 0xa29   : > { %v19458_v61 = vsub.f32 %v23508_v15, %v8546_v11  ;;  %v19460_v26 = vpack.c.bf16 %v8550_v17, %v8546_v11  ;;  %v23525_v15 = vld [vmem:[#allocation103_spill] sm:$0xff]  ;;  %v19474_v11 = vpack.c.bf16 %v8556_v0, %v8552_v49  ;;  %v19480_v17 = vsub.f32 %v23520_v7, %v8556_v0 }
 0xa2a   : > { %v23526_v6 = vpack.c.bf16 %v23318_v1, %v23525_v15  ;;  %v19486_v51 = vpack.c.bf16 %v8558_v39, %v8554_v33  ;;  %v19489_v62 = vsub.f32 %v23521_v28, %v8554_v33  ;;  %v19492_v1 = vsub.f32 %v23522_v16, %v8558_v39  ;;  %23535 = vst [vmem:[#allocation10_spill] sm:$0xff] %v19500_v4  ;;  %v23536_v7 = vld [vmem:[#allocation27_spill] sm:$0xff]  ;;  %v23540_v15 = vld [vmem:[#allocation24_spill] sm:$0xff] }
 0xa2b   : > { %23518 = vst [vmem:[#allocation79_spill] sm:$0xff] %v19460_v26  ;;  %23527 = vst [vmem:[#allocation80_spill] sm:$0xff] %v19474_v11  ;;  %v23528_v26 = vld [vmem:[#allocation17_spill] sm:$0xff]  ;;  %v19497_v49 = vsub.f32 %v23523_v9, %v8560_v31  ;;  %v8566_v0 = vand.u32 4294901760, %v23536_v7  ;;  %v23539_v33 = vld [vmem:[#allocation147_spill] sm:$0xff]  ;;  %v8570_v16 = vand.u32 4294901760, %v23540_v15 }
 0xa2c   : > { %13162 = vmatpush1.bf16.msra.mxu1 %v23526_v6  ;;  %v8562_v27 = vand.u32 4294901760, %v23528_v26  ;;  %23530 = vst [vmem:[#allocation110_spill] sm:$0xff] %v19486_v51  ;;  %23531 = vst [vmem:[#allocation99_spill] sm:$0xff] %v19489_v62  ;;  %v19494_v6 = vpack.c.bf16 %v8564_v5, %v8560_v31  ;;  %v8572_v28 = vand.u32 4294901760, %v23539_v33  ;;  %v23541_v39 = vld [vmem:[#allocation31_spill] sm:$0xff]  ;;  %v23546_v5 = vld [vmem:[#allocation46_spill] sm:$0xff] }
 0xa2d   : > { %13164 = vmatprep.subr.bf16.mxu1 %v23529_v57  ;;  %23532 = vst [vmem:[#allocation42_spill] sm:$0xff] %v19492_v1  ;;  %23534 = vst [vmem:[#allocation141_spill] sm:$0xff] %v19497_v49  ;;  %v8568_v57 = vand.u32 4294901760, %v23538_v19  ;;  %v8574_v51 = vand.u32 4294901760, %v23541_v39  ;;  %v19516_v43 = vsub.f32 %v23536_v7, %v8566_v0  ;;  %v23547_v11 = vld [vmem:[#allocation149_spill] sm:$0xff]  ;;  %v23548_v4 = vld [vmem:[#allocation64_spill] sm:$0xff] }
 0xa2e   : > { %23533 = vst [vmem:[#allocation137_spill] sm:$0xff] %v19494_v6  ;;  %v19504_v10 = vsub.f32 %v23528_v26, %v8562_v27  ;;  %v23542_v6 = vld [vmem:[#allocation114_spill] sm:$0xff]  ;;  %v19513_v9 = vpack.c.bf16 %v8566_v0, %v8562_v27  ;;  %v8576_v26 = vand.u32 4294901760, %v23546_v5  ;;  %v23549_v49 = vpack.c.bf16 %v23409_v48, %v23548_v4  ;;  %v23558_v4 = vld [vmem:[#allocation35_spill] sm:$0xff] }
 0xa2f   : > { %v23543_v31 = vpack.c.bf16 %v23327_v32, %v23542_v6  ;;  %23545 = vst [vmem:[#allocation52_spill] sm:$0xff] %v19516_v43  ;;  %v19523_v1 = vpack.c.bf16 %v8572_v28, %v8568_v57  ;;  %v19526_v62 = vsub.f32 %v23538_v19, %v8568_v57  ;;  %v19529_v32 = vsub.f32 %v23539_v33, %v8572_v28  ;;  %v23559_v57 = vld [vmem:[#allocation62_spill] sm:$0xff] }
 0xa30   : > { %23537 = vst [vmem:[#allocation15_spill] sm:$0xff] %v19504_v10  ;;  %23544 = vst [vmem:[#allocation97_spill] sm:$0xff] %v19513_v9  ;;  %v8580_v10 = vand.u32 4294901760, %v23547_v11  ;;  %v19531_v27 = vpack.c.bf16 %v8574_v51, %v8570_v16  ;;  %v19534_v6 = vsub.f32 %v23540_v15, %v8570_v16  ;;  %v19537_v7 = vsub.f32 %v23541_v39, %v8574_v51  ;;  %v23560_v28 = vld [vmem:[#allocation150_spill] sm:$0xff]  ;;  %v23561_v15 = vld [vmem:[#allocation119_spill] sm:$0xff] }
 0xa31   : > { %13166 = vmatpush1.bf16.msra.mxu1 %v23543_v31  ;;  %23550 = vst [vmem:[#allocation103_spill] sm:$0xff] %v19523_v1  ;;  %23551 = vst [vmem:[#allocation17_spill] sm:$0xff] %v19526_v62  ;;  %v19542_v48 = vsub.f32 %v23546_v5, %v8576_v26  ;;  %v8578_v19 = vand.u32 4294901760, %v23558_v4  ;;  %v8582_v33 = vand.u32 4294901760, %v23559_v57  ;;  %v8584_v31 = vand.u32 4294901760, %v23560_v28  ;;  %v23563_v51 = vld [vmem:[#allocation111_spill] sm:$0xff] }
 0xa32   : > { %13168 = vmatprep.subr.bf16.mxu1 %v23549_v49  ;;  %23552 = vst [vmem:[#allocation27_spill] sm:$0xff] %v19531_v27  ;;  %23553 = vst [vmem:[#allocation146_spill] sm:$0xff] %v19534_v6  ;;  %v19539_v0 = vpack.c.bf16 %v8580_v10, %v8576_v26  ;;  %v19545_v49 = vsub.f32 %v23547_v11, %v8580_v10  ;;  %v23562_v16 = vpack.c.bf16 %v23372_v30, %v23561_v15  ;;  %v23564_v27 = vld [vmem:[#allocation66_spill] sm:$0xff]  ;;  %v23565_v1 = vld [vmem:[#allocation68_spill] sm:$0xff] }
 0xa33   : > { %23554 = vst [vmem:[#allocation147_spill] sm:$0xff] %v19537_v7  ;;  %23556 = vst [vmem:[#allocation31_spill] sm:$0xff] %v19542_v48  ;;  %v8588_v39 = vand.u32 4294901760, %v23563_v51  ;;  %v8590_v5 = vand.u32 4294901760, %v23565_v1  ;;  %v23566_v26 = vld [vmem:[#allocation151_spill] sm:$0xff]  ;;  %v23567_v11 = vpack.c.bf16 %v23416_v2, %v23373_v45  ;;  %v19560_v10 = vpack.c.bf16 %v8582_v33, %v8578_v19 }
 0xa34   : > { %23555 = vst [vmem:[#allocation24_spill] sm:$0xff] %v19539_v0  ;;  %23557 = vst [vmem:[#allocation114_spill] sm:$0xff] %v19545_v49  ;;  %v8586_v0 = vand.u32 4294901760, %v23564_v27  ;;  %v8592_v9 = vand.u32 4294901760, %v23566_v26  ;;  %v19563_v49 = vsub.f32 %v23558_v4, %v8578_v19  ;;  %v19566_v30 = vsub.f32 %v23559_v57, %v8582_v33  ;;  %v23577_v4 = vld [vmem:[#allocation57_spill] sm:$0xff]  ;;  %v23579_v33 = vld [vmem:[#allocation96_spill] sm:$0xff] }
 0xa35   : > { %13170 = vmatpush1.bf16.msra.mxu1 %v23562_v16  ;;  %23568 = vst [vmem:[#allocation46_spill] sm:$0xff] %v19560_v10  ;;  %v19569_v15 = vsub.f32 %v23560_v28, %v8584_v31  ;;  %v19571_v16 = vpack.c.bf16 %v8588_v39, %v8584_v31  ;;  %v19574_v48 = vsub.f32 %v23563_v51, %v8588_v39  ;;  %v8596_v19 = vand.u32 4294901760, %v23577_v4  ;;  %v23580_v31 = vld [vmem:[#allocation123_spill] sm:$0xff]  ;;  %v23582_v51 = vld [vmem:[#allocation98_spill] sm:$0xff] }
 0xa36   : > { %13172 = vmatprep.subr.bf16.mxu1 %v23567_v11  ;;  %23569 = vst [vmem:[#allocation149_spill] sm:$0xff] %v19563_v49  ;;  %23570 = vst [vmem:[#allocation64_spill] sm:$0xff] %v19566_v30  ;;  %v19576_v7 = vpack.c.bf16 %v8590_v5, %v8586_v0  ;;  %v19579_v45 = vsub.f32 %v23564_v27, %v8586_v0  ;;  %v19582_v2 = vsub.f32 %v23565_v1, %v8590_v5  ;;  %v23584_v27 = vld [vmem:[#allocation152_spill] sm:$0xff]  ;;  %v23585_v10 = vld [vmem:[#allocation107_spill] sm:$0xff] }
 0xa37   : > { %23571 = vst [vmem:[#allocation35_spill] sm:$0xff] %v19569_v15  ;;  %23572 = vst [vmem:[#allocation62_spill] sm:$0xff] %v19571_v16  ;;  %v19586_v57 = vsub.f32 %v23566_v26, %v8592_v9  ;;  %v8594_v28 = vand.u32 4294901760, %v23579_v33  ;;  %v23581_v11 = vpack.c.bf16 %v23420_v52, %v23580_v31  ;;  %v8598_v39 = vand.u32 4294901760, %v23582_v51  ;;  %v23590_v31 = vld [vmem:[#allocation19_spill] sm:$0xff] }
 0xa38   : > { %23573 = vst [vmem:[#allocation150_spill] sm:$0xff] %v19574_v48  ;;  %23574 = vst [vmem:[#allocation119_spill] sm:$0xff] %v19576_v7  ;;  %v23583_v7 = vld [vmem:[#allocation60_spill] sm:$0xff]  ;;  %v8604_v0 = vand.u32 4294901760, %v23584_v27  ;;  %v8602_v1 = vand.u32 4294901760, %v23585_v10  ;;  %v23586_v5 = vpack.c.bf16 %v23424_v50, %v23377_v13  ;;  %v19599_v26 = vpack.c.bf16 %v8596_v19, %v8592_v9 }
 0xa39   : > { %23575 = vst [vmem:[#allocation111_spill] sm:$0xff] %v19579_v45  ;;  %23576 = vst [vmem:[#allocation66_spill] sm:$0xff] %v19582_v2  ;;  %13174 = vmatpush1.bf16.msra.mxu1 %v23581_v11  ;;  %v8600_v16 = vand.u32 4294901760, %v23583_v7  ;;  %v19605_v52 = vsub.f32 %v23579_v33, %v8594_v28  ;;  %v8606_v11 = vand.u32 4294901760, %v23590_v31  ;;  %v19608_v2 = vpack.c.bf16 %v8598_v39, %v8594_v28  ;;  %v23599_v28 = vld [vmem:[#allocation115_spill] sm:$0xff] }
 0xa3a   : > { %23578 = vst [vmem:[#allocation68_spill] sm:$0xff] %v19586_v57  ;;  %13176 = vmatprep.subr.bf16.mxu1 %v23586_v5  ;;  %23587 = vst [vmem:[#allocation151_spill] sm:$0xff] %v19599_v26  ;;  %v19602_v57 = vsub.f32 %v23577_v4, %v8596_v19  ;;  %v19611_v45 = vsub.f32 %v23582_v51, %v8598_v39  ;;  %v19619_v50 = vsub.f32 %v23584_v27, %v8604_v0  ;;  %v23600_v39 = vld [vmem:[#allocation153_spill] sm:$0xff]  ;;  %v23602_v27 = vld [vmem:[#allocation39_spill] sm:$0xff] }
 0xa3b   : > { %23589 = vst [vmem:[#allocation96_spill] sm:$0xff] %v19605_v52  ;;  %23591 = vst [vmem:[#allocation123_spill] sm:$0xff] %v19608_v2  ;;  %v19613_v48 = vpack.c.bf16 %v8604_v0, %v8600_v16  ;;  %v19616_v13 = vsub.f32 %v23583_v7, %v8600_v16  ;;  %v19621_v9 = vpack.c.bf16 %v8606_v11, %v8602_v1  ;;  %v8608_v51 = vand.u32 4294901760, %v23599_v28  ;;  %v23601_v16 = vld [vmem:[#allocation32_spill] sm:$0xff] }
 0xa3c   : > { %23588 = vst [vmem:[#allocation57_spill] sm:$0xff] %v19602_v57  ;;  %23592 = vst [vmem:[#allocation98_spill] sm:$0xff] %v19611_v45  ;;  %v19624_v4 = vsub.f32 %v23585_v10, %v8602_v1  ;;  %v19627_v19 = vsub.f32 %v23590_v31, %v8606_v11  ;;  %v23598_v33 = vpack.c.bf16 %v23380_v24, %v23379_v38  ;;  %v8612_v7 = vand.u32 4294901760, %v23600_v39  ;;  %v23604_v10 = vld [vmem:[#allocation154_spill] sm:$0xff]  ;;  %v23605_v31 = vld [vmem:[#allocation23_spill] sm:$0xff] }
 0xa3d   : > { %23593 = vst [vmem:[#allocation60_spill] sm:$0xff] %v19613_v48  ;;  %23594 = vst [vmem:[#allocation152_spill] sm:$0xff] %v19619_v50  ;;  %v8610_v5 = vand.u32 4294901760, %v23601_v16  ;;  %v8614_v0 = vand.u32 4294901760, %v23602_v27  ;;  %v8616_v1 = vand.u32 4294901760, %v23604_v10  ;;  %v8620_v11 = vand.u32 4294901760, %v23605_v31 }
 0xa3e   : > { %23595 = vst [vmem:[#allocation107_spill] sm:$0xff] %v19621_v9  ;;  %23596 = vst [vmem:[#allocation19_spill] sm:$0xff] %v19624_v4  ;;  %13178 = vmatpush1.bf16.msra.mxu1 %v23598_v33  ;;  %v23603_v9 = vpack.c.bf16 %v23431_v14, %v23381_v29  ;;  %v23606_v48 = vld [vmem:[#allocation41_spill] sm:$0xff]  ;;  %v19643_v33 = vpack.c.bf16 %v8612_v7, %v8608_v51  ;;  %v19646_v26 = vsub.f32 %v23599_v28, %v8608_v51 }
 0xa3f   : > { %23597 = vst [vmem:[#allocation166_spill] sm:$0xff] %v19627_v19  ;;  %v8618_v2 = vand.u32 4294901760, %v23606_v48  ;;  %v23607_v38 = vld [vmem:[#allocation45_spill] sm:$0xff]  ;;  %v19649_v19 = vsub.f32 %v23600_v39, %v8612_v7  ;;  %v19651_v4 = vpack.c.bf16 %v8614_v0, %v8610_v5  ;;  %v19654_v29 = vsub.f32 %v23601_v16, %v8610_v5 }
 0xa40   : > { %13180 = vmatprep.subr.bf16.mxu1 %v23603_v9  ;;  %v8622_v24 = vand.u32 4294901760, %v23607_v38  ;;  %23608 = vst [vmem:[#allocation115_spill] sm:$0xff] %v19643_v33  ;;  %23609 = vst [vmem:[#allocation153_spill] sm:$0xff] %v19646_v26  ;;  %v19657_v14 = vsub.f32 %v23602_v27, %v8614_v0  ;;  %v19659_v9 = vpack.c.bf16 %v8620_v11, %v8616_v1  ;;  %v23616_v33 = vld [vmem:[#allocation16_spill] sm:$0xff]  ;;  %v23623_v27 = vld [vmem:[#allocation155_spill] sm:$0xff] }
 0xa41   : > { %23610 = vst [vmem:[#allocation32_spill] sm:$0xff] %v19649_v19  ;;  %23611 = vst [vmem:[#allocation39_spill] sm:$0xff] %v19651_v4  ;;  %v19662_v50 = vsub.f32 %v23604_v10, %v8616_v1  ;;  %v23617_v28 = vpack.c.bf16 %v23435_v46, %v23616_v33  ;;  %v19668_v51 = vsub.f32 %v23605_v31, %v8620_v11  ;;  %v8624_v0 = vand.u32 4294901760, %v23623_v27  ;;  %v23624_v10 = vld [vmem:[#allocation156_spill] sm:$0xff]  ;;  %v23625_v1 = vld [vmem:[#allocation59_spill] sm:$0xff] }
 0xa42   : > { %23612 = vst [vmem:[#allocation154_spill] sm:$0xff] %v19654_v29  ;;  %23613 = vst [vmem:[#allocation23_spill] sm:$0xff] %v19657_v14  ;;  %v19670_v39 = vpack.c.bf16 %v8622_v24, %v8618_v2  ;;  %v19673_v7 = vsub.f32 %v23606_v48, %v8618_v2  ;;  %v19676_v16 = vsub.f32 %v23607_v38, %v8622_v24  ;;  %v8628_v46 = vand.u32 4294901760, %v23624_v10  ;;  %v23626_v31 = vld [vmem:[#allocation56_spill] sm:$0xff]  ;;  %v23629_v2 = vld [vmem:[#allocation71_spill] sm:$0xff] }
 0xa43   : > { %23614 = vst [vmem:[#allocation41_spill] sm:$0xff] %v19659_v9  ;;  %23615 = vst [vmem:[#allocation45_spill] sm:$0xff] %v19662_v50  ;;  %13182 = vmatpush1.bf16.msra.mxu1 %v23617_v28  ;;  %v23622_v5 = vpack.c.bf16 %v23384_v3, %v23383_v47  ;;  %v8626_v33 = vand.u32 4294901760, %v23625_v1  ;;  %v8630_v11 = vand.u32 4294901760, %v23626_v31  ;;  %v23627_v28 = vld [vmem:[#allocation157_spill] sm:$0xff]  ;;  %v23628_v9 = vld [vmem:[#allocation158_spill] sm:$0xff]  ;;  %v19692_v3 = vsub.f32 %v23623_v27, %v8624_v0 }
 0xa44   : > { %23618 = vst [vmem:[#allocation16_spill] sm:$0xff] %v19668_v51  ;;  %23619 = vst [vmem:[#allocation167_spill] sm:$0xff] %v19670_v39  ;;  %v8632_v39 = vand.u32 4294901760, %v23627_v28  ;;  %v8636_v48 = vand.u32 4294901760, %v23628_v9  ;;  %v8634_v4 = vand.u32 4294901760, %v23629_v2  ;;  %v23630_v38 = vld [vmem:[#allocation83_spill] sm:$0xff]  ;;  %v19695_v47 = vsub.f32 %v23624_v10, %v8628_v46 }
 0xa45   : > { %23620 = vst [vmem:[#allocation168_spill] sm:$0xff] %v19673_v7  ;;  %23621 = vst [vmem:[#allocation169_spill] sm:$0xff] %v19676_v16  ;;  %13184 = vmatprep.subr.bf16.mxu1 %v23622_v5  ;;  %v8638_v24 = vand.u32 4294901760, %v23630_v38  ;;  %v19689_v16 = vpack.c.bf16 %v8628_v46, %v8624_v0  ;;  %v19697_v5 = vpack.c.bf16 %v8630_v11, %v8626_v33  ;;  %v23643_v46 = vld [vmem:[#allocation159_spill] sm:$0xff] }
 0xa46   : > { %23632 = vst [vmem:[#allocation156_spill] sm:$0xff] %v19692_v3  ;;  %23633 = vst [vmem:[#allocation59_spill] sm:$0xff] %v19695_v47  ;;  %v23635_v7 = vpack.c.bf16 %v23362_v58, %v23385_v53  ;;  %v19703_v51 = vsub.f32 %v23625_v1, %v8626_v33  ;;  %v19706_v50 = vsub.f32 %v23626_v31, %v8630_v11  ;;  %v8640_v1 = vand.u32 4294901760, %v23643_v46  ;;  %v23644_v33 = vld [vmem:[#allocation160_spill] sm:$0xff]  ;;  %v23645_v31 = vld [vmem:[#allocation81_spill] sm:$0xff] }
 0xa47   : > { %23631 = vst [vmem:[#allocation155_spill] sm:$0xff] %v19689_v16  ;;  %23634 = vst [vmem:[#allocation56_spill] sm:$0xff] %v19697_v5  ;;  %v19708_v14 = vpack.c.bf16 %v8636_v48, %v8632_v39  ;;  %v19711_v27 = vsub.f32 %v23627_v28, %v8632_v39  ;;  %v23638_v0 = vpack.c.bf16 %v23445_v40, %v23386_v55  ;;  %v8644_v39 = vand.u32 4294901760, %v23644_v33  ;;  %v23646_v28 = vld [vmem:[#allocation92_spill] sm:$0xff]  ;;  %v23647_v40 = vld [vmem:[#allocation161_spill] sm:$0xff] }
 0xa48   : > { %13186 = vmatpush1.bf16.msra.mxu1 %v23635_v7  ;;  %23636 = vst [vmem:[#allocation157_spill] sm:$0xff] %v19703_v51  ;;  %v19717_v10 = vsub.f32 %v23628_v9, %v8636_v48  ;;  %v19719_v58 = vpack.c.bf16 %v8638_v24, %v8634_v4  ;;  %v19722_v53 = vsub.f32 %v23629_v2, %v8634_v4  ;;  %v8642_v11 = vand.u32 4294901760, %v23645_v31  ;;  %v23648_v9 = vld [vmem:[#allocation162_spill] sm:$0xff]  ;;  %v23650_v5 = vld [vmem:[#allocation69_spill] sm:$0xff] }
 0xa49   : > { %23637 = vst [vmem:[#allocation158_spill] sm:$0xff] %v19708_v14  ;;  %13188 = vmatprep.subr.bf16.mxu1 %v23638_v0  ;;  %v19725_v7 = vsub.f32 %v23630_v38, %v8638_v24  ;;  %v8646_v55 = vand.u32 4294901760, %v23646_v28  ;;  %v8648_v0 = vand.u32 4294901760, %v23647_v40  ;;  %v8652_v48 = vand.u32 4294901760, %v23648_v9  ;;  %v23649_v14 = vld [vmem:[#allocation21_spill] sm:$0xff] }
 0xa4a   : > { %23639 = vst [vmem:[#allocation71_spill] sm:$0xff] %v19717_v10  ;;  %23640 = vst [vmem:[#allocation83_spill] sm:$0xff] %v19719_v58  ;;  %v8650_v58 = vand.u32 4294901760, %v23649_v14  ;;  %v8654_v4 = vand.u32 4294901760, %v23650_v5  ;;  %v23651_v2 = vpack.c.bf16 %v23449_v22, %v23388_v12  ;;  %v19738_v38 = vpack.c.bf16 %v8644_v39, %v8640_v1 }
 0xa4b   : > { %23641 = vst [vmem:[#allocation170_spill] sm:$0xff] %v19722_v53  ;;  %23642 = vst [vmem:[#allocation171_spill] sm:$0xff] %v19725_v7  ;;  %v19741_v24 = vsub.f32 %v23643_v46, %v8640_v1  ;;  %v19744_v16 = vsub.f32 %v23644_v33, %v8644_v39  ;;  %v19746_v7 = vpack.c.bf16 %v8646_v55, %v8642_v11 }
 0xa4c   : > { %13190 = vmatpush1.bf16.msra.mxu1 %v23651_v2  ;;  %23652 = vst [vmem:[#allocation159_spill] sm:$0xff] %v19738_v38  ;;  %v23656_v53 = vpack.c.bf16 %v18684_v44, %v18679_v25  ;;  %v19752_v10 = vsub.f32 %v23645_v31, %v8642_v11  ;;  %v19755_v12 = vsub.f32 %v23646_v28, %v8646_v55  ;;  %v8656_v44 = vand.u32 4294901760, %v19421_v20  ;;  %v23666_v11 = vld [vmem:[#allocation77_spill] sm:$0xff]  ;;  %v23667_v55 = vld [vmem:[#allocation82_spill] sm:$0xff] }
 0xa4d   : > { %23653 = vst [vmem:[#allocation160_spill] sm:$0xff] %v19741_v24  ;;  %23654 = vst [vmem:[#allocation81_spill] sm:$0xff] %v19744_v16  ;;  %v19757_v22 = vpack.c.bf16 %v8652_v48, %v8648_v0  ;;  %v19760_v46 = vsub.f32 %v23647_v40, %v8648_v0  ;;  %v19763_v1 = vsub.f32 %v23648_v9, %v8652_v48  ;;  %v8658_v28 = vand.u32 4294901760, %v23666_v11 }
 0xa4e   : > { %23655 = vst [vmem:[#allocation92_spill] sm:$0xff] %v19746_v7  ;;  %13192 = vmatprep.subr.bf16.mxu1 %v23656_v53  ;;  %23657 = vst [vmem:[#allocation161_spill] sm:$0xff] %v19752_v10  ;;  %v19765_v33 = vpack.c.bf16 %v8654_v4, %v8650_v58  ;;  %v19768_v39 = vsub.f32 %v23649_v14, %v8650_v58  ;;  %v19771_v25 = vsub.f32 %v23650_v5, %v8654_v4  ;;  %v23665_v53 = vld [vmem:[#allocation93_spill] sm:$0xff]  ;;  %v23700_v7 = vld [vmem:[#allocation100_spill] sm:$0xff] }
 0xa4f   : > { %23658 = vst [vmem:[#allocation162_spill] sm:$0xff] %v19755_v12  ;;  %23659 = vst [vmem:[#allocation21_spill] sm:$0xff] %v19757_v22  ;;  %v8660_v31 = vand.u32 4294901760, %v23665_v53  ;;  %v8662_v40 = vand.u32 4294901760, %v23667_v55  ;;  %v23668_v0 = vpack.c.bf16 %v23390_v60, %v23366_v36  ;;  %v22262_v9 = vand.u32 4294901760, %v19427_v35  ;;  %v23688_v22 = vld [vmem:[#allocation5_spill] sm:$0xff] }
 0xa50   : > { %23660 = vst [vmem:[#allocation69_spill] sm:$0xff] %v19760_v46  ;;  %23661 = vst [vmem:[#allocation172_spill] sm:$0xff] %v19763_v1  ;;  %v22261_v14 = vand.u32 4294901760, %v19430_v37  ;;  %v22264_v5 = vand.u32 4294901760, %v19443_v18  ;;  %v23669_v48 = vpack.c.bf16 %v23392_v8, %v23391_v34  ;;  %v19790_v2 = vsub.f32 %v19421_v20, %v8656_v44 }
 0xa51   : > { %23662 = vst [vmem:[#allocation173_spill] sm:$0xff] %v19765_v33  ;;  %23663 = vst [vmem:[#allocation174_spill] sm:$0xff] %v19768_v39  ;;  %13194 = vmatpush1.bf16.msra.mxu1 %v23668_v0  ;;  %v19787_v4 = vpack.c.bf16 %v8660_v31, %v8656_v44  ;;  %v19793_v60 = vsub.f32 %v23665_v53, %v8660_v31  ;;  %v19795_v36 = vpack.c.bf16 %v8662_v40, %v8658_v28  ;;  %v23687_v33 = vld [vmem:[#allocation28_spill] sm:$0xff] }
 0xa52   : > { %23664 = vst [vmem:[#allocation175_spill] sm:$0xff] %v19771_v25  ;;  %13196 = vmatprep.subr.bf16.mxu1 %v23669_v48  ;;  %23671 = vst [vmem:[#allocation77_spill] sm:$0xff] %v19790_v2  ;;  %v19798_v0 = vsub.f32 %v23666_v11, %v8658_v28  ;;  %v19801_v58 = vsub.f32 %v23667_v55, %v8662_v40  ;;  %v8684_v34 = vsub.f32 %v19427_v35, %v22262_v9 }
 0xa53   : > { %23670 = vst [vmem:[#allocation93_spill] sm:$0xff] %v19787_v4  ;;  %23672 = vst [vmem:[#allocation82_spill] sm:$0xff] %v19793_v60  ;;  %v8696_v8 = vsub.f32 %v19430_v37, %v22261_v14  ;;  %v23676_v20 = vand.u32 4294901760, %v19440_v41  ;;  %v8702_v53 = vsub.f32 %v19443_v18, %v22264_v5  ;;  %v22266_v31 = vand.u32 4294901760, %v19452_v23 }
 0xa54   : > { %23673 = vst [vmem:[#allocation176_spill] sm:$0xff] %v19795_v36  ;;  %23674 = vst [vmem:[#allocation177_spill] sm:$0xff] %v19798_v0  ;;  %v23677_v28 = vpack.c.bf16 %v23369_v54, %v23368_v56  ;;  %v8685_v55 = vand.u32 4294901760, %v8684_v34  ;;  %v22267_v48 = vand.u32 4294901760, %v19458_v61  ;;  %v22268_v14 = vand.u32 4294901760, %v19463_v21 }
 0xa55   : > { %23675 = vst [vmem:[#allocation178_spill] sm:$0xff] %v19801_v58  ;;  %v8690_v44 = vsub.f32 %v19440_v41, %v23676_v20  ;;  %v8697_v40 = vand.u32 4294901760, %v8696_v8  ;;  %v23678_v20 = vld [vmem:[#allocation112_spill] sm:$0xff]  ;;  %v8703_v5 = vand.u32 4294901760, %v8702_v53  ;;  %v8708_v11 = vsub.f32 %v19452_v23, %v22266_v31 }
 0xa56   : > { %13198 = vmatpush1.bf16.msra.mxu1 %v23677_v28  ;;  %v23679_v9 = vpack.c.bf16 %v18717_v42, %v23678_v20  ;;  %v23680_v4 = vand.u32 4294901760, %v19455_v59  ;;  %v8714_v34 = vsub.f32 %v19458_v61, %v22267_v48  ;;  %v8726_v42 = vsub.f32 %v19463_v21, %v22268_v14  ;;  %v23683_v20 = vld [vmem:[#allocation38_spill] sm:$0xff] }
 0xa57   : > { %v8691_v36 = vand.u32 4294901760, %v8690_v44  ;;  %v19831_v54 = vpack.c.bf16 %v8697_v40, %v8685_v55  ;;  %v8709_v44 = vand.u32 4294901760, %v8708_v11  ;;  %v22272_v28 = vand.u32 4294901760, %v19480_v17 }
 0xa58   : > { %13200 = vmatprep.subr.bf16.mxu1 %v23679_v9  ;;  %v8720_v56 = vsub.f32 %v19455_v59, %v23680_v4  ;;  %v22271_v9 = vand.u32 4294901760, %v19477_v63  ;;  %v23684_v4 = vld [vmem:[#allocation40_spill] sm:$0xff]  ;;  %v8715_v40 = vand.u32 4294901760, %v8714_v34  ;;  %v8727_v31 = vand.u32 4294901760, %v8726_v42  ;;  %v23692_v34 = vld [vmem:[#allocation141_spill] sm:$0xff] }
 0xa59   : > { %23681 = vst [vmem:[#allocation112_spill] sm:$0xff] %v19831_v54  ;;  %v19840_v8 = vpack.c.bf16 %v8703_v5, %v8691_v36  ;;  %v23685_v55 = vpack.c.bf16 %v23683_v20, %v23684_v4  ;;  %v23686_v54 = vld [vmem:[#allocation99_spill] sm:$0xff]  ;;  %v23689_v5 = vpack.c.bf16 %v23687_v33, %v23688_v22  ;;  %v8744_v11 = vsub.f32 %v19480_v17, %v22272_v28 }
 0xa5a   : > { %v8721_v53 = vand.u32 4294901760, %v8720_v56  ;;  %v8732_v48 = vsub.f32 %v19477_v63, %v22271_v9  ;;  %v22273_v14 = vand.u32 4294901760, %v23686_v54  ;;  %v23691_v56 = vld [vmem:[#allocation42_spill] sm:$0xff]  ;;  %v22277_v42 = vand.u32 4294901760, %v23692_v34 }
 0xa5b   : > { %23682 = vst [vmem:[#allocation179_spill] sm:$0xff] %v19840_v8  ;;  %13202 = vmatpush1.bf16.msra.mxu1 %v23685_v55  ;;  %v22274_v20 = vand.u32 4294901760, %v23691_v56  ;;  %v19860_v4 = vpack.c.bf16 %v8727_v31, %v8715_v40  ;;  %v23694_v8 = vld [vmem:[#allocation10_spill] sm:$0xff]  ;;  %v8745_v33 = vand.u32 4294901760, %v8744_v11  ;;  %v23697_v40 = vld [vmem:[#allocation33_spill] sm:$0xff]  ;;  %v22280_v11 = vand.u32 4294901760, %v19516_v43 }
 0xa5c   : > { %13204 = vmatprep.subr.bf16.mxu1 %v23689_v5  ;;  %v19853_v36 = vpack.c.bf16 %v8721_v53, %v8709_v44  ;;  %v8733_v55 = vand.u32 4294901760, %v8732_v48  ;;  %v8738_v9 = vsub.f32 %v23686_v54, %v22273_v14  ;;  %v22279_v22 = vand.u32 4294901760, %v23694_v8  ;;  %v23695_v5 = vld [vmem:[#allocation15_spill] sm:$0xff]  ;;  %v23696_v31 = vld [vmem:[#allocation74_spill] sm:$0xff] }
 0xa5d   : > { %23693 = vst [vmem:[#allocation40_spill] sm:$0xff] %v19860_v4  ;;  %v8750_v44 = vsub.f32 %v23691_v56, %v22274_v20  ;;  %v8756_v53 = vsub.f32 %v23692_v34, %v22277_v42  ;;  %v23698_v48 = vpack.c.bf16 %v23696_v31, %v23697_v40  ;;  %v23699_v20 = vld [vmem:[#allocation78_spill] sm:$0xff]  ;;  %v23703_v31 = vand.u32 4294901760, %v23695_v5 }
 0xa5e   : > { %23690 = vst [vmem:[#allocation38_spill] sm:$0xff] %v19853_v36  ;;  %v8739_v4 = vand.u32 4294901760, %v8738_v9  ;;  %v8768_v14 = vsub.f32 %v23694_v8, %v22279_v22  ;;  %v22283_v36 = vand.u32 4294901760, %v19526_v62  ;;  %v23701_v38 = vpack.c.bf16 %v23699_v20, %v23700_v7 }
 0xa5f   : > { %13206 = vmatpush1.bf16.msra.mxu1 %v23698_v48  ;;  %v19884_v42 = vpack.c.bf16 %v8745_v33, %v8733_v55  ;;  %v8751_v28 = vand.u32 4294901760, %v8750_v44  ;;  %v8757_v34 = vand.u32 4294901760, %v8756_v53  ;;  %v8762_v9 = vsub.f32 %v23695_v5, %v23703_v31  ;;  %v23705_v33 = vld [vmem:[#allocation147_spill] sm:$0xff]  ;;  %v23707_v31 = vld [vmem:[#allocation49_spill] sm:$0xff] }
 0xa60   : > { %13208 = vmatprep.subr.bf16.mxu1 %v23701_v38  ;;  %v8769_v40 = vand.u32 4294901760, %v8768_v14  ;;  %v8774_v48 = vsub.f32 %v19516_v43, %v22280_v11  ;;  %v8780_v22 = vsub.f32 %v19526_v62, %v22283_v36  ;;  %v22286_v7 = vand.u32 4294901760, %v19529_v32  ;;  %v23706_v53 = vld [vmem:[#allocation63_spill] sm:$0xff] }
 0xa61   : > { %23702 = vst [vmem:[#allocation28_spill] sm:$0xff] %v19884_v42  ;;  %v19896_v38 = vpack.c.bf16 %v8751_v28, %v8739_v4  ;;  %v8763_v20 = vand.u32 4294901760, %v8762_v9  ;;  %v22287_v55 = vand.u32 4294901760, %v19534_v6  ;;  %v22288_v44 = vand.u32 4294901760, %v23705_v33  ;;  %v23710_v62 = vld [vmem:[#allocation135_spill] sm:$0xff] }
 0xa62   : > { %v23708_v14 = vpack.c.bf16 %v23706_v53, %v23707_v31  ;;  %v19903_v42 = vpack.c.bf16 %v8769_v40, %v8757_v34  ;;  %v8775_v11 = vand.u32 4294901760, %v8774_v48  ;;  %v8781_v43 = vand.u32 4294901760, %v8780_v22  ;;  %v23711_v28 = vld [vmem:[#allocation67_spill] sm:$0xff]  ;;  %v23714_v48 = vld [vmem:[#allocation114_spill] sm:$0xff] }
 0xa63   : > { %23704 = vst [vmem:[#allocation5_spill] sm:$0xff] %v19896_v38  ;;  %v8792_v36 = vsub.f32 %v19529_v32, %v22286_v7  ;;  %v23712_v4 = vpack.c.bf16 %v23710_v62, %v23711_v28  ;;  %v8786_v9 = vsub.f32 %v19534_v6, %v22287_v55  ;;  %v8798_v53 = vsub.f32 %v23705_v33, %v22288_v44  ;;  %v23713_v34 = vld [vmem:[#allocation31_spill] sm:$0xff]  ;;  %v23717_v38 = vld [vmem:[#allocation136_spill] sm:$0xff]  ;;  %v23805_v6 = vld [vmem:[#allocation157_spill] sm:$0xff] }
 0xa64   : > { %13210 = vmatpush1.bf16.msra.mxu1 %v23708_v14  ;;  %23709 = vst [vmem:[#allocation42_spill] sm:$0xff] %v19903_v42  ;;  %v22290_v40 = vand.u32 4294901760, %v23713_v34  ;;  %v22291_v22 = vand.u32 4294901760, %v23714_v48  ;;  %v19919_v31 = vpack.c.bf16 %v8775_v11, %v8763_v20  ;;  %v22292_v7 = vand.u32 4294901760, %v19563_v49  ;;  %v23716_v42 = vld [vmem:[#allocation139_spill] sm:$0xff] }
 0xa65   : > { %13212 = vmatprep.subr.bf16.mxu1 %v23712_v4  ;;  %v8793_v14 = vand.u32 4294901760, %v8792_v36  ;;  %v22295_v62 = vand.u32 4294901760, %v19566_v30  ;;  %v8787_v28 = vand.u32 4294901760, %v8786_v9  ;;  %v8799_v4 = vand.u32 4294901760, %v8798_v53  ;;  %v23720_v53 = vld [vmem:[#allocation108_spill] sm:$0xff] }
 0xa66   : > { %23715 = vst [vmem:[#allocation10_spill] sm:$0xff] %v19919_v31  ;;  %v8804_v55 = vsub.f32 %v23713_v34, %v22290_v40  ;;  %v8816_v44 = vsub.f32 %v23714_v48, %v22291_v22  ;;  %v23718_v33 = vpack.c.bf16 %v23716_v42, %v23717_v38  ;;  %v8810_v36 = vsub.f32 %v19563_v49, %v22292_v7  ;;  %v23721_v40 = vld [vmem:[#allocation142_spill] sm:$0xff]  ;;  %v23725_v49 = vld [vmem:[#allocation111_spill] sm:$0xff] }
 0xa67   : > { %v19932_v11 = vpack.c.bf16 %v8793_v14, %v8781_v43  ;;  %v8822_v20 = vsub.f32 %v19566_v30, %v22295_v62  ;;  %v22298_v9 = vand.u32 4294901760, %v19569_v15  ;;  %v23722_v31 = vpack.c.bf16 %v23720_v53, %v23721_v40  ;;  %v23724_v43 = vld [vmem:[#allocation150_spill] sm:$0xff]  ;;  %v23730_v53 = vld [vmem:[#allocation144_spill] sm:$0xff] }
 0xa68   : > { %13214 = vmatpush1.bf16.msra.mxu1 %v23718_v33  ;;  %v19944_v22 = vpack.c.bf16 %v8799_v4, %v8787_v28  ;;  %v8805_v42 = vand.u32 4294901760, %v8804_v55  ;;  %v8817_v38 = vand.u32 4294901760, %v8816_v44  ;;  %v22299_v33 = vand.u32 4294901760, %v23724_v43  ;;  %v23728_v55 = vld [vmem:[#allocation68_spill] sm:$0xff]  ;;  %v23729_v4 = vld [vmem:[#allocation145_spill] sm:$0xff] }
 0xa69   : > { %23719 = vst [vmem:[#allocation15_spill] sm:$0xff] %v19932_v11  ;;  %13216 = vmatprep.subr.bf16.mxu1 %v23722_v31  ;;  %v8811_v14 = vand.u32 4294901760, %v8810_v36  ;;  %v8823_v11 = vand.u32 4294901760, %v8822_v20  ;;  %v8828_v7 = vsub.f32 %v19569_v15, %v22298_v9  ;;  %v22300_v62 = vand.u32 4294901760, %v23725_v49  ;;  %v23727_v31 = vld [vmem:[#allocation66_spill] sm:$0xff]  ;;  %v23733_v9 = vld [vmem:[#allocation7_spill] sm:$0xff] }
 0xa6a   : > { %23723 = vst [vmem:[#allocation74_spill] sm:$0xff] %v19944_v22  ;;  %v19951_v30 = vpack.c.bf16 %v8817_v38, %v8805_v42  ;;  %v8840_v40 = vsub.f32 %v23724_v43, %v22299_v33  ;;  %v22301_v28 = vand.u32 4294901760, %v23727_v31  ;;  %v23731_v36 = vpack.c.bf16 %v23729_v4, %v23730_v53  ;;  %v23801_v43 = vld [vmem:[#allocation154_spill] sm:$0xff] }
 0xa6b   : > { %v19961_v20 = vpack.c.bf16 %v8823_v11, %v8811_v14  ;;  %v8829_v22 = vand.u32 4294901760, %v8828_v7  ;;  %v8834_v42 = vsub.f32 %v23725_v49, %v22300_v62  ;;  %v22303_v38 = vand.u32 4294901760, %v19602_v57 }
 0xa6c   : > { %23726 = vst [vmem:[#allocation33_spill] sm:$0xff] %v19951_v30  ;;  %13218 = vmatpush1.bf16.msra.mxu1 %v23731_v36  ;;  %v8841_v33 = vand.u32 4294901760, %v8840_v40  ;;  %v8846_v44 = vsub.f32 %v23727_v31, %v22301_v28  ;;  %v23734_v30 = vand.u32 4294901760, %v23728_v55  ;;  %v22304_v11 = vand.u32 4294901760, %v19605_v52  ;;  %v23735_v40 = vld [vmem:[#allocation12_spill] sm:$0xff] }
 0xa6d   : > { %23732 = vst [vmem:[#allocation78_spill] sm:$0xff] %v19961_v20  ;;  %13220 = vmatprep.subr.bf16.mxu1 %v23733_v9  ;;  %v8835_v7 = vand.u32 4294901760, %v8834_v42  ;;  %v8864_v14 = vsub.f32 %v19602_v57, %v22303_v38  ;;  %v22310_v53 = vand.u32 4294901760, %v19611_v45  ;;  %v23737_v9 = vld [vmem:[#allocation101_spill] sm:$0xff]  ;;  %v23738_v42 = vld [vmem:[#allocation8_spill] sm:$0xff] }
 0xa6e   : > { %v8852_v4 = vsub.f32 %v23728_v55, %v23734_v30  ;;  %v19981_v62 = vpack.c.bf16 %v8841_v33, %v8829_v22  ;;  %v8847_v28 = vand.u32 4294901760, %v8846_v44  ;;  %v8858_v30 = vsub.f32 %v19605_v52, %v22304_v11  ;;  %v23741_v33 = vld [vmem:[#allocation152_spill] sm:$0xff] }
 0xa6f   : > { %7987 = vmatmul.mubr.f32.vlgmr.msra.gmra.mrb[64].mxu1 %v23735_v40  ;;  %v23739_v55 = vand.u32 4294901760, %v23738_v42  ;;  %v8865_v38 = vand.u32 4294901760, %v8864_v14  ;;  %v8870_v36 = vsub.f32 %v19611_v45, %v22310_v53  ;;  %v23740_v40 = vand.u32 4294901760, %v19616_v13  ;;  %v23745_v42 = vld [vmem:[#allocation166_spill] sm:$0xff] }
 0xa70   : > { %23736 = vst [vmem:[#allocation100_spill] sm:$0xff] %v19981_v62  ;;  %v8853_v20 = vand.u32 4294901760, %v8852_v4  ;;  %13222 = vmatpush1.bf16.msra.mxu1 %v23737_v9  ;;  %v22311_v44 = vand.u32 4294901760, %v23741_v33  ;;  %v23742_v4 = vld [vmem:[#allocation53_spill] sm:$0xff]  ;;  %v19997_v62 = vpack.c.bf16 %v8847_v28, %v8835_v7  ;;  %v8859_v11 = vand.u32 4294901760, %v8858_v30  ;;  %v23744_v9 = vld [vmem:[#allocation19_spill] sm:$0xff] }
 0xa71   : > { %8124 = vmatprep.mubr.f32.mxu1 %v23739_v55  ;;  %v8876_v22 = vsub.f32 %v19616_v13, %v23740_v40  ;;  %13224 = vmatprep.subr.bf16.mxu1 %v23742_v4  ;;  %v22312_v52 = vand.u32 4294901760, %v23744_v9  ;;  %v22313_v55 = vand.u32 4294901760, %v23745_v42  ;;  %v8871_v57 = vand.u32 4294901760, %v8870_v36 }
 0xa72   : > { %23743 = vst [vmem:[#allocation63_spill] sm:$0xff] %v19997_v62  ;;  %v20001_v14 = vpack.c.bf16 %v8865_v38, %v8853_v20  ;;  %v8888_v53 = vsub.f32 %v23741_v33, %v22311_v44  ;;  %v22315_v7 = vand.u32 4294901760, %v19646_v26  ;;  %v22320_v30 = vand.u32 4294901760, %v19649_v19  ;;  %v23747_v20 = vld [vmem:[#allocation109_spill] sm:$0xff]  ;;  %v23749_v44 = vld [vmem:[#allocation23_spill] sm:$0xff]  ;;  %v23750_v62 = vld [vmem:[#allocation50_spill] sm:$0xff] }
 0xa73   : > { %v8877_v31 = vand.u32 4294901760, %v8876_v22  ;;  %v8882_v40 = vsub.f32 %v23744_v9, %v22312_v52  ;;  %v8894_v28 = vsub.f32 %v23745_v42, %v22313_v55  ;;  %v20015_v38 = vpack.c.bf16 %v8871_v57, %v8859_v11  ;;  %v23755_v9 = vld [vmem:[#allocation113_spill] sm:$0xff] }
 0xa74   : > { %23746 = vst [vmem:[#allocation49_spill] sm:$0xff] %v20001_v14  ;;  %13226 = vmatpush1.bf16.msra.mxu1 %v23747_v20  ;;  %v8889_v36 = vand.u32 4294901760, %v8888_v53  ;;  %v22319_v22 = vand.u32 4294901760, %v19654_v29  ;;  %v22323_v14 = vand.u32 4294901760, %v23749_v44  ;;  %v8900_v55 = vsub.f32 %v19646_v26, %v22315_v7  ;;  %v23752_v53 = vld [vmem:[#allocation45_spill] sm:$0xff] }
 0xa75   : > { %23748 = vst [vmem:[#allocation135_spill] sm:$0xff] %v20015_v38  ;;  %13228 = vmatprep.subr.bf16.mxu1 %v23750_v62  ;;  %v8883_v52 = vand.u32 4294901760, %v8882_v40  ;;  %v8895_v4 = vand.u32 4294901760, %v8894_v28  ;;  %v8912_v42 = vsub.f32 %v19649_v19, %v22320_v30  ;;  %v22324_v40 = vand.u32 4294901760, %v23752_v53  ;;  %v23754_v62 = vld [vmem:[#allocation16_spill] sm:$0xff]  ;;  %v23806_v19 = vld [vmem:[#allocation65_spill] sm:$0xff] }
 0xa76   : > { %v20026_v20 = vpack.c.bf16 %v8889_v36, %v8877_v31  ;;  %v8906_v57 = vsub.f32 %v19654_v29, %v22319_v22  ;;  %v8918_v11 = vsub.f32 %v23749_v44, %v22323_v14  ;;  %v8901_v38 = vand.u32 4294901760, %v8900_v55  ;;  %v23756_v30 = vld [vmem:[#allocation168_spill] sm:$0xff]  ;;  %v23757_v29 = vld [vmem:[#allocation58_spill] sm:$0xff] }
 0xa77   : > { %v20035_v28 = vpack.c.bf16 %v8895_v4, %v8883_v52  ;;  %v8913_v7 = vand.u32 4294901760, %v8912_v42  ;;  %v22325_v26 = vand.u32 4294901760, %v23754_v62  ;;  %v8924_v22 = vsub.f32 %v23752_v53, %v22324_v40  ;;  %v23759_v4 = vld [vmem:[#allocation169_spill] sm:$0xff] }
 0xa78   : > { %23751 = vst [vmem:[#allocation67_spill] sm:$0xff] %v20026_v20  ;;  %13230 = vmatpush1.bf16.msra.mxu1 %v23755_v9  ;;  %v8907_v31 = vand.u32 4294901760, %v8906_v57  ;;  %v8919_v36 = vand.u32 4294901760, %v8918_v11  ;;  %v22326_v20 = vand.u32 4294901760, %v23756_v30  ;;  %v22327_v42 = vand.u32 4294901760, %v23759_v4 }
 0xa79   : > { %23753 = vst [vmem:[#allocation114_spill] sm:$0xff] %v20035_v28  ;;  %13232 = vmatprep.subr.bf16.mxu1 %v23757_v29  ;;  %v20044_v14 = vpack.c.bf16 %v8913_v7, %v8901_v38  ;;  %v8936_v52 = vsub.f32 %v23754_v62, %v22325_v26  ;;  %v22328_v55 = vand.u32 4294901760, %v19692_v3  ;;  %v8925_v11 = vand.u32 4294901760, %v8924_v22 }
 0xa7a   : > { %v20051_v57 = vpack.c.bf16 %v8919_v36, %v8907_v31  ;;  %v8930_v40 = vsub.f32 %v23756_v30, %v22326_v20  ;;  %v22329_v28 = vand.u32 4294901760, %v19695_v47  ;;  %v8942_v7 = vsub.f32 %v23759_v4, %v22327_v42  ;;  %v23761_v31 = vld [vmem:[#allocation118_spill] sm:$0xff]  ;;  %v23768_v4 = vld [vmem:[#allocation121_spill] sm:$0xff] }
 0xa7b   : > { %23758 = vst [vmem:[#allocation139_spill] sm:$0xff] %v20044_v14  ;;  %v8937_v29 = vand.u32 4294901760, %v8936_v52  ;;  %v8948_v38 = vsub.f32 %v19692_v3, %v22328_v55  ;;  %v22335_v26 = vand.u32 4294901760, %v19703_v51  ;;  %v22338_v20 = vand.u32 4294901760, %v19706_v50 }
 0xa7c   : > { %23760 = vst [vmem:[#allocation136_spill] sm:$0xff] %v20051_v57  ;;  %13234 = vmatpush1.bf16.msra.mxu1 %v23761_v31  ;;  %v8931_v22 = vand.u32 4294901760, %v8930_v40  ;;  %v8960_v36 = vsub.f32 %v19695_v47, %v22329_v28  ;;  %v22339_v52 = vand.u32 4294901760, %v19711_v27  ;;  %v23762_v57 = vld [vmem:[#allocation129_spill] sm:$0xff]  ;;  %v8943_v14 = vand.u32 4294901760, %v8942_v7  ;;  %v23764_v47 = vld [vmem:[#allocation71_spill] sm:$0xff] }
 0xa7d   : > { %13236 = vmatprep.subr.bf16.mxu1 %v23762_v57  ;;  %v20071_v42 = vpack.c.bf16 %v8937_v29, %v8925_v11  ;;  %v8949_v9 = vand.u32 4294901760, %v8948_v38  ;;  %v8954_v55 = vsub.f32 %v19703_v51, %v22335_v26  ;;  %v8966_v40 = vsub.f32 %v19706_v50, %v22338_v20  ;;  %v23766_v11 = vld [vmem:[#allocation170_spill] sm:$0xff]  ;;  %v23767_v38 = vld [vmem:[#allocation171_spill] sm:$0xff] }
 0xa7e   : > { %v8961_v31 = vand.u32 4294901760, %v8960_v36  ;;  %v8972_v28 = vsub.f32 %v19711_v27, %v22339_v52  ;;  %v22340_v3 = vand.u32 4294901760, %v23764_v47  ;;  %v20083_v57 = vpack.c.bf16 %v8943_v14, %v8931_v22  ;;  %v23770_v52 = vld [vmem:[#allocation30_spill] sm:$0xff] }
 0xa7f   : > { %23763 = vst [vmem:[#allocation108_spill] sm:$0xff] %v20071_v42  ;;  %v8955_v29 = vand.u32 4294901760, %v8954_v55  ;;  %v22341_v7 = vand.u32 4294901760, %v23766_v11  ;;  %v22342_v42 = vand.u32 4294901760, %v23767_v38  ;;  %v8967_v26 = vand.u32 4294901760, %v8966_v40 }
 0xa80   : > { %23765 = vst [vmem:[#allocation142_spill] sm:$0xff] %v20083_v57  ;;  %13238 = vmatpush1.bf16.msra.mxu1 %v23768_v4  ;;  %v20088_v36 = vpack.c.bf16 %v8961_v31, %v8949_v9  ;;  %v8973_v51 = vand.u32 4294901760, %v8972_v28  ;;  %v8984_v20 = vsub.f32 %v23764_v47, %v22340_v3  ;;  %v22343_v22 = vand.u32 4294901760, %v19741_v24 }
 0xa81   : > { %13240 = vmatprep.subr.bf16.mxu1 %v23770_v52  ;;  %v8978_v14 = vsub.f32 %v23766_v11, %v22341_v7  ;;  %v8990_v55 = vsub.f32 %v23767_v38, %v22342_v42  ;;  %v22344_v9 = vand.u32 4294901760, %v19744_v16  ;;  %v20102_v31 = vpack.c.bf16 %v8967_v26, %v8955_v29  ;;  %v23772_v52 = vld [vmem:[#allocation126_spill] sm:$0xff] }
 0xa82   : > { %23769 = vst [vmem:[#allocation111_spill] sm:$0xff] %v20088_v36  ;;  %v8985_v28 = vand.u32 4294901760, %v8984_v20  ;;  %v22345_v40 = vand.u32 4294901760, %v19752_v10  ;;  %v22346_v3 = vand.u32 4294901760, %v19755_v12  ;;  %v8996_v7 = vsub.f32 %v19741_v24, %v22343_v22 }
 0xa83   : > { %23771 = vst [vmem:[#allocation145_spill] sm:$0xff] %v20102_v31  ;;  %v8979_v36 = vand.u32 4294901760, %v8978_v14  ;;  %v8991_v57 = vand.u32 4294901760, %v8990_v55  ;;  %v9008_v42 = vsub.f32 %v19744_v16, %v22344_v9  ;;  %v22347_v29 = vand.u32 4294901760, %v19760_v46  ;;  %v23774_v14 = vld [vmem:[#allocation29_spill] sm:$0xff] }
 0xa84   : > { %13242 = vmatpush1.bf16.msra.mxu1 %v23772_v52  ;;  %v20113_v4 = vpack.c.bf16 %v8985_v28, %v8973_v51  ;;  %v9002_v26 = vsub.f32 %v19752_v10, %v22345_v40  ;;  %v9014_v20 = vsub.f32 %v19755_v12, %v22346_v3  ;;  %v8997_v22 = vand.u32 4294901760, %v8996_v7  ;;  %v23777_v7 = vld [vmem:[#allocation18_spill] sm:$0xff] }
 0xa85   : > { %13244 = vmatprep.subr.bf16.mxu1 %v23774_v14  ;;  %v20123_v55 = vpack.c.bf16 %v8991_v57, %v8979_v36  ;;  %v9009_v9 = vand.u32 4294901760, %v9008_v42  ;;  %v22348_v31 = vand.u32 4294901760, %v19763_v1  ;;  %v9020_v40 = vsub.f32 %v19760_v46, %v22347_v29  ;;  %v23803_v14 = vld [vmem:[#allocation156_spill] sm:$0xff] }
 0xa86   : > { %23773 = vst [vmem:[#allocation144_spill] sm:$0xff] %v20113_v4  ;;  %v9003_v51 = vand.u32 4294901760, %v9002_v26  ;;  %v9015_v28 = vand.u32 4294901760, %v9014_v20  ;;  %v22349_v4 = vand.u32 4294901760, %v19768_v39  ;;  %v22350_v57 = vand.u32 4294901760, %v19771_v25 }
 0xa87   : > { %23775 = vst [vmem:[#allocation8_spill] sm:$0xff] %v20123_v55  ;;  %v20130_v52 = vpack.c.bf16 %v9009_v9, %v8997_v22  ;;  %v9032_v3 = vsub.f32 %v19763_v1, %v22348_v31  ;;  %v22351_v42 = vand.u32 4294901760, %v19790_v2  ;;  %v9021_v26 = vand.u32 4294901760, %v9020_v40  ;;  %v23779_v9 = vld [vmem:[#allocation36_spill] sm:$0xff] }
 0xa88   : > { %13246 = vmatpush1.bf16.msra.mxu1 %v23777_v7  ;;  %v20138_v36 = vpack.c.bf16 %v9015_v28, %v9003_v51  ;;  %v9026_v20 = vsub.f32 %v19768_v39, %v22349_v4  ;;  %v22352_v22 = vand.u32 4294901760, %v19793_v60  ;;  %v9038_v31 = vsub.f32 %v19771_v25, %v22350_v57  ;;  %v23791_v7 = vld [vmem:[#allocation149_spill] sm:$0xff] }
 0xa89   : > { %23776 = vst [vmem:[#allocation152_spill] sm:$0xff] %v20130_v52  ;;  %13248 = vmatprep.subr.bf16.mxu1 %v23779_v9  ;;  %v9033_v29 = vand.u32 4294901760, %v9032_v3  ;;  %v9044_v52 = vsub.f32 %v19790_v2, %v22351_v42  ;;  %v22353_v51 = vand.u32 4294901760, %v19798_v0  ;;  %v22354_v4 = vand.u32 4294901760, %v19801_v58  ;;  %v23781_v9 = vld [vmem:[#allocation22_spill] sm:$0xff]  ;;  %v23802_v3 = vld [vmem:[#allocation169_spill] sm:$0xff] }
 0xa8a   : > { %23778 = vst [vmem:[#allocation23_spill] sm:$0xff] %v20138_v36  ;;  %v9027_v40 = vand.u32 4294901760, %v9026_v20  ;;  %v9056_v28 = vsub.f32 %v19793_v60, %v22352_v22  ;;  %v9039_v55 = vand.u32 4294901760, %v9038_v31  ;;  %v23812_v45 = vand.u32 4294901760, %v19443_v18 }
 0xa8b   : > { %v20158_v36 = vpack.c.bf16 %v9033_v29, %v9021_v26  ;;  %v9045_v57 = vand.u32 4294901760, %v9044_v52  ;;  %v9050_v42 = vsub.f32 %v19798_v0, %v22353_v51  ;;  %v9062_v22 = vsub.f32 %v19801_v58, %v22354_v4  ;;  %v23782_v26 = vld [vmem:[#allocation86_spill] sm:$0xff] }
 0xa8c   : > { %13250 = vmatpush1.bf16.msra.mxu1 %v23781_v9  ;;  %v9057_v20 = vand.u32 4294901760, %v9056_v28  ;;  %v20172_v52 = vpack.c.bf16 %v9039_v55, %v9027_v40  ;;  %v23787_v40 = vld [vmem:[#allocation17_spill] sm:$0xff]  ;;  %v23792_v28 = vld [vmem:[#allocation64_spill] sm:$0xff]  ;;  %v23793_v55 = vld [vmem:[#allocation66_spill] sm:$0xff]  ;;  %v23817_v29 = vand.u32 4294901760, %v19458_v61 }
 0xa8d   : > { %23780 = vst [vmem:[#allocation45_spill] sm:$0xff] %v20158_v36  ;;  %13252 = vmatprep.subr.bf16.mxu1 %v23782_v26  ;;  %v9051_v31 = vand.u32 4294901760, %v9050_v42  ;;  %v9063_v4 = vand.u32 4294901760, %v9062_v22  ;;  %v23785_v36 = vld [vmem:[#allocation141_spill] sm:$0xff]  ;;  %v23786_v26 = vld [vmem:[#allocation52_spill] sm:$0xff]  ;;  %v23807_v9 = vld [vmem:[#allocation95_spill] sm:$0xff] }
 0xa8e   : > { %23783 = vst [vmem:[#allocation16_spill] sm:$0xff] %v20172_v52  ;;  %v20178_v51 = vpack.c.bf16 %v9057_v20, %v9045_v57  ;;  %v23789_v20 = vld [vmem:[#allocation34_spill] sm:$0xff]  ;;  %v23794_v42 = vld [vmem:[#allocation104_spill] sm:$0xff]  ;;  %v23804_v57 = vld [vmem:[#allocation59_spill] sm:$0xff]  ;;  %v23811_v52 = vand.u32 4294901760, %v19440_v41 }
 0xa8f   : > { %v20193_v22 = vpack.c.bf16 %v9063_v4, %v9051_v31  ;;  %v23798_v31 = vld [vmem:[#allocation19_spill] sm:$0xff]  ;;  %v23814_v4 = vand.u32 4294901760, %v19452_v23 }
 0xa90   : > { %23784 = vst [vmem:[#allocation168_spill] sm:$0xff] %v20178_v51  ;;  %13254 = vmatpush1.bf16.msra.mxu1 %v23789_v20  ;;  %v23800_v20 = vld [vmem:[#allocation153_spill] sm:$0xff]  ;;  %v20250_v1 = vpack.c.bf16 %v23812_v45, %v23811_v52  ;;  %v23823_v45 = vand.u32 4294901760, %v23686_v54  ;;  %v23824_v52 = vand.u32 4294901760, %v23691_v56 }
 0xa91   : > { %23790 = vst [vmem:[#allocation71_spill] sm:$0xff] %v20193_v22  ;;  %13256 = vmatprep.subr.bf16.mxu1 %v23794_v42  ;;  %v23799_v22 = vld [vmem:[#allocation166_spill] sm:$0xff]  ;;  %v23809_v42 = vand.u32 4294901760, %v19430_v37 }
 0xa92   : > { %23813 = vst [vmem:[#allocation52_spill] sm:$0xff] %v20250_v1  ;;  %v20274_v1 = vpack.c.bf16 %v23824_v52, %v23823_v45  ;;  %v23835_v45 = vld [vmem:[#allocation146_spill] sm:$0xff] }
 0xa93   : > { %v23836_v52 = vand.u32 4294901760, %v23835_v45 }
 0xa94   : > { %13258 = vmatpush1.bf16.msra.mxu1 %v23806_v19  ;;  %v23808_v19 = vand.u32 4294901760, %v19427_v35  ;;  %v23818_v35 = vand.u32 4294901760, %v19463_v21  ;;  %23825 = vst [vmem:[#allocation166_spill] sm:$0xff] %v20274_v1  ;;  %v23837_v1 = vld [vmem:[#allocation147_spill] sm:$0xff] }
 0xa95   : > { %13260 = vmatprep.subr.bf16.mxu1 %v23807_v9  ;;  %v23815_v9 = vand.u32 4294901760, %v19455_v59 }
 0xa96   : > { %v20244_v16 = vpack.c.bf16 %v23809_v42, %v23808_v19  ;;  %v20262_v58 = vpack.c.bf16 %v23818_v35, %v23817_v29  ;;  %v23820_v19 = vand.u32 4294901760, %v19477_v63  ;;  %v23821_v42 = vand.u32 4294901760, %v19480_v17 }
 0xa97   : > { %v20256_v51 = vpack.c.bf16 %v23815_v9, %v23814_v4  ;;  %v23826_v9 = vand.u32 4294901760, %v23785_v36  ;;  %v23827_v4 = vand.u32 4294901760, %v23694_v8  ;;  %v23829_v35 = vand.u32 4294901760, %v23695_v5 }
 0xa98   : > { %23810 = vst [vmem:[#allocation171_spill] sm:$0xff] %v20244_v16  ;;  %23819 = vst [vmem:[#allocation66_spill] sm:$0xff] %v20262_v58  ;;  %v20268_v16 = vpack.c.bf16 %v23821_v42, %v23820_v19  ;;  %v23830_v29 = vand.u32 4294901760, %v23786_v26  ;;  %v23832_v19 = vand.u32 4294901760, %v23787_v40  ;;  %v23833_v42 = vand.u32 4294901760, %v19529_v32 }
 0xa99   : > { %23816 = vst [vmem:[#allocation17_spill] sm:$0xff] %v20256_v51  ;;  %v20280_v51 = vpack.c.bf16 %v23827_v4, %v23826_v9  ;;  %v23838_v36 = vand.u32 4294901760, %v23837_v1  ;;  %v23840_v9 = vld [vmem:[#allocation91_spill] sm:$0xff]  ;;  %v23841_v4 = vand.u32 4294901760, %v23713_v34 }
 0xa9a   : > { %23822 = vst [vmem:[#allocation19_spill] sm:$0xff] %v20268_v16  ;;  %v20286_v58 = vpack.c.bf16 %v23830_v29, %v23829_v35  ;;  %v20292_v16 = vpack.c.bf16 %v23833_v42, %v23832_v19  ;;  %13262 = vmatpush1.bf16.msra.mxu1 %v23840_v9  ;;  %v23844_v29 = vand.u32 4294901760, %v23791_v7  ;;  %v23847_v42 = vand.u32 4294901760, %v19569_v15  ;;  %v23857_v7 = vld [vmem:[#allocation57_spill] sm:$0xff]  ;;  %v23862_v15 = vld [vmem:[#allocation98_spill] sm:$0xff] }
 0xa9b   : > { %23828 = vst [vmem:[#allocation153_spill] sm:$0xff] %v20280_v51  ;;  %v20298_v54 = vpack.c.bf16 %v23838_v36, %v23836_v52  ;;  %v23842_v51 = vand.u32 4294901760, %v23714_v48  ;;  %v23851_v52 = vand.u32 4294901760, %v23725_v49 }
 0xa9c   : > { %23831 = vst [vmem:[#allocation154_spill] sm:$0xff] %v20286_v58  ;;  %23834 = vst [vmem:[#allocation169_spill] sm:$0xff] %v20292_v16  ;;  %v23845_v58 = vand.u32 4294901760, %v23792_v28  ;;  %v23848_v16 = vld [vmem:[#allocation150_spill] sm:$0xff]  ;;  %v23858_v28 = vand.u32 4294901760, %v23857_v7 }
 0xa9d   : > { %23839 = vst [vmem:[#allocation156_spill] sm:$0xff] %v20298_v54  ;;  %v20305_v35 = vpack.c.bf16 %v23842_v51, %v23841_v4  ;;  %v23849_v45 = vand.u32 4294901760, %v23848_v16  ;;  %v23852_v54 = vand.u32 4294901760, %v23793_v55  ;;  %v23854_v51 = vld [vmem:[#allocation6_spill] sm:$0xff]  ;;  %v23855_v4 = vld [vmem:[#allocation68_spill] sm:$0xff]  ;;  %v23863_v16 = vand.u32 4294901760, %v23862_v15 }
 0xa9e   : > { %v20311_v19 = vpack.c.bf16 %v23845_v58, %v23844_v29  ;;  %13264 = vmatprep.subr.bf16.mxu1 %v23854_v51  ;;  %v23860_v29 = vld [vmem:[#allocation96_spill] sm:$0xff] }
 0xa9f   : > { %23843 = vst [vmem:[#allocation59_spill] sm:$0xff] %v20305_v35  ;;  %v20317_v36 = vpack.c.bf16 %v23849_v45, %v23847_v42  ;;  %v20323_v34 = vpack.c.bf16 %v23852_v54, %v23851_v52  ;;  %v23856_v35 = vand.u32 4294901760, %v23855_v4  ;;  %v23865_v42 = vand.u32 4294901760, %v19616_v13 }
 0xaa0   : > { %23846 = vst [vmem:[#allocation147_spill] sm:$0xff] %v20311_v19  ;;  %v23861_v19 = vand.u32 4294901760, %v23860_v29  ;;  %v23868_v52 = vand.u32 4294901760, %v23798_v31 }
 0xaa1   : > { %23850 = vst [vmem:[#allocation91_spill] sm:$0xff] %v20317_v36  ;;  %23853 = vst [vmem:[#allocation180_spill] sm:$0xff] %v20323_v34  ;;  %v20330_v58 = vpack.c.bf16 %v23858_v28, %v23856_v35  ;;  %v23866_v36 = vand.u32 4294901760, %v23741_v33  ;;  %v23869_v34 = vand.u32 4294901760, %v23799_v22  ;;  %v23871_v28 = vand.u32 4294901760, %v23800_v20  ;;  %v23872_v35 = vld [vmem:[#allocation32_spill] sm:$0xff] }
 0xaa2   : > { %v20336_v45 = vpack.c.bf16 %v23863_v16, %v23861_v19  ;;  %v23875_v16 = vand.u32 4294901760, %v23801_v43  ;;  %v23876_v19 = vand.u32 4294901760, %v23749_v44 }
 0xaa3   : > { %23859 = vst [vmem:[#allocation6_spill] sm:$0xff] %v20330_v58  ;;  %v20342_v54 = vpack.c.bf16 %v23866_v36, %v23865_v42  ;;  %v20348_v4 = vpack.c.bf16 %v23869_v34, %v23868_v52  ;;  %v23873_v58 = vand.u32 4294901760, %v23872_v35  ;;  %v23878_v36 = vand.u32 4294901760, %v23752_v53 }
 0xaa4   : > { %23864 = vst [vmem:[#allocation57_spill] sm:$0xff] %v20336_v45  ;;  %v20360_v45 = vpack.c.bf16 %v23876_v19, %v23875_v16  ;;  %v23879_v42 = vand.u32 4294901760, %v23754_v62  ;;  %v23881_v34 = vand.u32 4294901760, %v23756_v30  ;;  %v23882_v52 = vand.u32 4294901760, %v23802_v3 }
 0xaa5   : > { %23867 = vst [vmem:[#allocation98_spill] sm:$0xff] %v20342_v54  ;;  %23870 = vst [vmem:[#allocation181_spill] sm:$0xff] %v20348_v4  ;;  %v20354_v29 = vpack.c.bf16 %v23873_v58, %v23871_v28  ;;  %v23884_v58 = vand.u32 4294901760, %v23803_v14  ;;  %v23885_v28 = vand.u32 4294901760, %v23804_v57  ;;  %v23887_v16 = vand.u32 4294901760, %v23805_v6 }
 0xaa6   : > { %23877 = vst [vmem:[#allocation182_spill] sm:$0xff] %v20360_v45  ;;  %v20366_v54 = vpack.c.bf16 %v23879_v42, %v23878_v36  ;;  %v20372_v4 = vpack.c.bf16 %v23882_v52, %v23881_v34  ;;  %v23888_v19 = vand.u32 4294901760, %v19706_v50  ;;  %v23890_v36 = vand.u32 4294901760, %v19711_v27 }
 0xaa7   : > { %23874 = vst [vmem:[#allocation32_spill] sm:$0xff] %v20354_v29  ;;  %v20378_v29 = vpack.c.bf16 %v23885_v28, %v23884_v58  ;;  %v23891_v42 = vand.u32 4294901760, %v23764_v47  ;;  %v23893_v34 = vand.u32 4294901760, %v23766_v11  ;;  %v23894_v52 = vand.u32 4294901760, %v23767_v38  ;;  %v23896_v58 = vld [vmem:[#allocation37_spill] sm:$0xff] }
 0xaa8   : > { %23880 = vst [vmem:[#allocation183_spill] sm:$0xff] %v20366_v54  ;;  %23883 = vst [vmem:[#allocation184_spill] sm:$0xff] %v20372_v4  ;;  %v20384_v45 = vpack.c.bf16 %v23888_v19, %v23887_v16  ;;  %13266 = vmatpush1.bf16.msra.mxu1 %v23896_v58  ;;  %v23897_v28 = vand.u32 4294901760, %v19741_v24  ;;  %v23901_v19 = vand.u32 4294901760, %v19752_v10 }
 0xaa9   : > { %23886 = vst [vmem:[#allocation185_spill] sm:$0xff] %v20378_v29  ;;  %v20390_v54 = vpack.c.bf16 %v23891_v42, %v23890_v36  ;;  %v20396_v4 = vpack.c.bf16 %v23894_v52, %v23893_v34  ;;  %v23898_v29 = vld [vmem:[#allocation81_spill] sm:$0xff]  ;;  %v23904_v42 = vand.u32 4294901760, %v19760_v46  ;;  %v23908_v52 = vand.u32 4294901760, %v19768_v39 }
 0xaaa   : > { %23889 = vst [vmem:[#allocation186_spill] sm:$0xff] %v20384_v45  ;;  %v23899_v6 = vand.u32 4294901760, %v23898_v29  ;;  %v23902_v45 = vand.u32 4294901760, %v19755_v12  ;;  %v23936_v12 = vld [vmem:[#allocation11_spill] sm:$0xff]  ;;  %v23937_v29 = vld [vmem:[#allocation25_spill] sm:$0xff] }
 0xaab   : > { %23892 = vst [vmem:[#allocation187_spill] sm:$0xff] %v20390_v54  ;;  %23895 = vst [vmem:[#allocation188_spill] sm:$0xff] %v20396_v4  ;;  %v23905_v54 = vld [vmem:[#allocation172_spill] sm:$0xff]  ;;  %v23909_v4 = vand.u32 4294901760, %v19771_v25 }
 0xaac   : > { %v20403_v16 = vpack.c.bf16 %v23899_v6, %v23897_v28  ;;  %v20409_v36 = vpack.c.bf16 %v23902_v45, %v23901_v19  ;;  %v23906_v11 = vand.u32 4294901760, %v23905_v54  ;;  %v23911_v6 = vld [vmem:[#allocation14_spill] sm:$0xff]  ;;  %v23912_v28 = vand.u32 4294901760, %v19790_v2  ;;  %v23924_v2 = vld [vmem:[#allocation140_spill] sm:$0xff] }
 0xaad   : > { %v20421_v24 = vpack.c.bf16 %v23909_v4, %v23908_v52  ;;  %13268 = vmatprep.subr.bf16.mxu1 %v23911_v6  ;;  %v23915_v19 = vand.u32 4294901760, %v19798_v0  ;;  %v23921_v4 = vld [vmem:[#allocation89_spill] sm:$0xff]  ;;  %v23922_v52 = vld [vmem:[#allocation134_spill] sm:$0xff]  ;;  %v23934_v54 = vld [vmem:[#allocation12_spill] sm:$0xff] }
 0xaae   : > { %23900 = vst [vmem:[#allocation37_spill] sm:$0xff] %v20403_v16  ;;  %23903 = vst [vmem:[#allocation189_spill] sm:$0xff] %v20409_v36  ;;  %v20415_v34 = vpack.c.bf16 %v23906_v11, %v23904_v42  ;;  %v23913_v16 = vand.u32 4294901760, %v19793_v60  ;;  %v23916_v36 = vld [vmem:[#allocation178_spill] sm:$0xff]  ;;  %v23919_v42 = vld [vmem:[#allocation61_spill] sm:$0xff]  ;;  %v23935_v10 = vand.u32 4294901760, %v23934_v54 }
 0xaaf   : > { %23910 = vst [vmem:[#allocation191_spill] sm:$0xff] %v20421_v24  ;;  %v23917_v46 = vand.u32 4294901760, %v23916_v36  ;;  %13270 = vmatpush1.bf16.msra.mxu1 %v23919_v42  ;;  %v23923_v24 = vld [vmem:[#allocation138_spill] sm:$0xff]  ;;  %v23929_v36 = vld [vmem:[#allocation143_spill] sm:$0xff]  ;;  %v23947_v54 = vld [vmem:[#allocation84_spill] sm:$0xff] }
 0xab0   : > { %23907 = vst [vmem:[#allocation190_spill] sm:$0xff] %v20415_v34  ;;  %v20428_v45 = vpack.c.bf16 %v23913_v16, %v23912_v28  ;;  %v23920_v34 = vld [vmem:[#allocation88_spill] sm:$0xff] }
 0xab1   : > { %v20434_v11 = vpack.c.bf16 %v23917_v46, %v23915_v19  ;;  %13272 = vmatprep.subr.bf16.mxu1 %v23920_v34  ;;  %v23925_v16 = vld [vmem:[#allocation44_spill] sm:$0xff]  ;;  %v23930_v46 = vld [vmem:[#allocation94_spill] sm:$0xff] }
 0xab2   : > { %23914 = vst [vmem:[#allocation14_spill] sm:$0xff] %v20428_v45  ;;  %v23926_v28 = vand.u32 4294901760, %v23925_v16  ;;  %v23927_v45 = vld [vmem:[#allocation48_spill] sm:$0xff]  ;;  %v23931_v19 = vand.u32 4294901760, %v23930_v46  ;;  %v23938_v16 = vld [vmem:[#allocation54_spill] sm:$0xff] }
 0xab3   : > { %23918 = vst [vmem:[#allocation192_spill] sm:$0xff] %v20434_v11  ;;  %13274 = vmatpush1.bf16.msra.mxu1 %v23921_v4  ;;  %v23928_v0 = vand.u32 4294901760, %v23927_v45  ;;  %v23932_v11 = vld [vmem:[#allocation106_spill] sm:$0xff] }
 0xab4   : > { %13276 = vmatprep.subr.bf16.mxu1 %v23922_v52  ;;  %v23933_v39 = vand.u32 4294901760, %v23932_v11  ;;  %v23939_v45 = vld [vmem:[#allocation90_spill] sm:$0xff]  ;;  %v23943_v11 = vld [vmem:[#allocation131_spill] sm:$0xff] }
 0xab5   : > { %v13283_v60 = vpack.c.bf16 %v23928_v0, %v23926_v28  ;;  %v23940_v0 = vld [vmem:[#allocation122_spill] sm:$0xff]  ;;  %v23942_v28 = vld [vmem:[#allocation128_spill] sm:$0xff] }
 0xab6   : > { %v13285_v25 = vpack.c.bf16 %v23933_v39, %v23931_v19  ;;  %v23944_v39 = vld [vmem:[#allocation125_spill] sm:$0xff]  ;;  %v23949_v46 = vld [vmem:[#allocation26_spill] sm:$0xff]  ;;  %v23950_v19 = vld [vmem:[#allocation72_spill] sm:$0xff] }
 0xab7   : > { %13278 = vmatpush1.bf16.msra.mxu1 %v23923_v24 }
 0xab8   : > { %13280 = vmatprep.subr.bf16.mxu1 %v23924_v2 }
 0xabb   : > { %13282 = vmatpush1.bf16.msra.mxu1 %v23929_v36 }
 0xabc   : > { %13284 = vmatprep.subr.bf16.mxu1 %v13283_v60  ;;  %v23941_v60 = vld [vmem:[#allocation120_spill] sm:$0xff] }
 0xabe   : > { %8128 = vmatmul.mubr.f32.vlgmr.msra.gmra.mrb[64].mxu1 %v23935_v10  ;;  %v23945_v10 = vld [vmem:[#allocation13_spill] sm:$0xff] }
 0xabf   : > { %13286 = vmatpush1.bf16.msra.mxu1 %v13285_v25  ;;  %8391 = vmatprep.mubr.f32.mxu1 %v23936_v12  ;;  %v23946_v25 = vld [vmem:[#allocation133_spill] sm:$0xff] }
 0xac0   : > { %13288 = vmatprep.subr.bf16.mxu1 %v23937_v29  ;;  %v23948_v29 = vld [vmem:[#allocation47_spill] sm:$0xff] }
 0xac3   : > { %13290 = vmatpush1.bf16.msra.mxu1 %v23938_v16  ;;  %v23951_v16 = vld [vmem:[#allocation43_spill] sm:$0xff] }
 0xac4   : > { %13292 = vmatprep.subr.bf16.mxu1 %v23939_v45  ;;  %v23952_v45 = vld [vmem:[#allocation76_spill] sm:$0xff] }
 0xac7   : > { %13294 = vmatpush1.bf16.msra.mxu1 %v23940_v0  ;;  %v23953_v0 = vld [vmem:[#allocation70_spill] sm:$0xff] }
 0xac8   : > { %13296 = vmatprep.subr.bf16.mxu1 %v23941_v60  ;;  %v23954_v60 = vld [vmem:[#allocation105_spill] sm:$0xff] }
 0xacb   : > { %13298 = vmatpush1.bf16.msra.mxu1 %v23942_v28  ;;  %v23955_v28 = vld [vmem:[#allocation148_spill] sm:$0xff] }
 0xacc   : > { %13300 = vmatprep.subr.bf16.mxu1 %v23943_v11  ;;  %v23956_v11 = vld [vmem:[#allocation127_spill] sm:$0xff] }
 0xacf   : > { %13302 = vmatpush1.bf16.msra.mxu1 %v23944_v39  ;;  %v23957_v39 = vld [vmem:[#allocation130_spill] sm:$0xff] }
 0xad0   : > { %13304 = vmatprep.subr.bf16.mxu1 %v23945_v10  ;;  %v23958_v10 = vld [vmem:[#allocation124_spill] sm:$0xff] }
 0xad3   : > { %13306 = vmatpush1.bf16.msra.mxu1 %v23946_v25  ;;  %v23959_v25 = vld [vmem:[#allocation132_spill] sm:$0xff] }
 0xad4   : > { %13308 = vmatprep.subr.bf16.mxu1 %v23947_v54  ;;  %v23960_v54 = vld [vmem:[#allocation73_spill] sm:$0xff] }
 0xad7   : > { %13310 = vmatpush1.bf16.msra.mxu1 %v23948_v29  ;;  %v23961_v29 = vld [vmem:[#allocation20_spill] sm:$0xff] }
 0xad8   : > { %13312 = vmatprep.subr.bf16.mxu1 %v23949_v46  ;;  %v23962_v46 = vld [vmem:[#allocation85_spill] sm:$0xff] }
 0xadb   : > { %13314 = vmatpush1.bf16.msra.mxu1 %v23950_v19  ;;  %v23963_v19 = vld [vmem:[#allocation9_spill] sm:$0xff] }
 0xadc   : > { %13316 = vmatprep.subr.bf16.mxu1 %v23951_v16  ;;  %v23964_v16 = vld [vmem:[#allocation163_spill] sm:$0xff] }
 0xadf   : > { %13318 = vmatpush1.bf16.msra.mxu1 %v23952_v45  ;;  %v23965_v45 = vld [vmem:[#allocation164_spill] sm:$0xff] }
 0xae0   : > { %13320 = vmatprep.subr.bf16.mxu1 %v23953_v0  ;;  %v23966_v0 = vld [vmem:[#allocation165_spill] sm:$0xff] }
 0xae3   : > { %13322 = vmatpush1.bf16.msra.mxu1 %v23954_v60  ;;  %v23967_v60 = vld [vmem:[#allocation7_spill] sm:$0xff] }
 0xae4   : > { %13324 = vmatprep.subr.bf16.mxu1 %v23955_v28  ;;  %v23968_v28 = vld [vmem:[#allocation102_spill] sm:$0xff] }
 0xae7   : > { %13326 = vmatpush1.bf16.msra.mxu1 %v23956_v11  ;;  %v23969_v11 = vld [vmem:[#allocation101_spill] sm:$0xff] }
 0xae8   : > { %13328 = vmatprep.subr.bf16.mxu1 %v23957_v39  ;;  %v23970_v39 = vld [vmem:[#allocation53_spill] sm:$0xff] }
 0xaeb   : > { %13330 = vmatpush1.bf16.msra.mxu1 %v23958_v10  ;;  %v23971_v10 = vld [vmem:[#allocation109_spill] sm:$0xff] }
 0xaec   : > { %13332 = vmatprep.subr.bf16.mxu1 %v23959_v25  ;;  %v23972_v25 = vld [vmem:[#allocation50_spill] sm:$0xff] }
 0xaef   : > { %13334 = vmatpush1.bf16.msra.mxu1 %v23960_v54  ;;  %v23973_v54 = vld [vmem:[#allocation113_spill] sm:$0xff] }
 0xaf0   : > { %13336 = vmatprep.subr.bf16.mxu1 %v23961_v29  ;;  %v23974_v29 = vld [vmem:[#allocation58_spill] sm:$0xff] }
 0xaf3   : > { %13338 = vmatpush1.bf16.msra.mxu1 %v23962_v46  ;;  %v23975_v46 = vld [vmem:[#allocation118_spill] sm:$0xff] }
 0xaf4   : > { %13340 = vmatprep.subr.bf16.mxu1 %v23963_v19  ;;  %v23976_v19 = vld [vmem:[#allocation129_spill] sm:$0xff] }
 0xaf7   : > { %13342 = vmatpush1.bf16.msra.mxu1 %v23964_v16  ;;  %v23977_v16 = vld [vmem:[#allocation121_spill] sm:$0xff] }
 0xaf8   : > { %13344 = vmatprep.subr.bf16.mxu1 %v23965_v45  ;;  %v23978_v45 = vld [vmem:[#allocation30_spill] sm:$0xff] }
 0xafb   : > { %13346 = vmatpush1.bf16.msra.mxu1 %v23966_v0  ;;  %v23979_v0 = vld [vmem:[#allocation126_spill] sm:$0xff] }
 0xafc   : > { %13348 = vmatprep.subr.bf16.mxu1 %v23967_v60  ;;  %v23981_v60 = vld [vmem:[#allocation18_spill] sm:$0xff] }
 0xafe   : > { %8393 = vmatmul.mubr.f32.vlgmr.msra.gmra.mrb[64].mxu1 %v23968_v28 }
 0xaff   : > { %13350 = vmatpush1.bf16.msra.mxu1 %v23969_v11  ;;  %8528 = vmatprep.mubr.f32.mxu1 %v23936_v12  ;;  %v23980_v12 = vld [vmem:[#allocation29_spill] sm:$0xff]  ;;  %v23982_v11 = vld [vmem:[#allocation36_spill] sm:$0xff] }
 0xb00   : > { %13352 = vmatprep.subr.bf16.mxu1 %v23970_v39  ;;  %v23983_v39 = vld [vmem:[#allocation22_spill] sm:$0xff] }
 0xb03   : > { %13354 = vmatpush1.bf16.msra.mxu1 %v23971_v10  ;;  %v23984_v10 = vld [vmem:[#allocation86_spill] sm:$0xff] }
 0xb04   : > { %13356 = vmatprep.subr.bf16.mxu1 %v23972_v25  ;;  %v23985_v25 = vld [vmem:[#allocation34_spill] sm:$0xff] }
 0xb07   : > { %13358 = vmatpush1.bf16.msra.mxu1 %v23973_v54  ;;  %v23986_v54 = vld [vmem:[#allocation104_spill] sm:$0xff] }
 0xb08   : > { %13360 = vmatprep.subr.bf16.mxu1 %v23974_v29  ;;  %v23987_v29 = vld [vmem:[#allocation65_spill] sm:$0xff] }
 0xb0b   : > { %13362 = vmatpush1.bf16.msra.mxu1 %v23975_v46  ;;  %v23988_v46 = vld [vmem:[#allocation95_spill] sm:$0xff] }
 0xb0c   : > { %13364 = vmatprep.subr.bf16.mxu1 %v23976_v19  ;;  %v23989_v19 = vld [vmem:[#allocation117_spill] sm:$0xff] }
 0xb0f   : > { %13366 = vmatpush1.bf16.msra.mxu1 %v23977_v16  ;;  %v11957_v16 = vcombine.high %v23989_v19, %v23989_v19 }
 0xb10   : > { %13368 = vmatprep.subr.bf16.mxu1 %v23978_v45 }
 0xb11   : > { %v2416_v45 = vsel %vm2412_vm1, %v11957_v16, 1.0  ;;  %v24007_v16 = vld [vmem:[#allocation107_spill] sm:$0xff] }
 0xb13   : > { %13370 = vmatpush1.bf16.msra.mxu1 %v23979_v0  ;;  %v20514_v0 = vand.u32 4294901760, %v2416_v45 }
 0xb14   : > { %13372 = vmatprep.subr.bf16.mxu1 %v23980_v12 }
 0xb15   : > { %v20519_v12 = vsub.f32 %v2416_v45, %v20514_v0  ;;  %v24008_v45 = vld [vmem:[#allocation115_spill] sm:$0xff] }
 0xb17   : > { %13374 = vmatpush1.bf16.msra.mxu1 %v23981_v60  ;;  %v23997_v60 = vld [vmem:[#allocation97_spill] sm:$0xff] }
 0xb18   : > { %13376 = vmatprep.subr.bf16.mxu1 %v23982_v11  ;;  %v23999_v11 = vld [vmem:[#allocation27_spill] sm:$0xff] }
 0xb1b   : > { %13378 = vmatpush1.bf16.msra.mxu1 %v23983_v39  ;;  %v24001_v39 = vld [vmem:[#allocation46_spill] sm:$0xff] }
 0xb1c   : > { %13380 = vmatprep.subr.bf16.mxu1 %v23984_v10  ;;  %v24002_v10 = vld [vmem:[#allocation62_spill] sm:$0xff] }
 0xb1f   : > { %13382 = vmatpush1.bf16.msra.mxu1 %v23985_v25  ;;  %v24003_v25 = vld [vmem:[#allocation119_spill] sm:$0xff] }
 0xb20   : > { %13384 = vmatprep.subr.bf16.mxu1 %v23986_v54  ;;  %v24004_v54 = vld [vmem:[#allocation151_spill] sm:$0xff] }
 0xb23   : > { %13386 = vmatpush1.bf16.msra.mxu1 %v23987_v29  ;;  %v24005_v29 = vld [vmem:[#allocation123_spill] sm:$0xff] }
 0xb24   : > { %13388 = vmatprep.subr.bf16.mxu1 %v23988_v46  ;;  %v24006_v46 = vld [vmem:[#allocation60_spill] sm:$0xff] }
 0xb27   : > { %13390 = vmatpush1.bf16.msra.mxu1 %v23840_v9  ;;  %v22386_v9 = vand.u32 4294901760, %v20519_v12 }
 0xb28   : > { %13392 = vmatprep.subr.bf16.mxu1 %v23854_v51 }
 0xb29   : > { %v8667_v51 = vsub.f32 %v20519_v12, %v22386_v9  ;;  %v24011_v9 = vld [vmem:[#allocation167_spill] sm:$0xff] }
 0xb2b   : > { %13394 = vmatpush1.bf16.msra.mxu1 %v23896_v58  ;;  %v23990_v58 = vld [vmem:[#allocation51_spill] sm:$0xff] }
 0xb2c   : > { %13396 = vmatprep.subr.bf16.mxu1 %v23911_v6  ;;  %v23991_v6 = vld [vmem:[#allocation75_spill] sm:$0xff] }
 0xb2f   : > { %13398 = vmatpush1.bf16.msra.mxu1 %v23919_v42  ;;  %v23992_v42 = vld [vmem:[#allocation87_spill] sm:$0xff] }
 0xb30   : > { %13400 = vmatprep.subr.bf16.mxu1 %v23920_v34  ;;  %v8668_v34 = vand.u32 4294901760, %v8667_v51  ;;  %v24009_v51 = vld [vmem:[#allocation39_spill] sm:$0xff] }
 0xb33   : > { %13402 = vmatpush1.bf16.msra.mxu1 %v23921_v4  ;;  %v23993_v4 = vld [vmem:[#allocation79_spill] sm:$0xff] }
 0xb34   : > { %13404 = vmatprep.subr.bf16.mxu1 %v23922_v52  ;;  %v23996_v52 = vld [vmem:[#allocation137_spill] sm:$0xff] }
 0xb37   : > { %13406 = vmatpush1.bf16.msra.mxu1 %v23923_v24  ;;  %v23994_v24 = vld [vmem:[#allocation80_spill] sm:$0xff] }
 0xb38   : > { %13408 = vmatprep.subr.bf16.mxu1 %v23924_v2  ;;  %v23995_v2 = vld [vmem:[#allocation110_spill] sm:$0xff] }
 0xb3b   : > { %13410 = vmatpush1.bf16.msra.mxu1 %v23929_v36  ;;  %v23998_v36 = vld [vmem:[#allocation103_spill] sm:$0xff] }
 0xb3c   : > { %13412 = vmatprep.subr.bf16.mxu1 %v23990_v58 }
 0xb3e   : > { %8530 = vmatmul.mubr.f32.vlgmr.msra.gmra.mrb[64].mxu1 %v23968_v28  ;;  %v24000_v28 = vld [vmem:[#allocation24_spill] sm:$0xff] }
 0xb3f   : > { %13414 = vmatpush1.bf16.msra.mxu1 %v23991_v6  ;;  %8669 = vmatprep.mubr.f32.mxu1 %v8668_v34  ;;  %v24010_v34 = vld [vmem:[#allocation41_spill] sm:$0xff] }
 0xb40   : > { %13416 = vmatprep.subr.bf16.mxu1 %v23992_v42 }
 0xb43   : > { %13418 = vmatpush1.bf16.msra.mxu1 %v23993_v4 }
 0xb44   : > { %13420 = vmatprep.subr.bf16.mxu1 %v23994_v24 }
 0xb47   : > { %13422 = vmatpush1.bf16.msra.mxu1 %v23995_v2 }
 0xb48   : > { %13424 = vmatprep.subr.bf16.mxu1 %v23996_v52 }
 0xb4b   : > { %13426 = vmatpush1.bf16.msra.mxu1 %v23997_v60 }
 0xb4c   : > { %13428 = vmatprep.subr.bf16.mxu1 %v23998_v36 }
 0xb4f   : > { %13430 = vmatpush1.bf16.msra.mxu1 %v23999_v11 }
 0xb50   : > { %13432 = vmatprep.subr.bf16.mxu1 %v24000_v28  ;;  %v24030_v28 = vld [vmem:[#allocation42_spill] sm:$0xff] }
 0xb53   : > { %13434 = vmatpush1.bf16.msra.mxu1 %v24001_v39  ;;  %v24012_v39 = vld [vmem:[#allocation155_spill] sm:$0xff] }
 0xb54   : > { %13436 = vmatprep.subr.bf16.mxu1 %v24002_v10  ;;  %v24013_v10 = vld [vmem:[#allocation116_spill] sm:$0xff] }
 0xb57   : > { %13438 = vmatpush1.bf16.msra.mxu1 %v24003_v25  ;;  %v24014_v25 = vcombine.high %v24013_v10, %v23989_v19  ;;  %v24021_v10 = vld [vmem:[#allocation173_spill] sm:$0xff] }
 0xb58   : > { %13440 = vmatprep.subr.bf16.mxu1 %v24004_v54 }
 0xb59   : > { %v2415_v54 = vsel %vm2412_vm1, %v24014_v25, 1.0  ;;  %v24022_v25 = vld [vmem:[#allocation93_spill] sm:$0xff] }
 0xb5b   : > { %13442 = vmatpush1.bf16.msra.mxu1 %v24005_v29  ;;  %v24015_v29 = vld [vmem:[#allocation56_spill] sm:$0xff] }
 0xb5c   : > { %13444 = vmatprep.subr.bf16.mxu1 %v24006_v46  ;;  %v20559_v46 = vand.u32 4294901760, %v2415_v54 }
 0xb5f   : > { %13446 = vmatpush1.bf16.msra.mxu1 %v24007_v16  ;;  %v24016_v16 = vld [vmem:[#allocation158_spill] sm:$0xff] }
 0xb60   : > { %13448 = vmatprep.subr.bf16.mxu1 %v24008_v45  ;;  %v24017_v45 = vld [vmem:[#allocation83_spill] sm:$0xff] }
 0xb63   : > { %13450 = vmatpush1.bf16.msra.mxu1 %v24009_v51  ;;  %v20564_v51 = vsub.f32 %v2415_v54, %v20559_v46  ;;  %v24024_v54 = vld [vmem:[#allocation112_spill] sm:$0xff] }
 0xb64   : > { %13452 = vmatprep.subr.bf16.mxu1 %v24010_v34  ;;  %v24018_v34 = vld [vmem:[#allocation159_spill] sm:$0xff] }
 0xb65   : > { %v22387_v19 = vand.u32 4294901760, %v20564_v51 }
 0xb67   : > { %13454 = vmatpush1.bf16.msra.mxu1 %v24011_v9  ;;  %v24019_v9 = vld [vmem:[#allocation92_spill] sm:$0xff] }
 0xb68   : > { %13456 = vmatprep.subr.bf16.mxu1 %v24012_v39  ;;  %v24020_v39 = vld [vmem:[#allocation21_spill] sm:$0xff] }
 0xb6b   : > { %13458 = vmatpush1.bf16.msra.mxu1 %v24015_v29 }
 0xb6c   : > { %13460 = vmatprep.subr.bf16.mxu1 %v24016_v16  ;;  %v8673_v16 = vsub.f32 %v20564_v51, %v22387_v19  ;;  %v24031_v19 = vld [vmem:[#allocation10_spill] sm:$0xff] }
 0xb6e   : > { %v8674_v29 = vand.u32 4294901760, %v8673_v16  ;;  %v24033_v16 = vld [vmem:[#allocation74_spill] sm:$0xff] }
 0xb6f   : > { %13462 = vmatpush1.bf16.msra.mxu1 %v24017_v45  ;;  %v24023_v45 = vld [vmem:[#allocation176_spill] sm:$0xff] }
 0xb70   : > { %13464 = vmatprep.subr.bf16.mxu1 %v24018_v34  ;;  %v24025_v34 = vld [vmem:[#allocation179_spill] sm:$0xff] }
 0xb73   : > { %13466 = vmatpush1.bf16.msra.mxu1 %v24019_v9  ;;  %v24027_v9 = vld [vmem:[#allocation40_spill] sm:$0xff] }
 0xb74   : > { %13468 = vmatprep.subr.bf16.mxu1 %v24020_v39  ;;  %v24026_v39 = vld [vmem:[#allocation38_spill] sm:$0xff] }
 0xb77   : > { %13470 = vmatpush1.bf16.msra.mxu1 %v24021_v10  ;;  %v24028_v10 = vld [vmem:[#allocation28_spill] sm:$0xff] }
 0xb78   : > { %13472 = vmatprep.subr.bf16.mxu1 %v24022_v25  ;;  %v24029_v25 = vld [vmem:[#allocation5_spill] sm:$0xff] }
 0xb7b   : > { %13474 = vmatpush1.bf16.msra.mxu1 %v24023_v45  ;;  %v24032_v45 = vld [vmem:[#allocation15_spill] sm:$0xff] }
 0xb7c   : > { %13476 = vmatprep.subr.bf16.mxu1 %v24024_v54  ;;  %v24036_v54 = vld [vmem:[#allocation100_spill] sm:$0xff] }
 0xb7e   : > { %8675 = vmatmul.mubr.f32.vlgmr.msra.gmra.mrb[66].mxu1 %v8674_v29  ;;  %v24034_v29 = vld [vmem:[#allocation33_spill] sm:$0xff] }
 0xb7f   : > { %13478 = vmatpush1.bf16.msra.mxu1 %v24025_v34  ;;  %9066 = vmatprep.mubr.f32.mxu1 %v20514_v0  ;;  %v24035_v34 = vld [vmem:[#allocation78_spill] sm:$0xff] }
 0xb80   : > { %13480 = vmatprep.subr.bf16.mxu1 %v24026_v39  ;;  %v24037_v39 = vld [vmem:[#allocation63_spill] sm:$0xff] }
 0xb83   : > { %13482 = vmatpush1.bf16.msra.mxu1 %v24027_v9  ;;  %v24038_v9 = vld [vmem:[#allocation49_spill] sm:$0xff] }
 0xb84   : > { %13484 = vmatprep.subr.bf16.mxu1 %v24028_v10  ;;  %v24039_v10 = vld [vmem:[#allocation135_spill] sm:$0xff] }
 0xb87   : > { %13486 = vmatpush1.bf16.msra.mxu1 %v24029_v25  ;;  %v24040_v25 = vld [vmem:[#allocation67_spill] sm:$0xff] }
 0xb88   : > { %13488 = vmatprep.subr.bf16.mxu1 %v24030_v28  ;;  %v24041_v28 = vld [vmem:[#allocation114_spill] sm:$0xff] }
 0xb8b   : > { %13490 = vmatpush1.bf16.msra.mxu1 %v24031_v19  ;;  %v24042_v19 = vld [vmem:[#allocation139_spill] sm:$0xff] }
 0xb8c   : > { %13492 = vmatprep.subr.bf16.mxu1 %v24032_v45  ;;  %v24043_v45 = vld [vmem:[#allocation136_spill] sm:$0xff] }
 0xb8f   : > { %13494 = vmatpush1.bf16.msra.mxu1 %v24033_v16  ;;  %v24044_v16 = vld [vmem:[#allocation108_spill] sm:$0xff] }
 0xb90   : > { %13496 = vmatprep.subr.bf16.mxu1 %v24034_v29  ;;  %v24045_v29 = vld [vmem:[#allocation142_spill] sm:$0xff] }
 0xb93   : > { %13498 = vmatpush1.bf16.msra.mxu1 %v24035_v34  ;;  %v24046_v34 = vld [vmem:[#allocation111_spill] sm:$0xff] }
 0xb94   : > { %13500 = vmatprep.subr.bf16.mxu1 %v24036_v54  ;;  %v24047_v54 = vld [vmem:[#allocation145_spill] sm:$0xff] }
 0xb97   : > { %13502 = vmatpush1.bf16.msra.mxu1 %v24037_v39  ;;  %v24048_v39 = vld [vmem:[#allocation144_spill] sm:$0xff] }
 0xb98   : > { %13504 = vmatprep.subr.bf16.mxu1 %v24038_v9  ;;  %v24049_v9 = vld [vmem:[#allocation8_spill] sm:$0xff] }
 0xb9b   : > { %13506 = vmatpush1.bf16.msra.mxu1 %v24039_v10  ;;  %v24050_v10 = vld [vmem:[#allocation152_spill] sm:$0xff] }
 0xb9c   : > { %13508 = vmatprep.subr.bf16.mxu1 %v24040_v25  ;;  %v24051_v25 = vld [vmem:[#allocation23_spill] sm:$0xff] }
 0xb9f   : > { %13510 = vmatpush1.bf16.msra.mxu1 %v24041_v28  ;;  %v24052_v28 = vld [vmem:[#allocation45_spill] sm:$0xff] }
 0xba0   : > { %13512 = vmatprep.subr.bf16.mxu1 %v24042_v19  ;;  %v24053_v19 = vld [vmem:[#allocation16_spill] sm:$0xff] }
 0xba3   : > { %13514 = vmatpush1.bf16.msra.mxu1 %v24043_v45  ;;  %v24054_v45 = vld [vmem:[#allocation168_spill] sm:$0xff] }
 0xba4   : > { %13516 = vmatprep.subr.bf16.mxu1 %v24044_v16  ;;  %v24055_v16 = vld [vmem:[#allocation71_spill] sm:$0xff] }
 0xba7   : > { %13518 = vmatpush1.bf16.msra.mxu1 %v24045_v29  ;;  %v24056_v29 = vld [vmem:[#allocation55_spill] sm:$0xff] }
 0xba8   : > { %13520 = vmatprep.subr.bf16.mxu1 %v24046_v34  ;;  %v24057_v34 = vpack.c.bf16 %v19430_v37, %v24056_v29  ;;  %v24061_v37 = vpack.c.bf16 %v19480_v17, %v19477_v63  ;;  %v24070_v63 = vld [vmem:[#allocation31_spill] sm:$0xff]  ;;  %v24084_v29 = vpack.c.bf16 %v23799_v22, %v23798_v31  ;;  %v24096_v22 = vld [vmem:[#allocation160_spill] sm:$0xff]  ;;  %v24099_v31 = vld [vmem:[#allocation161_spill] sm:$0xff] }
 0xba9   : > { %v24071_v17 = vpack.c.bf16 %v23714_v48, %v24070_v63  ;;  %v24119_v63 = vld [vmem:[#allocation123_spill] sm:$0xff] }
 0xbab   : > { %13522 = vmatpush1.bf16.msra.mxu1 %v24047_v54  ;;  %v24058_v54 = vpack.c.bf16 %v19443_v18, %v19440_v41  ;;  %v24064_v18 = vld [vmem:[#allocation141_spill] sm:$0xff] }
 0xbac   : > { %13524 = vmatprep.subr.bf16.mxu1 %v24048_v39  ;;  %v24059_v39 = vpack.c.bf16 %v19455_v59, %v19452_v23  ;;  %v24065_v41 = vpack.c.bf16 %v23694_v8, %v24064_v18  ;;  %v24066_v59 = vpack.c.bf16 %v23786_v26, %v23695_v5  ;;  %v24067_v23 = vpack.c.bf16 %v19529_v32, %v23787_v40  ;;  %v24079_v26 = vld [vmem:[#allocation68_spill] sm:$0xff] }
 0xbad   : > { %v24078_v32 = vpack.c.bf16 %v23793_v55, %v23725_v49  ;;  %v24081_v40 = vld [vmem:[#allocation96_spill] sm:$0xff]  ;;  %v24085_v49 = vpack.c.bf16 %v23872_v35, %v23800_v20  ;;  %v24090_v55 = vld [vmem:[#allocation157_spill] sm:$0xff] }
 0xbae   : > { %v24082_v48 = vpack.c.bf16 %v23862_v15, %v24081_v40  ;;  %v24087_v15 = vpack.c.bf16 %v23754_v62, %v23752_v53  ;;  %v24091_v20 = vpack.c.bf16 %v19706_v50, %v24090_v55  ;;  %v24095_v53 = vld [vmem:[#allocation81_spill] sm:$0xff]  ;;  %v24114_v18 = vld [vmem:[#allocation24_spill] sm:$0xff]  ;;  %v24130_v40 = vld [vmem:[#allocation159_spill] sm:$0xff] }
 0xbaf   : > { %13526 = vmatpush1.bf16.msra.mxu1 %v24049_v9  ;;  %v24060_v9 = vpack.c.bf16 %v19463_v21, %v19458_v61  ;;  %v24068_v61 = vld [vmem:[#allocation146_spill] sm:$0xff]  ;;  %v24102_v35 = vld [vmem:[#allocation69_spill] sm:$0xff] }
 0xbb0   : > { %13528 = vmatprep.subr.bf16.mxu1 %v24050_v10  ;;  %v24062_v10 = vld [vmem:[#allocation99_spill] sm:$0xff]  ;;  %v24069_v21 = vpack.c.bf16 %v23837_v1, %v24068_v61  ;;  %v24080_v1 = vpack.c.bf16 %v23857_v7, %v24079_v26  ;;  %v24086_v7 = vpack.c.bf16 %v23749_v44, %v23801_v43  ;;  %v24092_v43 = vpack.c.bf16 %v23764_v47, %v19711_v27  ;;  %v24093_v44 = vld [vmem:[#allocation170_spill] sm:$0xff]  ;;  %v24139_v55 = vld [vmem:[#allocation17_spill] sm:$0xff] }
 0xbb1   : > { %v24094_v62 = vpack.c.bf16 %v23767_v38, %v24093_v44  ;;  %v24107_v27 = vld [vmem:[#allocation82_spill] sm:$0xff]  ;;  %v24117_v61 = vld [vmem:[#allocation119_spill] sm:$0xff] }
 0xbb2   : > { %v24128_v26 = vld [vmem:[#allocation158_spill] sm:$0xff] }
 0xbb3   : > { %13530 = vmatpush1.bf16.msra.mxu1 %v24051_v25  ;;  %v24063_v25 = vpack.c.bf16 %v23691_v56, %v24062_v10  ;;  %v24072_v56 = vld [vmem:[#allocation64_spill] sm:$0xff]  ;;  %v24142_v44 = vld [vmem:[#allocation166_spill] sm:$0xff] }
 0xbb4   : > { %13532 = vmatprep.subr.bf16.mxu1 %v24052_v28  ;;  %v24073_v28 = vld [vmem:[#allocation149_spill] sm:$0xff] }
 0xbb5   : > { %v24074_v8 = vpack.c.bf16 %v24072_v56, %v24073_v28  ;;  %v24121_v56 = vld [vmem:[#allocation107_spill] sm:$0xff] }
 0xbb6   : > { %v24122_v28 = vld [vmem:[#allocation115_spill] sm:$0xff] }
 0xbb7   : > { %13534 = vmatpush1.bf16.msra.mxu1 %v24053_v19  ;;  %v24075_v19 = vld [vmem:[#allocation150_spill] sm:$0xff] }
 0xbb8   : > { %13536 = vmatprep.subr.bf16.mxu1 %v24054_v45  ;;  %v24076_v45 = vld [vmem:[#allocation35_spill] sm:$0xff] }
 0xbb9   : > { %v24077_v5 = vpack.c.bf16 %v24075_v19, %v24076_v45  ;;  %v24124_v19 = vld [vmem:[#allocation41_spill] sm:$0xff]  ;;  %v24125_v45 = vld [vmem:[#allocation167_spill] sm:$0xff] }
 0xbbb   : > { %13538 = vmatpush1.bf16.msra.mxu1 %v24055_v16  ;;  %v24083_v16 = vpack.c.bf16 %v23741_v33, %v19616_v13  ;;  %v24088_v13 = vpack.c.bf16 %v23802_v3, %v23756_v30  ;;  %v24089_v33 = vpack.c.bf16 %v23804_v57, %v23803_v14  ;;  %v24097_v30 = vpack.c.bf16 %v24095_v53, %v24096_v22  ;;  %v24098_v3 = vld [vmem:[#allocation162_spill] sm:$0xff]  ;;  %v24101_v57 = vld [vmem:[#allocation172_spill] sm:$0xff]  ;;  %v24145_v22 = vld [vmem:[#allocation169_spill] sm:$0xff] }
 0xbbc   : > { %13540 = vmatprep.subr.bf16.mxu1 %v24057_v34  ;;  %v24100_v14 = vpack.c.bf16 %v24098_v3, %v24099_v31  ;;  %v24103_v50 = vpack.c.bf16 %v24101_v57, %v24102_v35  ;;  %v24104_v34 = vld [vmem:[#allocation175_spill] sm:$0xff]  ;;  %v24144_v53 = vld [vmem:[#allocation154_spill] sm:$0xff]  ;;  %v24152_v35 = vld [vmem:[#allocation57_spill] sm:$0xff] }
 0xbbd   : > { %v24148_v3 = vld [vmem:[#allocation147_spill] sm:$0xff]  ;;  %v24151_v57 = vld [vmem:[#allocation6_spill] sm:$0xff] }
 0xbbe   : > { %9068 = vmatmul.mubr.f32.vlgmr.msra.gmra.mrb[66].mxu1 %v20559_v46  ;;  %v24149_v31 = vld [vmem:[#allocation91_spill] sm:$0xff] }
 0xbbf   : > { %13542 = vmatpush1.bf16.msra.mxu1 %v24058_v54  ;;  %9268 = vmatprep.mubr.f32.mxu1 %v20519_v12  ;;  %v24105_v54 = vld [vmem:[#allocation174_spill] sm:$0xff] }
 0xbc0   : > { %13544 = vmatprep.subr.bf16.mxu1 %v24059_v39  ;;  %v24106_v47 = vpack.c.bf16 %v24104_v34, %v24105_v54  ;;  %v24108_v39 = vld [vmem:[#allocation77_spill] sm:$0xff]  ;;  %v24155_v54 = vld [vmem:[#allocation32_spill] sm:$0xff] }
 0xbc1   : > { %v24109_v38 = vpack.c.bf16 %v24107_v27, %v24108_v39  ;;  %v24154_v34 = vld [vmem:[#allocation181_spill] sm:$0xff]  ;;  %v24157_v27 = vld [vmem:[#allocation183_spill] sm:$0xff]  ;;  %v24158_v39 = vld [vmem:[#allocation184_spill] sm:$0xff] }
 0xbc3   : > { %13546 = vmatpush1.bf16.msra.mxu1 %v24060_v9  ;;  %v24110_v9 = vld [vmem:[#allocation178_spill] sm:$0xff] }
 0xbc4   : > { %13548 = vmatprep.subr.bf16.mxu1 %v24061_v37  ;;  %v24111_v37 = vld [vmem:[#allocation177_spill] sm:$0xff] }
 0xbc5   : > { %v24112_v10 = vpack.c.bf16 %v24110_v9, %v24111_v37  ;;  %v24160_v9 = vld [vmem:[#allocation186_spill] sm:$0xff]  ;;  %v24161_v37 = vld [vmem:[#allocation187_spill] sm:$0xff] }
 0xbc7   : > { %13550 = vmatpush1.bf16.msra.mxu1 %v24063_v25  ;;  %v24113_v25 = vand.u32 4294901760, %v20519_v12 }
 0xbc8   : > { %13552 = vmatprep.subr.bf16.mxu1 %v24065_v41 }
 0xbcb   : > { %13554 = vmatpush1.bf16.msra.mxu1 %v24066_v59  ;;  %v24115_v59 = vld [vmem:[#allocation46_spill] sm:$0xff] }
 0xbcc   : > { %13556 = vmatprep.subr.bf16.mxu1 %v24067_v23  ;;  %v24116_v23 = vld [vmem:[#allocation62_spill] sm:$0xff] }
 0xbcf   : > { %13558 = vmatpush1.bf16.msra.mxu1 %v24069_v21  ;;  %v24118_v21 = vld [vmem:[#allocation151_spill] sm:$0xff] }
 0xbd0   : > { %13560 = vmatprep.subr.bf16.mxu1 %v24071_v17  ;;  %v24120_v17 = vld [vmem:[#allocation60_spill] sm:$0xff] }
 0xbd3   : > { %13562 = vmatpush1.bf16.msra.mxu1 %v24074_v8  ;;  %v24123_v8 = vld [vmem:[#allocation39_spill] sm:$0xff] }
 0xbd4   : > { %13564 = vmatprep.subr.bf16.mxu1 %v24077_v5  ;;  %v24126_v5 = vld [vmem:[#allocation155_spill] sm:$0xff] }
 0xbd7   : > { %13566 = vmatpush1.bf16.msra.mxu1 %v24078_v32  ;;  %v24127_v32 = vld [vmem:[#allocation56_spill] sm:$0xff] }
 0xbd8   : > { %13568 = vmatprep.subr.bf16.mxu1 %v24080_v1  ;;  %v24129_v1 = vld [vmem:[#allocation83_spill] sm:$0xff] }
 0xbdb   : > { %13570 = vmatpush1.bf16.msra.mxu1 %v24082_v48  ;;  %v24131_v48 = vld [vmem:[#allocation92_spill] sm:$0xff] }
 0xbdc   : > { %13572 = vmatprep.subr.bf16.mxu1 %v24083_v16  ;;  %v24132_v16 = vld [vmem:[#allocation21_spill] sm:$0xff] }
 0xbdf   : > { %13574 = vmatpush1.bf16.msra.mxu1 %v24084_v29  ;;  %v24133_v29 = vld [vmem:[#allocation173_spill] sm:$0xff] }
 0xbe0   : > { %13576 = vmatprep.subr.bf16.mxu1 %v24085_v49  ;;  %v24134_v49 = vld [vmem:[#allocation93_spill] sm:$0xff] }
 0xbe3   : > { %13578 = vmatpush1.bf16.msra.mxu1 %v24086_v7  ;;  %v24135_v7 = vld [vmem:[#allocation176_spill] sm:$0xff] }
 0xbe4   : > { %13580 = vmatprep.subr.bf16.mxu1 %v24087_v15  ;;  %v24136_v15 = vld [vmem:[#allocation171_spill] sm:$0xff] }
 0xbe7   : > { %13582 = vmatpush1.bf16.msra.mxu1 %v24088_v13  ;;  %v24137_v13 = vand.u32 4294901760, %v20564_v51 }
 0xbe8   : > { %13584 = vmatprep.subr.bf16.mxu1 %v24089_v33  ;;  %v24138_v33 = vld [vmem:[#allocation52_spill] sm:$0xff] }
 0xbeb   : > { %13586 = vmatpush1.bf16.msra.mxu1 %v24091_v20  ;;  %v24140_v20 = vld [vmem:[#allocation66_spill] sm:$0xff] }
 0xbec   : > { %13588 = vmatprep.subr.bf16.mxu1 %v24092_v43  ;;  %v24141_v43 = vld [vmem:[#allocation19_spill] sm:$0xff] }
 0xbef   : > { %13590 = vmatpush1.bf16.msra.mxu1 %v24094_v62  ;;  %v24143_v62 = vld [vmem:[#allocation153_spill] sm:$0xff] }
 0xbf0   : > { %13592 = vmatprep.subr.bf16.mxu1 %v24097_v30  ;;  %v24147_v30 = vld [vmem:[#allocation59_spill] sm:$0xff] }
 0xbf3   : > { %13594 = vmatpush1.bf16.msra.mxu1 %v24100_v14  ;;  %v24150_v14 = vld [vmem:[#allocation180_spill] sm:$0xff] }
 0xbf4   : > { %13596 = vmatprep.subr.bf16.mxu1 %v24103_v50  ;;  %v24153_v50 = vld [vmem:[#allocation98_spill] sm:$0xff] }
 0xbf7   : > { %13598 = vmatpush1.bf16.msra.mxu1 %v24106_v47  ;;  %v24156_v47 = vld [vmem:[#allocation182_spill] sm:$0xff] }
 0xbf8   : > { %13600 = vmatprep.subr.bf16.mxu1 %v24109_v38  ;;  %v24159_v38 = vld [vmem:[#allocation185_spill] sm:$0xff] }
 0xbfb   : > { %13602 = vmatpush1.bf16.msra.mxu1 %v24112_v10  ;;  %v24162_v10 = vld [vmem:[#allocation188_spill] sm:$0xff] }
 0xbfc   : > { %13604 = vmatprep.subr.bf16.mxu1 %v23990_v58 }
 0xbfe   : > { %9271 = vmatmul.mubr.f32.vlgmr.msra.gmra.mrb[66].mxu1 %v20564_v51  ;;  %v24146_v51 = vld [vmem:[#allocation156_spill] sm:$0xff] }
 0xbff   : > { %13606 = vmatpush1.bf16.msra.mxu1 %v23991_v6  ;;  %9408 = vmatprep.mubr.f32.mxu1 %v24113_v25  ;;  %v24163_v25 = vld [vmem:[#allocation37_spill] sm:$0xff] }
 0xc00   : > { %13608 = vmatprep.subr.bf16.mxu1 %v23992_v42 }
 0xc03   : > { %13610 = vmatpush1.bf16.msra.mxu1 %v23993_v4 }
 0xc04   : > { %13612 = vmatprep.subr.bf16.mxu1 %v23994_v24 }
 0xc07   : > { %13614 = vmatpush1.bf16.msra.mxu1 %v23995_v2 }
 0xc08   : > { %13616 = vmatprep.subr.bf16.mxu1 %v23996_v52 }
 0xc0b   : > { %13618 = vmatpush1.bf16.msra.mxu1 %v23997_v60 }
 0xc0c   : > { %13620 = vmatprep.subr.bf16.mxu1 %v23998_v36 }
 0xc0f   : > { %13622 = vmatpush1.bf16.msra.mxu1 %v23999_v11 }
 0xc10   : > { %13624 = vmatprep.subr.bf16.mxu1 %v24114_v18 }
 0xc11   : > { %v20721_v12 = vpop.f32.mrb[64].mxu1 }
 0xc12   : > { %v20723_v41 = vpop.f32.mrb[65].mxu1  ;;  %15078 = vrcp.f32 %v20721_v12 }
 0xc13   : > { %13626 = vmatpush1.bf16.msra.mxu1 %v24115_v59  ;;  %15080 = vrcp.f32 %v20723_v41 }
 0xc14   : > { %13628 = vmatprep.subr.bf16.mxu1 %v24116_v23 }
 0xc17   : > { %13630 = vmatpush1.bf16.msra.mxu1 %v24117_v61 }
 0xc18   : > { %13632 = vmatprep.subr.bf16.mxu1 %v24118_v21 }
 0xc1b   : > { %13634 = vmatpush1.bf16.msra.mxu1 %v24119_v63 }
 0xc1c   : > { %13636 = vmatprep.subr.bf16.mxu1 %v24120_v17 }
 0xc1f   : > { %13638 = vmatpush1.bf16.msra.mxu1 %v24121_v56 }
 0xc20   : > { %13640 = vmatprep.subr.bf16.mxu1 %v24122_v28 }
 0xc23   : > { %13642 = vmatpush1.bf16.msra.mxu1 %v24123_v8 }
 0xc24   : > { %13644 = vmatprep.subr.bf16.mxu1 %v24124_v19 }
 0xc27   : > { %13646 = vmatpush1.bf16.msra.mxu1 %v24125_v45 }
 0xc28   : > { %13648 = vmatprep.subr.bf16.mxu1 %v24126_v5 }
 0xc2b   : > { %13650 = vmatpush1.bf16.msra.mxu1 %v24127_v32 }
 0xc2c   : > { %13652 = vmatprep.subr.bf16.mxu1 %v24128_v26 }
 0xc2f   : > { %13654 = vmatpush1.bf16.msra.mxu1 %v24129_v1 }
 0xc30   : > { %13656 = vmatprep.subr.bf16.mxu1 %v24130_v40 }
 0xc33   : > { %13658 = vmatpush1.bf16.msra.mxu1 %v24131_v48 }
 0xc34   : > { %13660 = vmatprep.subr.bf16.mxu1 %v24132_v16 }
 0xc37   : > { %13662 = vmatpush1.bf16.msra.mxu1 %v24133_v29 }
 0xc38   : > { %13664 = vmatprep.subr.bf16.mxu1 %v24134_v49 }
 0xc3b   : > { %13666 = vmatpush1.bf16.msra.mxu1 %v24135_v7 }
 0xc3c   : > { %13668 = vmatprep.subr.bf16.mxu1 %v24136_v15  ;;  %v24164_v15 = vld [vmem:[#allocation189_spill] sm:$0xff] }
 0xc3e   : > { %9412 = vmatmul.mubr.f32.vlgmr.msra.gmra.mrb[66].mxu1 %v24137_v13  ;;  %v24165_v13 = vld [vmem:[#allocation190_spill] sm:$0xff] }
 0xc3f   : > { %13670 = vmatpush1.bf16.msra.mxu1 %v24138_v33  ;;  %9675 = vmatprep.mubr.f32.mxu1 %v20514_v0  ;;  %v24166_v33 = vld [vmem:[#allocation191_spill] sm:$0xff] }
 0xc40   : > { %13672 = vmatprep.subr.bf16.mxu1 %v24139_v55  ;;  %v24167_v55 = vld [vmem:[#allocation14_spill] sm:$0xff] }
 0xc43   : > { %13674 = vmatpush1.bf16.msra.mxu1 %v24140_v20  ;;  %v24168_v20 = vld [vmem:[#allocation192_spill] sm:$0xff] }
 0xc44   : > { %13676 = vmatprep.subr.bf16.mxu1 %v24141_v43 }
 0xc47   : > { %13678 = vmatpush1.bf16.msra.mxu1 %v24142_v44 }
 0xc48   : > { %13680 = vmatprep.subr.bf16.mxu1 %v24143_v62 }
 0xc4b   : > { %13682 = vmatpush1.bf16.msra.mxu1 %v24144_v53 }
 0xc4c   : > { %13684 = vmatprep.subr.bf16.mxu1 %v24145_v22 }
 0xc4f   : > { %13686 = vmatpush1.bf16.msra.mxu1 %v24146_v51 }
 0xc50   : > { %13688 = vmatprep.subr.bf16.mxu1 %v24147_v30 }
 0xc53   : > { %13690 = vmatpush1.bf16.msra.mxu1 %v24148_v3 }
 0xc54   : > { %13692 = vmatprep.subr.bf16.mxu1 %v24149_v31 }
 0xc57   : > { %13694 = vmatpush1.bf16.msra.mxu1 %v24150_v14 }
 0xc58   : > { %13696 = vmatprep.subr.bf16.mxu1 %v24151_v57 }
 0xc5b   : > { %13698 = vmatpush1.bf16.msra.mxu1 %v24152_v35 }
 0xc5c   : > { %13700 = vmatprep.subr.bf16.mxu1 %v24153_v50 }
 0xc5f   : > { %13702 = vmatpush1.bf16.msra.mxu1 %v24154_v34 }
 0xc60   : > { %13704 = vmatprep.subr.bf16.mxu1 %v24155_v54 }
 0xc63   : > { %13706 = vmatpush1.bf16.msra.mxu1 %v24156_v47 }
 0xc64   : > { %13708 = vmatprep.subr.bf16.mxu1 %v24157_v27 }
 0xc67   : > { %13710 = vmatpush1.bf16.msra.mxu1 %v24158_v39 }
 0xc68   : > { %13712 = vmatprep.subr.bf16.mxu1 %v24159_v38 }
 0xc6b   : > { %13714 = vmatpush1.bf16.msra.mxu1 %v24160_v9 }
 0xc6c   : > { %13716 = vmatprep.subr.bf16.mxu1 %v24161_v37 }
 0xc6f   : > { %13718 = vmatpush1.bf16.msra.mxu1 %v24162_v10 }
 0xc70   : > { %13720 = vmatprep.subr.bf16.mxu1 %v24163_v25 }
 0xc73   : > { %13722 = vmatpush1.bf16.msra.mxu1 %v24164_v15 }
 0xc74   : > { %13724 = vmatprep.subr.bf16.mxu1 %v24165_v13 }
 0xc77   : > { %13726 = vmatpush1.bf16.msra.mxu1 %v24166_v33 }
 0xc78   : > { %13728 = vmatprep.subr.bf16.mxu1 %v24167_v55 }
 0xc7b   : > { %13730 = vmatpush1.bf16.msra.mxu1 %v24168_v20 }
 0xc7c   : > { %13732 = vmatprep.subr.bf16.mxu1 %v23990_v58 }
 0xc7e   : > { %9677 = vmatmul.mubr.f32.vlgmr.msra.gmra.mrb[66].mxu1 %v20559_v46 }
 0xc7f   : > { %13734 = vmatpush1.bf16.msra.mxu1 %v23991_v6  ;;  %9812 = vmatprep.mubr.f32.mxu1 %v20514_v0  ;;  %v285_v0 = vld [vmem:[%s21460_s5] sm:$0xff] }
 0xc80   : > { %13736 = vmatprep.subr.bf16.mxu1 %v23992_v42  ;;  %v10019_v58 = vsel %vm396_vm0, %v285_v0, 0  ;;  %v9828_v42 = vlaneseq }
 0xc81   : > { %v20820_v6 = vand.u32 4294901760, %v10019_v58 }
 0xc83   : > { %13738 = vmatpush1.bf16.msra.mxu1 %v23993_v4  ;;  %12703 = vmatprep.subr.mxu0 %v20820_v6 }
 0xc84   : > { %13740 = vmatprep.subr.bf16.mxu1 %v23994_v24  ;;  %12704 = vmatpush3.xpose.msra.mxu0 %v20820_v6 }
 0xc87   : > { %13742 = vmatpush1.bf16.msra.mxu1 %v23995_v2  ;;  %v9829_v2 = vshrl.u32 %v9828_v42, 7 }
 0xc88   : > { %13744 = vmatprep.subr.bf16.mxu1 %v23996_v52 }
 0xc89   : > { %v9830_v52 = vsub.s32 4, %v9829_v2 }
 0xc8b   : > { %13746 = vmatpush1.bf16.msra.mxu1 %v23997_v60  ;;  %v15079_v60 = vpop.eup %15078 }
 0xc8c   : > { %13748 = vmatprep.subr.bf16.mxu1 %v23998_v36  ;;  %v15081_v36 = vpop.eup %15080 }
 0xc8f   : > { %13750 = vmatpush1.bf16.msra.mxu1 %v23999_v11  ;;  %v9831_v11 = vrot.slane %v15079_v60, %v9830_v52 }
 0xc90   : > { %13752 = vmatprep.subr.bf16.mxu1 %v24114_v18  ;;  %v9835_v18 = vrot.slane %v15081_v36, %v9830_v52 }
 0xc93   : > { %13754 = vmatpush1.bf16.msra.mxu1 %v24115_v59 }
 0xc94   : > { %13756 = vmatprep.subr.bf16.mxu1 %v24116_v23 }
 0xc97   : > { %13758 = vmatpush1.bf16.msra.mxu1 %v24117_v61 }
 0xc98   : > { %13760 = vmatprep.subr.bf16.mxu1 %v24118_v21  ;;  %v9844_v21 = vmul.f32 %v9831_v11, %v20721_v12 }
 0xc9b   : > { %13762 = vmatpush1.bf16.msra.mxu1 %v24119_v63 }
 0xc9c   : > { %13764 = vmatprep.subr.bf16.mxu1 %v24120_v17  ;;  %v9845_v17 = vmul.f32 %v9835_v18, %v20723_v41 }
 0xc9f   : > { %13766 = vmatpush1.bf16.msra.mxu1 %v24121_v56 }
 0xca0   : > { %13768 = vmatprep.subr.bf16.mxu1 %v24122_v28 }
 0xca3   : > { %13770 = vmatpush1.bf16.msra.mxu1 %v24123_v8 }
 0xca4   : > { %13772 = vmatprep.subr.bf16.mxu1 %v24124_v19  ;;  %v20831_v19 = vsub.f32 %v10019_v58, %v20820_v6 }
 0xca7   : > { %13774 = vmatpush1.bf16.msra.mxu1 %v24125_v45  ;;  %v20834_v45 = vand.u32 4294901760, %v20831_v19 }
 0xca8   : > { %13776 = vmatprep.subr.bf16.mxu1 %v24126_v5 }
 0xca9   : > { %v10411_v5 = vsub.f32 %v20831_v19, %v20834_v45 }
 0xcab   : > { %13778 = vmatpush1.bf16.msra.mxu1 %v24127_v32  ;;  %v10412_v32 = vand.u32 4294901760, %v10411_v5 }
 0xcac   : > { %13780 = vmatprep.subr.bf16.mxu1 %v24128_v26 }
 0xcad   : > { %12753 = vmatprep.subr.mxu0 %v10412_v32 }
 0xcaf   : > { %13782 = vmatpush1.bf16.msra.mxu1 %v24129_v1 }
 0xcb0   : > { %13784 = vmatprep.subr.bf16.mxu1 %v24130_v40 }
 0xcb3   : > { %13786 = vmatpush1.bf16.msra.mxu1 %v24131_v48 }
 0xcb4   : > { %13788 = vmatprep.subr.bf16.mxu1 %v24132_v16 }
 0xcb7   : > { %13790 = vmatpush1.bf16.msra.mxu1 %v24133_v29 }
 0xcb8   : > { %13792 = vmatprep.subr.bf16.mxu1 %v24134_v49 }
 0xcbb   : > { %13794 = vmatpush1.bf16.msra.mxu1 %v24135_v7 }
 0xcbc   : > { %13795 = vmatprep.subr.mxu1 %v20820_v6 }
 0xcbe   : > { %9814 = vmatmul.mubr.f32.vlgmr.msra.gmra.mrb[66].mxu1 %v20559_v46 }
 0xcc4   : > { %13796 = vmatpush3.xpose.msra.mxu1 %v20820_v6 }
 0xd91   : > { %v9815_v4 = vpop.f32.mrb[66].mxu1 }
 0xd92   : > { %15082 = vrcp.f32 %v9815_v4  ;;  %v9817_v24 = vpop.f32.mrb[67].mxu1 }
 0xd93   : > { %15084 = vrcp.f32 %v9817_v24 }
 0xd9c   : > { %v15083_v46 = vpop.eup %15082 }
 0xd9d   : > { %v15085_v59 = vpop.eup %15084  ;;  %v9839_v23 = vrot.slane %v15083_v46, %v9830_v52 }
 0xd9e   : > { %v9843_v61 = vrot.slane %v15085_v59, %v9830_v52 }
 0xd9f   : > { %v9846_v63 = vmul.f32 %v9839_v23, %v9815_v4 }
 0xda0   : > { %v9847_v56 = vmul.f32 %v9843_v61, %v9817_v24 }
 0xda1   : > { %v11962_v28 = vcombine.low %v9844_v21, %v9846_v63 }
 0xda2   : > { %v11963_v8 = vcombine.low %v9845_v17, %v9847_v56 }
 0xda3   : > { %9858 = vxpose.xlu0.b32.start.end [1/1] (short) %v11962_v28, 128 }
 0xde0   : > { %9890 = vxpose.xlu0.b32.start.end [1/1] (short) %v11963_v8, 128 }
 0xe23   : > { %v9874_v12 = vpop.trf.xlu0 }
 0xe24   : > { %v9923_v26 = vsel %vm396_vm0, %v9874_v12, 0 }
 0xe25   : > { %v20839_v41 = vand.u32 4294901760, %v9923_v26 }
 0xe27   : > { %v20842_v1 = vsub.f32 %v9923_v26, %v20839_v41  ;;  %v9875_v40 = vpop.trf.xlu0 }
 0xe28   : > { %v9926_v48 = vsel %vm396_vm0, %v9875_v40, 0 }
 0xe29   : > { %v22411_v16 = vand.u32 4294901760, %v20842_v1  ;;  %v20846_v29 = vand.u32 4294901760, %v9926_v48 }
 0xe2b   : > { %v20849_v49 = vsub.f32 %v9926_v48, %v20846_v29  ;;  %v9876_v7 = vpop.trf.xlu0  ;;  %v10090_v43 = vsub.f32 %v20842_v1, %v22411_v16 }
 0xe2c   : > { %v9929_v44 = vsel %vm396_vm0, %v9876_v7, 0 }
 0xe2d   : > { %v22410_v62 = vand.u32 4294901760, %v20849_v49  ;;  %v20856_v53 = vand.u32 4294901760, %v9929_v44  ;;  %v10091_v22 = vand.u32 4294901760, %v10090_v43 }
 0xe2f   : > { %v10100_v51 = vsub.f32 %v20849_v49, %v22410_v62  ;;  %v20862_v30 = vsub.f32 %v9929_v44, %v20856_v53  ;;  %v9877_v3 = vpop.trf.xlu0  ;;  %12705 = vmatprep.mubr.f32.mxu0 %v10091_v22 }
 0xe30   : > { %v9932_v31 = vsel %vm396_vm0, %v9877_v3, 0 }
 0xe31   : > { %v10101_v14 = vand.u32 4294901760, %v10100_v51  ;;  %v22408_v57 = vand.u32 4294901760, %v20862_v30  ;;  %v20866_v35 = vand.u32 4294901760, %v9932_v31 }
 0xe33   : > { %v20869_v50 = vsub.f32 %v9932_v31, %v20866_v35  ;;  %v9878_v34 = vpop.trf.xlu0  ;;  %12706 = vmatmul.mubr.f32.vlgmr.msra.gmra.mrb[96].mxu0 %v10101_v14  ;;  %v10110_v54 = vsub.f32 %v20862_v30, %v22408_v57 }
 0xe34   : > { %v9935_v47 = vsel %vm396_vm0, %v9878_v34, 0  ;;  %12754 = vmatpush3.xpose.msra.mxu0 %v10412_v32 }
 0xe35   : > { %v22407_v27 = vand.u32 4294901760, %v20869_v50  ;;  %v20876_v39 = vand.u32 4294901760, %v9935_v47  ;;  %v10111_v38 = vand.u32 4294901760, %v10110_v54  ;;  %12803 = vmatprep.subr.mxu0 %v20831_v19 }
 0xe37   : > { %v20880_v9 = vsub.f32 %v9935_v47, %v20876_v39  ;;  %v9879_v37 = vpop.trf.xlu0  ;;  %12708 = vmatprep.mubr.f32.mxu0 %v10111_v38  ;;  %v10120_v10 = vsub.f32 %v20869_v50, %v22407_v27 }
 0xe38   : > { %v9938_v25 = vsel %vm396_vm0, %v9879_v37, 0 }
 0xe39   : > { %v22405_v15 = vand.u32 4294901760, %v20880_v9  ;;  %v20887_v13 = vand.u32 4294901760, %v9938_v25  ;;  %v10121_v33 = vand.u32 4294901760, %v10120_v10 }
 0xe3b   : > { %v20890_v55 = vsub.f32 %v9938_v25, %v20887_v13  ;;  %v9880_v20 = vpop.trf.xlu0  ;;  %12709 = vmatmul.mubr.f32.gmra.mrb[98].mxu0 %v10121_v33  ;;  %v10130_v0 = vsub.f32 %v20880_v9, %v22405_v15 }
 0xe3c   : > { %v9941_v58 = vsel %vm396_vm0, %v9880_v20, 0 }
 0xe3d   : > { %v22404_v42 = vand.u32 4294901760, %v20890_v55  ;;  %v20897_v4 = vand.u32 4294901760, %v9941_v58  ;;  %v10131_v24 = vand.u32 4294901760, %v10130_v0 }
 0xe3f   : > { %v20900_v2 = vsub.f32 %v9941_v58, %v20897_v4  ;;  %v9881_v52 = vpop.trf.xlu0  ;;  %12711 = vmatprep.mubr.f32.mxu0 %v10131_v24  ;;  %v10140_v60 = vsub.f32 %v20890_v55, %v22404_v42 }
 0xe40   : > { %v9944_v36 = vsel %vm396_vm0, %v9881_v52, 0 }
 0xe41   : > { %v22402_v11 = vand.u32 4294901760, %v20900_v2  ;;  %v20907_v46 = vand.u32 4294901760, %v9944_v36  ;;  %v10141_v18 = vand.u32 4294901760, %v10140_v60 }
 0xe43   : > { %v20910_v59 = vsub.f32 %v9944_v36, %v20907_v46  ;;  %v9882_v23 = vpop.trf.xlu0  ;;  %12712 = vmatmul.mubr.f32.gmra.mrb[100].mxu0 %v10141_v18  ;;  %v10150_v61 = vsub.f32 %v20900_v2, %v22402_v11 }
 0xe44   : > { %v9947_v21 = vsel %vm396_vm0, %v9882_v23, 0 }
 0xe45   : > { %v22401_v63 = vand.u32 4294901760, %v20910_v59  ;;  %v20917_v17 = vand.u32 4294901760, %v9947_v21  ;;  %v10151_v56 = vand.u32 4294901760, %v10150_v61 }
 0xe47   : > { %v20920_v28 = vsub.f32 %v9947_v21, %v20917_v17  ;;  %v9883_v8 = vpop.trf.xlu0  ;;  %12714 = vmatprep.mubr.f32.mxu0 %v10151_v56  ;;  %v10160_v5 = vsub.f32 %v20910_v59, %v22401_v63 }
 0xe48   : > { %v9950_v32 = vsel %vm396_vm0, %v9883_v8, 0 }
 0xe49   : > { %v22399_v12 = vand.u32 4294901760, %v20920_v28  ;;  %v20927_v26 = vand.u32 4294901760, %v9950_v32  ;;  %v10161_v40 = vand.u32 4294901760, %v10160_v5 }
 0xe4b   : > { %v20930_v48 = vsub.f32 %v9950_v32, %v20927_v26  ;;  %v9884_v7 = vpop.trf.xlu0  ;;  %12715 = vmatmul.mubr.f32.gmra.mrb[102].mxu0 %v10161_v40  ;;  %v10170_v43 = vsub.f32 %v20920_v28, %v22399_v12 }
 0xe4c   : > { %v9953_v44 = vsel %vm396_vm0, %v9884_v7, 0 }
 0xe4d   : > { %v22398_v22 = vand.u32 4294901760, %v20930_v48  ;;  %v20937_v51 = vand.u32 4294901760, %v9953_v44  ;;  %v10171_v3 = vand.u32 4294901760, %v10170_v43 }
 0xe4f   : > { %v20940_v31 = vsub.f32 %v9953_v44, %v20937_v51  ;;  %v9885_v14 = vpop.trf.xlu0  ;;  %12717 = vmatprep.mubr.f32.mxu0 %v10171_v3  ;;  %v10180_v34 = vsub.f32 %v20930_v48, %v22398_v22 }
 0xe50   : > { %v9956_v54 = vsel %vm396_vm0, %v9885_v14, 0 }
 0xe51   : > { %v22396_v47 = vand.u32 4294901760, %v20940_v31  ;;  %v20947_v38 = vand.u32 4294901760, %v9956_v54  ;;  %v10181_v37 = vand.u32 4294901760, %v10180_v34 }
 0xe53   : > { %v20950_v10 = vsub.f32 %v9956_v54, %v20947_v38  ;;  %v9886_v25 = vpop.trf.xlu0  ;;  %12718 = vmatmul.mubr.f32.gmra.mrb[104].mxu0 %v10181_v37  ;;  %v10190_v33 = vsub.f32 %v20940_v31, %v22396_v47 }
 0xe54   : > { %v9959_v20 = vsel %vm396_vm0, %v9886_v25, 0 }
 0xe55   : > { %v22395_v0 = vand.u32 4294901760, %v20950_v10  ;;  %v20957_v58 = vand.u32 4294901760, %v9959_v20  ;;  %v10191_v24 = vand.u32 4294901760, %v10190_v33 }
 0xe57   : > { %v20960_v52 = vsub.f32 %v9959_v20, %v20957_v58  ;;  %v9887_v60 = vpop.trf.xlu0  ;;  %12720 = vmatprep.mubr.f32.mxu0 %v10191_v24  ;;  %v10200_v36 = vsub.f32 %v20950_v10, %v22395_v0 }
 0xe58   : > { %v9962_v18 = vsel %vm396_vm0, %v9887_v60, 0 }
 0xe59   : > { %v22393_v23 = vand.u32 4294901760, %v20960_v52  ;;  %v20967_v61 = vand.u32 4294901760, %v9962_v18  ;;  %v10201_v21 = vand.u32 4294901760, %v10200_v36 }
 0xe5b   : > { %v20970_v56 = vsub.f32 %v9962_v18, %v20967_v61  ;;  %v9888_v8 = vpop.trf.xlu0  ;;  %12721 = vmatmul.mubr.f32.gmra.mrb[106].mxu0 %v10201_v21  ;;  %v10210_v5 = vsub.f32 %v20960_v52, %v22393_v23 }
 0xe5c   : > { %v9965_v32 = vsel %vm396_vm0, %v9888_v8, 0 }
 0xe5d   : > { %v22392_v40 = vand.u32 4294901760, %v20970_v56  ;;  %v20977_v7 = vand.u32 4294901760, %v9965_v32  ;;  %v10211_v43 = vand.u32 4294901760, %v10210_v5 }
 0xe5f   : > { %v20980_v44 = vsub.f32 %v9965_v32, %v20977_v7  ;;  %v9889_v3 = vpop.trf.xlu0  ;;  %12723 = vmatprep.mubr.f32.mxu0 %v10211_v43  ;;  %v10220_v14 = vsub.f32 %v20970_v56, %v22392_v40 }
 0xe60   : > { %v9968_v34 = vsel %vm396_vm0, %v9889_v3, 0 }
 0xe61   : > { %v22390_v54 = vand.u32 4294901760, %v20980_v44  ;;  %v20987_v37 = vand.u32 4294901760, %v9968_v34  ;;  %v10221_v25 = vand.u32 4294901760, %v10220_v14 }
 0xe63   : > { %v20990_v33 = vsub.f32 %v9968_v34, %v20987_v37  ;;  %12724 = vmatmul.mubr.f32.gmra.mrb[108].mxu0 %v10221_v25  ;;  %v10230_v20 = vsub.f32 %v20980_v44, %v22390_v54  ;;  %v9906_v24 = vpop.trf.xlu0 }
 0xe64   : > { %v9971_v60 = vsel %vm396_vm0, %v9906_v24, 0 }
 0xe65   : > { %v22388_v36 = vand.u32 4294901760, %v20990_v33  ;;  %v10231_v18 = vand.u32 4294901760, %v10230_v20  ;;  %v20997_v21 = vand.u32 4294901760, %v9971_v60 }
 0xe67   : > { %24169 = vst [vmem:[#allocation61_spill] sm:$0xff] %v20997_v21  ;;  %12726 = vmatprep.mubr.f32.mxu0 %v10231_v18  ;;  %v10240_v8 = vsub.f32 %v20990_v33, %v22388_v36  ;;  %v21003_v5 = vsub.f32 %v9971_v60, %v20997_v21  ;;  %v9907_v32 = vpop.trf.xlu0 }
 0xe68   : > { %v9974_v43 = vsel %vm396_vm0, %v9907_v32, 0 }
 0xe69   : > { %v10241_v3 = vand.u32 4294901760, %v10240_v8  ;;  %v22389_v14 = vand.u32 4294901760, %v21003_v5  ;;  %v21007_v34 = vand.u32 4294901760, %v9974_v43 }
 0xe6b   : > { %24170 = vst [vmem:[#allocation88_spill] sm:$0xff] %v21007_v34  ;;  %12727 = vmatmul.mubr.f32.gmra.mrb[110].mxu0 %v10241_v3  ;;  %v21010_v25 = vsub.f32 %v9974_v43, %v21007_v34  ;;  %v9908_v20 = vpop.trf.xlu0  ;;  %v10250_v24 = vsub.f32 %v21003_v5, %v22389_v14 }
 0xe6c   : > { %12755 = vmatprep.mubr.f32.mxu0 %v20839_v41  ;;  %v9977_v60 = vsel %vm396_vm0, %v9908_v20, 0 }
 0xe6d   : > { %v22391_v18 = vand.u32 4294901760, %v21010_v25  ;;  %v21018_v8 = vand.u32 4294901760, %v9977_v60  ;;  %v10251_v32 = vand.u32 4294901760, %v10250_v24 }
 0xe6f   : > { %24171 = vst [vmem:[#allocation89_spill] sm:$0xff] %v21018_v8  ;;  %12756 = vmatmul.mubr.f32.vlgmr.msra.gmra.mrb[96].mxu0 %v20846_v29  ;;  %v10260_v43 = vsub.f32 %v21010_v25, %v22391_v18  ;;  %v21025_v3 = vsub.f32 %v9977_v60, %v21018_v8  ;;  %v9909_v36 = vpop.trf.xlu0  ;;  %12729 = vmatprep.mubr.f32.mxu1 %v10251_v32 }
 0xe70   : > { %12758 = vmatprep.mubr.f32.mxu0 %v20856_v53  ;;  %v9980_v20 = vsel %vm396_vm0, %v9909_v36, 0  ;;  %12804 = vmatpush3.xpose.msra.mxu0 %v20831_v19 }
 0xe71   : > { %v10261_v14 = vand.u32 4294901760, %v10260_v43  ;;  %v22394_v24 = vand.u32 4294901760, %v21025_v3  ;;  %v21031_v54 = vand.u32 4294901760, %v9980_v20  ;;  %12853 = vmatprep.subr.mxu0 %v20820_v6 }
 0xe73   : > { %24172 = vst [vmem:[#allocation134_spill] sm:$0xff] %v21031_v54  ;;  %12759 = vmatmul.mubr.f32.gmra.mrb[98].mxu0 %v20866_v35  ;;  %v21036_v60 = vsub.f32 %v9980_v20, %v21031_v54  ;;  %v9910_v18 = vpop.trf.xlu0  ;;  %12730 = vmatmul.mubr.f32.vlgmr.msra.gmra.mrb[68].mxu1 %v10261_v14  ;;  %v10270_v36 = vsub.f32 %v21025_v3, %v22394_v24 }
 0xe74   : > { %12761 = vmatprep.mubr.f32.mxu0 %v20876_v39  ;;  %v9983_v19 = vsel %vm396_vm0, %v9910_v18, 0 }
 0xe75   : > { %v22397_v32 = vand.u32 4294901760, %v21036_v60  ;;  %v21044_v43 = vand.u32 4294901760, %v9983_v19  ;;  %v10271_v40 = vand.u32 4294901760, %v10270_v36 }
 0xe77   : > { %24173 = vst [vmem:[#allocation138_spill] sm:$0xff] %v21044_v43  ;;  %12762 = vmatmul.mubr.f32.gmra.mrb[100].mxu0 %v20887_v13  ;;  %v21048_v20 = vsub.f32 %v9983_v19, %v21044_v43  ;;  %v9911_v23 = vpop.trf.xlu0  ;;  %12732 = vmatprep.mubr.f32.mxu1 %v10271_v40  ;;  %v10280_v14 = vsub.f32 %v21036_v60, %v22397_v32 }
 0xe78   : > { %12764 = vmatprep.mubr.f32.mxu0 %v20897_v4  ;;  %v9986_v18 = vsel %vm396_vm0, %v9911_v23, 0 }
 0xe79   : > { %v22400_v24 = vand.u32 4294901760, %v21048_v20  ;;  %v21056_v0 = vand.u32 4294901760, %v9986_v18  ;;  %v10281_v36 = vand.u32 4294901760, %v10280_v14 }
 0xe7b   : > { %24174 = vst [vmem:[#allocation140_spill] sm:$0xff] %v21056_v0  ;;  %12765 = vmatmul.mubr.f32.gmra.mrb[102].mxu0 %v20907_v46  ;;  %v21060_v19 = vsub.f32 %v9986_v18, %v21056_v0  ;;  %v9912_v47 = vpop.trf.xlu0  ;;  %12733 = vmatmul.mubr.f32.gmra.mrb[70].mxu1 %v10281_v36  ;;  %v10290_v40 = vsub.f32 %v21048_v20, %v22400_v24 }
 0xe7c   : > { %12767 = vmatprep.mubr.f32.mxu0 %v20917_v17  ;;  %v9989_v23 = vsel %vm396_vm0, %v9912_v47, 0 }
 0xe7d   : > { %v22403_v32 = vand.u32 4294901760, %v21060_v19  ;;  %v21068_v22 = vand.u32 4294901760, %v9989_v23  ;;  %v10291_v14 = vand.u32 4294901760, %v10290_v40 }
 0xe7f   : > { %24175 = vst [vmem:[#allocation44_spill] sm:$0xff] %v21068_v22  ;;  %12768 = vmatmul.mubr.f32.gmra.mrb[104].mxu0 %v20927_v26  ;;  %v21072_v18 = vsub.f32 %v9989_v23, %v21068_v22  ;;  %v9913_v12 = vpop.trf.xlu0  ;;  %12735 = vmatprep.mubr.f32.mxu1 %v10291_v14  ;;  %v10300_v36 = vsub.f32 %v21060_v19, %v22403_v32 }
 0xe80   : > { %12770 = vmatprep.mubr.f32.mxu0 %v20937_v51  ;;  %v9992_v47 = vsel %vm396_vm0, %v9913_v12, 0 }
 0xe81   : > { %v22406_v24 = vand.u32 4294901760, %v21072_v18  ;;  %v21080_v63 = vand.u32 4294901760, %v9992_v47  ;;  %v10301_v40 = vand.u32 4294901760, %v10300_v36 }
 0xe83   : > { %24176 = vst [vmem:[#allocation48_spill] sm:$0xff] %v21080_v63  ;;  %12771 = vmatmul.mubr.f32.gmra.mrb[106].mxu0 %v20947_v38  ;;  %v21084_v23 = vsub.f32 %v9992_v47, %v21080_v63  ;;  %v9914_v11 = vpop.trf.xlu0  ;;  %12736 = vmatmul.mubr.f32.gmra.mrb[72].mxu1 %v10301_v40  ;;  %v10310_v14 = vsub.f32 %v21072_v18, %v22406_v24 }
 0xe84   : > { %12773 = vmatprep.mubr.f32.mxu0 %v20957_v58  ;;  %v9995_v12 = vsel %vm396_vm0, %v9914_v11, 0 }
 0xe85   : > { %v22409_v32 = vand.u32 4294901760, %v21084_v23  ;;  %v21092_v42 = vand.u32 4294901760, %v9995_v12  ;;  %v10311_v36 = vand.u32 4294901760, %v10310_v14 }
 0xe87   : > { %24177 = vst [vmem:[#allocation143_spill] sm:$0xff] %v21092_v42  ;;  %12774 = vmatmul.mubr.f32.gmra.mrb[108].mxu0 %v20967_v61  ;;  %v21096_v47 = vsub.f32 %v9995_v12, %v21092_v42  ;;  %v9915_v15 = vpop.trf.xlu0  ;;  %12738 = vmatprep.mubr.f32.mxu1 %v10311_v36  ;;  %v10320_v40 = vsub.f32 %v21084_v23, %v22409_v32 }
 0xe88   : > { %12776 = vmatprep.mubr.f32.mxu0 %v20977_v7  ;;  %v9998_v11 = vsel %vm396_vm0, %v9915_v15, 0 }
 0xe89   : > { %v22412_v24 = vand.u32 4294901760, %v21096_v47  ;;  %v21104_v27 = vand.u32 4294901760, %v9998_v11  ;;  %v10321_v14 = vand.u32 4294901760, %v10320_v40 }
 0xe8b   : > { %12777 = vmatmul.mubr.f32.gmra.mrb[110].mxu0 %v20987_v37  ;;  %v21108_v12 = vsub.f32 %v9998_v11, %v21104_v27  ;;  %v9916_v57 = vpop.trf.xlu0  ;;  %12739 = vmatmul.mubr.f32.gmra.mrb[74].mxu1 %v10321_v14  ;;  %v10330_v36 = vsub.f32 %v21096_v47, %v22412_v24 }
 0xe8c   : > { %12779 = vmatprep.mubr.f32.mxu0 %v20997_v21  ;;  %v10001_v15 = vsel %vm396_vm0, %v9916_v57, 0 }
 0xe8d   : > { %v22417_v32 = vand.u32 4294901760, %v21108_v12  ;;  %v21116_v62 = vand.u32 4294901760, %v10001_v15  ;;  %v10331_v40 = vand.u32 4294901760, %v10330_v36 }
 0xe8f   : > { %12780 = vmatmul.mubr.f32.gmra.mrb[112].mxu0 %v21007_v34  ;;  %v21120_v11 = vsub.f32 %v10001_v15, %v21116_v62  ;;  %v9917_v16 = vpop.trf.xlu0  ;;  %12741 = vmatprep.mubr.f32.mxu1 %v10331_v40  ;;  %v10340_v14 = vsub.f32 %v21108_v12, %v22417_v32 }
 0xe90   : > { %12782 = vmatprep.mubr.f32.mxu0 %v21018_v8  ;;  %v10004_v57 = vsel %vm396_vm0, %v9917_v16, 0 }
 0xe91   : > { %v22422_v24 = vand.u32 4294901760, %v21120_v11  ;;  %v21128_v21 = vand.u32 4294901760, %v10004_v57  ;;  %v10341_v36 = vand.u32 4294901760, %v10340_v14 }
 0xe93   : > { %12783 = vmatmul.mubr.f32.gmra.mrb[114].mxu0 %v21031_v54  ;;  %v21132_v15 = vsub.f32 %v10004_v57, %v21128_v21  ;;  %v9918_v34 = vpop.trf.xlu0  ;;  %12742 = vmatmul.mubr.f32.gmra.mrb[76].mxu1 %v10341_v36  ;;  %v10350_v40 = vsub.f32 %v21120_v11, %v22422_v24 }
 0xe94   : > { %12785 = vmatprep.mubr.f32.mxu0 %v21044_v43  ;;  %v10007_v16 = vsel %vm396_vm0, %v9918_v34, 0 }
 0xe95   : > { %v22427_v32 = vand.u32 4294901760, %v21132_v15  ;;  %v21140_v8 = vand.u32 4294901760, %v10007_v16  ;;  %v10351_v14 = vand.u32 4294901760, %v10350_v40 }
 0xe97   : > { %12786 = vmatmul.mubr.f32.gmra.mrb[116].mxu0 %v21056_v0  ;;  %v21144_v57 = vsub.f32 %v10007_v16, %v21140_v8  ;;  %v9919_v54 = vpop.trf.xlu0  ;;  %12744 = vmatprep.mubr.f32.mxu1 %v10351_v14  ;;  %v10360_v36 = vsub.f32 %v21132_v15, %v22427_v32 }
 0xe98   : > { %12788 = vmatprep.mubr.f32.mxu0 %v21068_v22  ;;  %v10010_v34 = vsel %vm396_vm0, %v9919_v54, 0 }
 0xe99   : > { %v22432_v24 = vand.u32 4294901760, %v21144_v57  ;;  %v21152_v43 = vand.u32 4294901760, %v10010_v34  ;;  %v10361_v40 = vand.u32 4294901760, %v10360_v36 }
 0xe9b   : > { %12789 = vmatmul.mubr.f32.gmra.mrb[118].mxu0 %v21080_v63  ;;  %v21156_v16 = vsub.f32 %v10010_v34, %v21152_v43  ;;  %v9920_v0 = vpop.trf.xlu0  ;;  %12745 = vmatmul.mubr.f32.gmra.mrb[78].mxu1 %v10361_v40  ;;  %v10370_v14 = vsub.f32 %v21144_v57, %v22432_v24 }
 0xe9c   : > { %12791 = vmatprep.mubr.f32.mxu0 %v21092_v42  ;;  %v10013_v54 = vsel %vm396_vm0, %v9920_v0, 0 }
 0xe9d   : > { %v22435_v32 = vand.u32 4294901760, %v21156_v16  ;;  %v21164_v22 = vand.u32 4294901760, %v10013_v54  ;;  %v10371_v36 = vand.u32 4294901760, %v10370_v14 }
 0xe9f   : > { %12792 = vmatmul.mubr.f32.gmra.mrb[120].mxu0 %v21104_v27  ;;  %v21168_v34 = vsub.f32 %v10013_v54, %v21164_v22  ;;  %v9921_v63 = vpop.trf.xlu0  ;;  %12747 = vmatprep.mubr.f32.mxu1 %v10371_v36  ;;  %v10380_v40 = vsub.f32 %v21156_v16, %v22435_v32 }
 0xea0   : > { %12794 = vmatprep.mubr.f32.mxu0 %v21116_v62  ;;  %v10016_v0 = vsel %vm396_vm0, %v9921_v63, 0 }
 0xea1   : > { %v10389_v24 = vand.u32 4294901760, %v21168_v34  ;;  %v21176_v42 = vand.u32 4294901760, %v10016_v0  ;;  %v10381_v14 = vand.u32 4294901760, %v10380_v40 }
 0xea3   : > { %12795 = vmatmul.mubr.f32.gmra.mrb[122].mxu0 %v21128_v21  ;;  %v21180_v54 = vsub.f32 %v10016_v0, %v21176_v42  ;;  %12748 = vmatmul.mubr.f32.gmra.mrb[80].mxu1 %v10381_v14  ;;  %v10390_v36 = vsub.f32 %v21168_v34, %v10389_v24  ;;  %v24178_v14 = vand.u32 4294901760, %v20842_v1 }
 0xea4   : > { %12797 = vmatprep.mubr.f32.mxu0 %v21140_v8 }
 0xea5   : > { %v22436_v32 = vand.u32 4294901760, %v21180_v54  ;;  %v10391_v63 = vand.u32 4294901760, %v10390_v36  ;;  %v24179_v36 = vand.u32 4294901760, %v20849_v49 }
 0xea7   : > { %12798 = vmatmul.mubr.f32.gmra.mrb[124].mxu0 %v21152_v43  ;;  %12750 = vmatprep.mubr.f32.mxu1 %v10391_v63  ;;  %v10400_v40 = vsub.f32 %v21180_v54, %v22436_v32  ;;  %v24180_v63 = vand.u32 4294901760, %v20862_v30  ;;  %v24183_v32 = vand.u32 4294901760, %v20890_v55 }
 0xea8   : > { %12800 = vmatprep.mubr.f32.mxu0 %v21164_v22 }
 0xea9   : > { %v10401_v0 = vand.u32 4294901760, %v10400_v40  ;;  %v24181_v40 = vand.u32 4294901760, %v20869_v50 }
 0xeab   : > { %12801 = vmatmul.mubr.f32.gmra.mrb[126].mxu0 %v21176_v42  ;;  %12751 = vmatmul.mubr.f32.gmra.mrb[82].mxu1 %v10401_v0  ;;  %v24182_v0 = vand.u32 4294901760, %v20880_v9 }
 0xeac   : > { %12805 = vmatprep.mubr.f32.mxu0 %v20842_v1  ;;  %v24184_v1 = vand.u32 4294901760, %v20900_v2 }
 0xeaf   : > { %12806 = vmatmul.mubr.f32.vlgmr.msra.gmra.mrb[96].mxu0 %v20849_v49  ;;  %v24185_v49 = vand.u32 4294901760, %v20910_v59 }
 0xeb0   : > { %12808 = vmatprep.mubr.f32.mxu0 %v20862_v30  ;;  %12854 = vmatpush3.xpose.msra.mxu0 %v20820_v6  ;;  %v24186_v30 = vand.u32 4294901760, %v20920_v28 }
 0xeb1   : > { %12903 = vmatprep.subr.mxu0 %v20834_v45 }
 0xeb3   : > { %12809 = vmatmul.mubr.f32.gmra.mrb[98].mxu0 %v20869_v50  ;;  %v24188_v50 = vand.u32 4294901760, %v20940_v31 }
 0xeb4   : > { %12811 = vmatprep.mubr.f32.mxu0 %v20880_v9  ;;  %v24189_v9 = vand.u32 4294901760, %v20950_v10 }
 0xeb7   : > { %12812 = vmatmul.mubr.f32.gmra.mrb[100].mxu0 %v20890_v55  ;;  %v24190_v55 = vand.u32 4294901760, %v20960_v52 }
 0xeb8   : > { %12814 = vmatprep.mubr.f32.mxu0 %v20900_v2  ;;  %v24191_v2 = vand.u32 4294901760, %v20970_v56 }
 0xebb   : > { %12815 = vmatmul.mubr.f32.gmra.mrb[102].mxu0 %v20910_v59  ;;  %v24192_v59 = vand.u32 4294901760, %v20980_v44 }
 0xebc   : > { %12817 = vmatprep.mubr.f32.mxu0 %v20920_v28  ;;  %v24193_v28 = vand.u32 4294901760, %v20990_v33 }
 0xebf   : > { %12818 = vmatmul.mubr.f32.gmra.mrb[104].mxu0 %v20930_v48 }
 0xec0   : > { %12820 = vmatprep.mubr.f32.mxu0 %v20940_v31  ;;  %v24195_v31 = vand.u32 4294901760, %v21010_v25 }
 0xec3   : > { %12821 = vmatmul.mubr.f32.gmra.mrb[106].mxu0 %v20950_v10  ;;  %v24196_v10 = vand.u32 4294901760, %v21025_v3 }
 0xec4   : > { %12823 = vmatprep.mubr.f32.mxu0 %v20960_v52  ;;  %v24197_v52 = vand.u32 4294901760, %v21036_v60 }
 0xec7   : > { %12824 = vmatmul.mubr.f32.gmra.mrb[108].mxu0 %v20970_v56  ;;  %v24198_v56 = vand.u32 4294901760, %v21048_v20 }
 0xec8   : > { %12826 = vmatprep.mubr.f32.mxu0 %v20980_v44  ;;  %v24199_v44 = vand.u32 4294901760, %v21060_v19 }
 0xecb   : > { %12827 = vmatmul.mubr.f32.gmra.mrb[110].mxu0 %v20990_v33  ;;  %v24200_v33 = vand.u32 4294901760, %v21072_v18 }
 0xecc   : > { %12829 = vmatprep.mubr.f32.mxu0 %v21003_v5 }
 0xecf   : > { %12830 = vmatmul.mubr.f32.gmra.mrb[112].mxu0 %v21010_v25  ;;  %v24202_v25 = vand.u32 4294901760, %v21096_v47 }
 0xed0   : > { %12832 = vmatprep.mubr.f32.mxu0 %v21025_v3  ;;  %v24203_v3 = vand.u32 4294901760, %v21108_v12 }
 0xed3   : > { %12833 = vmatmul.mubr.f32.gmra.mrb[114].mxu0 %v21036_v60  ;;  %v24204_v60 = vand.u32 4294901760, %v21120_v11 }
 0xed4   : > { %12835 = vmatprep.mubr.f32.mxu0 %v21048_v20  ;;  %v24206_v20 = vand.u32 4294901760, %v21144_v57 }
 0xed7   : > { %12836 = vmatmul.mubr.f32.gmra.mrb[116].mxu0 %v21060_v19  ;;  %v24207_v19 = vand.u32 4294901760, %v21156_v16 }
 0xed8   : > { %12838 = vmatprep.mubr.f32.mxu0 %v21072_v18  ;;  %v24208_v18 = vand.u32 4294901760, %v21180_v54 }
 0xedb   : > { %12839 = vmatmul.mubr.f32.gmra.mrb[118].mxu0 %v21084_v23 }
 0xedc   : > { %12841 = vmatprep.mubr.f32.mxu0 %v21096_v47 }
 0xedf   : > { %12842 = vmatmul.mubr.f32.gmra.mrb[120].mxu0 %v21108_v12  ;;  %v24210_v12 = vld [vmem:[#allocation88_spill] sm:$0xff] }
 0xee0   : > { %12844 = vmatprep.mubr.f32.mxu0 %v21120_v11 }
 0xee3   : > { %12845 = vmatmul.mubr.f32.gmra.mrb[122].mxu0 %v21132_v15 }
 0xee4   : > { %12847 = vmatprep.mubr.f32.mxu0 %v21144_v57  ;;  %v24212_v57 = vld [vmem:[#allocation134_spill] sm:$0xff] }
 0xee7   : > { %12848 = vmatmul.mubr.f32.gmra.mrb[124].mxu0 %v21156_v16  ;;  %v24213_v16 = vld [vmem:[#allocation138_spill] sm:$0xff] }
 0xee8   : > { %12850 = vmatprep.mubr.f32.mxu0 %v21168_v34 }
 0xeeb   : > { %12851 = vmatmul.mubr.f32.gmra.mrb[126].mxu0 %v21180_v54  ;;  %v24214_v54 = vld [vmem:[#allocation140_spill] sm:$0xff] }
 0xeec   : > { %12855 = vmatprep.mubr.f32.mxu0 %v24178_v14 }
 0xeef   : > { %12856 = vmatmul.mubr.f32.vlgmr.msra.gmra.mrb[96].mxu0 %v24179_v36  ;;  %v24215_v36 = vld [vmem:[#allocation44_spill] sm:$0xff] }
 0xef0   : > { %12858 = vmatprep.mubr.f32.mxu0 %v24180_v63  ;;  %12904 = vmatpush3.xpose.msra.mxu0 %v20834_v45  ;;  %v24187_v45 = vand.u32 4294901760, %v20930_v48  ;;  %v24194_v48 = vand.u32 4294901760, %v21003_v5  ;;  %v24201_v5 = vand.u32 4294901760, %v21084_v23  ;;  %v24209_v23 = vld [vmem:[#allocation61_spill] sm:$0xff]  ;;  %v24216_v63 = vld [vmem:[#allocation48_spill] sm:$0xff] }
 0xef1   : > { %12953 = vmatprep.subr.mxu0 %v20820_v6 }
 0xef3   : > { %12859 = vmatmul.mubr.f32.gmra.mrb[98].mxu0 %v24181_v40  ;;  %v24217_v40 = vld [vmem:[#allocation143_spill] sm:$0xff] }
 0xef4   : > { %12861 = vmatprep.mubr.f32.mxu0 %v24182_v0 }
 0xef7   : > { %12862 = vmatmul.mubr.f32.gmra.mrb[100].mxu0 %v24183_v32  ;;  %v24205_v32 = vand.u32 4294901760, %v21132_v15  ;;  %v24211_v15 = vld [vmem:[#allocation89_spill] sm:$0xff] }
 0xef8   : > { %12864 = vmatprep.mubr.f32.mxu0 %v24184_v1 }
 0xefb   : > { %12865 = vmatmul.mubr.f32.gmra.mrb[102].mxu0 %v24185_v49 }
 0xefc   : > { %12867 = vmatprep.mubr.f32.mxu0 %v24186_v30 }
 0xeff   : > { %12868 = vmatmul.mubr.f32.gmra.mrb[104].mxu0 %v24187_v45 }
 0xf00   : > { %12870 = vmatprep.mubr.f32.mxu0 %v24188_v50 }
 0xf03   : > { %12871 = vmatmul.mubr.f32.gmra.mrb[106].mxu0 %v24189_v9 }
 0xf04   : > { %12873 = vmatprep.mubr.f32.mxu0 %v24190_v55 }
 0xf07   : > { %12874 = vmatmul.mubr.f32.gmra.mrb[108].mxu0 %v24191_v2 }
 0xf08   : > { %12876 = vmatprep.mubr.f32.mxu0 %v24192_v59 }
 0xf0b   : > { %12877 = vmatmul.mubr.f32.gmra.mrb[110].mxu0 %v24193_v28 }
 0xf0c   : > { %12879 = vmatprep.mubr.f32.mxu0 %v24194_v48 }
 0xf0f   : > { %12880 = vmatmul.mubr.f32.gmra.mrb[112].mxu0 %v24195_v31 }
 0xf10   : > { %12882 = vmatprep.mubr.f32.mxu0 %v24196_v10 }
 0xf13   : > { %12883 = vmatmul.mubr.f32.gmra.mrb[114].mxu0 %v24197_v52 }
 0xf14   : > { %12885 = vmatprep.mubr.f32.mxu0 %v24198_v56 }
 0xf17   : > { %12886 = vmatmul.mubr.f32.gmra.mrb[116].mxu0 %v24199_v44 }
 0xf18   : > { %12888 = vmatprep.mubr.f32.mxu0 %v24200_v33 }
 0xf1b   : > { %12889 = vmatmul.mubr.f32.gmra.mrb[118].mxu0 %v24201_v5 }
 0xf1c   : > { %12891 = vmatprep.mubr.f32.mxu0 %v24202_v25 }
 0xf1f   : > { %12892 = vmatmul.mubr.f32.gmra.mrb[120].mxu0 %v24203_v3 }
 0xf20   : > { %12894 = vmatprep.mubr.f32.mxu0 %v24204_v60 }
 0xf23   : > { %12895 = vmatmul.mubr.f32.gmra.mrb[122].mxu0 %v24205_v32 }
 0xf24   : > { %12897 = vmatprep.mubr.f32.mxu0 %v24206_v20 }
 0xf27   : > { %12898 = vmatmul.mubr.f32.gmra.mrb[124].mxu0 %v24207_v19 }
 0xf28   : > { %12900 = vmatprep.mubr.f32.mxu0 %v10389_v24 }
 0xf2b   : > { %12901 = vmatmul.mubr.f32.gmra.mrb[126].mxu0 %v24208_v18 }
 0xf2c   : > { %12905 = vmatprep.mubr.f32.mxu0 %v20839_v41 }
 0xf2f   : > { %12906 = vmatmul.mubr.f32.vlgmr.msra.gmra.mrb[96].mxu0 %v20846_v29 }
 0xf30   : > { %12908 = vmatprep.mubr.f32.mxu0 %v20856_v53  ;;  %12954 = vmatpush3.xpose.msra.mxu0 %v20820_v6 }
 0xf33   : > { %12909 = vmatmul.mubr.f32.gmra.mrb[98].mxu0 %v20866_v35 }
 0xf34   : > { %12911 = vmatprep.mubr.f32.mxu0 %v20876_v39 }
 0xf37   : > { %12912 = vmatmul.mubr.f32.gmra.mrb[100].mxu0 %v20887_v13 }
 0xf38   : > { %12914 = vmatprep.mubr.f32.mxu0 %v20897_v4 }
 0xf3b   : > { %12915 = vmatmul.mubr.f32.gmra.mrb[102].mxu0 %v20907_v46 }
 0xf3c   : > { %12917 = vmatprep.mubr.f32.mxu0 %v20917_v17 }
 0xf3f   : > { %12918 = vmatmul.mubr.f32.gmra.mrb[104].mxu0 %v20927_v26 }
 0xf40   : > { %12920 = vmatprep.mubr.f32.mxu0 %v20937_v51 }
 0xf43   : > { %12921 = vmatmul.mubr.f32.gmra.mrb[106].mxu0 %v20947_v38 }
 0xf44   : > { %12923 = vmatprep.mubr.f32.mxu0 %v20957_v58 }
 0xf46   : > { %v21307_v6 = vpop.f32.mrb[68].mxu1 }
 0xf47   : > { %12924 = vmatmul.mubr.f32.gmra.mrb[108].mxu0 %v20967_v61  ;;  %v21310_v24 = vpop.f32.mrb[69].mxu1 }
 0xf48   : > { %12926 = vmatprep.mubr.f32.mxu0 %v20977_v7 }
 0xf4b   : > { %12927 = vmatmul.mubr.f32.gmra.mrb[110].mxu0 %v20987_v37 }
 0xf4c   : > { %12929 = vmatprep.mubr.f32.mxu0 %v24209_v23 }
 0xf4e   : > { %v21315_v47 = vpop.f32.mrb[70].mxu1 }
 0xf4f   : > { %12930 = vmatmul.mubr.f32.gmra.mrb[112].mxu0 %v24210_v12  ;;  %v21318_v11 = vpop.f32.mrb[71].mxu1 }
 0xf50   : > { %12932 = vmatprep.mubr.f32.mxu0 %v24211_v15 }
 0xf53   : > { %12933 = vmatmul.mubr.f32.gmra.mrb[114].mxu0 %v24212_v57 }
 0xf54   : > { %12935 = vmatprep.mubr.f32.mxu0 %v24213_v16 }
 0xf56   : > { %v21323_v34 = vpop.f32.mrb[72].mxu1 }
 0xf57   : > { %12936 = vmatmul.mubr.f32.gmra.mrb[116].mxu0 %v24214_v54  ;;  %v21326_v14 = vpop.f32.mrb[73].mxu1 }
 0xf58   : > { %12938 = vmatprep.mubr.f32.mxu0 %v24215_v36 }
 0xf5b   : > { %12939 = vmatmul.mubr.f32.gmra.mrb[118].mxu0 %v24216_v63 }
 0xf5c   : > { %12941 = vmatprep.mubr.f32.mxu0 %v24217_v40 }
 0xf5e   : > { %v21331_v0 = vpop.f32.mrb[74].mxu1 }
 0xf5f   : > { %12942 = vmatmul.mubr.f32.gmra.mrb[120].mxu0 %v21104_v27  ;;  %v21334_v1 = vpop.f32.mrb[75].mxu1 }
 0xf60   : > { %12944 = vmatprep.mubr.f32.mxu0 %v21116_v62 }
 0xf63   : > { %12945 = vmatmul.mubr.f32.gmra.mrb[122].mxu0 %v21128_v21 }
 0xf64   : > { %12947 = vmatprep.mubr.f32.mxu0 %v21140_v8 }
 0xf66   : > { %v21339_v49 = vpop.f32.mrb[76].mxu1 }
 0xf67   : > { %12948 = vmatmul.mubr.f32.gmra.mrb[124].mxu0 %v21152_v43  ;;  %v21342_v30 = vpop.f32.mrb[77].mxu1 }
 0xf68   : > { %12950 = vmatprep.mubr.f32.mxu0 %v21164_v22 }
 0xf6b   : > { %12951 = vmatmul.mubr.f32.gmra.mrb[126].mxu0 %v21176_v42 }
 0xf6c   : > { %12955 = vmatprep.mubr.f32.mxu0 %v20839_v41 }
 0xf6e   : > { %v21347_v45 = vpop.f32.mrb[78].mxu1 }
 0xf6f   : > { %12956 = vmatmul.mubr.f32.vlgmr.msra.gmra.mrb[96].mxu0 %v20846_v29  ;;  %v21350_v50 = vpop.f32.mrb[79].mxu1 }
 0xf70   : > { %12958 = vmatprep.mubr.f32.mxu0 %v20856_v53 }
 0xf73   : > { %12959 = vmatmul.mubr.f32.gmra.mrb[98].mxu0 %v20866_v35 }
 0xf74   : > { %12961 = vmatprep.mubr.f32.mxu0 %v20876_v39 }
 0xf76   : > { %v21355_v9 = vpop.f32.mrb[80].mxu1 }
 0xf77   : > { %12962 = vmatmul.mubr.f32.gmra.mrb[100].mxu0 %v20887_v13  ;;  %v21358_v55 = vpop.f32.mrb[81].mxu1 }
 0xf78   : > { %12964 = vmatprep.mubr.f32.mxu0 %v20897_v4 }
 0xf7b   : > { %12965 = vmatmul.mubr.f32.gmra.mrb[102].mxu0 %v20907_v46 }
 0xf7c   : > { %12967 = vmatprep.mubr.f32.mxu0 %v20917_v17 }
 0xf7e   : > { %v21363_v41 = vpop.f32.mrb[82].mxu1 }
 0xf7f   : > { %12968 = vmatmul.mubr.f32.gmra.mrb[104].mxu0 %v20927_v26  ;;  %v21366_v29 = vpop.f32.mrb[83].mxu1 }
 0xf80   : > { %12970 = vmatprep.mubr.f32.mxu0 %v20937_v51 }
 0xf83   : > { %12971 = vmatmul.mubr.f32.gmra.mrb[106].mxu0 %v20947_v38 }
 0xf84   : > { %12973 = vmatprep.mubr.f32.mxu0 %v20957_v58 }
 0xf87   : > { %12974 = vmatmul.mubr.f32.gmra.mrb[108].mxu0 %v20967_v61 }
 0xf88   : > { %12976 = vmatprep.mubr.f32.mxu0 %v20977_v7 }
 0xf8b   : > { %12977 = vmatmul.mubr.f32.gmra.mrb[110].mxu0 %v20987_v37 }
 0xf8c   : > { %12979 = vmatprep.mubr.f32.mxu0 %v24209_v23 }
 0xf8f   : > { %12980 = vmatmul.mubr.f32.gmra.mrb[112].mxu0 %v24210_v12 }
 0xf90   : > { %12982 = vmatprep.mubr.f32.mxu0 %v24211_v15 }
 0xf93   : > { %12983 = vmatmul.mubr.f32.gmra.mrb[114].mxu0 %v24212_v57 }
 0xf94   : > { %12985 = vmatprep.mubr.f32.mxu0 %v24213_v16 }
 0xf97   : > { %12986 = vmatmul.mubr.f32.gmra.mrb[116].mxu0 %v24214_v54 }
 0xf98   : > { %12988 = vmatprep.mubr.f32.mxu0 %v24215_v36  ;;  %v15086_v36 = vld [vmem:[%s15248_s17] sm:$0xff] }
 0xf9b   : > { %12989 = vmatmul.mubr.f32.gmra.mrb[118].mxu0 %v24216_v63 }
 0xf9c   : > { %12991 = vmatprep.mubr.f32.mxu0 %v24217_v40 }
 0xf9f   : > { %12992 = vmatmul.mubr.f32.gmra.mrb[120].mxu0 %v21104_v27 }
 0xfa0   : > { %12994 = vmatprep.mubr.f32.mxu0 %v21116_v62 }
 0xfa3   : > { %12995 = vmatmul.mubr.f32.gmra.mrb[122].mxu0 %v21128_v21 }
 0xfa4   : > { %12997 = vmatprep.mubr.f32.mxu0 %v21140_v8 }
 0xfa7   : > { %12998 = vmatmul.mubr.f32.gmra.mrb[124].mxu0 %v21152_v43 }
 0xfa8   : > { %13000 = vmatprep.mubr.f32.mxu0 %v21164_v22 }
 0xfab   : > { %13001 = vmatmul.mubr.f32.gmra.mrb[126].mxu0 %v21176_v42 }
0x1042   : > { %v12957_v53 = vpop.f32.mrb[96].mxu0 }
0x1043   : > { %v11610_v35 = vpop.f32.mrb[97].mxu0 }
0x1044   : > { %11800 = vxpose.xlu1.b32.start [1/16] (narrow) %v11610_v35, 8 }
0x1046   : > { %v12960_v39 = vpop.f32.mrb[98].mxu0 }
0x1047   : > { %v11622_v13 = vpop.f32.mrb[99].mxu0 }
0x1048   : > { %11801 = vxpose.xlu1.b32.cont [2/16] (narrow) %v12957_v53, 8 }
0x104a   : > { %v12963_v4 = vpop.f32.mrb[100].mxu0 }
0x104b   : > { %v11634_v27 = vpop.f32.mrb[101].mxu0 }
0x104c   : > { %11802 = vxpose.xlu1.b32.cont [3/16] (narrow) %v11622_v13, 8 }
0x104e   : > { %v12966_v62 = vpop.f32.mrb[102].mxu0 }
0x104f   : > { %v11646_v46 = vpop.f32.mrb[103].mxu0 }
0x1050   : > { %11803 = vxpose.xlu1.b32.cont [4/16] (narrow) %v12960_v39, 8 }
0x1052   : > { %v12969_v17 = vpop.f32.mrb[104].mxu0 }
0x1053   : > { %v11658_v26 = vpop.f32.mrb[105].mxu0 }
0x1054   : > { %11804 = vxpose.xlu1.b32.cont [5/16] (narrow) %v11634_v27, 8 }
0x1056   : > { %v12972_v51 = vpop.f32.mrb[106].mxu0 }
0x1057   : > { %v11670_v38 = vpop.f32.mrb[107].mxu0 }
0x1058   : > { %11805 = vxpose.xlu1.b32.cont [6/16] (narrow) %v12963_v4, 8 }
0x105a   : > { %v12975_v22 = vpop.f32.mrb[108].mxu0 }
0x105b   : > { %v11682_v42 = vpop.f32.mrb[109].mxu0 }
0x105c   : > { %11806 = vxpose.xlu1.b32.cont [7/16] (narrow) %v11646_v46, 8 }
0x105e   : > { %v12978_v58 = vpop.f32.mrb[110].mxu0 }
0x105f   : > { %v11694_v61 = vpop.f32.mrb[111].mxu0 }
0x1060   : > { %11807 = vxpose.xlu1.b32.cont [8/16] (narrow) %v12966_v62, 8 }
0x1062   : > { %v12981_v7 = vpop.f32.mrb[112].mxu0 }
0x1063   : > { %v13797_v37 = vadd.f32 %v12981_v7, %v21307_v6  ;;  %v11706_v21 = vpop.f32.mrb[113].mxu0 }
0x1064   : > { %v13798_v8 = vadd.f32 %v11706_v21, %v21310_v24  ;;  %11808 = vxpose.xlu1.b32.cont [9/16] (narrow) %v11658_v26, 8 }
0x1066   : > { %v12984_v43 = vpop.f32.mrb[114].mxu0  ;;  %11832 = vxpose.xlu0.b32.start [1/16] (narrow) %v13798_v8, 8 }
0x1067   : > { %v13799_v2 = vadd.f32 %v12984_v43, %v21315_v47  ;;  %v11718_v59 = vpop.f32.mrb[115].mxu0 }
0x1068   : > { %v13800_v28 = vadd.f32 %v11718_v59, %v21318_v11  ;;  %11809 = vxpose.xlu1.b32.cont [10/16] (narrow) %v12969_v17, 8 }
0x106a   : > { %v12987_v48 = vpop.f32.mrb[116].mxu0  ;;  %11833 = vxpose.xlu0.b32.cont [2/16] (narrow) %v13797_v37, 8 }
0x106b   : > { %v13801_v31 = vadd.f32 %v12987_v48, %v21323_v34  ;;  %v11730_v10 = vpop.f32.mrb[117].mxu0  ;;  %v11867_v34 = vpop.permute.xlu1 %11866 }
0x106c   : > { %v13802_v52 = vadd.f32 %v11730_v10, %v21326_v14  ;;  %11810 = vxpose.xlu1.b32.cont [11/16] (narrow) %v11670_v38, 8 }
0x106e   : > { %v12990_v56 = vpop.f32.mrb[118].mxu0  ;;  %11834 = vxpose.xlu0.b32.cont [3/16] (narrow) %v13800_v28, 8 }
0x106f   : > { %v13803_v44 = vadd.f32 %v12990_v56, %v21331_v0  ;;  %v11742_v33 = vpop.f32.mrb[119].mxu0 }
0x1070   : > { %v13804_v5 = vadd.f32 %v11742_v33, %v21334_v1  ;;  %11811 = vxpose.xlu1.b32.cont [12/16] (narrow) %v12972_v51, 8  ;;  %v15087_v1 = vld [vmem:[%s15248_s17 + $0x8] sm:$0xff]  ;;  %s15092_s17 = sshll.u32 %s15154_s28, 4  ;;  %s15093_s17 = int_to_ptr.vmem [resolvable:$false] %s15092_s17 }
0x1071   : > { %s15094_s22 = scalar_lea.vmem %s15093_s17, 512  ;;  %p15095_p0 = scmp.lt.s32.totalorder %s21415_s15, %s15093_s17 }
0x1072   : > { %v12993_v25 = vpop.f32.mrb[120].mxu0  ;;  %11835 = vxpose.xlu0.b32.cont [4/16] (narrow) %v13799_v2, 8  ;;  %p15096_p1 = scmp.lt.s32.totalorder %s15094_s22, %s15088_s21 }
0x1073   : > { %v13805_v3 = vadd.f32 %v12993_v25, %v21339_v49  ;;  %v11754_v60 = vpop.f32.mrb[121].mxu0 }
0x1074   : > { %v13806_v32 = vadd.f32 %v11754_v60, %v21342_v30  ;;  %11812 = vxpose.xlu1.b32.cont [13/16] (narrow) %v11682_v42, 8  ;;  %p15097_p2 = por %p15096_p1, %p15095_p0 }
0x1076   : > { %v12996_v20 = vpop.f32.mrb[122].mxu0  ;;  %11836 = vxpose.xlu0.b32.cont [5/16] (narrow) %v13802_v52, 8  ;;  %p15098_p3 = pnand %p15097_p2, %p15091_p13 }
0x1077   : > { %v13807_v19 = vadd.f32 %v12996_v20, %v21347_v45  ;;  %v11766_v18 = vpop.f32.mrb[123].mxu0 }
0x1078   : > { %v13808_v6 = vadd.f32 %v11766_v18, %v21350_v50  ;;  %11813 = vxpose.xlu1.b32.cont [14/16] (narrow) %v12975_v22, 8 }
0x107a   : > { %v12999_v24 = vpop.f32.mrb[124].mxu0  ;;  %11837 = vxpose.xlu0.b32.cont [6/16] (narrow) %v13801_v31, 8 }
0x107b   : > { %v13809_v23 = vadd.f32 %v12999_v24, %v21355_v9  ;;  %v11778_v47 = vpop.f32.mrb[125].mxu0 }
0x107c   : > { %v13810_v12 = vadd.f32 %v11778_v47, %v21358_v55  ;;  %11814 = vxpose.xlu1.b32.cont [15/16] (narrow) %v11694_v61, 8 }
0x107e   : > { %v13002_v11 = vpop.f32.mrb[126].mxu0  ;;  %11838 = vxpose.xlu0.b32.cont [7/16] (narrow) %v13804_v5, 8 }
0x107f   : > { %v13811_v15 = vadd.f32 %v13002_v11, %v21363_v41  ;;  %v11790_v57 = vpop.f32.mrb[127].mxu0 }
0x1080   : > { %v13812_v16 = vadd.f32 %v11790_v57, %v21366_v29  ;;  %11815 = vxpose.xlu1.b32.end [16/16] (narrow) %v12978_v58, 8 }
0x1082   : > { %11839 = vxpose.xlu0.b32.cont [8/16] (narrow) %v13803_v44, 8 }
0x1086   : > { %11840 = vxpose.xlu0.b32.cont [9/16] (narrow) %v13806_v32, 8 }
0x108a   : > { %11841 = vxpose.xlu0.b32.cont [10/16] (narrow) %v13805_v3, 8 }
0x108e   : > { %11842 = vxpose.xlu0.b32.cont [11/16] (narrow) %v13808_v6, 8 }
0x1092   : > { %11843 = vxpose.xlu0.b32.cont [12/16] (narrow) %v13807_v19, 8 }
0x1096   : > { %11844 = vxpose.xlu0.b32.cont [13/16] (narrow) %v13810_v12, 8 }
0x109a   : > { %11845 = vxpose.xlu0.b32.cont [14/16] (narrow) %v13809_v23, 8 }
0x109e   : > { %11846 = vxpose.xlu0.b32.cont [15/16] (narrow) %v13812_v16, 8 }
0x10a2   : > { %11847 = vxpose.xlu0.b32.end [16/16] (narrow) %v13811_v15, 8 }
0x10c4   : > { %v11816_v54 = vpop.trf.xlu1 }
0x10c5   : > { %v11869_v14 = vadd.f32 %v11867_v34, %v11816_v54 }
0x10c7   : > { %v11871_v63 = vadd.f32 %v15086_v36, %v11869_v14 }
0x10c9   : > { %11873 = vst [vmem:[%s271_s13] sm:$0xff] %v11871_v63 }
0x10e6   : > { %v11848_v40 = vpop.trf.xlu0 }
0x10e7   : > { %v11870_v0 = vadd.f32 %v11867_v34, %v11848_v40 }
0x10e9   : > { %v11872_v49 = vadd.f32 %v15087_v1, %v11870_v0 }
0x10eb   : > { %11874 = vst [vmem:[%s271_s13 + $0x8] sm:$0xff] %v11872_v49 }
0x10ec   : > { %15101 = shalt.err (!%p15098_p3)
}
0x10ed   : > { %s15102_s23 = scalar_lea.hbm %s21413_s19, 256  ;;  %s15106_s9 = scalar_lea.hbm %s21462_s7, 512 }
0x10ee   : > { %p15103_p4 = scmp.ne.s32.totalorder %s21413_s19, %s15102_s23  ;;  %p15107_p9 = scmp.lt.u32.totalorder %s21413_s19, %s21462_s7 }
0x10ef   : > { %p15108_p10 = scmp.lt.u32.totalorder %s15106_s9, %s15102_s23  ;;  %p15110_p12 = scmp.lt.u32.totalorder %s15102_s23, %s21413_s19 }
0x10f0   : > { %p15104_p7 = pnand %p15103_p4, %p15233_p5 }
0x10f1   : > { %p15109_p11 = por %p15108_p10, %p15107_p9 }
0x10f2   : > { %p15105_p8 = pneg %p15104_p7 }
0x10f3   : > { %p15111_p13 = por %p15110_p12, %p15109_p11 }
0x10f5   : > { %p15112_p0 = pnand %p15111_p13, %p15105_p8 }
0x10f7   : > { %15115 = shalt.err (!%p15112_p0)
}
0x10f8   : > { %14777 = dma.vmem_to_hbm [thread:$0]  (%p15233_p5), %s21415_s15, 256, %s21413_s19, %s11876_s20  }
0x10f9 PF: > { %p14783_p1 = scmp.ge.s32.totalorder %s15150_s27, 2  ;;  %s11902_s16 = sand.u32 1, %s15138_s24  }
0x10fa   : > { %s11903_s18 = scalar_lea.sflag [#allocation3], %s11902_s16 }
0x10fb   : > { %p14780_p2 = pnand %p14783_p1, %p15237_p6 }
0x10fd   : > { %15133 = dma.done.wait (!%p14780_p2), %s11903_s18, 256  }
0x10fe   : > { %15135 = vsyncadd (!%p14780_p2), %s11903_s18, 4294967040  ;;  %p17_p3 = scmp.ge.s32.totalorder %s15220_s30, 4   ;;  %s24218_s24 = smov %s15142_s25 }
0x10ff   : > { %s24219_s25 = smov %s15146_s26  ;;  %s24220_s26 = smov %s15231_s10 }
0x1100   : > { %s24221_s27 = smov %s15220_s30  ;;  %19 = sbr.rel (!%p17_p3) target bundleno = 3 (0x3), region = 83 }
0x1107   :  { %11908 = vsyncpa [#allocation3], 1 }
0x1108   :  { %11910 = vsyncpa [#allocation3 + $0x1], 1 }

</bundles_post_ra>
